<compile_context>
chip_gen: v7x
topology: tpu7x:2x2x1
jax: 0.10.0
libtpu: 0.0.40
codegen_flags: <defaults>
</compile_context>

<pallas_src>
import jax
import jax.numpy as jnp
from jax.experimental import pallas as pl
from jax.experimental.pallas import tpu as pltpu


def _round_up(x, m):
    return ((x + m - 1) // m) * m


def _cdiv(a, b):
    return (a + b - 1) // b


def _pick_batch_tile(padded_b):
    """padded_b is a multiple of 8; prefer >=2 grid steps, cap tile at 32."""
    for tb in (32, 16, 8):
        if padded_b % tb == 0 and padded_b // tb >= 2:
            return tb
    for tb in (32, 16, 8):
        if padded_b % tb == 0:
            return tb
    return padded_b


def _input_quotient_req(cfg):
    """Max quotient index (+count) this layer reads from its phase-split input."""
    req = 0
    for rp in range(cfg["P_out"]):
        for kw in range(cfg["k"]):
            c0 = cfg["s"] * rp + kw
            req = max(req, c0 // cfg["P_in"] + cfg["WOq"])
    return req


def _make_kernel(eff, tb):
    """Fused conv-stack + FC kernel body.  All loop bounds / slices are static."""
    n_layers = len(eff)

    def kernel(*refs):
        x_ref = refs[0]                                   # (1, H*P, WQ*tb, CI)  bf16
        a_ref = refs[1]                                   # (tb, A)              f32
        w_refs = [refs[2 + 2 * l] for l in range(n_layers)]   # (k*k, CI, CO)   bf16
        b_refs = [refs[3 + 2 * l] for l in range(n_layers)]   # (1, CO)         f32
        wfc_ref = refs[2 + 2 * n_layers]                  # (HO*WO*CO, Fp)       bf16
        wa_ref = refs[3 + 2 * n_layers]                   # (A, Fp)              bf16
        bfc_ref = refs[4 + 2 * n_layers]                  # (1, Fp)              f32
        o_ref = refs[5 + 2 * n_layers]                    # (tb, Fp)             f32
        scratch = list(refs[6 + 2 * n_layers:])           # per-layer intermediates

        # FC accumulator: action contribution (one batched matmul) + bias.
        fc_acc = jnp.dot(a_ref[...].astype(jnp.bfloat16), wa_ref[...],
                         preferred_element_type=jnp.float32) + bfc_ref[...]

        for l, cfg in enumerate(eff):
            k, s = cfg["k"], cfg["s"]
            p_in, p_out = cfg["P_in"], cfg["P_out"]
            ho_n, wo_n, c_out = cfg["HO"], cfg["WO"], cfg["CO"]
            woq = cfg["WOq"]
            m = woq * tb
            is_last = l == n_layers - 1
            w_all = w_refs[l][...]                                   # (k*k, CI, CO)
            bias_init = jnp.broadcast_to(b_refs[l][...], (m, c_out))  # hoisted, f32

            for ho in range(ho_n):
                for rp in range(p_out):
                    acc = bias_init
                    for kh in range(k):
                        h_in = s * ho + kh
                        for kw in range(k):
                            c0 = s * rp + kw
                            rin, q0 = c0 % p_in, c0 // p_in
                            hp = h_in * p_in + rin
                            lo, hi = q0 * tb, (q0 + woq) * tb
                            if l == 0:
                                slab = x_ref[0:1, hp:hp + 1, lo:hi, :][0, 0]
                            else:
                                slab = scratch[l - 1][hp:hp + 1, lo:hi, :][0]
                            acc = acc + jnp.dot(slab, w_all[kh * k + kw],
                                                preferred_element_type=jnp.float32)
                    row = jnp.maximum(acc, 0.0)                       # (m, CO) f32
                    if not is_last:
                        idx = ho * p_out + rp
                        scratch[l][idx:idx + 1, 0:m, :] = (
                            row.astype(scratch[l].dtype)[None])
                    else:
                        # Last layer: P_out == 1, rows of `row` ordered (wo, b).
                        # Fold into the FC with M = tb chunks; the FC weight
                        # matrix streams through the MXU exactly once.
                        for wo in range(wo_n):
                            chunk = row[wo * tb:(wo + 1) * tb, :]
                            r0 = (ho * wo_n + wo) * c_out
                            fc_acc = fc_acc + jnp.dot(
                                chunk.astype(jnp.bfloat16),
                                wfc_ref[r0:r0 + c_out, :],
                                preferred_element_type=jnp.float32)

        o_ref[...] = jnp.maximum(fc_acc, 0.0).astype(o_ref.dtype)

    return kernel


class PixelEncoderWithActionPallas:
    """JAX/Pallas port of d3rlpy's PixelEncoderWithAction (forward pass only)."""

    def __init__(self, observation_shape, action_size, filters=None,
                 feature_size=512, key=None, discrete_action=False,
                 use_batch_norm=False, dropout_rate=None):
        if filters is None:
            filters = [(32, 8, 4), (64, 4, 2), (64, 3, 1)]
        if feature_size is None:
            feature_size = 512
        if key is None:
            key = jax.random.PRNGKey(0)
        # TODO(synk): BatchNorm / Dropout branches (off by module defaults) are
        # not implemented.
        assert not use_batch_norm and dropout_rate is None

        self.observation_shape = tuple(observation_shape)
        self._action_size = int(action_size)
        self.feature_size = int(feature_size)
        self.discrete_action = bool(discrete_action)

        c_in, h, w = self.observation_shape
        in_channels = [c_in] + [f[0] for f in filters[:-1]]

        # ---- raw torch-equivalent parameters (reference uses these) ----
        self.conv_raw = []
        spatial = []
        hh, ww = h, w
        for in_ch, (out_ch, k, s) in zip(in_channels, filters):
            key, k_w, k_b = jax.random.split(key, 3)
            fan_in = in_ch * k * k
            bound = 1.0 / float(fan_in) ** 0.5
            w_oihw = jax.random.uniform(k_w, (out_ch, in_ch, k, k),
                                        jnp.float32, -bound, bound)
            bias = jax.random.uniform(k_b, (out_ch,), jnp.float32, -bound, bound)
            self.conv_raw.append((w_oihw, bias, s))
            ho = (hh - k) // s + 1
            wo = (ww - k) // s + 1
            spatial.append((hh, ww, ho, wo))
            hh, ww = ho, wo

        c_last = filters[-1][0]
        conv_feat = c_last * hh * ww
        lin_in = conv_feat + self._action_size
        key, k_w, k_b = jax.random.split(key, 3)
        bound = 1.0 / float(lin_in) ** 0.5
        # Stored transposed vs torch: (in_features, out_features); rows follow
        # PyTorch's NCHW flatten order (c, h, w), then the action.
        self.fc_w = jax.random.uniform(k_w, (lin_in, self.feature_size),
                                       jnp.float32, -bound, bound)
        self.fc_b = jax.random.uniform(k_b, (self.feature_size,),
                                       jnp.float32, -bound, bound)

        # ---- layer-0 space-to-depth (only when dims are divisible) ----
        k0, s0 = filters[0][1], filters[0][2]
        self._s2d = s0 if (s0 > 1 and k0 % s0 == 0 and h % s0 == 0
                           and w % s0 == 0) else 1

        # ---- effective per-layer geometry used by the kernel ----
        eff = []
        for l, (out_ch, k, s) in enumerate(filters):
            in_ch = in_channels[l]
            hi, wi, ho, wo = spatial[l]
            if l == 0 and self._s2d > 1:
                f = self._s2d
                eff.append(dict(k=k // f, s=1, CI=in_ch * f * f, CO=out_ch,
                                HI=hi // f, WI=wi // f, HO=ho, WO=wo))
            else:
                eff.append(dict(k=k, s=s, CI=in_ch, CO=out_ch,
                                HI=hi, WI=wi, HO=ho, WO=wo))
        n = len(eff)
        p = [1] * (n + 1)
        for l in range(n - 1, -1, -1):
            p[l] = eff[l]["s"] * p[l + 1]
        for l in range(n):
            eff[l]["P_in"] = p[l]
            eff[l]["P_out"] = p[l + 1]
            eff[l]["WOq"] = _cdiv(eff[l]["WO"], p[l + 1])
        # stored quotient length of the layer-0 input (prepared by the wrapper)
        self._x_wq = max(_cdiv(eff[0]["WI"], eff[0]["P_in"]),
                         _input_quotient_req(eff[0]))
        # stored quotient length of each intermediate (output l / input l+1)
        for l in range(n - 1):
            eff[l]["WQ_store"] = max(eff[l]["WOq"],
                                     _input_quotient_req(eff[l + 1]))
        self._eff = eff

        # ---- kernel-side conv weights (k*k, CI, CO) bf16, biases (1, CO) f32 ----
        self._conv_w = []
        self._conv_b = []
        for l, (w_oihw, bias, s) in enumerate(self.conv_raw):
            out_ch, in_ch, k, _ = w_oihw.shape
            if l == 0 and self._s2d > 1:
                f = self._s2d
                kk = k // f
                wr = w_oihw.reshape(out_ch, in_ch, kk, f, kk, f)
                wr = jnp.transpose(wr, (2, 4, 3, 5, 1, 0))   # (qh, qw, rh, rw, ci, co)
                wmat = wr.reshape(kk * kk, f * f * in_ch, out_ch)
            else:
                wr = jnp.transpose(w_oihw, (2, 3, 1, 0))     # (kh, kw, ci, co)
                wmat = wr.reshape(k * k, in_ch, out_ch)
            self._conv_w.append(wmat.astype(jnp.bfloat16))
            self._conv_b.append(bias.reshape(1, out_ch).astype(jnp.float32))

        # ---- kernel-side FC params: rows re-ordered to (ho, wo, co), padded ----
        last = eff[-1]
        feat_p = _round_up(self.feature_size, 128)
        self._feat_p = feat_p
        pad_cols = feat_p - self.feature_size
        wc = self.fc_w[:conv_feat].reshape(last["CO"], last["HO"], last["WO"],
                                           self.feature_size)
        wc = jnp.transpose(wc, (1, 2, 0, 3)).reshape(
            last["HO"] * last["WO"] * last["CO"], self.feature_size)
        self._fc_wc = jnp.pad(wc, ((0, 0), (0, pad_cols))).astype(jnp.bfloat16)
        self._fc_wa = jnp.pad(self.fc_w[conv_feat:],
                              ((0, 0), (0, pad_cols))).astype(jnp.bfloat16)
        self._fc_b = jnp.pad(self.fc_b, (0, pad_cols)).reshape(1, feat_p)

    @property
    def action_size(self):
        return self._action_size

    def get_feature_size(self):
        return self.feature_size

    def __call__(self, x_nchw, action):
        b = x_nchw.shape[0]
        eff0 = self._eff[0]
        feat_p = self._feat_p

        b_pad = max(_round_up(b, 8), 8)
        tb = _pick_batch_tile(b_pad)
        n_tiles = b_pad // tb

        # ---- image: NHWC -> (optional s2d) -> W-phase-split -> tile layout ----
        x = jnp.transpose(x_nchw.astype(jnp.float32), (0, 2, 3, 1))
        if self._s2d > 1:
            f = self._s2d
            bb, hh, ww, cc = x.shape
            x = x.reshape(bb, hh // f, f, ww // f, f, cc)
            x = jnp.transpose(x, (0, 1, 3, 2, 4, 5))
            x = x.reshape(bb, hh // f, ww // f, f * f * cc)
        h0, w0, c0 = eff0["HI"], eff0["WI"], eff0["CI"]
        p0, wq0 = eff0["P_in"], self._x_wq
        x = jnp.pad(x, ((0, b_pad - b), (0, 0), (0, p0 * wq0 - w0), (0, 0)))
        x = x.reshape(b_pad, h0, wq0, p0, c0)          # column w = p0*q + r
        x = jnp.transpose(x, (0, 1, 3, 2, 4))          # (B, H, P, WQ, C)
        x = x.reshape(n_tiles, tb, h0, p0, wq0, c0)
        x = jnp.transpose(x, (0, 2, 3, 4, 1, 5))       # (T, H, P, WQ, tb, C)
        x = x.reshape(n_tiles, h0 * p0, wq0 * tb, c0).astype(jnp.bfloat16)

        # ---- action ----
        if self.discrete_action:
            action = jax.nn.one_hot(action.reshape(-1).astype(jnp.int32),
                                    self._action_size, dtype=jnp.float32)
        action = action.astype(jnp.float32).reshape(b, self._action_size)
        action = jnp.pad(action, ((0, b_pad - b), (0, 0)))

        def _const_spec(arr):
            nd = arr.ndim
            return pl.BlockSpec(arr.shape, lambda i, _nd=nd: (0,) * _nd)

        inputs = [x, action]
        in_specs = [
            pl.BlockSpec((1, h0 * p0, wq0 * tb, c0), lambda i: (i, 0, 0, 0)),
            pl.BlockSpec((tb, self._action_size), lambda i: (i, 0)),
        ]
        for w_mat, b_row in zip(self._conv_w, self._conv_b):
            inputs += [w_mat, b_row]
            in_specs += [_const_spec(w_mat), _const_spec(b_row)]
        inputs += [self._fc_wc, self._fc_wa, self._fc_b]
        in_specs += [_const_spec(self._fc_wc), _const_spec(self._fc_wa),
                     _const_spec(self._fc_b)]

        scratch_shapes = [
            pltpu.VMEM((cfg["HO"] * cfg["P_out"], cfg["WQ_store"] * tb, cfg["CO"]),
                       jnp.bfloat16)
            for cfg in self._eff[:-1]
        ]

        out = pl.pallas_call(
            _make_kernel(self._eff, tb),
            out_shape=jax.ShapeDtypeStruct((b_pad, feat_p), jnp.float32),
            grid=(n_tiles,),
            in_specs=in_specs,
            out_specs=pl.BlockSpec((tb, feat_p), lambda i: (i, 0)),
            scratch_shapes=scratch_shapes,
            compiler_params=pltpu.CompilerParams(
                dimension_semantics=("parallel",)),
        )(*inputs)
        return out[:b, :self.feature_size]


# ----------------------------------------------------------------------------
# Pure-JAX reference (correctness check only)
# ----------------------------------------------------------------------------
def reference_forward(model, x_nchw, action):
    h = x_nchw.astype(jnp.float32)
    for w_oihw, bias, stride in model.conv_raw:
        h = jax.lax.conv_general_dilated(
            h, w_oihw, window_strides=(stride, stride), padding="VALID",
            dimension_numbers=("NCHW", "OIHW", "NCHW"))
        h = jax.nn.relu(h + bias[None, :, None, None])
    flat = h.reshape(h.shape[0], -1)
    if model.discrete_action:
        action = jax.nn.one_hot(action.reshape(-1).astype(jnp.int32),
                                model.action_size, dtype=jnp.float32)
    cat = jnp.concatenate([flat, action.astype(jnp.float32)], axis=1)
    return jax.nn.relu(cat @ model.fc_w + model.fc_b)


if __name__ == "__main__":
    key = jax.random.PRNGKey(0)
    k_param, k_x, k_a = jax.random.split(key, 3)

    # Small config mirroring the module's default (stride 4/2/1) structure.
    observation_shape = (4, 20, 20)                  # (C, H, W)
    action_size = 3
    filters = [(8, 4, 2), (16, 4, 2), (16, 3, 1)]    # (out_ch, kernel, stride)
    feature_size = 32
    batch = 2

    model = PixelEncoderWithActionPallas(
        observation_shape, action_size, filters=filters,
        feature_size=feature_size, key=k_param, discrete_action=False)

    x = jax.random.uniform(k_x, (batch,) + observation_shape, jnp.float32)
    action = jax.random.normal(k_a, (batch, action_size), jnp.float32)

    out = jax.block_until_ready(model(x, action))
    assert out.shape == (batch, feature_size), out.shape

    ref = jax.block_until_ready(reference_forward(model, x, action))
    max_err = float(jnp.max(jnp.abs(out - ref)))
    # bf16 MXU operands / bf16 intermediates with f32 accumulation.
    assert jnp.allclose(out, ref, rtol=3e-2, atol=3e-2), max_err

    print("KERNEL_OK")
</pallas_src>

<mosaic_0001>
module attributes {stable_mosaic.version = 11 : i64} {
  func.func @kernel(%arg0: i32, %arg1: memref<1x20x48x16xbf16, #tpu.memory_space<vmem>>, %arg2: memref<8x3xf32, #tpu.memory_space<vmem>>, %arg3: memref<4x16x8xbf16, #tpu.memory_space<vmem>>, %arg4: memref<1x8xf32, #tpu.memory_space<vmem>>, %arg5: memref<16x8x16xbf16, #tpu.memory_space<vmem>>, %arg6: memref<1x16xf32, #tpu.memory_space<vmem>>, %arg7: memref<9x16x16xbf16, #tpu.memory_space<vmem>>, %arg8: memref<1x16xf32, #tpu.memory_space<vmem>>, %arg9: memref<16x128xbf16, #tpu.memory_space<vmem>>, %arg10: memref<3x128xbf16, #tpu.memory_space<vmem>>, %arg11: memref<1x128xf32, #tpu.memory_space<vmem>>, %arg12: memref<8x128xf32, #tpu.memory_space<vmem>>, %arg13: memref<18x40x8xbf16, #tpu.memory_space<vmem>>, %arg14: memref<3x24x16xbf16, #tpu.memory_space<vmem>>) attributes {dimension_semantics = [#tpu.dimension_semantics<parallel>], iteration_bounds = array<i64: 1>, scalar_prefetch = 0 : i64, scratch_operands = 2 : i64, tpu.core_type = #tpu.core_type<tc>, window_params = [{transform_indices = @transform_0, window_bounds = array<i64: 1, 20, 48, 16>}, {transform_indices = @transform_1, window_bounds = array<i64: 8, 3>}, {pipeline_mode = #tpu.pipeline_mode<synchronous>, transform_indices = @transform_2, window_bounds = array<i64: 4, 16, 8>}, {pipeline_mode = #tpu.pipeline_mode<synchronous>, transform_indices = @transform_3, window_bounds = array<i64: 1, 8>}, {pipeline_mode = #tpu.pipeline_mode<synchronous>, transform_indices = @transform_4, window_bounds = array<i64: 16, 8, 16>}, {pipeline_mode = #tpu.pipeline_mode<synchronous>, transform_indices = @transform_5, window_bounds = array<i64: 1, 16>}, {pipeline_mode = #tpu.pipeline_mode<synchronous>, transform_indices = @transform_6, window_bounds = array<i64: 9, 16, 16>}, {pipeline_mode = #tpu.pipeline_mode<synchronous>, transform_indices = @transform_7, window_bounds = array<i64: 1, 16>}, {pipeline_mode = #tpu.pipeline_mode<synchronous>, transform_indices = @transform_8, window_bounds = array<i64: 16, 128>}, {pipeline_mode = #tpu.pipeline_mode<synchronous>, transform_indices = @transform_9, window_bounds = array<i64: 3, 128>}, {pipeline_mode = #tpu.pipeline_mode<synchronous>, transform_indices = @transform_10, window_bounds = array<i64: 1, 128>}, {transform_indices = @transform_11, window_bounds = array<i64: 8, 128>}]} {
    %c0 = arith.constant 0 : index
    %c0_0 = arith.constant 0 : index
    %0 = vector.load %arg2[%c0, %c0_0] : memref<8x3xf32, #tpu.memory_space<vmem>>, vector<8x3xf32>
    %1 = arith.truncf %0 : vector<8x3xf32> to vector<8x3xbf16>
    %c0_1 = arith.constant 0 : index
    %c0_2 = arith.constant 0 : index
    %2 = vector.load %arg10[%c0_1, %c0_2] : memref<3x128xbf16, #tpu.memory_space<vmem>>, vector<3x128xbf16>
    %cst = arith.constant dense<0.000000e+00> : vector<8x128xf32>
    %3 = tpu.matmul %1, %2, %cst {dimension_numbers = #tpu.dot_dimension_numbers<[1], [0], [0], [1], [0, 0, 1, 1], [], []>} : vector<8x3xbf16>, vector<3x128xbf16>, vector<8x128xf32> -> vector<8x128xf32>
    %c0_3 = arith.constant 0 : index
    %c0_4 = arith.constant 0 : index
    %4 = vector.load %arg11[%c0_3, %c0_4] : memref<1x128xf32, #tpu.memory_space<vmem>>, vector<1x128xf32>
    %5 = vector.broadcast %4 : vector<1x128xf32> to vector<8x128xf32>
    %6 = arith.addf %3, %5 : vector<8x128xf32>
    %c0_5 = arith.constant 0 : index
    %c0_6 = arith.constant 0 : index
    %c0_7 = arith.constant 0 : index
    %7 = vector.load %arg3[%c0_5, %c0_6, %c0_7] : memref<4x16x8xbf16, #tpu.memory_space<vmem>>, vector<4x16x8xbf16>
    %c0_8 = arith.constant 0 : index
    %c0_9 = arith.constant 0 : index
    %8 = vector.load %arg4[%c0_8, %c0_9] : memref<1x8xf32, #tpu.memory_space<vmem>>, vector<1x8xf32>
    %9 = vector.shape_cast %8 : vector<1x8xf32> to vector<1x8xf32>
    %10 = vector.broadcast %9 : vector<1x8xf32> to vector<40x8xf32>
    %c0_10 = arith.constant 0 : index
    %c0_11 = arith.constant 0 : index
    %c0_12 = arith.constant 0 : index
    %c0_13 = arith.constant 0 : index
    %11 = vector.load %arg1[%c0_10, %c0_11, %c0_12, %c0_13] : memref<1x20x48x16xbf16, #tpu.memory_space<vmem>>, vector<1x1x40x16xbf16>
    %12 = vector.shape_cast %11 : vector<1x1x40x16xbf16> to vector<40x16xbf16>
    %13 = vector.extract_strided_slice %7 {offsets = [0, 0, 0], sizes = [1, 16, 8], strides = [1, 1, 1]} : vector<4x16x8xbf16> to vector<1x16x8xbf16>
    %14 = vector.shape_cast %13 : vector<1x16x8xbf16> to vector<16x8xbf16>
    %cst_14 = arith.constant dense<0.000000e+00> : vector<40x8xf32>
    %15 = tpu.matmul %12, %14, %cst_14 {dimension_numbers = #tpu.dot_dimension_numbers<[1], [0], [0], [1], [0, 0, 1, 1], [], []>} : vector<40x16xbf16>, vector<16x8xbf16>, vector<40x8xf32> -> vector<40x8xf32>
    %16 = arith.addf %10, %15 : vector<40x8xf32>
    %c0_15 = arith.constant 0 : index
    %c1 = arith.constant 1 : index
    %c0_16 = arith.constant 0 : index
    %c0_17 = arith.constant 0 : index
    %17 = vector.load %arg1[%c0_15, %c1, %c0_16, %c0_17] : memref<1x20x48x16xbf16, #tpu.memory_space<vmem>>, vector<1x1x40x16xbf16>
    %18 = vector.shape_cast %17 : vector<1x1x40x16xbf16> to vector<40x16xbf16>
    %19 = vector.extract_strided_slice %7 {offsets = [1, 0, 0], sizes = [1, 16, 8], strides = [1, 1, 1]} : vector<4x16x8xbf16> to vector<1x16x8xbf16>
    %20 = vector.shape_cast %19 : vector<1x16x8xbf16> to vector<16x8xbf16>
    %cst_18 = arith.constant dense<0.000000e+00> : vector<40x8xf32>
    %21 = tpu.matmul %18, %20, %cst_18 {dimension_numbers = #tpu.dot_dimension_numbers<[1], [0], [0], [1], [0, 0, 1, 1], [], []>} : vector<40x16xbf16>, vector<16x8xbf16>, vector<40x8xf32> -> vector<40x8xf32>
    %22 = arith.addf %16, %21 : vector<40x8xf32>
    %c0_19 = arith.constant 0 : index
    %c2 = arith.constant 2 : index
    %c0_20 = arith.constant 0 : index
    %c0_21 = arith.constant 0 : index
    %23 = vector.load %arg1[%c0_19, %c2, %c0_20, %c0_21] : memref<1x20x48x16xbf16, #tpu.memory_space<vmem>>, vector<1x1x40x16xbf16>
    %24 = vector.shape_cast %23 : vector<1x1x40x16xbf16> to vector<40x16xbf16>
    %25 = vector.extract_strided_slice %7 {offsets = [2, 0, 0], sizes = [1, 16, 8], strides = [1, 1, 1]} : vector<4x16x8xbf16> to vector<1x16x8xbf16>
    %26 = vector.shape_cast %25 : vector<1x16x8xbf16> to vector<16x8xbf16>
    %cst_22 = arith.constant dense<0.000000e+00> : vector<40x8xf32>
    %27 = tpu.matmul %24, %26, %cst_22 {dimension_numbers = #tpu.dot_dimension_numbers<[1], [0], [0], [1], [0, 0, 1, 1], [], []>} : vector<40x16xbf16>, vector<16x8xbf16>, vector<40x8xf32> -> vector<40x8xf32>
    %28 = arith.addf %22, %27 : vector<40x8xf32>
    %c0_23 = arith.constant 0 : index
    %c3 = arith.constant 3 : index
    %c0_24 = arith.constant 0 : index
    %c0_25 = arith.constant 0 : index
    %29 = vector.load %arg1[%c0_23, %c3, %c0_24, %c0_25] : memref<1x20x48x16xbf16, #tpu.memory_space<vmem>>, vector<1x1x40x16xbf16>
    %30 = vector.shape_cast %29 : vector<1x1x40x16xbf16> to vector<40x16xbf16>
    %31 = vector.extract_strided_slice %7 {offsets = [3, 0, 0], sizes = [1, 16, 8], strides = [1, 1, 1]} : vector<4x16x8xbf16> to vector<1x16x8xbf16>
    %32 = vector.shape_cast %31 : vector<1x16x8xbf16> to vector<16x8xbf16>
    %cst_26 = arith.constant dense<0.000000e+00> : vector<40x8xf32>
    %33 = tpu.matmul %30, %32, %cst_26 {dimension_numbers = #tpu.dot_dimension_numbers<[1], [0], [0], [1], [0, 0, 1, 1], [], []>} : vector<40x16xbf16>, vector<16x8xbf16>, vector<40x8xf32> -> vector<40x8xf32>
    %34 = arith.addf %28, %33 : vector<40x8xf32>
    %cst_27 = arith.constant 0.000000e+00 : f32
    %35 = vector.broadcast %cst_27 : f32 to vector<40x8xf32>
    %36 = arith.maximumf %34, %35 : vector<40x8xf32>
    %37 = arith.truncf %36 : vector<40x8xf32> to vector<40x8xbf16>
    %38 = vector.shape_cast %37 : vector<40x8xbf16> to vector<1x40x8xbf16>
    %c0_28 = arith.constant 0 : index
    %c0_29 = arith.constant 0 : index
    %c0_30 = arith.constant 0 : index
    %39 = vector.load %arg13[%c0_28, %c0_29, %c0_30] : memref<18x40x8xbf16, #tpu.memory_space<vmem>>, vector<1x40x8xbf16>
    tpu.vector_store %arg13[%c0_28, %c0_29, %c0_30], %38 {strides = array<i32>} : memref<18x40x8xbf16, #tpu.memory_space<vmem>>, vector<1x40x8xbf16>,
    %c0_31 = arith.constant 0 : index
    %c1_32 = arith.constant 1 : index
    %c0_33 = arith.constant 0 : index
    %c0_34 = arith.constant 0 : index
    %40 = vector.load %arg1[%c0_31, %c1_32, %c0_33, %c0_34] : memref<1x20x48x16xbf16, #tpu.memory_space<vmem>>, vector<1x1x40x16xbf16>
    %41 = vector.shape_cast %40 : vector<1x1x40x16xbf16> to vector<40x16xbf16>
    %42 = vector.extract_strided_slice %7 {offsets = [0, 0, 0], sizes = [1, 16, 8], strides = [1, 1, 1]} : vector<4x16x8xbf16> to vector<1x16x8xbf16>
    %43 = vector.shape_cast %42 : vector<1x16x8xbf16> to vector<16x8xbf16>
    %cst_35 = arith.constant dense<0.000000e+00> : vector<40x8xf32>
    %44 = tpu.matmul %41, %43, %cst_35 {dimension_numbers = #tpu.dot_dimension_numbers<[1], [0], [0], [1], [0, 0, 1, 1], [], []>} : vector<40x16xbf16>, vector<16x8xbf16>, vector<40x8xf32> -> vector<40x8xf32>
    %45 = arith.addf %10, %44 : vector<40x8xf32>
    %c0_36 = arith.constant 0 : index
    %c0_37 = arith.constant 0 : index
    %c8 = arith.constant 8 : index
    %c0_38 = arith.constant 0 : index
    %46 = vector.load %arg1[%c0_36, %c0_37, %c8, %c0_38] : memref<1x20x48x16xbf16, #tpu.memory_space<vmem>>, vector<1x1x40x16xbf16>
    %47 = vector.shape_cast %46 : vector<1x1x40x16xbf16> to vector<40x16xbf16>
    %48 = vector.extract_strided_slice %7 {offsets = [1, 0, 0], sizes = [1, 16, 8], strides = [1, 1, 1]} : vector<4x16x8xbf16> to vector<1x16x8xbf16>
    %49 = vector.shape_cast %48 : vector<1x16x8xbf16> to vector<16x8xbf16>
    %cst_39 = arith.constant dense<0.000000e+00> : vector<40x8xf32>
    %50 = tpu.matmul %47, %49, %cst_39 {dimension_numbers = #tpu.dot_dimension_numbers<[1], [0], [0], [1], [0, 0, 1, 1], [], []>} : vector<40x16xbf16>, vector<16x8xbf16>, vector<40x8xf32> -> vector<40x8xf32>
    %51 = arith.addf %45, %50 : vector<40x8xf32>
    %c0_40 = arith.constant 0 : index
    %c3_41 = arith.constant 3 : index
    %c0_42 = arith.constant 0 : index
    %c0_43 = arith.constant 0 : index
    %52 = vector.load %arg1[%c0_40, %c3_41, %c0_42, %c0_43] : memref<1x20x48x16xbf16, #tpu.memory_space<vmem>>, vector<1x1x40x16xbf16>
    %53 = vector.shape_cast %52 : vector<1x1x40x16xbf16> to vector<40x16xbf16>
    %54 = vector.extract_strided_slice %7 {offsets = [2, 0, 0], sizes = [1, 16, 8], strides = [1, 1, 1]} : vector<4x16x8xbf16> to vector<1x16x8xbf16>
    %55 = vector.shape_cast %54 : vector<1x16x8xbf16> to vector<16x8xbf16>
    %cst_44 = arith.constant dense<0.000000e+00> : vector<40x8xf32>
    %56 = tpu.matmul %53, %55, %cst_44 {dimension_numbers = #tpu.dot_dimension_numbers<[1], [0], [0], [1], [0, 0, 1, 1], [], []>} : vector<40x16xbf16>, vector<16x8xbf16>, vector<40x8xf32> -> vector<40x8xf32>
    %57 = arith.addf %51, %56 : vector<40x8xf32>
    %c0_45 = arith.constant 0 : index
    %c2_46 = arith.constant 2 : index
    %c8_47 = arith.constant 8 : index
    %c0_48 = arith.constant 0 : index
    %58 = vector.load %arg1[%c0_45, %c2_46, %c8_47, %c0_48] : memref<1x20x48x16xbf16, #tpu.memory_space<vmem>>, vector<1x1x40x16xbf16>
    %59 = vector.shape_cast %58 : vector<1x1x40x16xbf16> to vector<40x16xbf16>
    %60 = vector.extract_strided_slice %7 {offsets = [3, 0, 0], sizes = [1, 16, 8], strides = [1, 1, 1]} : vector<4x16x8xbf16> to vector<1x16x8xbf16>
    %61 = vector.shape_cast %60 : vector<1x16x8xbf16> to vector<16x8xbf16>
    %cst_49 = arith.constant dense<0.000000e+00> : vector<40x8xf32>
    %62 = tpu.matmul %59, %61, %cst_49 {dimension_numbers = #tpu.dot_dimension_numbers<[1], [0], [0], [1], [0, 0, 1, 1], [], []>} : vector<40x16xbf16>, vector<16x8xbf16>, vector<40x8xf32> -> vector<40x8xf32>
    %63 = arith.addf %57, %62 : vector<40x8xf32>
    %cst_50 = arith.constant 0.000000e+00 : f32
    %64 = vector.broadcast %cst_50 : f32 to vector<40x8xf32>
    %65 = arith.maximumf %63, %64 : vector<40x8xf32>
    %66 = arith.truncf %65 : vector<40x8xf32> to vector<40x8xbf16>
    %67 = vector.shape_cast %66 : vector<40x8xbf16> to vector<1x40x8xbf16>
    %c1_51 = arith.constant 1 : index
    %c0_52 = arith.constant 0 : index
    %c0_53 = arith.constant 0 : index
    %68 = vector.load %arg13[%c1_51, %c0_52, %c0_53] : memref<18x40x8xbf16, #tpu.memory_space<vmem>>, vector<1x40x8xbf16>
    tpu.vector_store %arg13[%c1_51, %c0_52, %c0_53], %67 {strides = array<i32>} : memref<18x40x8xbf16, #tpu.memory_space<vmem>>, vector<1x40x8xbf16>,
    %c0_54 = arith.constant 0 : index
    %c2_55 = arith.constant 2 : index
    %c0_56 = arith.constant 0 : index
    %c0_57 = arith.constant 0 : index
    %69 = vector.load %arg1[%c0_54, %c2_55, %c0_56, %c0_57] : memref<1x20x48x16xbf16, #tpu.memory_space<vmem>>, vector<1x1x40x16xbf16>
    %70 = vector.shape_cast %69 : vector<1x1x40x16xbf16> to vector<40x16xbf16>
    %71 = vector.extract_strided_slice %7 {offsets = [0, 0, 0], sizes = [1, 16, 8], strides = [1, 1, 1]} : vector<4x16x8xbf16> to vector<1x16x8xbf16>
    %72 = vector.shape_cast %71 : vector<1x16x8xbf16> to vector<16x8xbf16>
    %cst_58 = arith.constant dense<0.000000e+00> : vector<40x8xf32>
    %73 = tpu.matmul %70, %72, %cst_58 {dimension_numbers = #tpu.dot_dimension_numbers<[1], [0], [0], [1], [0, 0, 1, 1], [], []>} : vector<40x16xbf16>, vector<16x8xbf16>, vector<40x8xf32> -> vector<40x8xf32>
    %74 = arith.addf %10, %73 : vector<40x8xf32>
    %c0_59 = arith.constant 0 : index
    %c3_60 = arith.constant 3 : index
    %c0_61 = arith.constant 0 : index
    %c0_62 = arith.constant 0 : index
    %75 = vector.load %arg1[%c0_59, %c3_60, %c0_61, %c0_62] : memref<1x20x48x16xbf16, #tpu.memory_space<vmem>>, vector<1x1x40x16xbf16>
    %76 = vector.shape_cast %75 : vector<1x1x40x16xbf16> to vector<40x16xbf16>
    %77 = vector.extract_strided_slice %7 {offsets = [1, 0, 0], sizes = [1, 16, 8], strides = [1, 1, 1]} : vector<4x16x8xbf16> to vector<1x16x8xbf16>
    %78 = vector.shape_cast %77 : vector<1x16x8xbf16> to vector<16x8xbf16>
    %cst_63 = arith.constant dense<0.000000e+00> : vector<40x8xf32>
    %79 = tpu.matmul %76, %78, %cst_63 {dimension_numbers = #tpu.dot_dimension_numbers<[1], [0], [0], [1], [0, 0, 1, 1], [], []>} : vector<40x16xbf16>, vector<16x8xbf16>, vector<40x8xf32> -> vector<40x8xf32>
    %80 = arith.addf %74, %79 : vector<40x8xf32>
    %c0_64 = arith.constant 0 : index
    %c4 = arith.constant 4 : index
    %c0_65 = arith.constant 0 : index
    %c0_66 = arith.constant 0 : index
    %81 = vector.load %arg1[%c0_64, %c4, %c0_65, %c0_66] : memref<1x20x48x16xbf16, #tpu.memory_space<vmem>>, vector<1x1x40x16xbf16>
    %82 = vector.shape_cast %81 : vector<1x1x40x16xbf16> to vector<40x16xbf16>
    %83 = vector.extract_strided_slice %7 {offsets = [2, 0, 0], sizes = [1, 16, 8], strides = [1, 1, 1]} : vector<4x16x8xbf16> to vector<1x16x8xbf16>
    %84 = vector.shape_cast %83 : vector<1x16x8xbf16> to vector<16x8xbf16>
    %cst_67 = arith.constant dense<0.000000e+00> : vector<40x8xf32>
    %85 = tpu.matmul %82, %84, %cst_67 {dimension_numbers = #tpu.dot_dimension_numbers<[1], [0], [0], [1], [0, 0, 1, 1], [], []>} : vector<40x16xbf16>, vector<16x8xbf16>, vector<40x8xf32> -> vector<40x8xf32>
    %86 = arith.addf %80, %85 : vector<40x8xf32>
    %c0_68 = arith.constant 0 : index
    %c5 = arith.constant 5 : index
    %c0_69 = arith.constant 0 : index
    %c0_70 = arith.constant 0 : index
    %87 = vector.load %arg1[%c0_68, %c5, %c0_69, %c0_70] : memref<1x20x48x16xbf16, #tpu.memory_space<vmem>>, vector<1x1x40x16xbf16>
    %88 = vector.shape_cast %87 : vector<1x1x40x16xbf16> to vector<40x16xbf16>
    %89 = vector.extract_strided_slice %7 {offsets = [3, 0, 0], sizes = [1, 16, 8], strides = [1, 1, 1]} : vector<4x16x8xbf16> to vector<1x16x8xbf16>
    %90 = vector.shape_cast %89 : vector<1x16x8xbf16> to vector<16x8xbf16>
    %cst_71 = arith.constant dense<0.000000e+00> : vector<40x8xf32>
    %91 = tpu.matmul %88, %90, %cst_71 {dimension_numbers = #tpu.dot_dimension_numbers<[1], [0], [0], [1], [0, 0, 1, 1], [], []>} : vector<40x16xbf16>, vector<16x8xbf16>, vector<40x8xf32> -> vector<40x8xf32>
    %92 = arith.addf %86, %91 : vector<40x8xf32>
    %cst_72 = arith.constant 0.000000e+00 : f32
    %93 = vector.broadcast %cst_72 : f32 to vector<40x8xf32>
    %94 = arith.maximumf %92, %93 : vector<40x8xf32>
    %95 = arith.truncf %94 : vector<40x8xf32> to vector<40x8xbf16>
    %96 = vector.shape_cast %95 : vector<40x8xbf16> to vector<1x40x8xbf16>
    %c2_73 = arith.constant 2 : index
    %c0_74 = arith.constant 0 : index
    %c0_75 = arith.constant 0 : index
    %97 = vector.load %arg13[%c2_73, %c0_74, %c0_75] : memref<18x40x8xbf16, #tpu.memory_space<vmem>>, vector<1x40x8xbf16>
    tpu.vector_store %arg13[%c2_73, %c0_74, %c0_75], %96 {strides = array<i32>} : memref<18x40x8xbf16, #tpu.memory_space<vmem>>, vector<1x40x8xbf16>,
    %c0_76 = arith.constant 0 : index
    %c3_77 = arith.constant 3 : index
    %c0_78 = arith.constant 0 : index
    %c0_79 = arith.constant 0 : index
    %98 = vector.load %arg1[%c0_76, %c3_77, %c0_78, %c0_79] : memref<1x20x48x16xbf16, #tpu.memory_space<vmem>>, vector<1x1x40x16xbf16>
    %99 = vector.shape_cast %98 : vector<1x1x40x16xbf16> to vector<40x16xbf16>
    %100 = vector.extract_strided_slice %7 {offsets = [0, 0, 0], sizes = [1, 16, 8], strides = [1, 1, 1]} : vector<4x16x8xbf16> to vector<1x16x8xbf16>
    %101 = vector.shape_cast %100 : vector<1x16x8xbf16> to vector<16x8xbf16>
    %cst_80 = arith.constant dense<0.000000e+00> : vector<40x8xf32>
    %102 = tpu.matmul %99, %101, %cst_80 {dimension_numbers = #tpu.dot_dimension_numbers<[1], [0], [0], [1], [0, 0, 1, 1], [], []>} : vector<40x16xbf16>, vector<16x8xbf16>, vector<40x8xf32> -> vector<40x8xf32>
    %103 = arith.addf %10, %102 : vector<40x8xf32>
    %c0_81 = arith.constant 0 : index
    %c2_82 = arith.constant 2 : index
    %c8_83 = arith.constant 8 : index
    %c0_84 = arith.constant 0 : index
    %104 = vector.load %arg1[%c0_81, %c2_82, %c8_83, %c0_84] : memref<1x20x48x16xbf16, #tpu.memory_space<vmem>>, vector<1x1x40x16xbf16>
    %105 = vector.shape_cast %104 : vector<1x1x40x16xbf16> to vector<40x16xbf16>
    %106 = vector.extract_strided_slice %7 {offsets = [1, 0, 0], sizes = [1, 16, 8], strides = [1, 1, 1]} : vector<4x16x8xbf16> to vector<1x16x8xbf16>
    %107 = vector.shape_cast %106 : vector<1x16x8xbf16> to vector<16x8xbf16>
    %cst_85 = arith.constant dense<0.000000e+00> : vector<40x8xf32>
    %108 = tpu.matmul %105, %107, %cst_85 {dimension_numbers = #tpu.dot_dimension_numbers<[1], [0], [0], [1], [0, 0, 1, 1], [], []>} : vector<40x16xbf16>, vector<16x8xbf16>, vector<40x8xf32> -> vector<40x8xf32>
    %109 = arith.addf %103, %108 : vector<40x8xf32>
    %c0_86 = arith.constant 0 : index
    %c5_87 = arith.constant 5 : index
    %c0_88 = arith.constant 0 : index
    %c0_89 = arith.constant 0 : index
    %110 = vector.load %arg1[%c0_86, %c5_87, %c0_88, %c0_89] : memref<1x20x48x16xbf16, #tpu.memory_space<vmem>>, vector<1x1x40x16xbf16>
    %111 = vector.shape_cast %110 : vector<1x1x40x16xbf16> to vector<40x16xbf16>
    %112 = vector.extract_strided_slice %7 {offsets = [2, 0, 0], sizes = [1, 16, 8], strides = [1, 1, 1]} : vector<4x16x8xbf16> to vector<1x16x8xbf16>
    %113 = vector.shape_cast %112 : vector<1x16x8xbf16> to vector<16x8xbf16>
    %cst_90 = arith.constant dense<0.000000e+00> : vector<40x8xf32>
    %114 = tpu.matmul %111, %113, %cst_90 {dimension_numbers = #tpu.dot_dimension_numbers<[1], [0], [0], [1], [0, 0, 1, 1], [], []>} : vector<40x16xbf16>, vector<16x8xbf16>, vector<40x8xf32> -> vector<40x8xf32>
    %115 = arith.addf %109, %114 : vector<40x8xf32>
    %c0_91 = arith.constant 0 : index
    %c4_92 = arith.constant 4 : index
    %c8_93 = arith.constant 8 : index
    %c0_94 = arith.constant 0 : index
    %116 = vector.load %arg1[%c0_91, %c4_92, %c8_93, %c0_94] : memref<1x20x48x16xbf16, #tpu.memory_space<vmem>>, vector<1x1x40x16xbf16>
    %117 = vector.shape_cast %116 : vector<1x1x40x16xbf16> to vector<40x16xbf16>
    %118 = vector.extract_strided_slice %7 {offsets = [3, 0, 0], sizes = [1, 16, 8], strides = [1, 1, 1]} : vector<4x16x8xbf16> to vector<1x16x8xbf16>
    %119 = vector.shape_cast %118 : vector<1x16x8xbf16> to vector<16x8xbf16>
    %cst_95 = arith.constant dense<0.000000e+00> : vector<40x8xf32>
    %120 = tpu.matmul %117, %119, %cst_95 {dimension_numbers = #tpu.dot_dimension_numbers<[1], [0], [0], [1], [0, 0, 1, 1], [], []>} : vector<40x16xbf16>, vector<16x8xbf16>, vector<40x8xf32> -> vector<40x8xf32>
    %121 = arith.addf %115, %120 : vector<40x8xf32>
    %cst_96 = arith.constant 0.000000e+00 : f32
    %122 = vector.broadcast %cst_96 : f32 to vector<40x8xf32>
    %123 = arith.maximumf %121, %122 : vector<40x8xf32>
    %124 = arith.truncf %123 : vector<40x8xf32> to vector<40x8xbf16>
    %125 = vector.shape_cast %124 : vector<40x8xbf16> to vector<1x40x8xbf16>
    %c3_97 = arith.constant 3 : index
    %c0_98 = arith.constant 0 : index
    %c0_99 = arith.constant 0 : index
    %126 = vector.load %arg13[%c3_97, %c0_98, %c0_99] : memref<18x40x8xbf16, #tpu.memory_space<vmem>>, vector<1x40x8xbf16>
    tpu.vector_store %arg13[%c3_97, %c0_98, %c0_99], %125 {strides = array<i32>} : memref<18x40x8xbf16, #tpu.memory_space<vmem>>, vector<1x40x8xbf16>,
    %c0_100 = arith.constant 0 : index
    %c4_101 = arith.constant 4 : index
    %c0_102 = arith.constant 0 : index
    %c0_103 = arith.constant 0 : index
    %127 = vector.load %arg1[%c0_100, %c4_101, %c0_102, %c0_103] : memref<1x20x48x16xbf16, #tpu.memory_space<vmem>>, vector<1x1x40x16xbf16>
    %128 = vector.shape_cast %127 : vector<1x1x40x16xbf16> to vector<40x16xbf16>
    %129 = vector.extract_strided_slice %7 {offsets = [0, 0, 0], sizes = [1, 16, 8], strides = [1, 1, 1]} : vector<4x16x8xbf16> to vector<1x16x8xbf16>
    %130 = vector.shape_cast %129 : vector<1x16x8xbf16> to vector<16x8xbf16>
    %cst_104 = arith.constant dense<0.000000e+00> : vector<40x8xf32>
    %131 = tpu.matmul %128, %130, %cst_104 {dimension_numbers = #tpu.dot_dimension_numbers<[1], [0], [0], [1], [0, 0, 1, 1], [], []>} : vector<40x16xbf16>, vector<16x8xbf16>, vector<40x8xf32> -> vector<40x8xf32>
    %132 = arith.addf %10, %131 : vector<40x8xf32>
    %c0_105 = arith.constant 0 : index
    %c5_106 = arith.constant 5 : index
    %c0_107 = arith.constant 0 : index
    %c0_108 = arith.constant 0 : index
    %133 = vector.load %arg1[%c0_105, %c5_106, %c0_107, %c0_108] : memref<1x20x48x16xbf16, #tpu.memory_space<vmem>>, vector<1x1x40x16xbf16>
    %134 = vector.shape_cast %133 : vector<1x1x40x16xbf16> to vector<40x16xbf16>
    %135 = vector.extract_strided_slice %7 {offsets = [1, 0, 0], sizes = [1, 16, 8], strides = [1, 1, 1]} : vector<4x16x8xbf16> to vector<1x16x8xbf16>
    %136 = vector.shape_cast %135 : vector<1x16x8xbf16> to vector<16x8xbf16>
    %cst_109 = arith.constant dense<0.000000e+00> : vector<40x8xf32>
    %137 = tpu.matmul %134, %136, %cst_109 {dimension_numbers = #tpu.dot_dimension_numbers<[1], [0], [0], [1], [0, 0, 1, 1], [], []>} : vector<40x16xbf16>, vector<16x8xbf16>, vector<40x8xf32> -> vector<40x8xf32>
    %138 = arith.addf %132, %137 : vector<40x8xf32>
    %c0_110 = arith.constant 0 : index
    %c6 = arith.constant 6 : index
    %c0_111 = arith.constant 0 : index
    %c0_112 = arith.constant 0 : index
    %139 = vector.load %arg1[%c0_110, %c6, %c0_111, %c0_112] : memref<1x20x48x16xbf16, #tpu.memory_space<vmem>>, vector<1x1x40x16xbf16>
    %140 = vector.shape_cast %139 : vector<1x1x40x16xbf16> to vector<40x16xbf16>
    %141 = vector.extract_strided_slice %7 {offsets = [2, 0, 0], sizes = [1, 16, 8], strides = [1, 1, 1]} : vector<4x16x8xbf16> to vector<1x16x8xbf16>
    %142 = vector.shape_cast %141 : vector<1x16x8xbf16> to vector<16x8xbf16>
    %cst_113 = arith.constant dense<0.000000e+00> : vector<40x8xf32>
    %143 = tpu.matmul %140, %142, %cst_113 {dimension_numbers = #tpu.dot_dimension_numbers<[1], [0], [0], [1], [0, 0, 1, 1], [], []>} : vector<40x16xbf16>, vector<16x8xbf16>, vector<40x8xf32> -> vector<40x8xf32>
    %144 = arith.addf %138, %143 : vector<40x8xf32>
    %c0_114 = arith.constant 0 : index
    %c7 = arith.constant 7 : index
    %c0_115 = arith.constant 0 : index
    %c0_116 = arith.constant 0 : index
    %145 = vector.load %arg1[%c0_114, %c7, %c0_115, %c0_116] : memref<1x20x48x16xbf16, #tpu.memory_space<vmem>>, vector<1x1x40x16xbf16>
    %146 = vector.shape_cast %145 : vector<1x1x40x16xbf16> to vector<40x16xbf16>
    %147 = vector.extract_strided_slice %7 {offsets = [3, 0, 0], sizes = [1, 16, 8], strides = [1, 1, 1]} : vector<4x16x8xbf16> to vector<1x16x8xbf16>
    %148 = vector.shape_cast %147 : vector<1x16x8xbf16> to vector<16x8xbf16>
    %cst_117 = arith.constant dense<0.000000e+00> : vector<40x8xf32>
    %149 = tpu.matmul %146, %148, %cst_117 {dimension_numbers = #tpu.dot_dimension_numbers<[1], [0], [0], [1], [0, 0, 1, 1], [], []>} : vector<40x16xbf16>, vector<16x8xbf16>, vector<40x8xf32> -> vector<40x8xf32>
    %150 = arith.addf %144, %149 : vector<40x8xf32>
    %cst_118 = arith.constant 0.000000e+00 : f32
    %151 = vector.broadcast %cst_118 : f32 to vector<40x8xf32>
    %152 = arith.maximumf %150, %151 : vector<40x8xf32>
    %153 = arith.truncf %152 : vector<40x8xf32> to vector<40x8xbf16>
    %154 = vector.shape_cast %153 : vector<40x8xbf16> to vector<1x40x8xbf16>
    %c4_119 = arith.constant 4 : index
    %c0_120 = arith.constant 0 : index
    %c0_121 = arith.constant 0 : index
    %155 = vector.load %arg13[%c4_119, %c0_120, %c0_121] : memref<18x40x8xbf16, #tpu.memory_space<vmem>>, vector<1x40x8xbf16>
    tpu.vector_store %arg13[%c4_119, %c0_120, %c0_121], %154 {strides = array<i32>} : memref<18x40x8xbf16, #tpu.memory_space<vmem>>, vector<1x40x8xbf16>,
    %c0_122 = arith.constant 0 : index
    %c5_123 = arith.constant 5 : index
    %c0_124 = arith.constant 0 : index
    %c0_125 = arith.constant 0 : index
    %156 = vector.load %arg1[%c0_122, %c5_123, %c0_124, %c0_125] : memref<1x20x48x16xbf16, #tpu.memory_space<vmem>>, vector<1x1x40x16xbf16>
    %157 = vector.shape_cast %156 : vector<1x1x40x16xbf16> to vector<40x16xbf16>
    %158 = vector.extract_strided_slice %7 {offsets = [0, 0, 0], sizes = [1, 16, 8], strides = [1, 1, 1]} : vector<4x16x8xbf16> to vector<1x16x8xbf16>
    %159 = vector.shape_cast %158 : vector<1x16x8xbf16> to vector<16x8xbf16>
    %cst_126 = arith.constant dense<0.000000e+00> : vector<40x8xf32>
    %160 = tpu.matmul %157, %159, %cst_126 {dimension_numbers = #tpu.dot_dimension_numbers<[1], [0], [0], [1], [0, 0, 1, 1], [], []>} : vector<40x16xbf16>, vector<16x8xbf16>, vector<40x8xf32> -> vector<40x8xf32>
    %161 = arith.addf %10, %160 : vector<40x8xf32>
    %c0_127 = arith.constant 0 : index
    %c4_128 = arith.constant 4 : index
    %c8_129 = arith.constant 8 : index
    %c0_130 = arith.constant 0 : index
    %162 = vector.load %arg1[%c0_127, %c4_128, %c8_129, %c0_130] : memref<1x20x48x16xbf16, #tpu.memory_space<vmem>>, vector<1x1x40x16xbf16>
    %163 = vector.shape_cast %162 : vector<1x1x40x16xbf16> to vector<40x16xbf16>
    %164 = vector.extract_strided_slice %7 {offsets = [1, 0, 0], sizes = [1, 16, 8], strides = [1, 1, 1]} : vector<4x16x8xbf16> to vector<1x16x8xbf16>
    %165 = vector.shape_cast %164 : vector<1x16x8xbf16> to vector<16x8xbf16>
    %cst_131 = arith.constant dense<0.000000e+00> : vector<40x8xf32>
    %166 = tpu.matmul %163, %165, %cst_131 {dimension_numbers = #tpu.dot_dimension_numbers<[1], [0], [0], [1], [0, 0, 1, 1], [], []>} : vector<40x16xbf16>, vector<16x8xbf16>, vector<40x8xf32> -> vector<40x8xf32>
    %167 = arith.addf %161, %166 : vector<40x8xf32>
    %c0_132 = arith.constant 0 : index
    %c7_133 = arith.constant 7 : index
    %c0_134 = arith.constant 0 : index
    %c0_135 = arith.constant 0 : index
    %168 = vector.load %arg1[%c0_132, %c7_133, %c0_134, %c0_135] : memref<1x20x48x16xbf16, #tpu.memory_space<vmem>>, vector<1x1x40x16xbf16>
    %169 = vector.shape_cast %168 : vector<1x1x40x16xbf16> to vector<40x16xbf16>
    %170 = vector.extract_strided_slice %7 {offsets = [2, 0, 0], sizes = [1, 16, 8], strides = [1, 1, 1]} : vector<4x16x8xbf16> to vector<1x16x8xbf16>
    %171 = vector.shape_cast %170 : vector<1x16x8xbf16> to vector<16x8xbf16>
    %cst_136 = arith.constant dense<0.000000e+00> : vector<40x8xf32>
    %172 = tpu.matmul %169, %171, %cst_136 {dimension_numbers = #tpu.dot_dimension_numbers<[1], [0], [0], [1], [0, 0, 1, 1], [], []>} : vector<40x16xbf16>, vector<16x8xbf16>, vector<40x8xf32> -> vector<40x8xf32>
    %173 = arith.addf %167, %172 : vector<40x8xf32>
    %c0_137 = arith.constant 0 : index
    %c6_138 = arith.constant 6 : index
    %c8_139 = arith.constant 8 : index
    %c0_140 = arith.constant 0 : index
    %174 = vector.load %arg1[%c0_137, %c6_138, %c8_139, %c0_140] : memref<1x20x48x16xbf16, #tpu.memory_space<vmem>>, vector<1x1x40x16xbf16>
    %175 = vector.shape_cast %174 : vector<1x1x40x16xbf16> to vector<40x16xbf16>
    %176 = vector.extract_strided_slice %7 {offsets = [3, 0, 0], sizes = [1, 16, 8], strides = [1, 1, 1]} : vector<4x16x8xbf16> to vector<1x16x8xbf16>
    %177 = vector.shape_cast %176 : vector<1x16x8xbf16> to vector<16x8xbf16>
    %cst_141 = arith.constant dense<0.000000e+00> : vector<40x8xf32>
    %178 = tpu.matmul %175, %177, %cst_141 {dimension_numbers = #tpu.dot_dimension_numbers<[1], [0], [0], [1], [0, 0, 1, 1], [], []>} : vector<40x16xbf16>, vector<16x8xbf16>, vector<40x8xf32> -> vector<40x8xf32>
    %179 = arith.addf %173, %178 : vector<40x8xf32>
    %cst_142 = arith.constant 0.000000e+00 : f32
    %180 = vector.broadcast %cst_142 : f32 to vector<40x8xf32>
    %181 = arith.maximumf %179, %180 : vector<40x8xf32>
    %182 = arith.truncf %181 : vector<40x8xf32> to vector<40x8xbf16>
    %183 = vector.shape_cast %182 : vector<40x8xbf16> to vector<1x40x8xbf16>
    %c5_143 = arith.constant 5 : index
    %c0_144 = arith.constant 0 : index
    %c0_145 = arith.constant 0 : index
    %184 = vector.load %arg13[%c5_143, %c0_144, %c0_145] : memref<18x40x8xbf16, #tpu.memory_space<vmem>>, vector<1x40x8xbf16>
    tpu.vector_store %arg13[%c5_143, %c0_144, %c0_145], %183 {strides = array<i32>} : memref<18x40x8xbf16, #tpu.memory_space<vmem>>, vector<1x40x8xbf16>,
    %c0_146 = arith.constant 0 : index
    %c6_147 = arith.constant 6 : index
    %c0_148 = arith.constant 0 : index
    %c0_149 = arith.constant 0 : index
    %185 = vector.load %arg1[%c0_146, %c6_147, %c0_148, %c0_149] : memref<1x20x48x16xbf16, #tpu.memory_space<vmem>>, vector<1x1x40x16xbf16>
    %186 = vector.shape_cast %185 : vector<1x1x40x16xbf16> to vector<40x16xbf16>
    %187 = vector.extract_strided_slice %7 {offsets = [0, 0, 0], sizes = [1, 16, 8], strides = [1, 1, 1]} : vector<4x16x8xbf16> to vector<1x16x8xbf16>
    %188 = vector.shape_cast %187 : vector<1x16x8xbf16> to vector<16x8xbf16>
    %cst_150 = arith.constant dense<0.000000e+00> : vector<40x8xf32>
    %189 = tpu.matmul %186, %188, %cst_150 {dimension_numbers = #tpu.dot_dimension_numbers<[1], [0], [0], [1], [0, 0, 1, 1], [], []>} : vector<40x16xbf16>, vector<16x8xbf16>, vector<40x8xf32> -> vector<40x8xf32>
    %190 = arith.addf %10, %189 : vector<40x8xf32>
    %c0_151 = arith.constant 0 : index
    %c7_152 = arith.constant 7 : index
    %c0_153 = arith.constant 0 : index
    %c0_154 = arith.constant 0 : index
    %191 = vector.load %arg1[%c0_151, %c7_152, %c0_153, %c0_154] : memref<1x20x48x16xbf16, #tpu.memory_space<vmem>>, vector<1x1x40x16xbf16>
    %192 = vector.shape_cast %191 : vector<1x1x40x16xbf16> to vector<40x16xbf16>
    %193 = vector.extract_strided_slice %7 {offsets = [1, 0, 0], sizes = [1, 16, 8], strides = [1, 1, 1]} : vector<4x16x8xbf16> to vector<1x16x8xbf16>
    %194 = vector.shape_cast %193 : vector<1x16x8xbf16> to vector<16x8xbf16>
    %cst_155 = arith.constant dense<0.000000e+00> : vector<40x8xf32>
    %195 = tpu.matmul %192, %194, %cst_155 {dimension_numbers = #tpu.dot_dimension_numbers<[1], [0], [0], [1], [0, 0, 1, 1], [], []>} : vector<40x16xbf16>, vector<16x8xbf16>, vector<40x8xf32> -> vector<40x8xf32>
    %196 = arith.addf %190, %195 : vector<40x8xf32>
    %c0_156 = arith.constant 0 : index
    %c8_157 = arith.constant 8 : index
    %c0_158 = arith.constant 0 : index
    %c0_159 = arith.constant 0 : index
    %197 = vector.load %arg1[%c0_156, %c8_157, %c0_158, %c0_159] : memref<1x20x48x16xbf16, #tpu.memory_space<vmem>>, vector<1x1x40x16xbf16>
    %198 = vector.shape_cast %197 : vector<1x1x40x16xbf16> to vector<40x16xbf16>
    %199 = vector.extract_strided_slice %7 {offsets = [2, 0, 0], sizes = [1, 16, 8], strides = [1, 1, 1]} : vector<4x16x8xbf16> to vector<1x16x8xbf16>
    %200 = vector.shape_cast %199 : vector<1x16x8xbf16> to vector<16x8xbf16>
    %cst_160 = arith.constant dense<0.000000e+00> : vector<40x8xf32>
    %201 = tpu.matmul %198, %200, %cst_160 {dimension_numbers = #tpu.dot_dimension_numbers<[1], [0], [0], [1], [0, 0, 1, 1], [], []>} : vector<40x16xbf16>, vector<16x8xbf16>, vector<40x8xf32> -> vector<40x8xf32>
    %202 = arith.addf %196, %201 : vector<40x8xf32>
    %c0_161 = arith.constant 0 : index
    %c9 = arith.constant 9 : index
    %c0_162 = arith.constant 0 : index
    %c0_163 = arith.constant 0 : index
    %203 = vector.load %arg1[%c0_161, %c9, %c0_162, %c0_163] : memref<1x20x48x16xbf16, #tpu.memory_space<vmem>>, vector<1x1x40x16xbf16>
    %204 = vector.shape_cast %203 : vector<1x1x40x16xbf16> to vector<40x16xbf16>
    %205 = vector.extract_strided_slice %7 {offsets = [3, 0, 0], sizes = [1, 16, 8], strides = [1, 1, 1]} : vector<4x16x8xbf16> to vector<1x16x8xbf16>
    %206 = vector.shape_cast %205 : vector<1x16x8xbf16> to vector<16x8xbf16>
    %cst_164 = arith.constant dense<0.000000e+00> : vector<40x8xf32>
    %207 = tpu.matmul %204, %206, %cst_164 {dimension_numbers = #tpu.dot_dimension_numbers<[1], [0], [0], [1], [0, 0, 1, 1], [], []>} : vector<40x16xbf16>, vector<16x8xbf16>, vector<40x8xf32> -> vector<40x8xf32>
    %208 = arith.addf %202, %207 : vector<40x8xf32>
    %cst_165 = arith.constant 0.000000e+00 : f32
    %209 = vector.broadcast %cst_165 : f32 to vector<40x8xf32>
    %210 = arith.maximumf %208, %209 : vector<40x8xf32>
    %211 = arith.truncf %210 : vector<40x8xf32> to vector<40x8xbf16>
    %212 = vector.shape_cast %211 : vector<40x8xbf16> to vector<1x40x8xbf16>
    %c6_166 = arith.constant 6 : index
    %c0_167 = arith.constant 0 : index
    %c0_168 = arith.constant 0 : index
    %213 = vector.load %arg13[%c6_166, %c0_167, %c0_168] : memref<18x40x8xbf16, #tpu.memory_space<vmem>>, vector<1x40x8xbf16>
    tpu.vector_store %arg13[%c6_166, %c0_167, %c0_168], %212 {strides = array<i32>} : memref<18x40x8xbf16, #tpu.memory_space<vmem>>, vector<1x40x8xbf16>,
    %c0_169 = arith.constant 0 : index
    %c7_170 = arith.constant 7 : index
    %c0_171 = arith.constant 0 : index
    %c0_172 = arith.constant 0 : index
    %214 = vector.load %arg1[%c0_169, %c7_170, %c0_171, %c0_172] : memref<1x20x48x16xbf16, #tpu.memory_space<vmem>>, vector<1x1x40x16xbf16>
    %215 = vector.shape_cast %214 : vector<1x1x40x16xbf16> to vector<40x16xbf16>
    %216 = vector.extract_strided_slice %7 {offsets = [0, 0, 0], sizes = [1, 16, 8], strides = [1, 1, 1]} : vector<4x16x8xbf16> to vector<1x16x8xbf16>
    %217 = vector.shape_cast %216 : vector<1x16x8xbf16> to vector<16x8xbf16>
    %cst_173 = arith.constant dense<0.000000e+00> : vector<40x8xf32>
    %218 = tpu.matmul %215, %217, %cst_173 {dimension_numbers = #tpu.dot_dimension_numbers<[1], [0], [0], [1], [0, 0, 1, 1], [], []>} : vector<40x16xbf16>, vector<16x8xbf16>, vector<40x8xf32> -> vector<40x8xf32>
    %219 = arith.addf %10, %218 : vector<40x8xf32>
    %c0_174 = arith.constant 0 : index
    %c6_175 = arith.constant 6 : index
    %c8_176 = arith.constant 8 : index
    %c0_177 = arith.constant 0 : index
    %220 = vector.load %arg1[%c0_174, %c6_175, %c8_176, %c0_177] : memref<1x20x48x16xbf16, #tpu.memory_space<vmem>>, vector<1x1x40x16xbf16>
    %221 = vector.shape_cast %220 : vector<1x1x40x16xbf16> to vector<40x16xbf16>
    %222 = vector.extract_strided_slice %7 {offsets = [1, 0, 0], sizes = [1, 16, 8], strides = [1, 1, 1]} : vector<4x16x8xbf16> to vector<1x16x8xbf16>
    %223 = vector.shape_cast %222 : vector<1x16x8xbf16> to vector<16x8xbf16>
    %cst_178 = arith.constant dense<0.000000e+00> : vector<40x8xf32>
    %224 = tpu.matmul %221, %223, %cst_178 {dimension_numbers = #tpu.dot_dimension_numbers<[1], [0], [0], [1], [0, 0, 1, 1], [], []>} : vector<40x16xbf16>, vector<16x8xbf16>, vector<40x8xf32> -> vector<40x8xf32>
    %225 = arith.addf %219, %224 : vector<40x8xf32>
    %c0_179 = arith.constant 0 : index
    %c9_180 = arith.constant 9 : index
    %c0_181 = arith.constant 0 : index
    %c0_182 = arith.constant 0 : index
    %226 = vector.load %arg1[%c0_179, %c9_180, %c0_181, %c0_182] : memref<1x20x48x16xbf16, #tpu.memory_space<vmem>>, vector<1x1x40x16xbf16>
    %227 = vector.shape_cast %226 : vector<1x1x40x16xbf16> to vector<40x16xbf16>
    %228 = vector.extract_strided_slice %7 {offsets = [2, 0, 0], sizes = [1, 16, 8], strides = [1, 1, 1]} : vector<4x16x8xbf16> to vector<1x16x8xbf16>
    %229 = vector.shape_cast %228 : vector<1x16x8xbf16> to vector<16x8xbf16>
    %cst_183 = arith.constant dense<0.000000e+00> : vector<40x8xf32>
    %230 = tpu.matmul %227, %229, %cst_183 {dimension_numbers = #tpu.dot_dimension_numbers<[1], [0], [0], [1], [0, 0, 1, 1], [], []>} : vector<40x16xbf16>, vector<16x8xbf16>, vector<40x8xf32> -> vector<40x8xf32>
    %231 = arith.addf %225, %230 : vector<40x8xf32>
    %c0_184 = arith.constant 0 : index
    %c8_185 = arith.constant 8 : index
    %c8_186 = arith.constant 8 : index
    %c0_187 = arith.constant 0 : index
    %232 = vector.load %arg1[%c0_184, %c8_185, %c8_186, %c0_187] : memref<1x20x48x16xbf16, #tpu.memory_space<vmem>>, vector<1x1x40x16xbf16>
    %233 = vector.shape_cast %232 : vector<1x1x40x16xbf16> to vector<40x16xbf16>
    %234 = vector.extract_strided_slice %7 {offsets = [3, 0, 0], sizes = [1, 16, 8], strides = [1, 1, 1]} : vector<4x16x8xbf16> to vector<1x16x8xbf16>
    %235 = vector.shape_cast %234 : vector<1x16x8xbf16> to vector<16x8xbf16>
    %cst_188 = arith.constant dense<0.000000e+00> : vector<40x8xf32>
    %236 = tpu.matmul %233, %235, %cst_188 {dimension_numbers = #tpu.dot_dimension_numbers<[1], [0], [0], [1], [0, 0, 1, 1], [], []>} : vector<40x16xbf16>, vector<16x8xbf16>, vector<40x8xf32> -> vector<40x8xf32>
    %237 = arith.addf %231, %236 : vector<40x8xf32>
    %cst_189 = arith.constant 0.000000e+00 : f32
    %238 = vector.broadcast %cst_189 : f32 to vector<40x8xf32>
    %239 = arith.maximumf %237, %238 : vector<40x8xf32>
    %240 = arith.truncf %239 : vector<40x8xf32> to vector<40x8xbf16>
    %241 = vector.shape_cast %240 : vector<40x8xbf16> to vector<1x40x8xbf16>
    %c7_190 = arith.constant 7 : index
    %c0_191 = arith.constant 0 : index
    %c0_192 = arith.constant 0 : index
    %242 = vector.load %arg13[%c7_190, %c0_191, %c0_192] : memref<18x40x8xbf16, #tpu.memory_space<vmem>>, vector<1x40x8xbf16>
    tpu.vector_store %arg13[%c7_190, %c0_191, %c0_192], %241 {strides = array<i32>} : memref<18x40x8xbf16, #tpu.memory_space<vmem>>, vector<1x40x8xbf16>,
    %c0_193 = arith.constant 0 : index
    %c8_194 = arith.constant 8 : index
    %c0_195 = arith.constant 0 : index
    %c0_196 = arith.constant 0 : index
    %243 = vector.load %arg1[%c0_193, %c8_194, %c0_195, %c0_196] : memref<1x20x48x16xbf16, #tpu.memory_space<vmem>>, vector<1x1x40x16xbf16>
    %244 = vector.shape_cast %243 : vector<1x1x40x16xbf16> to vector<40x16xbf16>
    %245 = vector.extract_strided_slice %7 {offsets = [0, 0, 0], sizes = [1, 16, 8], strides = [1, 1, 1]} : vector<4x16x8xbf16> to vector<1x16x8xbf16>
    %246 = vector.shape_cast %245 : vector<1x16x8xbf16> to vector<16x8xbf16>
    %cst_197 = arith.constant dense<0.000000e+00> : vector<40x8xf32>
    %247 = tpu.matmul %244, %246, %cst_197 {dimension_numbers = #tpu.dot_dimension_numbers<[1], [0], [0], [1], [0, 0, 1, 1], [], []>} : vector<40x16xbf16>, vector<16x8xbf16>, vector<40x8xf32> -> vector<40x8xf32>
    %248 = arith.addf %10, %247 : vector<40x8xf32>
    %c0_198 = arith.constant 0 : index
    %c9_199 = arith.constant 9 : index
    %c0_200 = arith.constant 0 : index
    %c0_201 = arith.constant 0 : index
    %249 = vector.load %arg1[%c0_198, %c9_199, %c0_200, %c0_201] : memref<1x20x48x16xbf16, #tpu.memory_space<vmem>>, vector<1x1x40x16xbf16>
    %250 = vector.shape_cast %249 : vector<1x1x40x16xbf16> to vector<40x16xbf16>
    %251 = vector.extract_strided_slice %7 {offsets = [1, 0, 0], sizes = [1, 16, 8], strides = [1, 1, 1]} : vector<4x16x8xbf16> to vector<1x16x8xbf16>
    %252 = vector.shape_cast %251 : vector<1x16x8xbf16> to vector<16x8xbf16>
    %cst_202 = arith.constant dense<0.000000e+00> : vector<40x8xf32>
    %253 = tpu.matmul %250, %252, %cst_202 {dimension_numbers = #tpu.dot_dimension_numbers<[1], [0], [0], [1], [0, 0, 1, 1], [], []>} : vector<40x16xbf16>, vector<16x8xbf16>, vector<40x8xf32> -> vector<40x8xf32>
    %254 = arith.addf %248, %253 : vector<40x8xf32>
    %c0_203 = arith.constant 0 : index
    %c10 = arith.constant 10 : index
    %c0_204 = arith.constant 0 : index
    %c0_205 = arith.constant 0 : index
    %255 = vector.load %arg1[%c0_203, %c10, %c0_204, %c0_205] : memref<1x20x48x16xbf16, #tpu.memory_space<vmem>>, vector<1x1x40x16xbf16>
    %256 = vector.shape_cast %255 : vector<1x1x40x16xbf16> to vector<40x16xbf16>
    %257 = vector.extract_strided_slice %7 {offsets = [2, 0, 0], sizes = [1, 16, 8], strides = [1, 1, 1]} : vector<4x16x8xbf16> to vector<1x16x8xbf16>
    %258 = vector.shape_cast %257 : vector<1x16x8xbf16> to vector<16x8xbf16>
    %cst_206 = arith.constant dense<0.000000e+00> : vector<40x8xf32>
    %259 = tpu.matmul %256, %258, %cst_206 {dimension_numbers = #tpu.dot_dimension_numbers<[1], [0], [0], [1], [0, 0, 1, 1], [], []>} : vector<40x16xbf16>, vector<16x8xbf16>, vector<40x8xf32> -> vector<40x8xf32>
    %260 = arith.addf %254, %259 : vector<40x8xf32>
    %c0_207 = arith.constant 0 : index
    %c11 = arith.constant 11 : index
    %c0_208 = arith.constant 0 : index
    %c0_209 = arith.constant 0 : index
    %261 = vector.load %arg1[%c0_207, %c11, %c0_208, %c0_209] : memref<1x20x48x16xbf16, #tpu.memory_space<vmem>>, vector<1x1x40x16xbf16>
    %262 = vector.shape_cast %261 : vector<1x1x40x16xbf16> to vector<40x16xbf16>
    %263 = vector.extract_strided_slice %7 {offsets = [3, 0, 0], sizes = [1, 16, 8], strides = [1, 1, 1]} : vector<4x16x8xbf16> to vector<1x16x8xbf16>
    %264 = vector.shape_cast %263 : vector<1x16x8xbf16> to vector<16x8xbf16>
    %cst_210 = arith.constant dense<0.000000e+00> : vector<40x8xf32>
    %265 = tpu.matmul %262, %264, %cst_210 {dimension_numbers = #tpu.dot_dimension_numbers<[1], [0], [0], [1], [0, 0, 1, 1], [], []>} : vector<40x16xbf16>, vector<16x8xbf16>, vector<40x8xf32> -> vector<40x8xf32>
    %266 = arith.addf %260, %265 : vector<40x8xf32>
    %cst_211 = arith.constant 0.000000e+00 : f32
    %267 = vector.broadcast %cst_211 : f32 to vector<40x8xf32>
    %268 = arith.maximumf %266, %267 : vector<40x8xf32>
    %269 = arith.truncf %268 : vector<40x8xf32> to vector<40x8xbf16>
    %270 = vector.shape_cast %269 : vector<40x8xbf16> to vector<1x40x8xbf16>
    %c8_212 = arith.constant 8 : index
    %c0_213 = arith.constant 0 : index
    %c0_214 = arith.constant 0 : index
    %271 = vector.load %arg13[%c8_212, %c0_213, %c0_214] : memref<18x40x8xbf16, #tpu.memory_space<vmem>>, vector<1x40x8xbf16>
    tpu.vector_store %arg13[%c8_212, %c0_213, %c0_214], %270 {strides = array<i32>} : memref<18x40x8xbf16, #tpu.memory_space<vmem>>, vector<1x40x8xbf16>,
    %c0_215 = arith.constant 0 : index
    %c9_216 = arith.constant 9 : index
    %c0_217 = arith.constant 0 : index
    %c0_218 = arith.constant 0 : index
    %272 = vector.load %arg1[%c0_215, %c9_216, %c0_217, %c0_218] : memref<1x20x48x16xbf16, #tpu.memory_space<vmem>>, vector<1x1x40x16xbf16>
    %273 = vector.shape_cast %272 : vector<1x1x40x16xbf16> to vector<40x16xbf16>
    %274 = vector.extract_strided_slice %7 {offsets = [0, 0, 0], sizes = [1, 16, 8], strides = [1, 1, 1]} : vector<4x16x8xbf16> to vector<1x16x8xbf16>
    %275 = vector.shape_cast %274 : vector<1x16x8xbf16> to vector<16x8xbf16>
    %cst_219 = arith.constant dense<0.000000e+00> : vector<40x8xf32>
    %276 = tpu.matmul %273, %275, %cst_219 {dimension_numbers = #tpu.dot_dimension_numbers<[1], [0], [0], [1], [0, 0, 1, 1], [], []>} : vector<40x16xbf16>, vector<16x8xbf16>, vector<40x8xf32> -> vector<40x8xf32>
    %277 = arith.addf %10, %276 : vector<40x8xf32>
    %c0_220 = arith.constant 0 : index
    %c8_221 = arith.constant 8 : index
    %c8_222 = arith.constant 8 : index
    %c0_223 = arith.constant 0 : index
    %278 = vector.load %arg1[%c0_220, %c8_221, %c8_222, %c0_223] : memref<1x20x48x16xbf16, #tpu.memory_space<vmem>>, vector<1x1x40x16xbf16>
    %279 = vector.shape_cast %278 : vector<1x1x40x16xbf16> to vector<40x16xbf16>
    %280 = vector.extract_strided_slice %7 {offsets = [1, 0, 0], sizes = [1, 16, 8], strides = [1, 1, 1]} : vector<4x16x8xbf16> to vector<1x16x8xbf16>
    %281 = vector.shape_cast %280 : vector<1x16x8xbf16> to vector<16x8xbf16>
    %cst_224 = arith.constant dense<0.000000e+00> : vector<40x8xf32>
    %282 = tpu.matmul %279, %281, %cst_224 {dimension_numbers = #tpu.dot_dimension_numbers<[1], [0], [0], [1], [0, 0, 1, 1], [], []>} : vector<40x16xbf16>, vector<16x8xbf16>, vector<40x8xf32> -> vector<40x8xf32>
    %283 = arith.addf %277, %282 : vector<40x8xf32>
    %c0_225 = arith.constant 0 : index
    %c11_226 = arith.constant 11 : index
    %c0_227 = arith.constant 0 : index
    %c0_228 = arith.constant 0 : index
    %284 = vector.load %arg1[%c0_225, %c11_226, %c0_227, %c0_228] : memref<1x20x48x16xbf16, #tpu.memory_space<vmem>>, vector<1x1x40x16xbf16>
    %285 = vector.shape_cast %284 : vector<1x1x40x16xbf16> to vector<40x16xbf16>
    %286 = vector.extract_strided_slice %7 {offsets = [2, 0, 0], sizes = [1, 16, 8], strides = [1, 1, 1]} : vector<4x16x8xbf16> to vector<1x16x8xbf16>
    %287 = vector.shape_cast %286 : vector<1x16x8xbf16> to vector<16x8xbf16>
    %cst_229 = arith.constant dense<0.000000e+00> : vector<40x8xf32>
    %288 = tpu.matmul %285, %287, %cst_229 {dimension_numbers = #tpu.dot_dimension_numbers<[1], [0], [0], [1], [0, 0, 1, 1], [], []>} : vector<40x16xbf16>, vector<16x8xbf16>, vector<40x8xf32> -> vector<40x8xf32>
    %289 = arith.addf %283, %288 : vector<40x8xf32>
    %c0_230 = arith.constant 0 : index
    %c10_231 = arith.constant 10 : index
    %c8_232 = arith.constant 8 : index
    %c0_233 = arith.constant 0 : index
    %290 = vector.load %arg1[%c0_230, %c10_231, %c8_232, %c0_233] : memref<1x20x48x16xbf16, #tpu.memory_space<vmem>>, vector<1x1x40x16xbf16>
    %291 = vector.shape_cast %290 : vector<1x1x40x16xbf16> to vector<40x16xbf16>
    %292 = vector.extract_strided_slice %7 {offsets = [3, 0, 0], sizes = [1, 16, 8], strides = [1, 1, 1]} : vector<4x16x8xbf16> to vector<1x16x8xbf16>
    %293 = vector.shape_cast %292 : vector<1x16x8xbf16> to vector<16x8xbf16>
    %cst_234 = arith.constant dense<0.000000e+00> : vector<40x8xf32>
    %294 = tpu.matmul %291, %293, %cst_234 {dimension_numbers = #tpu.dot_dimension_numbers<[1], [0], [0], [1], [0, 0, 1, 1], [], []>} : vector<40x16xbf16>, vector<16x8xbf16>, vector<40x8xf32> -> vector<40x8xf32>
    %295 = arith.addf %289, %294 : vector<40x8xf32>
    %cst_235 = arith.constant 0.000000e+00 : f32
    %296 = vector.broadcast %cst_235 : f32 to vector<40x8xf32>
    %297 = arith.maximumf %295, %296 : vector<40x8xf32>
    %298 = arith.truncf %297 : vector<40x8xf32> to vector<40x8xbf16>
    %299 = vector.shape_cast %298 : vector<40x8xbf16> to vector<1x40x8xbf16>
    %c9_236 = arith.constant 9 : index
    %c0_237 = arith.constant 0 : index
    %c0_238 = arith.constant 0 : index
    %300 = vector.load %arg13[%c9_236, %c0_237, %c0_238] : memref<18x40x8xbf16, #tpu.memory_space<vmem>>, vector<1x40x8xbf16>
    tpu.vector_store %arg13[%c9_236, %c0_237, %c0_238], %299 {strides = array<i32>} : memref<18x40x8xbf16, #tpu.memory_space<vmem>>, vector<1x40x8xbf16>,
    %c0_239 = arith.constant 0 : index
    %c10_240 = arith.constant 10 : index
    %c0_241 = arith.constant 0 : index
    %c0_242 = arith.constant 0 : index
    %301 = vector.load %arg1[%c0_239, %c10_240, %c0_241, %c0_242] : memref<1x20x48x16xbf16, #tpu.memory_space<vmem>>, vector<1x1x40x16xbf16>
    %302 = vector.shape_cast %301 : vector<1x1x40x16xbf16> to vector<40x16xbf16>
    %303 = vector.extract_strided_slice %7 {offsets = [0, 0, 0], sizes = [1, 16, 8], strides = [1, 1, 1]} : vector<4x16x8xbf16> to vector<1x16x8xbf16>
    %304 = vector.shape_cast %303 : vector<1x16x8xbf16> to vector<16x8xbf16>
    %cst_243 = arith.constant dense<0.000000e+00> : vector<40x8xf32>
    %305 = tpu.matmul %302, %304, %cst_243 {dimension_numbers = #tpu.dot_dimension_numbers<[1], [0], [0], [1], [0, 0, 1, 1], [], []>} : vector<40x16xbf16>, vector<16x8xbf16>, vector<40x8xf32> -> vector<40x8xf32>
    %306 = arith.addf %10, %305 : vector<40x8xf32>
    %c0_244 = arith.constant 0 : index
    %c11_245 = arith.constant 11 : index
    %c0_246 = arith.constant 0 : index
    %c0_247 = arith.constant 0 : index
    %307 = vector.load %arg1[%c0_244, %c11_245, %c0_246, %c0_247] : memref<1x20x48x16xbf16, #tpu.memory_space<vmem>>, vector<1x1x40x16xbf16>
    %308 = vector.shape_cast %307 : vector<1x1x40x16xbf16> to vector<40x16xbf16>
    %309 = vector.extract_strided_slice %7 {offsets = [1, 0, 0], sizes = [1, 16, 8], strides = [1, 1, 1]} : vector<4x16x8xbf16> to vector<1x16x8xbf16>
    %310 = vector.shape_cast %309 : vector<1x16x8xbf16> to vector<16x8xbf16>
    %cst_248 = arith.constant dense<0.000000e+00> : vector<40x8xf32>
    %311 = tpu.matmul %308, %310, %cst_248 {dimension_numbers = #tpu.dot_dimension_numbers<[1], [0], [0], [1], [0, 0, 1, 1], [], []>} : vector<40x16xbf16>, vector<16x8xbf16>, vector<40x8xf32> -> vector<40x8xf32>
    %312 = arith.addf %306, %311 : vector<40x8xf32>
    %c0_249 = arith.constant 0 : index
    %c12 = arith.constant 12 : index
    %c0_250 = arith.constant 0 : index
    %c0_251 = arith.constant 0 : index
    %313 = vector.load %arg1[%c0_249, %c12, %c0_250, %c0_251] : memref<1x20x48x16xbf16, #tpu.memory_space<vmem>>, vector<1x1x40x16xbf16>
    %314 = vector.shape_cast %313 : vector<1x1x40x16xbf16> to vector<40x16xbf16>
    %315 = vector.extract_strided_slice %7 {offsets = [2, 0, 0], sizes = [1, 16, 8], strides = [1, 1, 1]} : vector<4x16x8xbf16> to vector<1x16x8xbf16>
    %316 = vector.shape_cast %315 : vector<1x16x8xbf16> to vector<16x8xbf16>
    %cst_252 = arith.constant dense<0.000000e+00> : vector<40x8xf32>
    %317 = tpu.matmul %314, %316, %cst_252 {dimension_numbers = #tpu.dot_dimension_numbers<[1], [0], [0], [1], [0, 0, 1, 1], [], []>} : vector<40x16xbf16>, vector<16x8xbf16>, vector<40x8xf32> -> vector<40x8xf32>
    %318 = arith.addf %312, %317 : vector<40x8xf32>
    %c0_253 = arith.constant 0 : index
    %c13 = arith.constant 13 : index
    %c0_254 = arith.constant 0 : index
    %c0_255 = arith.constant 0 : index
    %319 = vector.load %arg1[%c0_253, %c13, %c0_254, %c0_255] : memref<1x20x48x16xbf16, #tpu.memory_space<vmem>>, vector<1x1x40x16xbf16>
    %320 = vector.shape_cast %319 : vector<1x1x40x16xbf16> to vector<40x16xbf16>
    %321 = vector.extract_strided_slice %7 {offsets = [3, 0, 0], sizes = [1, 16, 8], strides = [1, 1, 1]} : vector<4x16x8xbf16> to vector<1x16x8xbf16>
    %322 = vector.shape_cast %321 : vector<1x16x8xbf16> to vector<16x8xbf16>
    %cst_256 = arith.constant dense<0.000000e+00> : vector<40x8xf32>
    %323 = tpu.matmul %320, %322, %cst_256 {dimension_numbers = #tpu.dot_dimension_numbers<[1], [0], [0], [1], [0, 0, 1, 1], [], []>} : vector<40x16xbf16>, vector<16x8xbf16>, vector<40x8xf32> -> vector<40x8xf32>
    %324 = arith.addf %318, %323 : vector<40x8xf32>
    %cst_257 = arith.constant 0.000000e+00 : f32
    %325 = vector.broadcast %cst_257 : f32 to vector<40x8xf32>
    %326 = arith.maximumf %324, %325 : vector<40x8xf32>
    %327 = arith.truncf %326 : vector<40x8xf32> to vector<40x8xbf16>
    %328 = vector.shape_cast %327 : vector<40x8xbf16> to vector<1x40x8xbf16>
    %c10_258 = arith.constant 10 : index
    %c0_259 = arith.constant 0 : index
    %c0_260 = arith.constant 0 : index
    %329 = vector.load %arg13[%c10_258, %c0_259, %c0_260] : memref<18x40x8xbf16, #tpu.memory_space<vmem>>, vector<1x40x8xbf16>
    tpu.vector_store %arg13[%c10_258, %c0_259, %c0_260], %328 {strides = array<i32>} : memref<18x40x8xbf16, #tpu.memory_space<vmem>>, vector<1x40x8xbf16>,
    %c0_261 = arith.constant 0 : index
    %c11_262 = arith.constant 11 : index
    %c0_263 = arith.constant 0 : index
    %c0_264 = arith.constant 0 : index
    %330 = vector.load %arg1[%c0_261, %c11_262, %c0_263, %c0_264] : memref<1x20x48x16xbf16, #tpu.memory_space<vmem>>, vector<1x1x40x16xbf16>
    %331 = vector.shape_cast %330 : vector<1x1x40x16xbf16> to vector<40x16xbf16>
    %332 = vector.extract_strided_slice %7 {offsets = [0, 0, 0], sizes = [1, 16, 8], strides = [1, 1, 1]} : vector<4x16x8xbf16> to vector<1x16x8xbf16>
    %333 = vector.shape_cast %332 : vector<1x16x8xbf16> to vector<16x8xbf16>
    %cst_265 = arith.constant dense<0.000000e+00> : vector<40x8xf32>
    %334 = tpu.matmul %331, %333, %cst_265 {dimension_numbers = #tpu.dot_dimension_numbers<[1], [0], [0], [1], [0, 0, 1, 1], [], []>} : vector<40x16xbf16>, vector<16x8xbf16>, vector<40x8xf32> -> vector<40x8xf32>
    %335 = arith.addf %10, %334 : vector<40x8xf32>
    %c0_266 = arith.constant 0 : index
    %c10_267 = arith.constant 10 : index
    %c8_268 = arith.constant 8 : index
    %c0_269 = arith.constant 0 : index
    %336 = vector.load %arg1[%c0_266, %c10_267, %c8_268, %c0_269] : memref<1x20x48x16xbf16, #tpu.memory_space<vmem>>, vector<1x1x40x16xbf16>
    %337 = vector.shape_cast %336 : vector<1x1x40x16xbf16> to vector<40x16xbf16>
    %338 = vector.extract_strided_slice %7 {offsets = [1, 0, 0], sizes = [1, 16, 8], strides = [1, 1, 1]} : vector<4x16x8xbf16> to vector<1x16x8xbf16>
    %339 = vector.shape_cast %338 : vector<1x16x8xbf16> to vector<16x8xbf16>
    %cst_270 = arith.constant dense<0.000000e+00> : vector<40x8xf32>
    %340 = tpu.matmul %337, %339, %cst_270 {dimension_numbers = #tpu.dot_dimension_numbers<[1], [0], [0], [1], [0, 0, 1, 1], [], []>} : vector<40x16xbf16>, vector<16x8xbf16>, vector<40x8xf32> -> vector<40x8xf32>
    %341 = arith.addf %335, %340 : vector<40x8xf32>
    %c0_271 = arith.constant 0 : index
    %c13_272 = arith.constant 13 : index
    %c0_273 = arith.constant 0 : index
    %c0_274 = arith.constant 0 : index
    %342 = vector.load %arg1[%c0_271, %c13_272, %c0_273, %c0_274] : memref<1x20x48x16xbf16, #tpu.memory_space<vmem>>, vector<1x1x40x16xbf16>
    %343 = vector.shape_cast %342 : vector<1x1x40x16xbf16> to vector<40x16xbf16>
    %344 = vector.extract_strided_slice %7 {offsets = [2, 0, 0], sizes = [1, 16, 8], strides = [1, 1, 1]} : vector<4x16x8xbf16> to vector<1x16x8xbf16>
    %345 = vector.shape_cast %344 : vector<1x16x8xbf16> to vector<16x8xbf16>
    %cst_275 = arith.constant dense<0.000000e+00> : vector<40x8xf32>
    %346 = tpu.matmul %343, %345, %cst_275 {dimension_numbers = #tpu.dot_dimension_numbers<[1], [0], [0], [1], [0, 0, 1, 1], [], []>} : vector<40x16xbf16>, vector<16x8xbf16>, vector<40x8xf32> -> vector<40x8xf32>
    %347 = arith.addf %341, %346 : vector<40x8xf32>
    %c0_276 = arith.constant 0 : index
    %c12_277 = arith.constant 12 : index
    %c8_278 = arith.constant 8 : index
    %c0_279 = arith.constant 0 : index
    %348 = vector.load %arg1[%c0_276, %c12_277, %c8_278, %c0_279] : memref<1x20x48x16xbf16, #tpu.memory_space<vmem>>, vector<1x1x40x16xbf16>
    %349 = vector.shape_cast %348 : vector<1x1x40x16xbf16> to vector<40x16xbf16>
    %350 = vector.extract_strided_slice %7 {offsets = [3, 0, 0], sizes = [1, 16, 8], strides = [1, 1, 1]} : vector<4x16x8xbf16> to vector<1x16x8xbf16>
    %351 = vector.shape_cast %350 : vector<1x16x8xbf16> to vector<16x8xbf16>
    %cst_280 = arith.constant dense<0.000000e+00> : vector<40x8xf32>
    %352 = tpu.matmul %349, %351, %cst_280 {dimension_numbers = #tpu.dot_dimension_numbers<[1], [0], [0], [1], [0, 0, 1, 1], [], []>} : vector<40x16xbf16>, vector<16x8xbf16>, vector<40x8xf32> -> vector<40x8xf32>
    %353 = arith.addf %347, %352 : vector<40x8xf32>
    %cst_281 = arith.constant 0.000000e+00 : f32
    %354 = vector.broadcast %cst_281 : f32 to vector<40x8xf32>
    %355 = arith.maximumf %353, %354 : vector<40x8xf32>
    %356 = arith.truncf %355 : vector<40x8xf32> to vector<40x8xbf16>
    %357 = vector.shape_cast %356 : vector<40x8xbf16> to vector<1x40x8xbf16>
    %c11_282 = arith.constant 11 : index
    %c0_283 = arith.constant 0 : index
    %c0_284 = arith.constant 0 : index
    %358 = vector.load %arg13[%c11_282, %c0_283, %c0_284] : memref<18x40x8xbf16, #tpu.memory_space<vmem>>, vector<1x40x8xbf16>
    tpu.vector_store %arg13[%c11_282, %c0_283, %c0_284], %357 {strides = array<i32>} : memref<18x40x8xbf16, #tpu.memory_space<vmem>>, vector<1x40x8xbf16>,
    %c0_285 = arith.constant 0 : index
    %c12_286 = arith.constant 12 : index
    %c0_287 = arith.constant 0 : index
    %c0_288 = arith.constant 0 : index
    %359 = vector.load %arg1[%c0_285, %c12_286, %c0_287, %c0_288] : memref<1x20x48x16xbf16, #tpu.memory_space<vmem>>, vector<1x1x40x16xbf16>
    %360 = vector.shape_cast %359 : vector<1x1x40x16xbf16> to vector<40x16xbf16>
    %361 = vector.extract_strided_slice %7 {offsets = [0, 0, 0], sizes = [1, 16, 8], strides = [1, 1, 1]} : vector<4x16x8xbf16> to vector<1x16x8xbf16>
    %362 = vector.shape_cast %361 : vector<1x16x8xbf16> to vector<16x8xbf16>
    %cst_289 = arith.constant dense<0.000000e+00> : vector<40x8xf32>
    %363 = tpu.matmul %360, %362, %cst_289 {dimension_numbers = #tpu.dot_dimension_numbers<[1], [0], [0], [1], [0, 0, 1, 1], [], []>} : vector<40x16xbf16>, vector<16x8xbf16>, vector<40x8xf32> -> vector<40x8xf32>
    %364 = arith.addf %10, %363 : vector<40x8xf32>
    %c0_290 = arith.constant 0 : index
    %c13_291 = arith.constant 13 : index
    %c0_292 = arith.constant 0 : index
    %c0_293 = arith.constant 0 : index
    %365 = vector.load %arg1[%c0_290, %c13_291, %c0_292, %c0_293] : memref<1x20x48x16xbf16, #tpu.memory_space<vmem>>, vector<1x1x40x16xbf16>
    %366 = vector.shape_cast %365 : vector<1x1x40x16xbf16> to vector<40x16xbf16>
    %367 = vector.extract_strided_slice %7 {offsets = [1, 0, 0], sizes = [1, 16, 8], strides = [1, 1, 1]} : vector<4x16x8xbf16> to vector<1x16x8xbf16>
    %368 = vector.shape_cast %367 : vector<1x16x8xbf16> to vector<16x8xbf16>
    %cst_294 = arith.constant dense<0.000000e+00> : vector<40x8xf32>
    %369 = tpu.matmul %366, %368, %cst_294 {dimension_numbers = #tpu.dot_dimension_numbers<[1], [0], [0], [1], [0, 0, 1, 1], [], []>} : vector<40x16xbf16>, vector<16x8xbf16>, vector<40x8xf32> -> vector<40x8xf32>
    %370 = arith.addf %364, %369 : vector<40x8xf32>
    %c0_295 = arith.constant 0 : index
    %c14 = arith.constant 14 : index
    %c0_296 = arith.constant 0 : index
    %c0_297 = arith.constant 0 : index
    %371 = vector.load %arg1[%c0_295, %c14, %c0_296, %c0_297] : memref<1x20x48x16xbf16, #tpu.memory_space<vmem>>, vector<1x1x40x16xbf16>
    %372 = vector.shape_cast %371 : vector<1x1x40x16xbf16> to vector<40x16xbf16>
    %373 = vector.extract_strided_slice %7 {offsets = [2, 0, 0], sizes = [1, 16, 8], strides = [1, 1, 1]} : vector<4x16x8xbf16> to vector<1x16x8xbf16>
    %374 = vector.shape_cast %373 : vector<1x16x8xbf16> to vector<16x8xbf16>
    %cst_298 = arith.constant dense<0.000000e+00> : vector<40x8xf32>
    %375 = tpu.matmul %372, %374, %cst_298 {dimension_numbers = #tpu.dot_dimension_numbers<[1], [0], [0], [1], [0, 0, 1, 1], [], []>} : vector<40x16xbf16>, vector<16x8xbf16>, vector<40x8xf32> -> vector<40x8xf32>
    %376 = arith.addf %370, %375 : vector<40x8xf32>
    %c0_299 = arith.constant 0 : index
    %c15 = arith.constant 15 : index
    %c0_300 = arith.constant 0 : index
    %c0_301 = arith.constant 0 : index
    %377 = vector.load %arg1[%c0_299, %c15, %c0_300, %c0_301] : memref<1x20x48x16xbf16, #tpu.memory_space<vmem>>, vector<1x1x40x16xbf16>
    %378 = vector.shape_cast %377 : vector<1x1x40x16xbf16> to vector<40x16xbf16>
    %379 = vector.extract_strided_slice %7 {offsets = [3, 0, 0], sizes = [1, 16, 8], strides = [1, 1, 1]} : vector<4x16x8xbf16> to vector<1x16x8xbf16>
    %380 = vector.shape_cast %379 : vector<1x16x8xbf16> to vector<16x8xbf16>
    %cst_302 = arith.constant dense<0.000000e+00> : vector<40x8xf32>
    %381 = tpu.matmul %378, %380, %cst_302 {dimension_numbers = #tpu.dot_dimension_numbers<[1], [0], [0], [1], [0, 0, 1, 1], [], []>} : vector<40x16xbf16>, vector<16x8xbf16>, vector<40x8xf32> -> vector<40x8xf32>
    %382 = arith.addf %376, %381 : vector<40x8xf32>
    %cst_303 = arith.constant 0.000000e+00 : f32
    %383 = vector.broadcast %cst_303 : f32 to vector<40x8xf32>
    %384 = arith.maximumf %382, %383 : vector<40x8xf32>
    %385 = arith.truncf %384 : vector<40x8xf32> to vector<40x8xbf16>
    %386 = vector.shape_cast %385 : vector<40x8xbf16> to vector<1x40x8xbf16>
    %c12_304 = arith.constant 12 : index
    %c0_305 = arith.constant 0 : index
    %c0_306 = arith.constant 0 : index
    %387 = vector.load %arg13[%c12_304, %c0_305, %c0_306] : memref<18x40x8xbf16, #tpu.memory_space<vmem>>, vector<1x40x8xbf16>
    tpu.vector_store %arg13[%c12_304, %c0_305, %c0_306], %386 {strides = array<i32>} : memref<18x40x8xbf16, #tpu.memory_space<vmem>>, vector<1x40x8xbf16>,
    %c0_307 = arith.constant 0 : index
    %c13_308 = arith.constant 13 : index
    %c0_309 = arith.constant 0 : index
    %c0_310 = arith.constant 0 : index
    %388 = vector.load %arg1[%c0_307, %c13_308, %c0_309, %c0_310] : memref<1x20x48x16xbf16, #tpu.memory_space<vmem>>, vector<1x1x40x16xbf16>
    %389 = vector.shape_cast %388 : vector<1x1x40x16xbf16> to vector<40x16xbf16>
    %390 = vector.extract_strided_slice %7 {offsets = [0, 0, 0], sizes = [1, 16, 8], strides = [1, 1, 1]} : vector<4x16x8xbf16> to vector<1x16x8xbf16>
    %391 = vector.shape_cast %390 : vector<1x16x8xbf16> to vector<16x8xbf16>
    %cst_311 = arith.constant dense<0.000000e+00> : vector<40x8xf32>
    %392 = tpu.matmul %389, %391, %cst_311 {dimension_numbers = #tpu.dot_dimension_numbers<[1], [0], [0], [1], [0, 0, 1, 1], [], []>} : vector<40x16xbf16>, vector<16x8xbf16>, vector<40x8xf32> -> vector<40x8xf32>
    %393 = arith.addf %10, %392 : vector<40x8xf32>
    %c0_312 = arith.constant 0 : index
    %c12_313 = arith.constant 12 : index
    %c8_314 = arith.constant 8 : index
    %c0_315 = arith.constant 0 : index
    %394 = vector.load %arg1[%c0_312, %c12_313, %c8_314, %c0_315] : memref<1x20x48x16xbf16, #tpu.memory_space<vmem>>, vector<1x1x40x16xbf16>
    %395 = vector.shape_cast %394 : vector<1x1x40x16xbf16> to vector<40x16xbf16>
    %396 = vector.extract_strided_slice %7 {offsets = [1, 0, 0], sizes = [1, 16, 8], strides = [1, 1, 1]} : vector<4x16x8xbf16> to vector<1x16x8xbf16>
    %397 = vector.shape_cast %396 : vector<1x16x8xbf16> to vector<16x8xbf16>
    %cst_316 = arith.constant dense<0.000000e+00> : vector<40x8xf32>
    %398 = tpu.matmul %395, %397, %cst_316 {dimension_numbers = #tpu.dot_dimension_numbers<[1], [0], [0], [1], [0, 0, 1, 1], [], []>} : vector<40x16xbf16>, vector<16x8xbf16>, vector<40x8xf32> -> vector<40x8xf32>
    %399 = arith.addf %393, %398 : vector<40x8xf32>
    %c0_317 = arith.constant 0 : index
    %c15_318 = arith.constant 15 : index
    %c0_319 = arith.constant 0 : index
    %c0_320 = arith.constant 0 : index
    %400 = vector.load %arg1[%c0_317, %c15_318, %c0_319, %c0_320] : memref<1x20x48x16xbf16, #tpu.memory_space<vmem>>, vector<1x1x40x16xbf16>
    %401 = vector.shape_cast %400 : vector<1x1x40x16xbf16> to vector<40x16xbf16>
    %402 = vector.extract_strided_slice %7 {offsets = [2, 0, 0], sizes = [1, 16, 8], strides = [1, 1, 1]} : vector<4x16x8xbf16> to vector<1x16x8xbf16>
    %403 = vector.shape_cast %402 : vector<1x16x8xbf16> to vector<16x8xbf16>
    %cst_321 = arith.constant dense<0.000000e+00> : vector<40x8xf32>
    %404 = tpu.matmul %401, %403, %cst_321 {dimension_numbers = #tpu.dot_dimension_numbers<[1], [0], [0], [1], [0, 0, 1, 1], [], []>} : vector<40x16xbf16>, vector<16x8xbf16>, vector<40x8xf32> -> vector<40x8xf32>
    %405 = arith.addf %399, %404 : vector<40x8xf32>
    %c0_322 = arith.constant 0 : index
    %c14_323 = arith.constant 14 : index
    %c8_324 = arith.constant 8 : index
    %c0_325 = arith.constant 0 : index
    %406 = vector.load %arg1[%c0_322, %c14_323, %c8_324, %c0_325] : memref<1x20x48x16xbf16, #tpu.memory_space<vmem>>, vector<1x1x40x16xbf16>
    %407 = vector.shape_cast %406 : vector<1x1x40x16xbf16> to vector<40x16xbf16>
    %408 = vector.extract_strided_slice %7 {offsets = [3, 0, 0], sizes = [1, 16, 8], strides = [1, 1, 1]} : vector<4x16x8xbf16> to vector<1x16x8xbf16>
    %409 = vector.shape_cast %408 : vector<1x16x8xbf16> to vector<16x8xbf16>
    %cst_326 = arith.constant dense<0.000000e+00> : vector<40x8xf32>
    %410 = tpu.matmul %407, %409, %cst_326 {dimension_numbers = #tpu.dot_dimension_numbers<[1], [0], [0], [1], [0, 0, 1, 1], [], []>} : vector<40x16xbf16>, vector<16x8xbf16>, vector<40x8xf32> -> vector<40x8xf32>
    %411 = arith.addf %405, %410 : vector<40x8xf32>
    %cst_327 = arith.constant 0.000000e+00 : f32
    %412 = vector.broadcast %cst_327 : f32 to vector<40x8xf32>
    %413 = arith.maximumf %411, %412 : vector<40x8xf32>
    %414 = arith.truncf %413 : vector<40x8xf32> to vector<40x8xbf16>
    %415 = vector.shape_cast %414 : vector<40x8xbf16> to vector<1x40x8xbf16>
    %c13_328 = arith.constant 13 : index
    %c0_329 = arith.constant 0 : index
    %c0_330 = arith.constant 0 : index
    %416 = vector.load %arg13[%c13_328, %c0_329, %c0_330] : memref<18x40x8xbf16, #tpu.memory_space<vmem>>, vector<1x40x8xbf16>
    tpu.vector_store %arg13[%c13_328, %c0_329, %c0_330], %415 {strides = array<i32>} : memref<18x40x8xbf16, #tpu.memory_space<vmem>>, vector<1x40x8xbf16>,
    %c0_331 = arith.constant 0 : index
    %c14_332 = arith.constant 14 : index
    %c0_333 = arith.constant 0 : index
    %c0_334 = arith.constant 0 : index
    %417 = vector.load %arg1[%c0_331, %c14_332, %c0_333, %c0_334] : memref<1x20x48x16xbf16, #tpu.memory_space<vmem>>, vector<1x1x40x16xbf16>
    %418 = vector.shape_cast %417 : vector<1x1x40x16xbf16> to vector<40x16xbf16>
    %419 = vector.extract_strided_slice %7 {offsets = [0, 0, 0], sizes = [1, 16, 8], strides = [1, 1, 1]} : vector<4x16x8xbf16> to vector<1x16x8xbf16>
    %420 = vector.shape_cast %419 : vector<1x16x8xbf16> to vector<16x8xbf16>
    %cst_335 = arith.constant dense<0.000000e+00> : vector<40x8xf32>
    %421 = tpu.matmul %418, %420, %cst_335 {dimension_numbers = #tpu.dot_dimension_numbers<[1], [0], [0], [1], [0, 0, 1, 1], [], []>} : vector<40x16xbf16>, vector<16x8xbf16>, vector<40x8xf32> -> vector<40x8xf32>
    %422 = arith.addf %10, %421 : vector<40x8xf32>
    %c0_336 = arith.constant 0 : index
    %c15_337 = arith.constant 15 : index
    %c0_338 = arith.constant 0 : index
    %c0_339 = arith.constant 0 : index
    %423 = vector.load %arg1[%c0_336, %c15_337, %c0_338, %c0_339] : memref<1x20x48x16xbf16, #tpu.memory_space<vmem>>, vector<1x1x40x16xbf16>
    %424 = vector.shape_cast %423 : vector<1x1x40x16xbf16> to vector<40x16xbf16>
    %425 = vector.extract_strided_slice %7 {offsets = [1, 0, 0], sizes = [1, 16, 8], strides = [1, 1, 1]} : vector<4x16x8xbf16> to vector<1x16x8xbf16>
    %426 = vector.shape_cast %425 : vector<1x16x8xbf16> to vector<16x8xbf16>
    %cst_340 = arith.constant dense<0.000000e+00> : vector<40x8xf32>
    %427 = tpu.matmul %424, %426, %cst_340 {dimension_numbers = #tpu.dot_dimension_numbers<[1], [0], [0], [1], [0, 0, 1, 1], [], []>} : vector<40x16xbf16>, vector<16x8xbf16>, vector<40x8xf32> -> vector<40x8xf32>
    %428 = arith.addf %422, %427 : vector<40x8xf32>
    %c0_341 = arith.constant 0 : index
    %c16 = arith.constant 16 : index
    %c0_342 = arith.constant 0 : index
    %c0_343 = arith.constant 0 : index
    %429 = vector.load %arg1[%c0_341, %c16, %c0_342, %c0_343] : memref<1x20x48x16xbf16, #tpu.memory_space<vmem>>, vector<1x1x40x16xbf16>
    %430 = vector.shape_cast %429 : vector<1x1x40x16xbf16> to vector<40x16xbf16>
    %431 = vector.extract_strided_slice %7 {offsets = [2, 0, 0], sizes = [1, 16, 8], strides = [1, 1, 1]} : vector<4x16x8xbf16> to vector<1x16x8xbf16>
    %432 = vector.shape_cast %431 : vector<1x16x8xbf16> to vector<16x8xbf16>
    %cst_344 = arith.constant dense<0.000000e+00> : vector<40x8xf32>
    %433 = tpu.matmul %430, %432, %cst_344 {dimension_numbers = #tpu.dot_dimension_numbers<[1], [0], [0], [1], [0, 0, 1, 1], [], []>} : vector<40x16xbf16>, vector<16x8xbf16>, vector<40x8xf32> -> vector<40x8xf32>
    %434 = arith.addf %428, %433 : vector<40x8xf32>
    %c0_345 = arith.constant 0 : index
    %c17 = arith.constant 17 : index
    %c0_346 = arith.constant 0 : index
    %c0_347 = arith.constant 0 : index
    %435 = vector.load %arg1[%c0_345, %c17, %c0_346, %c0_347] : memref<1x20x48x16xbf16, #tpu.memory_space<vmem>>, vector<1x1x40x16xbf16>
    %436 = vector.shape_cast %435 : vector<1x1x40x16xbf16> to vector<40x16xbf16>
    %437 = vector.extract_strided_slice %7 {offsets = [3, 0, 0], sizes = [1, 16, 8], strides = [1, 1, 1]} : vector<4x16x8xbf16> to vector<1x16x8xbf16>
    %438 = vector.shape_cast %437 : vector<1x16x8xbf16> to vector<16x8xbf16>
    %cst_348 = arith.constant dense<0.000000e+00> : vector<40x8xf32>
    %439 = tpu.matmul %436, %438, %cst_348 {dimension_numbers = #tpu.dot_dimension_numbers<[1], [0], [0], [1], [0, 0, 1, 1], [], []>} : vector<40x16xbf16>, vector<16x8xbf16>, vector<40x8xf32> -> vector<40x8xf32>
    %440 = arith.addf %434, %439 : vector<40x8xf32>
    %cst_349 = arith.constant 0.000000e+00 : f32
    %441 = vector.broadcast %cst_349 : f32 to vector<40x8xf32>
    %442 = arith.maximumf %440, %441 : vector<40x8xf32>
    %443 = arith.truncf %442 : vector<40x8xf32> to vector<40x8xbf16>
    %444 = vector.shape_cast %443 : vector<40x8xbf16> to vector<1x40x8xbf16>
    %c14_350 = arith.constant 14 : index
    %c0_351 = arith.constant 0 : index
    %c0_352 = arith.constant 0 : index
    %445 = vector.load %arg13[%c14_350, %c0_351, %c0_352] : memref<18x40x8xbf16, #tpu.memory_space<vmem>>, vector<1x40x8xbf16>
    tpu.vector_store %arg13[%c14_350, %c0_351, %c0_352], %444 {strides = array<i32>} : memref<18x40x8xbf16, #tpu.memory_space<vmem>>, vector<1x40x8xbf16>,
    %c0_353 = arith.constant 0 : index
    %c15_354 = arith.constant 15 : index
    %c0_355 = arith.constant 0 : index
    %c0_356 = arith.constant 0 : index
    %446 = vector.load %arg1[%c0_353, %c15_354, %c0_355, %c0_356] : memref<1x20x48x16xbf16, #tpu.memory_space<vmem>>, vector<1x1x40x16xbf16>
    %447 = vector.shape_cast %446 : vector<1x1x40x16xbf16> to vector<40x16xbf16>
    %448 = vector.extract_strided_slice %7 {offsets = [0, 0, 0], sizes = [1, 16, 8], strides = [1, 1, 1]} : vector<4x16x8xbf16> to vector<1x16x8xbf16>
    %449 = vector.shape_cast %448 : vector<1x16x8xbf16> to vector<16x8xbf16>
    %cst_357 = arith.constant dense<0.000000e+00> : vector<40x8xf32>
    %450 = tpu.matmul %447, %449, %cst_357 {dimension_numbers = #tpu.dot_dimension_numbers<[1], [0], [0], [1], [0, 0, 1, 1], [], []>} : vector<40x16xbf16>, vector<16x8xbf16>, vector<40x8xf32> -> vector<40x8xf32>
    %451 = arith.addf %10, %450 : vector<40x8xf32>
    %c0_358 = arith.constant 0 : index
    %c14_359 = arith.constant 14 : index
    %c8_360 = arith.constant 8 : index
    %c0_361 = arith.constant 0 : index
    %452 = vector.load %arg1[%c0_358, %c14_359, %c8_360, %c0_361] : memref<1x20x48x16xbf16, #tpu.memory_space<vmem>>, vector<1x1x40x16xbf16>
    %453 = vector.shape_cast %452 : vector<1x1x40x16xbf16> to vector<40x16xbf16>
    %454 = vector.extract_strided_slice %7 {offsets = [1, 0, 0], sizes = [1, 16, 8], strides = [1, 1, 1]} : vector<4x16x8xbf16> to vector<1x16x8xbf16>
    %455 = vector.shape_cast %454 : vector<1x16x8xbf16> to vector<16x8xbf16>
    %cst_362 = arith.constant dense<0.000000e+00> : vector<40x8xf32>
    %456 = tpu.matmul %453, %455, %cst_362 {dimension_numbers = #tpu.dot_dimension_numbers<[1], [0], [0], [1], [0, 0, 1, 1], [], []>} : vector<40x16xbf16>, vector<16x8xbf16>, vector<40x8xf32> -> vector<40x8xf32>
    %457 = arith.addf %451, %456 : vector<40x8xf32>
    %c0_363 = arith.constant 0 : index
    %c17_364 = arith.constant 17 : index
    %c0_365 = arith.constant 0 : index
    %c0_366 = arith.constant 0 : index
    %458 = vector.load %arg1[%c0_363, %c17_364, %c0_365, %c0_366] : memref<1x20x48x16xbf16, #tpu.memory_space<vmem>>, vector<1x1x40x16xbf16>
    %459 = vector.shape_cast %458 : vector<1x1x40x16xbf16> to vector<40x16xbf16>
    %460 = vector.extract_strided_slice %7 {offsets = [2, 0, 0], sizes = [1, 16, 8], strides = [1, 1, 1]} : vector<4x16x8xbf16> to vector<1x16x8xbf16>
    %461 = vector.shape_cast %460 : vector<1x16x8xbf16> to vector<16x8xbf16>
    %cst_367 = arith.constant dense<0.000000e+00> : vector<40x8xf32>
    %462 = tpu.matmul %459, %461, %cst_367 {dimension_numbers = #tpu.dot_dimension_numbers<[1], [0], [0], [1], [0, 0, 1, 1], [], []>} : vector<40x16xbf16>, vector<16x8xbf16>, vector<40x8xf32> -> vector<40x8xf32>
    %463 = arith.addf %457, %462 : vector<40x8xf32>
    %c0_368 = arith.constant 0 : index
    %c16_369 = arith.constant 16 : index
    %c8_370 = arith.constant 8 : index
    %c0_371 = arith.constant 0 : index
    %464 = vector.load %arg1[%c0_368, %c16_369, %c8_370, %c0_371] : memref<1x20x48x16xbf16, #tpu.memory_space<vmem>>, vector<1x1x40x16xbf16>
    %465 = vector.shape_cast %464 : vector<1x1x40x16xbf16> to vector<40x16xbf16>
    %466 = vector.extract_strided_slice %7 {offsets = [3, 0, 0], sizes = [1, 16, 8], strides = [1, 1, 1]} : vector<4x16x8xbf16> to vector<1x16x8xbf16>
    %467 = vector.shape_cast %466 : vector<1x16x8xbf16> to vector<16x8xbf16>
    %cst_372 = arith.constant dense<0.000000e+00> : vector<40x8xf32>
    %468 = tpu.matmul %465, %467, %cst_372 {dimension_numbers = #tpu.dot_dimension_numbers<[1], [0], [0], [1], [0, 0, 1, 1], [], []>} : vector<40x16xbf16>, vector<16x8xbf16>, vector<40x8xf32> -> vector<40x8xf32>
    %469 = arith.addf %463, %468 : vector<40x8xf32>
    %cst_373 = arith.constant 0.000000e+00 : f32
    %470 = vector.broadcast %cst_373 : f32 to vector<40x8xf32>
    %471 = arith.maximumf %469, %470 : vector<40x8xf32>
    %472 = arith.truncf %471 : vector<40x8xf32> to vector<40x8xbf16>
    %473 = vector.shape_cast %472 : vector<40x8xbf16> to vector<1x40x8xbf16>
    %c15_374 = arith.constant 15 : index
    %c0_375 = arith.constant 0 : index
    %c0_376 = arith.constant 0 : index
    %474 = vector.load %arg13[%c15_374, %c0_375, %c0_376] : memref<18x40x8xbf16, #tpu.memory_space<vmem>>, vector<1x40x8xbf16>
    tpu.vector_store %arg13[%c15_374, %c0_375, %c0_376], %473 {strides = array<i32>} : memref<18x40x8xbf16, #tpu.memory_space<vmem>>, vector<1x40x8xbf16>,
    %c0_377 = arith.constant 0 : index
    %c16_378 = arith.constant 16 : index
    %c0_379 = arith.constant 0 : index
    %c0_380 = arith.constant 0 : index
    %475 = vector.load %arg1[%c0_377, %c16_378, %c0_379, %c0_380] : memref<1x20x48x16xbf16, #tpu.memory_space<vmem>>, vector<1x1x40x16xbf16>
    %476 = vector.shape_cast %475 : vector<1x1x40x16xbf16> to vector<40x16xbf16>
    %477 = vector.extract_strided_slice %7 {offsets = [0, 0, 0], sizes = [1, 16, 8], strides = [1, 1, 1]} : vector<4x16x8xbf16> to vector<1x16x8xbf16>
    %478 = vector.shape_cast %477 : vector<1x16x8xbf16> to vector<16x8xbf16>
    %cst_381 = arith.constant dense<0.000000e+00> : vector<40x8xf32>
    %479 = tpu.matmul %476, %478, %cst_381 {dimension_numbers = #tpu.dot_dimension_numbers<[1], [0], [0], [1], [0, 0, 1, 1], [], []>} : vector<40x16xbf16>, vector<16x8xbf16>, vector<40x8xf32> -> vector<40x8xf32>
    %480 = arith.addf %10, %479 : vector<40x8xf32>
    %c0_382 = arith.constant 0 : index
    %c17_383 = arith.constant 17 : index
    %c0_384 = arith.constant 0 : index
    %c0_385 = arith.constant 0 : index
    %481 = vector.load %arg1[%c0_382, %c17_383, %c0_384, %c0_385] : memref<1x20x48x16xbf16, #tpu.memory_space<vmem>>, vector<1x1x40x16xbf16>
    %482 = vector.shape_cast %481 : vector<1x1x40x16xbf16> to vector<40x16xbf16>
    %483 = vector.extract_strided_slice %7 {offsets = [1, 0, 0], sizes = [1, 16, 8], strides = [1, 1, 1]} : vector<4x16x8xbf16> to vector<1x16x8xbf16>
    %484 = vector.shape_cast %483 : vector<1x16x8xbf16> to vector<16x8xbf16>
    %cst_386 = arith.constant dense<0.000000e+00> : vector<40x8xf32>
    %485 = tpu.matmul %482, %484, %cst_386 {dimension_numbers = #tpu.dot_dimension_numbers<[1], [0], [0], [1], [0, 0, 1, 1], [], []>} : vector<40x16xbf16>, vector<16x8xbf16>, vector<40x8xf32> -> vector<40x8xf32>
    %486 = arith.addf %480, %485 : vector<40x8xf32>
    %c0_387 = arith.constant 0 : index
    %c18 = arith.constant 18 : index
    %c0_388 = arith.constant 0 : index
    %c0_389 = arith.constant 0 : index
    %487 = vector.load %arg1[%c0_387, %c18, %c0_388, %c0_389] : memref<1x20x48x16xbf16, #tpu.memory_space<vmem>>, vector<1x1x40x16xbf16>
    %488 = vector.shape_cast %487 : vector<1x1x40x16xbf16> to vector<40x16xbf16>
    %489 = vector.extract_strided_slice %7 {offsets = [2, 0, 0], sizes = [1, 16, 8], strides = [1, 1, 1]} : vector<4x16x8xbf16> to vector<1x16x8xbf16>
    %490 = vector.shape_cast %489 : vector<1x16x8xbf16> to vector<16x8xbf16>
    %cst_390 = arith.constant dense<0.000000e+00> : vector<40x8xf32>
    %491 = tpu.matmul %488, %490, %cst_390 {dimension_numbers = #tpu.dot_dimension_numbers<[1], [0], [0], [1], [0, 0, 1, 1], [], []>} : vector<40x16xbf16>, vector<16x8xbf16>, vector<40x8xf32> -> vector<40x8xf32>
    %492 = arith.addf %486, %491 : vector<40x8xf32>
    %c0_391 = arith.constant 0 : index
    %c19 = arith.constant 19 : index
    %c0_392 = arith.constant 0 : index
    %c0_393 = arith.constant 0 : index
    %493 = vector.load %arg1[%c0_391, %c19, %c0_392, %c0_393] : memref<1x20x48x16xbf16, #tpu.memory_space<vmem>>, vector<1x1x40x16xbf16>
    %494 = vector.shape_cast %493 : vector<1x1x40x16xbf16> to vector<40x16xbf16>
    %495 = vector.extract_strided_slice %7 {offsets = [3, 0, 0], sizes = [1, 16, 8], strides = [1, 1, 1]} : vector<4x16x8xbf16> to vector<1x16x8xbf16>
    %496 = vector.shape_cast %495 : vector<1x16x8xbf16> to vector<16x8xbf16>
    %cst_394 = arith.constant dense<0.000000e+00> : vector<40x8xf32>
    %497 = tpu.matmul %494, %496, %cst_394 {dimension_numbers = #tpu.dot_dimension_numbers<[1], [0], [0], [1], [0, 0, 1, 1], [], []>} : vector<40x16xbf16>, vector<16x8xbf16>, vector<40x8xf32> -> vector<40x8xf32>
    %498 = arith.addf %492, %497 : vector<40x8xf32>
    %cst_395 = arith.constant 0.000000e+00 : f32
    %499 = vector.broadcast %cst_395 : f32 to vector<40x8xf32>
    %500 = arith.maximumf %498, %499 : vector<40x8xf32>
    %501 = arith.truncf %500 : vector<40x8xf32> to vector<40x8xbf16>
    %502 = vector.shape_cast %501 : vector<40x8xbf16> to vector<1x40x8xbf16>
    %c16_396 = arith.constant 16 : index
    %c0_397 = arith.constant 0 : index
    %c0_398 = arith.constant 0 : index
    %503 = vector.load %arg13[%c16_396, %c0_397, %c0_398] : memref<18x40x8xbf16, #tpu.memory_space<vmem>>, vector<1x40x8xbf16>
    tpu.vector_store %arg13[%c16_396, %c0_397, %c0_398], %502 {strides = array<i32>} : memref<18x40x8xbf16, #tpu.memory_space<vmem>>, vector<1x40x8xbf16>,
    %c0_399 = arith.constant 0 : index
    %c17_400 = arith.constant 17 : index
    %c0_401 = arith.constant 0 : index
    %c0_402 = arith.constant 0 : index
    %504 = vector.load %arg1[%c0_399, %c17_400, %c0_401, %c0_402] : memref<1x20x48x16xbf16, #tpu.memory_space<vmem>>, vector<1x1x40x16xbf16>
    %505 = vector.shape_cast %504 : vector<1x1x40x16xbf16> to vector<40x16xbf16>
    %506 = vector.extract_strided_slice %7 {offsets = [0, 0, 0], sizes = [1, 16, 8], strides = [1, 1, 1]} : vector<4x16x8xbf16> to vector<1x16x8xbf16>
    %507 = vector.shape_cast %506 : vector<1x16x8xbf16> to vector<16x8xbf16>
    %cst_403 = arith.constant dense<0.000000e+00> : vector<40x8xf32>
    %508 = tpu.matmul %505, %507, %cst_403 {dimension_numbers = #tpu.dot_dimension_numbers<[1], [0], [0], [1], [0, 0, 1, 1], [], []>} : vector<40x16xbf16>, vector<16x8xbf16>, vector<40x8xf32> -> vector<40x8xf32>
    %509 = arith.addf %10, %508 : vector<40x8xf32>
    %c0_404 = arith.constant 0 : index
    %c16_405 = arith.constant 16 : index
    %c8_406 = arith.constant 8 : index
    %c0_407 = arith.constant 0 : index
    %510 = vector.load %arg1[%c0_404, %c16_405, %c8_406, %c0_407] : memref<1x20x48x16xbf16, #tpu.memory_space<vmem>>, vector<1x1x40x16xbf16>
    %511 = vector.shape_cast %510 : vector<1x1x40x16xbf16> to vector<40x16xbf16>
    %512 = vector.extract_strided_slice %7 {offsets = [1, 0, 0], sizes = [1, 16, 8], strides = [1, 1, 1]} : vector<4x16x8xbf16> to vector<1x16x8xbf16>
    %513 = vector.shape_cast %512 : vector<1x16x8xbf16> to vector<16x8xbf16>
    %cst_408 = arith.constant dense<0.000000e+00> : vector<40x8xf32>
    %514 = tpu.matmul %511, %513, %cst_408 {dimension_numbers = #tpu.dot_dimension_numbers<[1], [0], [0], [1], [0, 0, 1, 1], [], []>} : vector<40x16xbf16>, vector<16x8xbf16>, vector<40x8xf32> -> vector<40x8xf32>
    %515 = arith.addf %509, %514 : vector<40x8xf32>
    %c0_409 = arith.constant 0 : index
    %c19_410 = arith.constant 19 : index
    %c0_411 = arith.constant 0 : index
    %c0_412 = arith.constant 0 : index
    %516 = vector.load %arg1[%c0_409, %c19_410, %c0_411, %c0_412] : memref<1x20x48x16xbf16, #tpu.memory_space<vmem>>, vector<1x1x40x16xbf16>
    %517 = vector.shape_cast %516 : vector<1x1x40x16xbf16> to vector<40x16xbf16>
    %518 = vector.extract_strided_slice %7 {offsets = [2, 0, 0], sizes = [1, 16, 8], strides = [1, 1, 1]} : vector<4x16x8xbf16> to vector<1x16x8xbf16>
    %519 = vector.shape_cast %518 : vector<1x16x8xbf16> to vector<16x8xbf16>
    %cst_413 = arith.constant dense<0.000000e+00> : vector<40x8xf32>
    %520 = tpu.matmul %517, %519, %cst_413 {dimension_numbers = #tpu.dot_dimension_numbers<[1], [0], [0], [1], [0, 0, 1, 1], [], []>} : vector<40x16xbf16>, vector<16x8xbf16>, vector<40x8xf32> -> vector<40x8xf32>
    %521 = arith.addf %515, %520 : vector<40x8xf32>
    %c0_414 = arith.constant 0 : index
    %c18_415 = arith.constant 18 : index
    %c8_416 = arith.constant 8 : index
    %c0_417 = arith.constant 0 : index
    %522 = vector.load %arg1[%c0_414, %c18_415, %c8_416, %c0_417] : memref<1x20x48x16xbf16, #tpu.memory_space<vmem>>, vector<1x1x40x16xbf16>
    %523 = vector.shape_cast %522 : vector<1x1x40x16xbf16> to vector<40x16xbf16>
    %524 = vector.extract_strided_slice %7 {offsets = [3, 0, 0], sizes = [1, 16, 8], strides = [1, 1, 1]} : vector<4x16x8xbf16> to vector<1x16x8xbf16>
    %525 = vector.shape_cast %524 : vector<1x16x8xbf16> to vector<16x8xbf16>
    %cst_418 = arith.constant dense<0.000000e+00> : vector<40x8xf32>
    %526 = tpu.matmul %523, %525, %cst_418 {dimension_numbers = #tpu.dot_dimension_numbers<[1], [0], [0], [1], [0, 0, 1, 1], [], []>} : vector<40x16xbf16>, vector<16x8xbf16>, vector<40x8xf32> -> vector<40x8xf32>
    %527 = arith.addf %521, %526 : vector<40x8xf32>
    %cst_419 = arith.constant 0.000000e+00 : f32
    %528 = vector.broadcast %cst_419 : f32 to vector<40x8xf32>
    %529 = arith.maximumf %527, %528 : vector<40x8xf32>
    %530 = arith.truncf %529 : vector<40x8xf32> to vector<40x8xbf16>
    %531 = vector.shape_cast %530 : vector<40x8xbf16> to vector<1x40x8xbf16>
    %c17_420 = arith.constant 17 : index
    %c0_421 = arith.constant 0 : index
    %c0_422 = arith.constant 0 : index
    %532 = vector.load %arg13[%c17_420, %c0_421, %c0_422] : memref<18x40x8xbf16, #tpu.memory_space<vmem>>, vector<1x40x8xbf16>
    tpu.vector_store %arg13[%c17_420, %c0_421, %c0_422], %531 {strides = array<i32>} : memref<18x40x8xbf16, #tpu.memory_space<vmem>>, vector<1x40x8xbf16>,
    %c0_423 = arith.constant 0 : index
    %c0_424 = arith.constant 0 : index
    %c0_425 = arith.constant 0 : index
    %533 = vector.load %arg5[%c0_423, %c0_424, %c0_425] : memref<16x8x16xbf16, #tpu.memory_space<vmem>>, vector<16x8x16xbf16>
    %c0_426 = arith.constant 0 : index
    %c0_427 = arith.constant 0 : index
    %534 = vector.load %arg6[%c0_426, %c0_427] : memref<1x16xf32, #tpu.memory_space<vmem>>, vector<1x16xf32>
    %535 = vector.shape_cast %534 : vector<1x16xf32> to vector<1x16xf32>
    %536 = vector.broadcast %535 : vector<1x16xf32> to vector<24x16xf32>
    %c0_428 = arith.constant 0 : index
    %c0_429 = arith.constant 0 : index
    %c0_430 = arith.constant 0 : index
    %537 = vector.load %arg13[%c0_428, %c0_429, %c0_430] : memref<18x40x8xbf16, #tpu.memory_space<vmem>>, vector<1x24x8xbf16>
    %538 = vector.shape_cast %537 : vector<1x24x8xbf16> to vector<24x8xbf16>
    %539 = vector.extract_strided_slice %533 {offsets = [0, 0, 0], sizes = [1, 8, 16], strides = [1, 1, 1]} : vector<16x8x16xbf16> to vector<1x8x16xbf16>
    %540 = vector.shape_cast %539 : vector<1x8x16xbf16> to vector<8x16xbf16>
    %cst_431 = arith.constant dense<0.000000e+00> : vector<24x16xf32>
    %541 = tpu.matmul %538, %540, %cst_431 {dimension_numbers = #tpu.dot_dimension_numbers<[1], [0], [0], [1], [0, 0, 1, 1], [], []>} : vector<24x8xbf16>, vector<8x16xbf16>, vector<24x16xf32> -> vector<24x16xf32>
    %542 = arith.addf %536, %541 : vector<24x16xf32>
    %c1_432 = arith.constant 1 : index
    %c0_433 = arith.constant 0 : index
    %c0_434 = arith.constant 0 : index
    %543 = vector.load %arg13[%c1_432, %c0_433, %c0_434] : memref<18x40x8xbf16, #tpu.memory_space<vmem>>, vector<1x24x8xbf16>
    %544 = vector.shape_cast %543 : vector<1x24x8xbf16> to vector<24x8xbf16>
    %545 = vector.extract_strided_slice %533 {offsets = [1, 0, 0], sizes = [1, 8, 16], strides = [1, 1, 1]} : vector<16x8x16xbf16> to vector<1x8x16xbf16>
    %546 = vector.shape_cast %545 : vector<1x8x16xbf16> to vector<8x16xbf16>
    %cst_435 = arith.constant dense<0.000000e+00> : vector<24x16xf32>
    %547 = tpu.matmul %544, %546, %cst_435 {dimension_numbers = #tpu.dot_dimension_numbers<[1], [0], [0], [1], [0, 0, 1, 1], [], []>} : vector<24x8xbf16>, vector<8x16xbf16>, vector<24x16xf32> -> vector<24x16xf32>
    %548 = arith.addf %542, %547 : vector<24x16xf32>
    %c0_436 = arith.constant 0 : index
    %c8_437 = arith.constant 8 : index
    %c0_438 = arith.constant 0 : index
    %549 = vector.load %arg13[%c0_436, %c8_437, %c0_438] : memref<18x40x8xbf16, #tpu.memory_space<vmem>>, vector<1x24x8xbf16>
    %550 = vector.shape_cast %549 : vector<1x24x8xbf16> to vector<24x8xbf16>
    %551 = vector.extract_strided_slice %533 {offsets = [2, 0, 0], sizes = [1, 8, 16], strides = [1, 1, 1]} : vector<16x8x16xbf16> to vector<1x8x16xbf16>
    %552 = vector.shape_cast %551 : vector<1x8x16xbf16> to vector<8x16xbf16>
    %cst_439 = arith.constant dense<0.000000e+00> : vector<24x16xf32>
    %553 = tpu.matmul %550, %552, %cst_439 {dimension_numbers = #tpu.dot_dimension_numbers<[1], [0], [0], [1], [0, 0, 1, 1], [], []>} : vector<24x8xbf16>, vector<8x16xbf16>, vector<24x16xf32> -> vector<24x16xf32>
    %554 = arith.addf %548, %553 : vector<24x16xf32>
    %c1_440 = arith.constant 1 : index
    %c8_441 = arith.constant 8 : index
    %c0_442 = arith.constant 0 : index
    %555 = vector.load %arg13[%c1_440, %c8_441, %c0_442] : memref<18x40x8xbf16, #tpu.memory_space<vmem>>, vector<1x24x8xbf16>
    %556 = vector.shape_cast %555 : vector<1x24x8xbf16> to vector<24x8xbf16>
    %557 = vector.extract_strided_slice %533 {offsets = [3, 0, 0], sizes = [1, 8, 16], strides = [1, 1, 1]} : vector<16x8x16xbf16> to vector<1x8x16xbf16>
    %558 = vector.shape_cast %557 : vector<1x8x16xbf16> to vector<8x16xbf16>
    %cst_443 = arith.constant dense<0.000000e+00> : vector<24x16xf32>
    %559 = tpu.matmul %556, %558, %cst_443 {dimension_numbers = #tpu.dot_dimension_numbers<[1], [0], [0], [1], [0, 0, 1, 1], [], []>} : vector<24x8xbf16>, vector<8x16xbf16>, vector<24x16xf32> -> vector<24x16xf32>
    %560 = arith.addf %554, %559 : vector<24x16xf32>
    %c2_444 = arith.constant 2 : index
    %c0_445 = arith.constant 0 : index
    %c0_446 = arith.constant 0 : index
    %561 = vector.load %arg13[%c2_444, %c0_445, %c0_446] : memref<18x40x8xbf16, #tpu.memory_space<vmem>>, vector<1x24x8xbf16>
    %562 = vector.shape_cast %561 : vector<1x24x8xbf16> to vector<24x8xbf16>
    %563 = vector.extract_strided_slice %533 {offsets = [4, 0, 0], sizes = [1, 8, 16], strides = [1, 1, 1]} : vector<16x8x16xbf16> to vector<1x8x16xbf16>
    %564 = vector.shape_cast %563 : vector<1x8x16xbf16> to vector<8x16xbf16>
    %cst_447 = arith.constant dense<0.000000e+00> : vector<24x16xf32>
    %565 = tpu.matmul %562, %564, %cst_447 {dimension_numbers = #tpu.dot_dimension_numbers<[1], [0], [0], [1], [0, 0, 1, 1], [], []>} : vector<24x8xbf16>, vector<8x16xbf16>, vector<24x16xf32> -> vector<24x16xf32>
    %566 = arith.addf %560, %565 : vector<24x16xf32>
    %c3_448 = arith.constant 3 : index
    %c0_449 = arith.constant 0 : index
    %c0_450 = arith.constant 0 : index
    %567 = vector.load %arg13[%c3_448, %c0_449, %c0_450] : memref<18x40x8xbf16, #tpu.memory_space<vmem>>, vector<1x24x8xbf16>
    %568 = vector.shape_cast %567 : vector<1x24x8xbf16> to vector<24x8xbf16>
    %569 = vector.extract_strided_slice %533 {offsets = [5, 0, 0], sizes = [1, 8, 16], strides = [1, 1, 1]} : vector<16x8x16xbf16> to vector<1x8x16xbf16>
    %570 = vector.shape_cast %569 : vector<1x8x16xbf16> to vector<8x16xbf16>
    %cst_451 = arith.constant dense<0.000000e+00> : vector<24x16xf32>
    %571 = tpu.matmul %568, %570, %cst_451 {dimension_numbers = #tpu.dot_dimension_numbers<[1], [0], [0], [1], [0, 0, 1, 1], [], []>} : vector<24x8xbf16>, vector<8x16xbf16>, vector<24x16xf32> -> vector<24x16xf32>
    %572 = arith.addf %566, %571 : vector<24x16xf32>
    %c2_452 = arith.constant 2 : index
    %c8_453 = arith.constant 8 : index
    %c0_454 = arith.constant 0 : index
    %573 = vector.load %arg13[%c2_452, %c8_453, %c0_454] : memref<18x40x8xbf16, #tpu.memory_space<vmem>>, vector<1x24x8xbf16>
    %574 = vector.shape_cast %573 : vector<1x24x8xbf16> to vector<24x8xbf16>
    %575 = vector.extract_strided_slice %533 {offsets = [6, 0, 0], sizes = [1, 8, 16], strides = [1, 1, 1]} : vector<16x8x16xbf16> to vector<1x8x16xbf16>
    %576 = vector.shape_cast %575 : vector<1x8x16xbf16> to vector<8x16xbf16>
    %cst_455 = arith.constant dense<0.000000e+00> : vector<24x16xf32>
    %577 = tpu.matmul %574, %576, %cst_455 {dimension_numbers = #tpu.dot_dimension_numbers<[1], [0], [0], [1], [0, 0, 1, 1], [], []>} : vector<24x8xbf16>, vector<8x16xbf16>, vector<24x16xf32> -> vector<24x16xf32>
    %578 = arith.addf %572, %577 : vector<24x16xf32>
    %c3_456 = arith.constant 3 : index
    %c8_457 = arith.constant 8 : index
    %c0_458 = arith.constant 0 : index
    %579 = vector.load %arg13[%c3_456, %c8_457, %c0_458] : memref<18x40x8xbf16, #tpu.memory_space<vmem>>, vector<1x24x8xbf16>
    %580 = vector.shape_cast %579 : vector<1x24x8xbf16> to vector<24x8xbf16>
    %581 = vector.extract_strided_slice %533 {offsets = [7, 0, 0], sizes = [1, 8, 16], strides = [1, 1, 1]} : vector<16x8x16xbf16> to vector<1x8x16xbf16>
    %582 = vector.shape_cast %581 : vector<1x8x16xbf16> to vector<8x16xbf16>
    %cst_459 = arith.constant dense<0.000000e+00> : vector<24x16xf32>
    %583 = tpu.matmul %580, %582, %cst_459 {dimension_numbers = #tpu.dot_dimension_numbers<[1], [0], [0], [1], [0, 0, 1, 1], [], []>} : vector<24x8xbf16>, vector<8x16xbf16>, vector<24x16xf32> -> vector<24x16xf32>
    %584 = arith.addf %578, %583 : vector<24x16xf32>
    %c4_460 = arith.constant 4 : index
    %c0_461 = arith.constant 0 : index
    %c0_462 = arith.constant 0 : index
    %585 = vector.load %arg13[%c4_460, %c0_461, %c0_462] : memref<18x40x8xbf16, #tpu.memory_space<vmem>>, vector<1x24x8xbf16>
    %586 = vector.shape_cast %585 : vector<1x24x8xbf16> to vector<24x8xbf16>
    %587 = vector.extract_strided_slice %533 {offsets = [8, 0, 0], sizes = [1, 8, 16], strides = [1, 1, 1]} : vector<16x8x16xbf16> to vector<1x8x16xbf16>
    %588 = vector.shape_cast %587 : vector<1x8x16xbf16> to vector<8x16xbf16>
    %cst_463 = arith.constant dense<0.000000e+00> : vector<24x16xf32>
    %589 = tpu.matmul %586, %588, %cst_463 {dimension_numbers = #tpu.dot_dimension_numbers<[1], [0], [0], [1], [0, 0, 1, 1], [], []>} : vector<24x8xbf16>, vector<8x16xbf16>, vector<24x16xf32> -> vector<24x16xf32>
    %590 = arith.addf %584, %589 : vector<24x16xf32>
    %c5_464 = arith.constant 5 : index
    %c0_465 = arith.constant 0 : index
    %c0_466 = arith.constant 0 : index
    %591 = vector.load %arg13[%c5_464, %c0_465, %c0_466] : memref<18x40x8xbf16, #tpu.memory_space<vmem>>, vector<1x24x8xbf16>
    %592 = vector.shape_cast %591 : vector<1x24x8xbf16> to vector<24x8xbf16>
    %593 = vector.extract_strided_slice %533 {offsets = [9, 0, 0], sizes = [1, 8, 16], strides = [1, 1, 1]} : vector<16x8x16xbf16> to vector<1x8x16xbf16>
    %594 = vector.shape_cast %593 : vector<1x8x16xbf16> to vector<8x16xbf16>
    %cst_467 = arith.constant dense<0.000000e+00> : vector<24x16xf32>
    %595 = tpu.matmul %592, %594, %cst_467 {dimension_numbers = #tpu.dot_dimension_numbers<[1], [0], [0], [1], [0, 0, 1, 1], [], []>} : vector<24x8xbf16>, vector<8x16xbf16>, vector<24x16xf32> -> vector<24x16xf32>
    %596 = arith.addf %590, %595 : vector<24x16xf32>
    %c4_468 = arith.constant 4 : index
    %c8_469 = arith.constant 8 : index
    %c0_470 = arith.constant 0 : index
    %597 = vector.load %arg13[%c4_468, %c8_469, %c0_470] : memref<18x40x8xbf16, #tpu.memory_space<vmem>>, vector<1x24x8xbf16>
    %598 = vector.shape_cast %597 : vector<1x24x8xbf16> to vector<24x8xbf16>
    %599 = vector.extract_strided_slice %533 {offsets = [10, 0, 0], sizes = [1, 8, 16], strides = [1, 1, 1]} : vector<16x8x16xbf16> to vector<1x8x16xbf16>
    %600 = vector.shape_cast %599 : vector<1x8x16xbf16> to vector<8x16xbf16>
    %cst_471 = arith.constant dense<0.000000e+00> : vector<24x16xf32>
    %601 = tpu.matmul %598, %600, %cst_471 {dimension_numbers = #tpu.dot_dimension_numbers<[1], [0], [0], [1], [0, 0, 1, 1], [], []>} : vector<24x8xbf16>, vector<8x16xbf16>, vector<24x16xf32> -> vector<24x16xf32>
    %602 = arith.addf %596, %601 : vector<24x16xf32>
    %c5_472 = arith.constant 5 : index
    %c8_473 = arith.constant 8 : index
    %c0_474 = arith.constant 0 : index
    %603 = vector.load %arg13[%c5_472, %c8_473, %c0_474] : memref<18x40x8xbf16, #tpu.memory_space<vmem>>, vector<1x24x8xbf16>
    %604 = vector.shape_cast %603 : vector<1x24x8xbf16> to vector<24x8xbf16>
    %605 = vector.extract_strided_slice %533 {offsets = [11, 0, 0], sizes = [1, 8, 16], strides = [1, 1, 1]} : vector<16x8x16xbf16> to vector<1x8x16xbf16>
    %606 = vector.shape_cast %605 : vector<1x8x16xbf16> to vector<8x16xbf16>
    %cst_475 = arith.constant dense<0.000000e+00> : vector<24x16xf32>
    %607 = tpu.matmul %604, %606, %cst_475 {dimension_numbers = #tpu.dot_dimension_numbers<[1], [0], [0], [1], [0, 0, 1, 1], [], []>} : vector<24x8xbf16>, vector<8x16xbf16>, vector<24x16xf32> -> vector<24x16xf32>
    %608 = arith.addf %602, %607 : vector<24x16xf32>
    %c6_476 = arith.constant 6 : index
    %c0_477 = arith.constant 0 : index
    %c0_478 = arith.constant 0 : index
    %609 = vector.load %arg13[%c6_476, %c0_477, %c0_478] : memref<18x40x8xbf16, #tpu.memory_space<vmem>>, vector<1x24x8xbf16>
    %610 = vector.shape_cast %609 : vector<1x24x8xbf16> to vector<24x8xbf16>
    %611 = vector.extract_strided_slice %533 {offsets = [12, 0, 0], sizes = [1, 8, 16], strides = [1, 1, 1]} : vector<16x8x16xbf16> to vector<1x8x16xbf16>
    %612 = vector.shape_cast %611 : vector<1x8x16xbf16> to vector<8x16xbf16>
    %cst_479 = arith.constant dense<0.000000e+00> : vector<24x16xf32>
    %613 = tpu.matmul %610, %612, %cst_479 {dimension_numbers = #tpu.dot_dimension_numbers<[1], [0], [0], [1], [0, 0, 1, 1], [], []>} : vector<24x8xbf16>, vector<8x16xbf16>, vector<24x16xf32> -> vector<24x16xf32>
    %614 = arith.addf %608, %613 : vector<24x16xf32>
    %c7_480 = arith.constant 7 : index
    %c0_481 = arith.constant 0 : index
    %c0_482 = arith.constant 0 : index
    %615 = vector.load %arg13[%c7_480, %c0_481, %c0_482] : memref<18x40x8xbf16, #tpu.memory_space<vmem>>, vector<1x24x8xbf16>
    %616 = vector.shape_cast %615 : vector<1x24x8xbf16> to vector<24x8xbf16>
    %617 = vector.extract_strided_slice %533 {offsets = [13, 0, 0], sizes = [1, 8, 16], strides = [1, 1, 1]} : vector<16x8x16xbf16> to vector<1x8x16xbf16>
    %618 = vector.shape_cast %617 : vector<1x8x16xbf16> to vector<8x16xbf16>
    %cst_483 = arith.constant dense<0.000000e+00> : vector<24x16xf32>
    %619 = tpu.matmul %616, %618, %cst_483 {dimension_numbers = #tpu.dot_dimension_numbers<[1], [0], [0], [1], [0, 0, 1, 1], [], []>} : vector<24x8xbf16>, vector<8x16xbf16>, vector<24x16xf32> -> vector<24x16xf32>
    %620 = arith.addf %614, %619 : vector<24x16xf32>
    %c6_484 = arith.constant 6 : index
    %c8_485 = arith.constant 8 : index
    %c0_486 = arith.constant 0 : index
    %621 = vector.load %arg13[%c6_484, %c8_485, %c0_486] : memref<18x40x8xbf16, #tpu.memory_space<vmem>>, vector<1x24x8xbf16>
    %622 = vector.shape_cast %621 : vector<1x24x8xbf16> to vector<24x8xbf16>
    %623 = vector.extract_strided_slice %533 {offsets = [14, 0, 0], sizes = [1, 8, 16], strides = [1, 1, 1]} : vector<16x8x16xbf16> to vector<1x8x16xbf16>
    %624 = vector.shape_cast %623 : vector<1x8x16xbf16> to vector<8x16xbf16>
    %cst_487 = arith.constant dense<0.000000e+00> : vector<24x16xf32>
    %625 = tpu.matmul %622, %624, %cst_487 {dimension_numbers = #tpu.dot_dimension_numbers<[1], [0], [0], [1], [0, 0, 1, 1], [], []>} : vector<24x8xbf16>, vector<8x16xbf16>, vector<24x16xf32> -> vector<24x16xf32>
    %626 = arith.addf %620, %625 : vector<24x16xf32>
    %c7_488 = arith.constant 7 : index
    %c8_489 = arith.constant 8 : index
    %c0_490 = arith.constant 0 : index
    %627 = vector.load %arg13[%c7_488, %c8_489, %c0_490] : memref<18x40x8xbf16, #tpu.memory_space<vmem>>, vector<1x24x8xbf16>
    %628 = vector.shape_cast %627 : vector<1x24x8xbf16> to vector<24x8xbf16>
    %629 = vector.extract_strided_slice %533 {offsets = [15, 0, 0], sizes = [1, 8, 16], strides = [1, 1, 1]} : vector<16x8x16xbf16> to vector<1x8x16xbf16>
    %630 = vector.shape_cast %629 : vector<1x8x16xbf16> to vector<8x16xbf16>
    %cst_491 = arith.constant dense<0.000000e+00> : vector<24x16xf32>
    %631 = tpu.matmul %628, %630, %cst_491 {dimension_numbers = #tpu.dot_dimension_numbers<[1], [0], [0], [1], [0, 0, 1, 1], [], []>} : vector<24x8xbf16>, vector<8x16xbf16>, vector<24x16xf32> -> vector<24x16xf32>
    %632 = arith.addf %626, %631 : vector<24x16xf32>
    %cst_492 = arith.constant 0.000000e+00 : f32
    %633 = vector.broadcast %cst_492 : f32 to vector<24x16xf32>
    %634 = arith.maximumf %632, %633 : vector<24x16xf32>
    %635 = arith.truncf %634 : vector<24x16xf32> to vector<24x16xbf16>
    %636 = vector.shape_cast %635 : vector<24x16xbf16> to vector<1x24x16xbf16>
    %c0_493 = arith.constant 0 : index
    %c0_494 = arith.constant 0 : index
    %c0_495 = arith.constant 0 : index
    %637 = vector.load %arg14[%c0_493, %c0_494, %c0_495] : memref<3x24x16xbf16, #tpu.memory_space<vmem>>, vector<1x24x16xbf16>
    tpu.vector_store %arg14[%c0_493, %c0_494, %c0_495], %636 {strides = array<i32>} : memref<3x24x16xbf16, #tpu.memory_space<vmem>>, vector<1x24x16xbf16>,
    %c4_496 = arith.constant 4 : index
    %c0_497 = arith.constant 0 : index
    %c0_498 = arith.constant 0 : index
    %638 = vector.load %arg13[%c4_496, %c0_497, %c0_498] : memref<18x40x8xbf16, #tpu.memory_space<vmem>>, vector<1x24x8xbf16>
    %639 = vector.shape_cast %638 : vector<1x24x8xbf16> to vector<24x8xbf16>
    %640 = vector.extract_strided_slice %533 {offsets = [0, 0, 0], sizes = [1, 8, 16], strides = [1, 1, 1]} : vector<16x8x16xbf16> to vector<1x8x16xbf16>
    %641 = vector.shape_cast %640 : vector<1x8x16xbf16> to vector<8x16xbf16>
    %cst_499 = arith.constant dense<0.000000e+00> : vector<24x16xf32>
    %642 = tpu.matmul %639, %641, %cst_499 {dimension_numbers = #tpu.dot_dimension_numbers<[1], [0], [0], [1], [0, 0, 1, 1], [], []>} : vector<24x8xbf16>, vector<8x16xbf16>, vector<24x16xf32> -> vector<24x16xf32>
    %643 = arith.addf %536, %642 : vector<24x16xf32>
    %c5_500 = arith.constant 5 : index
    %c0_501 = arith.constant 0 : index
    %c0_502 = arith.constant 0 : index
    %644 = vector.load %arg13[%c5_500, %c0_501, %c0_502] : memref<18x40x8xbf16, #tpu.memory_space<vmem>>, vector<1x24x8xbf16>
    %645 = vector.shape_cast %644 : vector<1x24x8xbf16> to vector<24x8xbf16>
    %646 = vector.extract_strided_slice %533 {offsets = [1, 0, 0], sizes = [1, 8, 16], strides = [1, 1, 1]} : vector<16x8x16xbf16> to vector<1x8x16xbf16>
    %647 = vector.shape_cast %646 : vector<1x8x16xbf16> to vector<8x16xbf16>
    %cst_503 = arith.constant dense<0.000000e+00> : vector<24x16xf32>
    %648 = tpu.matmul %645, %647, %cst_503 {dimension_numbers = #tpu.dot_dimension_numbers<[1], [0], [0], [1], [0, 0, 1, 1], [], []>} : vector<24x8xbf16>, vector<8x16xbf16>, vector<24x16xf32> -> vector<24x16xf32>
    %649 = arith.addf %643, %648 : vector<24x16xf32>
    %c4_504 = arith.constant 4 : index
    %c8_505 = arith.constant 8 : index
    %c0_506 = arith.constant 0 : index
    %650 = vector.load %arg13[%c4_504, %c8_505, %c0_506] : memref<18x40x8xbf16, #tpu.memory_space<vmem>>, vector<1x24x8xbf16>
    %651 = vector.shape_cast %650 : vector<1x24x8xbf16> to vector<24x8xbf16>
    %652 = vector.extract_strided_slice %533 {offsets = [2, 0, 0], sizes = [1, 8, 16], strides = [1, 1, 1]} : vector<16x8x16xbf16> to vector<1x8x16xbf16>
    %653 = vector.shape_cast %652 : vector<1x8x16xbf16> to vector<8x16xbf16>
    %cst_507 = arith.constant dense<0.000000e+00> : vector<24x16xf32>
    %654 = tpu.matmul %651, %653, %cst_507 {dimension_numbers = #tpu.dot_dimension_numbers<[1], [0], [0], [1], [0, 0, 1, 1], [], []>} : vector<24x8xbf16>, vector<8x16xbf16>, vector<24x16xf32> -> vector<24x16xf32>
    %655 = arith.addf %649, %654 : vector<24x16xf32>
    %c5_508 = arith.constant 5 : index
    %c8_509 = arith.constant 8 : index
    %c0_510 = arith.constant 0 : index
    %656 = vector.load %arg13[%c5_508, %c8_509, %c0_510] : memref<18x40x8xbf16, #tpu.memory_space<vmem>>, vector<1x24x8xbf16>
    %657 = vector.shape_cast %656 : vector<1x24x8xbf16> to vector<24x8xbf16>
    %658 = vector.extract_strided_slice %533 {offsets = [3, 0, 0], sizes = [1, 8, 16], strides = [1, 1, 1]} : vector<16x8x16xbf16> to vector<1x8x16xbf16>
    %659 = vector.shape_cast %658 : vector<1x8x16xbf16> to vector<8x16xbf16>
    %cst_511 = arith.constant dense<0.000000e+00> : vector<24x16xf32>
    %660 = tpu.matmul %657, %659, %cst_511 {dimension_numbers = #tpu.dot_dimension_numbers<[1], [0], [0], [1], [0, 0, 1, 1], [], []>} : vector<24x8xbf16>, vector<8x16xbf16>, vector<24x16xf32> -> vector<24x16xf32>
    %661 = arith.addf %655, %660 : vector<24x16xf32>
    %c6_512 = arith.constant 6 : index
    %c0_513 = arith.constant 0 : index
    %c0_514 = arith.constant 0 : index
    %662 = vector.load %arg13[%c6_512, %c0_513, %c0_514] : memref<18x40x8xbf16, #tpu.memory_space<vmem>>, vector<1x24x8xbf16>
    %663 = vector.shape_cast %662 : vector<1x24x8xbf16> to vector<24x8xbf16>
    %664 = vector.extract_strided_slice %533 {offsets = [4, 0, 0], sizes = [1, 8, 16], strides = [1, 1, 1]} : vector<16x8x16xbf16> to vector<1x8x16xbf16>
    %665 = vector.shape_cast %664 : vector<1x8x16xbf16> to vector<8x16xbf16>
    %cst_515 = arith.constant dense<0.000000e+00> : vector<24x16xf32>
    %666 = tpu.matmul %663, %665, %cst_515 {dimension_numbers = #tpu.dot_dimension_numbers<[1], [0], [0], [1], [0, 0, 1, 1], [], []>} : vector<24x8xbf16>, vector<8x16xbf16>, vector<24x16xf32> -> vector<24x16xf32>
    %667 = arith.addf %661, %666 : vector<24x16xf32>
    %c7_516 = arith.constant 7 : index
    %c0_517 = arith.constant 0 : index
    %c0_518 = arith.constant 0 : index
    %668 = vector.load %arg13[%c7_516, %c0_517, %c0_518] : memref<18x40x8xbf16, #tpu.memory_space<vmem>>, vector<1x24x8xbf16>
    %669 = vector.shape_cast %668 : vector<1x24x8xbf16> to vector<24x8xbf16>
    %670 = vector.extract_strided_slice %533 {offsets = [5, 0, 0], sizes = [1, 8, 16], strides = [1, 1, 1]} : vector<16x8x16xbf16> to vector<1x8x16xbf16>
    %671 = vector.shape_cast %670 : vector<1x8x16xbf16> to vector<8x16xbf16>
    %cst_519 = arith.constant dense<0.000000e+00> : vector<24x16xf32>
    %672 = tpu.matmul %669, %671, %cst_519 {dimension_numbers = #tpu.dot_dimension_numbers<[1], [0], [0], [1], [0, 0, 1, 1], [], []>} : vector<24x8xbf16>, vector<8x16xbf16>, vector<24x16xf32> -> vector<24x16xf32>
    %673 = arith.addf %667, %672 : vector<24x16xf32>
    %c6_520 = arith.constant 6 : index
    %c8_521 = arith.constant 8 : index
    %c0_522 = arith.constant 0 : index
    %674 = vector.load %arg13[%c6_520, %c8_521, %c0_522] : memref<18x40x8xbf16, #tpu.memory_space<vmem>>, vector<1x24x8xbf16>
    %675 = vector.shape_cast %674 : vector<1x24x8xbf16> to vector<24x8xbf16>
    %676 = vector.extract_strided_slice %533 {offsets = [6, 0, 0], sizes = [1, 8, 16], strides = [1, 1, 1]} : vector<16x8x16xbf16> to vector<1x8x16xbf16>
    %677 = vector.shape_cast %676 : vector<1x8x16xbf16> to vector<8x16xbf16>
    %cst_523 = arith.constant dense<0.000000e+00> : vector<24x16xf32>
    %678 = tpu.matmul %675, %677, %cst_523 {dimension_numbers = #tpu.dot_dimension_numbers<[1], [0], [0], [1], [0, 0, 1, 1], [], []>} : vector<24x8xbf16>, vector<8x16xbf16>, vector<24x16xf32> -> vector<24x16xf32>
    %679 = arith.addf %673, %678 : vector<24x16xf32>
    %c7_524 = arith.constant 7 : index
    %c8_525 = arith.constant 8 : index
    %c0_526 = arith.constant 0 : index
    %680 = vector.load %arg13[%c7_524, %c8_525, %c0_526] : memref<18x40x8xbf16, #tpu.memory_space<vmem>>, vector<1x24x8xbf16>
    %681 = vector.shape_cast %680 : vector<1x24x8xbf16> to vector<24x8xbf16>
    %682 = vector.extract_strided_slice %533 {offsets = [7, 0, 0], sizes = [1, 8, 16], strides = [1, 1, 1]} : vector<16x8x16xbf16> to vector<1x8x16xbf16>
    %683 = vector.shape_cast %682 : vector<1x8x16xbf16> to vector<8x16xbf16>
    %cst_527 = arith.constant dense<0.000000e+00> : vector<24x16xf32>
    %684 = tpu.matmul %681, %683, %cst_527 {dimension_numbers = #tpu.dot_dimension_numbers<[1], [0], [0], [1], [0, 0, 1, 1], [], []>} : vector<24x8xbf16>, vector<8x16xbf16>, vector<24x16xf32> -> vector<24x16xf32>
    %685 = arith.addf %679, %684 : vector<24x16xf32>
    %c8_528 = arith.constant 8 : index
    %c0_529 = arith.constant 0 : index
    %c0_530 = arith.constant 0 : index
    %686 = vector.load %arg13[%c8_528, %c0_529, %c0_530] : memref<18x40x8xbf16, #tpu.memory_space<vmem>>, vector<1x24x8xbf16>
    %687 = vector.shape_cast %686 : vector<1x24x8xbf16> to vector<24x8xbf16>
    %688 = vector.extract_strided_slice %533 {offsets = [8, 0, 0], sizes = [1, 8, 16], strides = [1, 1, 1]} : vector<16x8x16xbf16> to vector<1x8x16xbf16>
    %689 = vector.shape_cast %688 : vector<1x8x16xbf16> to vector<8x16xbf16>
    %cst_531 = arith.constant dense<0.000000e+00> : vector<24x16xf32>
    %690 = tpu.matmul %687, %689, %cst_531 {dimension_numbers = #tpu.dot_dimension_numbers<[1], [0], [0], [1], [0, 0, 1, 1], [], []>} : vector<24x8xbf16>, vector<8x16xbf16>, vector<24x16xf32> -> vector<24x16xf32>
    %691 = arith.addf %685, %690 : vector<24x16xf32>
    %c9_532 = arith.constant 9 : index
    %c0_533 = arith.constant 0 : index
    %c0_534 = arith.constant 0 : index
    %692 = vector.load %arg13[%c9_532, %c0_533, %c0_534] : memref<18x40x8xbf16, #tpu.memory_space<vmem>>, vector<1x24x8xbf16>
    %693 = vector.shape_cast %692 : vector<1x24x8xbf16> to vector<24x8xbf16>
    %694 = vector.extract_strided_slice %533 {offsets = [9, 0, 0], sizes = [1, 8, 16], strides = [1, 1, 1]} : vector<16x8x16xbf16> to vector<1x8x16xbf16>
    %695 = vector.shape_cast %694 : vector<1x8x16xbf16> to vector<8x16xbf16>
    %cst_535 = arith.constant dense<0.000000e+00> : vector<24x16xf32>
    %696 = tpu.matmul %693, %695, %cst_535 {dimension_numbers = #tpu.dot_dimension_numbers<[1], [0], [0], [1], [0, 0, 1, 1], [], []>} : vector<24x8xbf16>, vector<8x16xbf16>, vector<24x16xf32> -> vector<24x16xf32>
    %697 = arith.addf %691, %696 : vector<24x16xf32>
    %c8_536 = arith.constant 8 : index
    %c8_537 = arith.constant 8 : index
    %c0_538 = arith.constant 0 : index
    %698 = vector.load %arg13[%c8_536, %c8_537, %c0_538] : memref<18x40x8xbf16, #tpu.memory_space<vmem>>, vector<1x24x8xbf16>
    %699 = vector.shape_cast %698 : vector<1x24x8xbf16> to vector<24x8xbf16>
    %700 = vector.extract_strided_slice %533 {offsets = [10, 0, 0], sizes = [1, 8, 16], strides = [1, 1, 1]} : vector<16x8x16xbf16> to vector<1x8x16xbf16>
    %701 = vector.shape_cast %700 : vector<1x8x16xbf16> to vector<8x16xbf16>
    %cst_539 = arith.constant dense<0.000000e+00> : vector<24x16xf32>
    %702 = tpu.matmul %699, %701, %cst_539 {dimension_numbers = #tpu.dot_dimension_numbers<[1], [0], [0], [1], [0, 0, 1, 1], [], []>} : vector<24x8xbf16>, vector<8x16xbf16>, vector<24x16xf32> -> vector<24x16xf32>
    %703 = arith.addf %697, %702 : vector<24x16xf32>
    %c9_540 = arith.constant 9 : index
    %c8_541 = arith.constant 8 : index
    %c0_542 = arith.constant 0 : index
    %704 = vector.load %arg13[%c9_540, %c8_541, %c0_542] : memref<18x40x8xbf16, #tpu.memory_space<vmem>>, vector<1x24x8xbf16>
    %705 = vector.shape_cast %704 : vector<1x24x8xbf16> to vector<24x8xbf16>
    %706 = vector.extract_strided_slice %533 {offsets = [11, 0, 0], sizes = [1, 8, 16], strides = [1, 1, 1]} : vector<16x8x16xbf16> to vector<1x8x16xbf16>
    %707 = vector.shape_cast %706 : vector<1x8x16xbf16> to vector<8x16xbf16>
    %cst_543 = arith.constant dense<0.000000e+00> : vector<24x16xf32>
    %708 = tpu.matmul %705, %707, %cst_543 {dimension_numbers = #tpu.dot_dimension_numbers<[1], [0], [0], [1], [0, 0, 1, 1], [], []>} : vector<24x8xbf16>, vector<8x16xbf16>, vector<24x16xf32> -> vector<24x16xf32>
    %709 = arith.addf %703, %708 : vector<24x16xf32>
    %c10_544 = arith.constant 10 : index
    %c0_545 = arith.constant 0 : index
    %c0_546 = arith.constant 0 : index
    %710 = vector.load %arg13[%c10_544, %c0_545, %c0_546] : memref<18x40x8xbf16, #tpu.memory_space<vmem>>, vector<1x24x8xbf16>
    %711 = vector.shape_cast %710 : vector<1x24x8xbf16> to vector<24x8xbf16>
    %712 = vector.extract_strided_slice %533 {offsets = [12, 0, 0], sizes = [1, 8, 16], strides = [1, 1, 1]} : vector<16x8x16xbf16> to vector<1x8x16xbf16>
    %713 = vector.shape_cast %712 : vector<1x8x16xbf16> to vector<8x16xbf16>
    %cst_547 = arith.constant dense<0.000000e+00> : vector<24x16xf32>
    %714 = tpu.matmul %711, %713, %cst_547 {dimension_numbers = #tpu.dot_dimension_numbers<[1], [0], [0], [1], [0, 0, 1, 1], [], []>} : vector<24x8xbf16>, vector<8x16xbf16>, vector<24x16xf32> -> vector<24x16xf32>
    %715 = arith.addf %709, %714 : vector<24x16xf32>
    %c11_548 = arith.constant 11 : index
    %c0_549 = arith.constant 0 : index
    %c0_550 = arith.constant 0 : index
    %716 = vector.load %arg13[%c11_548, %c0_549, %c0_550] : memref<18x40x8xbf16, #tpu.memory_space<vmem>>, vector<1x24x8xbf16>
    %717 = vector.shape_cast %716 : vector<1x24x8xbf16> to vector<24x8xbf16>
    %718 = vector.extract_strided_slice %533 {offsets = [13, 0, 0], sizes = [1, 8, 16], strides = [1, 1, 1]} : vector<16x8x16xbf16> to vector<1x8x16xbf16>
    %719 = vector.shape_cast %718 : vector<1x8x16xbf16> to vector<8x16xbf16>
    %cst_551 = arith.constant dense<0.000000e+00> : vector<24x16xf32>
    %720 = tpu.matmul %717, %719, %cst_551 {dimension_numbers = #tpu.dot_dimension_numbers<[1], [0], [0], [1], [0, 0, 1, 1], [], []>} : vector<24x8xbf16>, vector<8x16xbf16>, vector<24x16xf32> -> vector<24x16xf32>
    %721 = arith.addf %715, %720 : vector<24x16xf32>
    %c10_552 = arith.constant 10 : index
    %c8_553 = arith.constant 8 : index
    %c0_554 = arith.constant 0 : index
    %722 = vector.load %arg13[%c10_552, %c8_553, %c0_554] : memref<18x40x8xbf16, #tpu.memory_space<vmem>>, vector<1x24x8xbf16>
    %723 = vector.shape_cast %722 : vector<1x24x8xbf16> to vector<24x8xbf16>
    %724 = vector.extract_strided_slice %533 {offsets = [14, 0, 0], sizes = [1, 8, 16], strides = [1, 1, 1]} : vector<16x8x16xbf16> to vector<1x8x16xbf16>
    %725 = vector.shape_cast %724 : vector<1x8x16xbf16> to vector<8x16xbf16>
    %cst_555 = arith.constant dense<0.000000e+00> : vector<24x16xf32>
    %726 = tpu.matmul %723, %725, %cst_555 {dimension_numbers = #tpu.dot_dimension_numbers<[1], [0], [0], [1], [0, 0, 1, 1], [], []>} : vector<24x8xbf16>, vector<8x16xbf16>, vector<24x16xf32> -> vector<24x16xf32>
    %727 = arith.addf %721, %726 : vector<24x16xf32>
    %c11_556 = arith.constant 11 : index
    %c8_557 = arith.constant 8 : index
    %c0_558 = arith.constant 0 : index
    %728 = vector.load %arg13[%c11_556, %c8_557, %c0_558] : memref<18x40x8xbf16, #tpu.memory_space<vmem>>, vector<1x24x8xbf16>
    %729 = vector.shape_cast %728 : vector<1x24x8xbf16> to vector<24x8xbf16>
    %730 = vector.extract_strided_slice %533 {offsets = [15, 0, 0], sizes = [1, 8, 16], strides = [1, 1, 1]} : vector<16x8x16xbf16> to vector<1x8x16xbf16>
    %731 = vector.shape_cast %730 : vector<1x8x16xbf16> to vector<8x16xbf16>
    %cst_559 = arith.constant dense<0.000000e+00> : vector<24x16xf32>
    %732 = tpu.matmul %729, %731, %cst_559 {dimension_numbers = #tpu.dot_dimension_numbers<[1], [0], [0], [1], [0, 0, 1, 1], [], []>} : vector<24x8xbf16>, vector<8x16xbf16>, vector<24x16xf32> -> vector<24x16xf32>
    %733 = arith.addf %727, %732 : vector<24x16xf32>
    %cst_560 = arith.constant 0.000000e+00 : f32
    %734 = vector.broadcast %cst_560 : f32 to vector<24x16xf32>
    %735 = arith.maximumf %733, %734 : vector<24x16xf32>
    %736 = arith.truncf %735 : vector<24x16xf32> to vector<24x16xbf16>
    %737 = vector.shape_cast %736 : vector<24x16xbf16> to vector<1x24x16xbf16>
    %c1_561 = arith.constant 1 : index
    %c0_562 = arith.constant 0 : index
    %c0_563 = arith.constant 0 : index
    %738 = vector.load %arg14[%c1_561, %c0_562, %c0_563] : memref<3x24x16xbf16, #tpu.memory_space<vmem>>, vector<1x24x16xbf16>
    tpu.vector_store %arg14[%c1_561, %c0_562, %c0_563], %737 {strides = array<i32>} : memref<3x24x16xbf16, #tpu.memory_space<vmem>>, vector<1x24x16xbf16>,
    %c8_564 = arith.constant 8 : index
    %c0_565 = arith.constant 0 : index
    %c0_566 = arith.constant 0 : index
    %739 = vector.load %arg13[%c8_564, %c0_565, %c0_566] : memref<18x40x8xbf16, #tpu.memory_space<vmem>>, vector<1x24x8xbf16>
    %740 = vector.shape_cast %739 : vector<1x24x8xbf16> to vector<24x8xbf16>
    %741 = vector.extract_strided_slice %533 {offsets = [0, 0, 0], sizes = [1, 8, 16], strides = [1, 1, 1]} : vector<16x8x16xbf16> to vector<1x8x16xbf16>
    %742 = vector.shape_cast %741 : vector<1x8x16xbf16> to vector<8x16xbf16>
    %cst_567 = arith.constant dense<0.000000e+00> : vector<24x16xf32>
    %743 = tpu.matmul %740, %742, %cst_567 {dimension_numbers = #tpu.dot_dimension_numbers<[1], [0], [0], [1], [0, 0, 1, 1], [], []>} : vector<24x8xbf16>, vector<8x16xbf16>, vector<24x16xf32> -> vector<24x16xf32>
    %744 = arith.addf %536, %743 : vector<24x16xf32>
    %c9_568 = arith.constant 9 : index
    %c0_569 = arith.constant 0 : index
    %c0_570 = arith.constant 0 : index
    %745 = vector.load %arg13[%c9_568, %c0_569, %c0_570] : memref<18x40x8xbf16, #tpu.memory_space<vmem>>, vector<1x24x8xbf16>
    %746 = vector.shape_cast %745 : vector<1x24x8xbf16> to vector<24x8xbf16>
    %747 = vector.extract_strided_slice %533 {offsets = [1, 0, 0], sizes = [1, 8, 16], strides = [1, 1, 1]} : vector<16x8x16xbf16> to vector<1x8x16xbf16>
    %748 = vector.shape_cast %747 : vector<1x8x16xbf16> to vector<8x16xbf16>
    %cst_571 = arith.constant dense<0.000000e+00> : vector<24x16xf32>
    %749 = tpu.matmul %746, %748, %cst_571 {dimension_numbers = #tpu.dot_dimension_numbers<[1], [0], [0], [1], [0, 0, 1, 1], [], []>} : vector<24x8xbf16>, vector<8x16xbf16>, vector<24x16xf32> -> vector<24x16xf32>
    %750 = arith.addf %744, %749 : vector<24x16xf32>
    %c8_572 = arith.constant 8 : index
    %c8_573 = arith.constant 8 : index
    %c0_574 = arith.constant 0 : index
    %751 = vector.load %arg13[%c8_572, %c8_573, %c0_574] : memref<18x40x8xbf16, #tpu.memory_space<vmem>>, vector<1x24x8xbf16>
    %752 = vector.shape_cast %751 : vector<1x24x8xbf16> to vector<24x8xbf16>
    %753 = vector.extract_strided_slice %533 {offsets = [2, 0, 0], sizes = [1, 8, 16], strides = [1, 1, 1]} : vector<16x8x16xbf16> to vector<1x8x16xbf16>
    %754 = vector.shape_cast %753 : vector<1x8x16xbf16> to vector<8x16xbf16>
    %cst_575 = arith.constant dense<0.000000e+00> : vector<24x16xf32>
    %755 = tpu.matmul %752, %754, %cst_575 {dimension_numbers = #tpu.dot_dimension_numbers<[1], [0], [0], [1], [0, 0, 1, 1], [], []>} : vector<24x8xbf16>, vector<8x16xbf16>, vector<24x16xf32> -> vector<24x16xf32>
    %756 = arith.addf %750, %755 : vector<24x16xf32>
    %c9_576 = arith.constant 9 : index
    %c8_577 = arith.constant 8 : index
    %c0_578 = arith.constant 0 : index
    %757 = vector.load %arg13[%c9_576, %c8_577, %c0_578] : memref<18x40x8xbf16, #tpu.memory_space<vmem>>, vector<1x24x8xbf16>
    %758 = vector.shape_cast %757 : vector<1x24x8xbf16> to vector<24x8xbf16>
    %759 = vector.extract_strided_slice %533 {offsets = [3, 0, 0], sizes = [1, 8, 16], strides = [1, 1, 1]} : vector<16x8x16xbf16> to vector<1x8x16xbf16>
    %760 = vector.shape_cast %759 : vector<1x8x16xbf16> to vector<8x16xbf16>
    %cst_579 = arith.constant dense<0.000000e+00> : vector<24x16xf32>
    %761 = tpu.matmul %758, %760, %cst_579 {dimension_numbers = #tpu.dot_dimension_numbers<[1], [0], [0], [1], [0, 0, 1, 1], [], []>} : vector<24x8xbf16>, vector<8x16xbf16>, vector<24x16xf32> -> vector<24x16xf32>
    %762 = arith.addf %756, %761 : vector<24x16xf32>
    %c10_580 = arith.constant 10 : index
    %c0_581 = arith.constant 0 : index
    %c0_582 = arith.constant 0 : index
    %763 = vector.load %arg13[%c10_580, %c0_581, %c0_582] : memref<18x40x8xbf16, #tpu.memory_space<vmem>>, vector<1x24x8xbf16>
    %764 = vector.shape_cast %763 : vector<1x24x8xbf16> to vector<24x8xbf16>
    %765 = vector.extract_strided_slice %533 {offsets = [4, 0, 0], sizes = [1, 8, 16], strides = [1, 1, 1]} : vector<16x8x16xbf16> to vector<1x8x16xbf16>
    %766 = vector.shape_cast %765 : vector<1x8x16xbf16> to vector<8x16xbf16>
    %cst_583 = arith.constant dense<0.000000e+00> : vector<24x16xf32>
    %767 = tpu.matmul %764, %766, %cst_583 {dimension_numbers = #tpu.dot_dimension_numbers<[1], [0], [0], [1], [0, 0, 1, 1], [], []>} : vector<24x8xbf16>, vector<8x16xbf16>, vector<24x16xf32> -> vector<24x16xf32>
    %768 = arith.addf %762, %767 : vector<24x16xf32>
    %c11_584 = arith.constant 11 : index
    %c0_585 = arith.constant 0 : index
    %c0_586 = arith.constant 0 : index
    %769 = vector.load %arg13[%c11_584, %c0_585, %c0_586] : memref<18x40x8xbf16, #tpu.memory_space<vmem>>, vector<1x24x8xbf16>
    %770 = vector.shape_cast %769 : vector<1x24x8xbf16> to vector<24x8xbf16>
    %771 = vector.extract_strided_slice %533 {offsets = [5, 0, 0], sizes = [1, 8, 16], strides = [1, 1, 1]} : vector<16x8x16xbf16> to vector<1x8x16xbf16>
    %772 = vector.shape_cast %771 : vector<1x8x16xbf16> to vector<8x16xbf16>
    %cst_587 = arith.constant dense<0.000000e+00> : vector<24x16xf32>
    %773 = tpu.matmul %770, %772, %cst_587 {dimension_numbers = #tpu.dot_dimension_numbers<[1], [0], [0], [1], [0, 0, 1, 1], [], []>} : vector<24x8xbf16>, vector<8x16xbf16>, vector<24x16xf32> -> vector<24x16xf32>
    %774 = arith.addf %768, %773 : vector<24x16xf32>
    %c10_588 = arith.constant 10 : index
    %c8_589 = arith.constant 8 : index
    %c0_590 = arith.constant 0 : index
    %775 = vector.load %arg13[%c10_588, %c8_589, %c0_590] : memref<18x40x8xbf16, #tpu.memory_space<vmem>>, vector<1x24x8xbf16>
    %776 = vector.shape_cast %775 : vector<1x24x8xbf16> to vector<24x8xbf16>
    %777 = vector.extract_strided_slice %533 {offsets = [6, 0, 0], sizes = [1, 8, 16], strides = [1, 1, 1]} : vector<16x8x16xbf16> to vector<1x8x16xbf16>
    %778 = vector.shape_cast %777 : vector<1x8x16xbf16> to vector<8x16xbf16>
    %cst_591 = arith.constant dense<0.000000e+00> : vector<24x16xf32>
    %779 = tpu.matmul %776, %778, %cst_591 {dimension_numbers = #tpu.dot_dimension_numbers<[1], [0], [0], [1], [0, 0, 1, 1], [], []>} : vector<24x8xbf16>, vector<8x16xbf16>, vector<24x16xf32> -> vector<24x16xf32>
    %780 = arith.addf %774, %779 : vector<24x16xf32>
    %c11_592 = arith.constant 11 : index
    %c8_593 = arith.constant 8 : index
    %c0_594 = arith.constant 0 : index
    %781 = vector.load %arg13[%c11_592, %c8_593, %c0_594] : memref<18x40x8xbf16, #tpu.memory_space<vmem>>, vector<1x24x8xbf16>
    %782 = vector.shape_cast %781 : vector<1x24x8xbf16> to vector<24x8xbf16>
    %783 = vector.extract_strided_slice %533 {offsets = [7, 0, 0], sizes = [1, 8, 16], strides = [1, 1, 1]} : vector<16x8x16xbf16> to vector<1x8x16xbf16>
    %784 = vector.shape_cast %783 : vector<1x8x16xbf16> to vector<8x16xbf16>
    %cst_595 = arith.constant dense<0.000000e+00> : vector<24x16xf32>
    %785 = tpu.matmul %782, %784, %cst_595 {dimension_numbers = #tpu.dot_dimension_numbers<[1], [0], [0], [1], [0, 0, 1, 1], [], []>} : vector<24x8xbf16>, vector<8x16xbf16>, vector<24x16xf32> -> vector<24x16xf32>
    %786 = arith.addf %780, %785 : vector<24x16xf32>
    %c12_596 = arith.constant 12 : index
    %c0_597 = arith.constant 0 : index
    %c0_598 = arith.constant 0 : index
    %787 = vector.load %arg13[%c12_596, %c0_597, %c0_598] : memref<18x40x8xbf16, #tpu.memory_space<vmem>>, vector<1x24x8xbf16>
    %788 = vector.shape_cast %787 : vector<1x24x8xbf16> to vector<24x8xbf16>
    %789 = vector.extract_strided_slice %533 {offsets = [8, 0, 0], sizes = [1, 8, 16], strides = [1, 1, 1]} : vector<16x8x16xbf16> to vector<1x8x16xbf16>
    %790 = vector.shape_cast %789 : vector<1x8x16xbf16> to vector<8x16xbf16>
    %cst_599 = arith.constant dense<0.000000e+00> : vector<24x16xf32>
    %791 = tpu.matmul %788, %790, %cst_599 {dimension_numbers = #tpu.dot_dimension_numbers<[1], [0], [0], [1], [0, 0, 1, 1], [], []>} : vector<24x8xbf16>, vector<8x16xbf16>, vector<24x16xf32> -> vector<24x16xf32>
    %792 = arith.addf %786, %791 : vector<24x16xf32>
    %c13_600 = arith.constant 13 : index
    %c0_601 = arith.constant 0 : index
    %c0_602 = arith.constant 0 : index
    %793 = vector.load %arg13[%c13_600, %c0_601, %c0_602] : memref<18x40x8xbf16, #tpu.memory_space<vmem>>, vector<1x24x8xbf16>
    %794 = vector.shape_cast %793 : vector<1x24x8xbf16> to vector<24x8xbf16>
    %795 = vector.extract_strided_slice %533 {offsets = [9, 0, 0], sizes = [1, 8, 16], strides = [1, 1, 1]} : vector<16x8x16xbf16> to vector<1x8x16xbf16>
    %796 = vector.shape_cast %795 : vector<1x8x16xbf16> to vector<8x16xbf16>
    %cst_603 = arith.constant dense<0.000000e+00> : vector<24x16xf32>
    %797 = tpu.matmul %794, %796, %cst_603 {dimension_numbers = #tpu.dot_dimension_numbers<[1], [0], [0], [1], [0, 0, 1, 1], [], []>} : vector<24x8xbf16>, vector<8x16xbf16>, vector<24x16xf32> -> vector<24x16xf32>
    %798 = arith.addf %792, %797 : vector<24x16xf32>
    %c12_604 = arith.constant 12 : index
    %c8_605 = arith.constant 8 : index
    %c0_606 = arith.constant 0 : index
    %799 = vector.load %arg13[%c12_604, %c8_605, %c0_606] : memref<18x40x8xbf16, #tpu.memory_space<vmem>>, vector<1x24x8xbf16>
    %800 = vector.shape_cast %799 : vector<1x24x8xbf16> to vector<24x8xbf16>
    %801 = vector.extract_strided_slice %533 {offsets = [10, 0, 0], sizes = [1, 8, 16], strides = [1, 1, 1]} : vector<16x8x16xbf16> to vector<1x8x16xbf16>
    %802 = vector.shape_cast %801 : vector<1x8x16xbf16> to vector<8x16xbf16>
    %cst_607 = arith.constant dense<0.000000e+00> : vector<24x16xf32>
    %803 = tpu.matmul %800, %802, %cst_607 {dimension_numbers = #tpu.dot_dimension_numbers<[1], [0], [0], [1], [0, 0, 1, 1], [], []>} : vector<24x8xbf16>, vector<8x16xbf16>, vector<24x16xf32> -> vector<24x16xf32>
    %804 = arith.addf %798, %803 : vector<24x16xf32>
    %c13_608 = arith.constant 13 : index
    %c8_609 = arith.constant 8 : index
    %c0_610 = arith.constant 0 : index
    %805 = vector.load %arg13[%c13_608, %c8_609, %c0_610] : memref<18x40x8xbf16, #tpu.memory_space<vmem>>, vector<1x24x8xbf16>
    %806 = vector.shape_cast %805 : vector<1x24x8xbf16> to vector<24x8xbf16>
    %807 = vector.extract_strided_slice %533 {offsets = [11, 0, 0], sizes = [1, 8, 16], strides = [1, 1, 1]} : vector<16x8x16xbf16> to vector<1x8x16xbf16>
    %808 = vector.shape_cast %807 : vector<1x8x16xbf16> to vector<8x16xbf16>
    %cst_611 = arith.constant dense<0.000000e+00> : vector<24x16xf32>
    %809 = tpu.matmul %806, %808, %cst_611 {dimension_numbers = #tpu.dot_dimension_numbers<[1], [0], [0], [1], [0, 0, 1, 1], [], []>} : vector<24x8xbf16>, vector<8x16xbf16>, vector<24x16xf32> -> vector<24x16xf32>
    %810 = arith.addf %804, %809 : vector<24x16xf32>
    %c14_612 = arith.constant 14 : index
    %c0_613 = arith.constant 0 : index
    %c0_614 = arith.constant 0 : index
    %811 = vector.load %arg13[%c14_612, %c0_613, %c0_614] : memref<18x40x8xbf16, #tpu.memory_space<vmem>>, vector<1x24x8xbf16>
    %812 = vector.shape_cast %811 : vector<1x24x8xbf16> to vector<24x8xbf16>
    %813 = vector.extract_strided_slice %533 {offsets = [12, 0, 0], sizes = [1, 8, 16], strides = [1, 1, 1]} : vector<16x8x16xbf16> to vector<1x8x16xbf16>
    %814 = vector.shape_cast %813 : vector<1x8x16xbf16> to vector<8x16xbf16>
    %cst_615 = arith.constant dense<0.000000e+00> : vector<24x16xf32>
    %815 = tpu.matmul %812, %814, %cst_615 {dimension_numbers = #tpu.dot_dimension_numbers<[1], [0], [0], [1], [0, 0, 1, 1], [], []>} : vector<24x8xbf16>, vector<8x16xbf16>, vector<24x16xf32> -> vector<24x16xf32>
    %816 = arith.addf %810, %815 : vector<24x16xf32>
    %c15_616 = arith.constant 15 : index
    %c0_617 = arith.constant 0 : index
    %c0_618 = arith.constant 0 : index
    %817 = vector.load %arg13[%c15_616, %c0_617, %c0_618] : memref<18x40x8xbf16, #tpu.memory_space<vmem>>, vector<1x24x8xbf16>
    %818 = vector.shape_cast %817 : vector<1x24x8xbf16> to vector<24x8xbf16>
    %819 = vector.extract_strided_slice %533 {offsets = [13, 0, 0], sizes = [1, 8, 16], strides = [1, 1, 1]} : vector<16x8x16xbf16> to vector<1x8x16xbf16>
    %820 = vector.shape_cast %819 : vector<1x8x16xbf16> to vector<8x16xbf16>
    %cst_619 = arith.constant dense<0.000000e+00> : vector<24x16xf32>
    %821 = tpu.matmul %818, %820, %cst_619 {dimension_numbers = #tpu.dot_dimension_numbers<[1], [0], [0], [1], [0, 0, 1, 1], [], []>} : vector<24x8xbf16>, vector<8x16xbf16>, vector<24x16xf32> -> vector<24x16xf32>
    %822 = arith.addf %816, %821 : vector<24x16xf32>
    %c14_620 = arith.constant 14 : index
    %c8_621 = arith.constant 8 : index
    %c0_622 = arith.constant 0 : index
    %823 = vector.load %arg13[%c14_620, %c8_621, %c0_622] : memref<18x40x8xbf16, #tpu.memory_space<vmem>>, vector<1x24x8xbf16>
    %824 = vector.shape_cast %823 : vector<1x24x8xbf16> to vector<24x8xbf16>
    %825 = vector.extract_strided_slice %533 {offsets = [14, 0, 0], sizes = [1, 8, 16], strides = [1, 1, 1]} : vector<16x8x16xbf16> to vector<1x8x16xbf16>
    %826 = vector.shape_cast %825 : vector<1x8x16xbf16> to vector<8x16xbf16>
    %cst_623 = arith.constant dense<0.000000e+00> : vector<24x16xf32>
    %827 = tpu.matmul %824, %826, %cst_623 {dimension_numbers = #tpu.dot_dimension_numbers<[1], [0], [0], [1], [0, 0, 1, 1], [], []>} : vector<24x8xbf16>, vector<8x16xbf16>, vector<24x16xf32> -> vector<24x16xf32>
    %828 = arith.addf %822, %827 : vector<24x16xf32>
    %c15_624 = arith.constant 15 : index
    %c8_625 = arith.constant 8 : index
    %c0_626 = arith.constant 0 : index
    %829 = vector.load %arg13[%c15_624, %c8_625, %c0_626] : memref<18x40x8xbf16, #tpu.memory_space<vmem>>, vector<1x24x8xbf16>
    %830 = vector.shape_cast %829 : vector<1x24x8xbf16> to vector<24x8xbf16>
    %831 = vector.extract_strided_slice %533 {offsets = [15, 0, 0], sizes = [1, 8, 16], strides = [1, 1, 1]} : vector<16x8x16xbf16> to vector<1x8x16xbf16>
    %832 = vector.shape_cast %831 : vector<1x8x16xbf16> to vector<8x16xbf16>
    %cst_627 = arith.constant dense<0.000000e+00> : vector<24x16xf32>
    %833 = tpu.matmul %830, %832, %cst_627 {dimension_numbers = #tpu.dot_dimension_numbers<[1], [0], [0], [1], [0, 0, 1, 1], [], []>} : vector<24x8xbf16>, vector<8x16xbf16>, vector<24x16xf32> -> vector<24x16xf32>
    %834 = arith.addf %828, %833 : vector<24x16xf32>
    %cst_628 = arith.constant 0.000000e+00 : f32
    %835 = vector.broadcast %cst_628 : f32 to vector<24x16xf32>
    %836 = arith.maximumf %834, %835 : vector<24x16xf32>
    %837 = arith.truncf %836 : vector<24x16xf32> to vector<24x16xbf16>
    %838 = vector.shape_cast %837 : vector<24x16xbf16> to vector<1x24x16xbf16>
    %c2_629 = arith.constant 2 : index
    %c0_630 = arith.constant 0 : index
    %c0_631 = arith.constant 0 : index
    %839 = vector.load %arg14[%c2_629, %c0_630, %c0_631] : memref<3x24x16xbf16, #tpu.memory_space<vmem>>, vector<1x24x16xbf16>
    tpu.vector_store %arg14[%c2_629, %c0_630, %c0_631], %838 {strides = array<i32>} : memref<3x24x16xbf16, #tpu.memory_space<vmem>>, vector<1x24x16xbf16>,
    %c0_632 = arith.constant 0 : index
    %c0_633 = arith.constant 0 : index
    %c0_634 = arith.constant 0 : index
    %840 = vector.load %arg7[%c0_632, %c0_633, %c0_634] : memref<9x16x16xbf16, #tpu.memory_space<vmem>>, vector<9x16x16xbf16>
    %c0_635 = arith.constant 0 : index
    %c0_636 = arith.constant 0 : index
    %841 = vector.load %arg8[%c0_635, %c0_636] : memref<1x16xf32, #tpu.memory_space<vmem>>, vector<1x16xf32>
    %842 = vector.shape_cast %841 : vector<1x16xf32> to vector<1x16xf32>
    %843 = vector.broadcast %842 : vector<1x16xf32> to vector<8x16xf32>
    %c0_637 = arith.constant 0 : index
    %c0_638 = arith.constant 0 : index
    %c0_639 = arith.constant 0 : index
    %844 = vector.load %arg14[%c0_637, %c0_638, %c0_639] : memref<3x24x16xbf16, #tpu.memory_space<vmem>>, vector<1x8x16xbf16>
    %845 = vector.shape_cast %844 : vector<1x8x16xbf16> to vector<8x16xbf16>
    %846 = vector.extract_strided_slice %840 {offsets = [0, 0, 0], sizes = [1, 16, 16], strides = [1, 1, 1]} : vector<9x16x16xbf16> to vector<1x16x16xbf16>
    %847 = vector.shape_cast %846 : vector<1x16x16xbf16> to vector<16x16xbf16>
    %cst_640 = arith.constant dense<0.000000e+00> : vector<8x16xf32>
    %848 = tpu.matmul %845, %847, %cst_640 {dimension_numbers = #tpu.dot_dimension_numbers<[1], [0], [0], [1], [0, 0, 1, 1], [], []>} : vector<8x16xbf16>, vector<16x16xbf16>, vector<8x16xf32> -> vector<8x16xf32>
    %849 = arith.addf %843, %848 : vector<8x16xf32>
    %c0_641 = arith.constant 0 : index
    %c8_642 = arith.constant 8 : index
    %c0_643 = arith.constant 0 : index
    %850 = vector.load %arg14[%c0_641, %c8_642, %c0_643] : memref<3x24x16xbf16, #tpu.memory_space<vmem>>, vector<1x8x16xbf16>
    %851 = vector.shape_cast %850 : vector<1x8x16xbf16> to vector<8x16xbf16>
    %852 = vector.extract_strided_slice %840 {offsets = [1, 0, 0], sizes = [1, 16, 16], strides = [1, 1, 1]} : vector<9x16x16xbf16> to vector<1x16x16xbf16>
    %853 = vector.shape_cast %852 : vector<1x16x16xbf16> to vector<16x16xbf16>
    %cst_644 = arith.constant dense<0.000000e+00> : vector<8x16xf32>
    %854 = tpu.matmul %851, %853, %cst_644 {dimension_numbers = #tpu.dot_dimension_numbers<[1], [0], [0], [1], [0, 0, 1, 1], [], []>} : vector<8x16xbf16>, vector<16x16xbf16>, vector<8x16xf32> -> vector<8x16xf32>
    %855 = arith.addf %849, %854 : vector<8x16xf32>
    %c0_645 = arith.constant 0 : index
    %c16_646 = arith.constant 16 : index
    %c0_647 = arith.constant 0 : index
    %856 = vector.load %arg14[%c0_645, %c16_646, %c0_647] : memref<3x24x16xbf16, #tpu.memory_space<vmem>>, vector<1x8x16xbf16>
    %857 = vector.shape_cast %856 : vector<1x8x16xbf16> to vector<8x16xbf16>
    %858 = vector.extract_strided_slice %840 {offsets = [2, 0, 0], sizes = [1, 16, 16], strides = [1, 1, 1]} : vector<9x16x16xbf16> to vector<1x16x16xbf16>
    %859 = vector.shape_cast %858 : vector<1x16x16xbf16> to vector<16x16xbf16>
    %cst_648 = arith.constant dense<0.000000e+00> : vector<8x16xf32>
    %860 = tpu.matmul %857, %859, %cst_648 {dimension_numbers = #tpu.dot_dimension_numbers<[1], [0], [0], [1], [0, 0, 1, 1], [], []>} : vector<8x16xbf16>, vector<16x16xbf16>, vector<8x16xf32> -> vector<8x16xf32>
    %861 = arith.addf %855, %860 : vector<8x16xf32>
    %c1_649 = arith.constant 1 : index
    %c0_650 = arith.constant 0 : index
    %c0_651 = arith.constant 0 : index
    %862 = vector.load %arg14[%c1_649, %c0_650, %c0_651] : memref<3x24x16xbf16, #tpu.memory_space<vmem>>, vector<1x8x16xbf16>
    %863 = vector.shape_cast %862 : vector<1x8x16xbf16> to vector<8x16xbf16>
    %864 = vector.extract_strided_slice %840 {offsets = [3, 0, 0], sizes = [1, 16, 16], strides = [1, 1, 1]} : vector<9x16x16xbf16> to vector<1x16x16xbf16>
    %865 = vector.shape_cast %864 : vector<1x16x16xbf16> to vector<16x16xbf16>
    %cst_652 = arith.constant dense<0.000000e+00> : vector<8x16xf32>
    %866 = tpu.matmul %863, %865, %cst_652 {dimension_numbers = #tpu.dot_dimension_numbers<[1], [0], [0], [1], [0, 0, 1, 1], [], []>} : vector<8x16xbf16>, vector<16x16xbf16>, vector<8x16xf32> -> vector<8x16xf32>
    %867 = arith.addf %861, %866 : vector<8x16xf32>
    %c1_653 = arith.constant 1 : index
    %c8_654 = arith.constant 8 : index
    %c0_655 = arith.constant 0 : index
    %868 = vector.load %arg14[%c1_653, %c8_654, %c0_655] : memref<3x24x16xbf16, #tpu.memory_space<vmem>>, vector<1x8x16xbf16>
    %869 = vector.shape_cast %868 : vector<1x8x16xbf16> to vector<8x16xbf16>
    %870 = vector.extract_strided_slice %840 {offsets = [4, 0, 0], sizes = [1, 16, 16], strides = [1, 1, 1]} : vector<9x16x16xbf16> to vector<1x16x16xbf16>
    %871 = vector.shape_cast %870 : vector<1x16x16xbf16> to vector<16x16xbf16>
    %cst_656 = arith.constant dense<0.000000e+00> : vector<8x16xf32>
    %872 = tpu.matmul %869, %871, %cst_656 {dimension_numbers = #tpu.dot_dimension_numbers<[1], [0], [0], [1], [0, 0, 1, 1], [], []>} : vector<8x16xbf16>, vector<16x16xbf16>, vector<8x16xf32> -> vector<8x16xf32>
    %873 = arith.addf %867, %872 : vector<8x16xf32>
    %c1_657 = arith.constant 1 : index
    %c16_658 = arith.constant 16 : index
    %c0_659 = arith.constant 0 : index
    %874 = vector.load %arg14[%c1_657, %c16_658, %c0_659] : memref<3x24x16xbf16, #tpu.memory_space<vmem>>, vector<1x8x16xbf16>
    %875 = vector.shape_cast %874 : vector<1x8x16xbf16> to vector<8x16xbf16>
    %876 = vector.extract_strided_slice %840 {offsets = [5, 0, 0], sizes = [1, 16, 16], strides = [1, 1, 1]} : vector<9x16x16xbf16> to vector<1x16x16xbf16>
    %877 = vector.shape_cast %876 : vector<1x16x16xbf16> to vector<16x16xbf16>
    %cst_660 = arith.constant dense<0.000000e+00> : vector<8x16xf32>
    %878 = tpu.matmul %875, %877, %cst_660 {dimension_numbers = #tpu.dot_dimension_numbers<[1], [0], [0], [1], [0, 0, 1, 1], [], []>} : vector<8x16xbf16>, vector<16x16xbf16>, vector<8x16xf32> -> vector<8x16xf32>
    %879 = arith.addf %873, %878 : vector<8x16xf32>
    %c2_661 = arith.constant 2 : index
    %c0_662 = arith.constant 0 : index
    %c0_663 = arith.constant 0 : index
    %880 = vector.load %arg14[%c2_661, %c0_662, %c0_663] : memref<3x24x16xbf16, #tpu.memory_space<vmem>>, vector<1x8x16xbf16>
    %881 = vector.shape_cast %880 : vector<1x8x16xbf16> to vector<8x16xbf16>
    %882 = vector.extract_strided_slice %840 {offsets = [6, 0, 0], sizes = [1, 16, 16], strides = [1, 1, 1]} : vector<9x16x16xbf16> to vector<1x16x16xbf16>
    %883 = vector.shape_cast %882 : vector<1x16x16xbf16> to vector<16x16xbf16>
    %cst_664 = arith.constant dense<0.000000e+00> : vector<8x16xf32>
    %884 = tpu.matmul %881, %883, %cst_664 {dimension_numbers = #tpu.dot_dimension_numbers<[1], [0], [0], [1], [0, 0, 1, 1], [], []>} : vector<8x16xbf16>, vector<16x16xbf16>, vector<8x16xf32> -> vector<8x16xf32>
    %885 = arith.addf %879, %884 : vector<8x16xf32>
    %c2_665 = arith.constant 2 : index
    %c8_666 = arith.constant 8 : index
    %c0_667 = arith.constant 0 : index
    %886 = vector.load %arg14[%c2_665, %c8_666, %c0_667] : memref<3x24x16xbf16, #tpu.memory_space<vmem>>, vector<1x8x16xbf16>
    %887 = vector.shape_cast %886 : vector<1x8x16xbf16> to vector<8x16xbf16>
    %888 = vector.extract_strided_slice %840 {offsets = [7, 0, 0], sizes = [1, 16, 16], strides = [1, 1, 1]} : vector<9x16x16xbf16> to vector<1x16x16xbf16>
    %889 = vector.shape_cast %888 : vector<1x16x16xbf16> to vector<16x16xbf16>
    %cst_668 = arith.constant dense<0.000000e+00> : vector<8x16xf32>
    %890 = tpu.matmul %887, %889, %cst_668 {dimension_numbers = #tpu.dot_dimension_numbers<[1], [0], [0], [1], [0, 0, 1, 1], [], []>} : vector<8x16xbf16>, vector<16x16xbf16>, vector<8x16xf32> -> vector<8x16xf32>
    %891 = arith.addf %885, %890 : vector<8x16xf32>
    %c2_669 = arith.constant 2 : index
    %c16_670 = arith.constant 16 : index
    %c0_671 = arith.constant 0 : index
    %892 = vector.load %arg14[%c2_669, %c16_670, %c0_671] : memref<3x24x16xbf16, #tpu.memory_space<vmem>>, vector<1x8x16xbf16>
    %893 = vector.shape_cast %892 : vector<1x8x16xbf16> to vector<8x16xbf16>
    %894 = vector.extract_strided_slice %840 {offsets = [8, 0, 0], sizes = [1, 16, 16], strides = [1, 1, 1]} : vector<9x16x16xbf16> to vector<1x16x16xbf16>
    %895 = vector.shape_cast %894 : vector<1x16x16xbf16> to vector<16x16xbf16>
    %cst_672 = arith.constant dense<0.000000e+00> : vector<8x16xf32>
    %896 = tpu.matmul %893, %895, %cst_672 {dimension_numbers = #tpu.dot_dimension_numbers<[1], [0], [0], [1], [0, 0, 1, 1], [], []>} : vector<8x16xbf16>, vector<16x16xbf16>, vector<8x16xf32> -> vector<8x16xf32>
    %897 = arith.addf %891, %896 : vector<8x16xf32>
    %cst_673 = arith.constant 0.000000e+00 : f32
    %898 = vector.broadcast %cst_673 : f32 to vector<8x16xf32>
    %899 = arith.maximumf %897, %898 : vector<8x16xf32>
    %900 = arith.truncf %899 : vector<8x16xf32> to vector<8x16xbf16>
    %c0_674 = arith.constant 0 : index
    %c0_675 = arith.constant 0 : index
    %901 = vector.load %arg9[%c0_674, %c0_675] : memref<16x128xbf16, #tpu.memory_space<vmem>>, vector<16x128xbf16>
    %cst_676 = arith.constant dense<0.000000e+00> : vector<8x128xf32>
    %902 = tpu.matmul %900, %901, %cst_676 {dimension_numbers = #tpu.dot_dimension_numbers<[1], [0], [0], [1], [0, 0, 1, 1], [], []>} : vector<8x16xbf16>, vector<16x128xbf16>, vector<8x128xf32> -> vector<8x128xf32>
    %903 = arith.addf %6, %902 : vector<8x128xf32>
    %cst_677 = arith.constant 0.000000e+00 : f32
    %904 = vector.broadcast %cst_677 : f32 to vector<8x128xf32>
    %905 = arith.maximumf %903, %904 : vector<8x128xf32>
    %c0_678 = arith.constant 0 : index
    %c0_679 = arith.constant 0 : index
    %906 = vector.load %arg12[%c0_678, %c0_679] : memref<8x128xf32, #tpu.memory_space<vmem>>, vector<8x128xf32>
    tpu.vector_store %arg12[%c0_678, %c0_679], %905 {strides = array<i32>} : memref<8x128xf32, #tpu.memory_space<vmem>>, vector<8x128xf32>,
    return
  }
  func.func @transform_0(%arg0: i32) -> (i32, i32, i32, i32) {
    %c0_i32 = arith.constant 0 : i32
    %c0_i32_0 = arith.constant 0 : i32
    %c0_i32_1 = arith.constant 0 : i32
    %c0_i32_2 = arith.constant 0 : i32
    return %arg0, %c0_i32, %c0_i32_0, %c0_i32_1 : i32, i32, i32, i32
  }
  func.func @transform_1(%arg0: i32) -> (i32, i32) {
    %c0_i32 = arith.constant 0 : i32
    %c0_i32_0 = arith.constant 0 : i32
    return %arg0, %c0_i32 : i32, i32
  }
  func.func @transform_2(%arg0: i32) -> (i32, i32, i32) {
    %c0_i32 = arith.constant 0 : i32
    %c0_i32_0 = arith.constant 0 : i32
    %c0_i32_1 = arith.constant 0 : i32
    %c0_i32_2 = arith.constant 0 : i32
    return %c0_i32, %c0_i32_0, %c0_i32_1 : i32, i32, i32
  }
  func.func @transform_3(%arg0: i32) -> (i32, i32) {
    %c0_i32 = arith.constant 0 : i32
    %c0_i32_0 = arith.constant 0 : i32
    %c0_i32_1 = arith.constant 0 : i32
    return %c0_i32, %c0_i32_0 : i32, i32
  }
  func.func @transform_4(%arg0: i32) -> (i32, i32, i32) {
    %c0_i32 = arith.constant 0 : i32
    %c0_i32_0 = arith.constant 0 : i32
    %c0_i32_1 = arith.constant 0 : i32
    %c0_i32_2 = arith.constant 0 : i32
    return %c0_i32, %c0_i32_0, %c0_i32_1 : i32, i32, i32
  }
  func.func @transform_5(%arg0: i32) -> (i32, i32) {
    %c0_i32 = arith.constant 0 : i32
    %c0_i32_0 = arith.constant 0 : i32
    %c0_i32_1 = arith.constant 0 : i32
    return %c0_i32, %c0_i32_0 : i32, i32
  }
  func.func @transform_6(%arg0: i32) -> (i32, i32, i32) {
    %c0_i32 = arith.constant 0 : i32
    %c0_i32_0 = arith.constant 0 : i32
    %c0_i32_1 = arith.constant 0 : i32
    %c0_i32_2 = arith.constant 0 : i32
    return %c0_i32, %c0_i32_0, %c0_i32_1 : i32, i32, i32
  }
  func.func @transform_7(%arg0: i32) -> (i32, i32) {
    %c0_i32 = arith.constant 0 : i32
    %c0_i32_0 = arith.constant 0 : i32
    %c0_i32_1 = arith.constant 0 : i32
    return %c0_i32, %c0_i32_0 : i32, i32
  }
  func.func @transform_8(%arg0: i32) -> (i32, i32) {
    %c0_i32 = arith.constant 0 : i32
    %c0_i32_0 = arith.constant 0 : i32
    %c0_i32_1 = arith.constant 0 : i32
    return %c0_i32, %c0_i32_0 : i32, i32
  }
  func.func @transform_9(%arg0: i32) -> (i32, i32) {
    %c0_i32 = arith.constant 0 : i32
    %c0_i32_0 = arith.constant 0 : i32
    %c0_i32_1 = arith.constant 0 : i32
    return %c0_i32, %c0_i32_0 : i32, i32
  }
  func.func @transform_10(%arg0: i32) -> (i32, i32) {
    %c0_i32 = arith.constant 0 : i32
    %c0_i32_0 = arith.constant 0 : i32
    %c0_i32_1 = arith.constant 0 : i32
    return %c0_i32, %c0_i32_0 : i32, i32
  }
  func.func @transform_11(%arg0: i32) -> (i32, i32) {
    %c0_i32 = arith.constant 0 : i32
    %c0_i32_0 = arith.constant 0 : i32
    return %arg0, %c0_i32 : i32, i32
  }
}

</mosaic_0001>

<bundles_post_ra>
// kernel: tpu_custom_call.1
= control target key start
LH: loop header
LB: loop body
LE: loop exit
PB: predicated region body
PF: predicated region fallthrough
CT: control target
= control target key end

     0   :  { %v15413_v1 = vmov 0.0   ;;  %vm54_vm0 = vcmask 1040384   ;;  %vm55_vm1 = vcmask 1041408   ;;  %v15414_v3 = vmov 65535   ;;  %s17630_s0 = inlined_call_operand.vmem [shape: bf16[1,20,48,16], index: 0, kind: input, shape index: {}]   ;;  %s17631_s1 = inlined_call_operand.vmem [shape: f32[8,3], index: 1, kind: input, shape index: {}]   ;;  %s17632_s2 = inlined_call_operand.vmem [shape: bf16[4,16,8], index: 2, kind: input, shape index: {}]   ;;  %s17633_s3 = inlined_call_operand.vmem [shape: f32[1,8], index: 3, kind: input, shape index: {}]   ;;  %s17634_s4 = inlined_call_operand.vmem [shape: bf16[16,8,16], index: 4, kind: input, shape index: {}]   ;;  %s17635_s5 = inlined_call_operand.vmem [shape: f32[1,16], index: 5, kind: input, shape index: {}]   ;;  %s17636_s6 = inlined_call_operand.vmem [shape: bf16[9,16,16], index: 6, kind: input, shape index: {}]   ;;  %s17637_s7 = inlined_call_operand.vmem [shape: f32[1,16], index: 7, kind: input, shape index: {}]   ;;  %s17638_s8 = inlined_call_operand.vmem [shape: bf16[16,128], index: 8, kind: input, shape index: {}]   ;;  %s17639_s9 = inlined_call_operand.vmem [shape: bf16[3,128], index: 9, kind: input, shape index: {}]   ;;  %s17640_s10 = inlined_call_operand.vmem [shape: f32[1,128], index: 10, kind: input, shape index: {}]   ;;  %s17641_s11 = inlined_call_operand.hbm [shape: f32[8,128], index: 11, kind: output, shape index: {}]  }
   0x1   :  { %v15480_v0 = vld [vmem:[%s17632_s2 + $0x8] sm:$0xff]   ;;  %12698 = vmatprep.subr.bf16.mxu1 %v15413_v1  ;;  %12678 = vmatprep.subr.bf16.mxu0 %v15413_v1  ;;  %v42_v2 = vld [vmem:[%s17639_s9] sm:$0x3]  ;;  %v56_v4 = vsel %vm54_vm0, 4294967295, %v15414_v3  ;;  %vm15415_vm2 = vmmov 0   ;;  %vm140_vm3 = vcmask 130048  }
   0x2   :  { %12699 = vmatpush3.bf16.msra.mxu1 %v15480_v0  ;;  %12700 = vmatprep.mubr.msk.bf16.mxu1 %vm15415_vm2, %v15413_v1  ;;  %v57_v5 = vsel %vm55_vm1, %v56_v4, 0  ;;  %v15051_v6 = vld [vmem:[%s17630_s0 + $0x18] sm:$0xff]   ;;  %v15499_v8 = vld [vmem:[%s17632_s2 + $0x10] sm:$0xff]   ;;  %v40_v9 = vld [vmem:[%s17631_s1] sm:$0xff]  ;;  %vm50_vm4 = vcmask 23552  }
   0x3   :  { %12712 = vmatprep.subr.bf16.mxu1 %v15413_v1  ;;  %12680 = vmatprep.mubr.msk.bf16.mxu0 %vm15415_vm2, %v15413_v1  ;;  %v59_v7 = vand.u32 %v57_v5, %v42_v2  ;;  %v41_v10 = vpack.c.bf16 %v40_v9, %v40_v9  ;;  %v15509_v11 = vld [vmem:[%s17632_s2] sm:$0xff]   ;;  %v15056_v14 = vld [vmem:[%s17630_s0 + $0x28] ss:$0 sps:$4 sm:$0xff]   ;;  %v15058_v16 = vld [vmem:[%s17630_s0 + $0x30] sm:$0xff]  }
   0x4   :  { %v15054_v12 = vld [vmem:[%s17630_s0 + $0x20] sm:$0xff]   ;;  %v15057_v15 = vld [vmem:[%s17630_s0 + $0x8] sm:$0xff]   ;;  %v15551_v17 = vld [vmem:[%s17632_s2 + $0x18] sm:$0xff]  }
   0x5   :  { %12701 = vmatmul.mubr.msk.bf16.vlgmr.msra.gmra.mrb[0].mxu1 %vm140_vm3, %v15051_v6  ;;  %12679 = vmatpush3.bf16.msra.mxu0 %v59_v7  ;;  %v15055_v13 = vld [vmem:[%s17630_s0] sm:$0xff]   ;;  %v15060_v18 = vld [vmem:[%s17630_s0 + $0x10] ss:$0 sps:$4 sm:$0xff]   ;;  %v15061_v19 = vld [vmem:[%s17630_s0 + $0x38] sm:$0xff]  }
   0x6   :  { %12713 = vmatpush3.bf16.msra.mxu1 %v15499_v8  ;;  %12684 = vmatprep.subr.bf16.mxu0 %v15413_v1  ;;  %v15062_v20 = vld [vmem:[%s17630_s0 + $0x18] sm:$0xff]   ;;  %v15063_v21 = vld [vmem:[%s17630_s0 + $0x40] ss:$0 sps:$4 sm:$0xff]   ;;  %v15065_v23 = vld [vmem:[%s17630_s0 + $0x48] sm:$0xff]  }
   0x7   :  { %12704 = vmatprep.mubr.msk.bf16.mxu1 %vm15415_vm2, %v15413_v1  ;;  %12726 = vmatprep.subr.bf16.mxu1 %v15413_v1  ;;  %v15064_v22 = vld [vmem:[%s17630_s0 + $0x20] sm:$0xff]   ;;  %v15066_v24 = vld [vmem:[%s17630_s0 + $0x28] ss:$0 sps:$4 sm:$0xff]   ;;  %v15067_v25 = vld [vmem:[%s17630_s0 + $0x50] sm:$0xff]  }
   0x8   :  { %12681 = vmatmul.mubr.msk.bf16.vlgmr.msra.gmra.mrb[0].mxu0 %vm50_vm4, %v41_v10  ;;  %v15068_v26 = vld [vmem:[%s17630_s0 + $0x4] sm:$0xff]   ;;  %v15069_v27 = vld [vmem:[%s17630_s0 + $0x58] ss:$0 sps:$4 sm:$0xff]   ;;  %v15070_v28 = vld [vmem:[%s17630_s0 + $0xc] sm:$0xff]  }
   0x9   :  { %12685 = vmatpush3.bf16.msra.mxu0 %v15509_v11  ;;  %12686 = vmatprep.mubr.msk.bf16.mxu0 %vm15415_vm2, %v15413_v1  ;;  %v15071_v29 = vld [vmem:[%s17630_s0 + $0x30] sm:$0xff]   ;;  %v15073_v31 = vld [vmem:[%s17630_s0 + $0x38] sm:$0xff]   ;;  %v15074_v32 = vld [vmem:[%s17630_s0 + $0x48] sm:$0xff]  }
   0xa   :  { %12740 = vmatprep.subr.bf16.mxu0 %v15413_v1  ;;  %v15072_v30 = vld [vmem:[%s17630_s0 + $0x14] ss:$0 sps:$4 sm:$0xff]   ;;  %v15075_v33 = vld [vmem:[%s17630_s0 + $0x40] ss:$0 sps:$4 sm:$0xff]   ;;  %v15077_v35 = vld [vmem:[%s17630_s0 + $0x48] sm:$0xff]  }
   0xb   :  { %v15076_v34 = vld [vmem:[%s17630_s0 + $0x50] sm:$0xff]   ;;  %v15078_v36 = vld [vmem:[%s17630_s0 + $0x58] ss:$0 sps:$4 sm:$0xff]   ;;  %v15082_v40 = vld [vmem:[%s17630_s0 + $0x3c] sm:$0xff]  }
   0xc   :  { %v15079_v37 = vld [vmem:[%s17630_s0 + $0x50] sm:$0xff]   ;;  %v15081_v39 = vld [vmem:[%s17630_s0 + $0x58] ss:$0 sps:$4 sm:$0xff]   ;;  %v15083_v41 = vld [vmem:[%s17630_s0 + $0x60] sm:$0xff]  }
   0xd   :  { %12705 = vmatmul.mubr.msk.bf16.gmra.mrb[4].mxu1 %vm140_vm3, %v15054_v12  ;;  %v15080_v38 = vld [vmem:[%s17630_s0 + $0x34] sm:$0xff]   ;;  %v15084_v42 = vld [vmem:[%s17630_s0 + $0x44] ss:$0 sps:$4 sm:$0xff]   ;;  %v15085_v43 = vld [vmem:[%s17630_s0 + $0x68] sm:$0xff]  }
   0xe   :  { %12708 = vmatprep.mubr.msk.bf16.mxu1 %vm15415_vm2, %v15413_v1  ;;  %v15086_v44 = vld [vmem:[%s17630_s0 + $0x48] sm:$0xff]   ;;  %v15087_v45 = vld [vmem:[%s17630_s0 + $0x70] ss:$0 sps:$4 sm:$0xff]   ;;  %v15089_v47 = vld [vmem:[%s17630_s0 + $0x78] sm:$0xff]  }
   0xf   :  { %v15088_v46 = vld [vmem:[%s17630_s0 + $0x50] sm:$0xff]   ;;  %v15090_v48 = vld [vmem:[%s17630_s0 + $0x58] ss:$0 sps:$4 sm:$0xff]   ;;  %v15091_v49 = vld [vmem:[%s17630_s0 + $0x80] sm:$0xff]  }
  0x10   :  { %12687 = vmatmul.mubr.msk.bf16.vlgmr.msra.gmra.mrb[4].mxu0 %vm140_vm3, %v15055_v13 }
  0x11   :  { %12690 = vmatprep.mubr.msk.bf16.mxu0 %vm15415_vm2, %v15413_v1  ;;  %12741 = vmatpush3.bf16.msra.mxu0 %v15509_v11 }
  0x12   :  { %12754 = vmatprep.subr.bf16.mxu0 %v15413_v1 }
  0x15   :  { %12709 = vmatmul.mubr.msk.bf16.gmra.mrb[8].mxu1 %vm140_vm3, %v15056_v14 }
  0x16   :  { %12714 = vmatprep.mubr.msk.bf16.mxu1 %vm15415_vm2, %v15413_v1 }
  0x18   :  { %12691 = vmatmul.mubr.msk.bf16.gmra.mrb[8].mxu0 %vm140_vm3, %v15057_v15 }
  0x19   :  { %12694 = vmatprep.mubr.msk.bf16.mxu0 %vm15415_vm2, %v15413_v1 }
  0x1d   :  { %12715 = vmatmul.mubr.msk.bf16.vlgmr.msra.gmra.mrb[0].mxu1 %vm140_vm3, %v15058_v16 }
  0x1e   :  { %12727 = vmatpush3.bf16.msra.mxu1 %v15551_v17  ;;  %12718 = vmatprep.mubr.msk.bf16.mxu1 %vm15415_vm2, %v15413_v1 }
  0x1f   :  { %12796 = vmatprep.subr.bf16.mxu1 %v15413_v1 }
  0x20   :  { %12695 = vmatmul.mubr.msk.bf16.gmra.mrb[12].mxu0 %vm140_vm3, %v15060_v18 }
  0x21   :  { %12742 = vmatprep.mubr.msk.bf16.mxu0 %vm15415_vm2, %v15413_v1 }
  0x25   :  { %12719 = vmatmul.mubr.msk.bf16.gmra.mrb[4].mxu1 %vm140_vm3, %v15061_v19 }
  0x26   :  { %12722 = vmatprep.mubr.msk.bf16.mxu1 %vm15415_vm2, %v15413_v1 }
  0x28   :  { %12743 = vmatmul.mubr.msk.bf16.vlgmr.msra.gmra.mrb[16].mxu0 %vm140_vm3, %v15062_v20 }
  0x29   :  { %12746 = vmatprep.mubr.msk.bf16.mxu0 %vm15415_vm2, %v15413_v1  ;;  %12755 = vmatpush3.bf16.msra.mxu0 %v15480_v0 }
  0x2a   :  { %12768 = vmatprep.subr.bf16.mxu0 %v15413_v1 }
  0x2d   :  { %12723 = vmatmul.mubr.msk.bf16.gmra.mrb[8].mxu1 %vm140_vm3, %v15063_v21 }
  0x2e   :  { %12728 = vmatprep.mubr.msk.bf16.mxu1 %vm15415_vm2, %v15413_v1 }
  0x30   :  { %12747 = vmatmul.mubr.msk.bf16.gmra.mrb[20].mxu0 %vm140_vm3, %v15064_v22 }
  0x31   :  { %12750 = vmatprep.mubr.msk.bf16.mxu0 %vm15415_vm2, %v15413_v1 }
  0x35   :  { %12729 = vmatmul.mubr.msk.bf16.vlgmr.msra.gmra.mrb[0].mxu1 %vm140_vm3, %v15065_v23 }
  0x36   :  { %12797 = vmatpush3.bf16.msra.mxu1 %v15509_v11  ;;  %12732 = vmatprep.mubr.msk.bf16.mxu1 %vm15415_vm2, %v15413_v1 }
  0x37   :  { %12810 = vmatprep.subr.bf16.mxu1 %v15413_v1 }
  0x38   :  { %12751 = vmatmul.mubr.msk.bf16.gmra.mrb[24].mxu0 %vm140_vm3, %v15066_v24 }
  0x39   :  { %12756 = vmatprep.mubr.msk.bf16.mxu0 %vm15415_vm2, %v15413_v1 }
  0x3d   :  { %12733 = vmatmul.mubr.msk.bf16.gmra.mrb[4].mxu1 %vm140_vm3, %v15067_v25 }
  0x3e   :  { %12736 = vmatprep.mubr.msk.bf16.mxu1 %vm15415_vm2, %v15413_v1 }
  0x40   :  { %12757 = vmatmul.mubr.msk.bf16.vlgmr.msra.gmra.mrb[16].mxu0 %vm140_vm3, %v15068_v26 }
  0x41   :  { %12760 = vmatprep.mubr.msk.bf16.mxu0 %vm15415_vm2, %v15413_v1  ;;  %12769 = vmatpush3.bf16.msra.mxu0 %v15499_v8 }
  0x42   :  { %12782 = vmatprep.subr.bf16.mxu0 %v15413_v1 }
  0x45   :  { %12737 = vmatmul.mubr.msk.bf16.gmra.mrb[8].mxu1 %vm140_vm3, %v15069_v27 }
  0x46   :  { %12798 = vmatprep.mubr.msk.bf16.mxu1 %vm15415_vm2, %v15413_v1 }
  0x48   :  { %12761 = vmatmul.mubr.msk.bf16.gmra.mrb[20].mxu0 %vm140_vm3, %v15070_v28 }
  0x49   :  { %12764 = vmatprep.mubr.msk.bf16.mxu0 %vm15415_vm2, %v15413_v1 }
  0x4d   :  { %12799 = vmatmul.mubr.msk.bf16.vlgmr.msra.gmra.mrb[12].mxu1 %vm140_vm3, %v15071_v29 }
  0x4e   :  { %12811 = vmatpush3.bf16.msra.mxu1 %v15480_v0  ;;  %12802 = vmatprep.mubr.msk.bf16.mxu1 %vm15415_vm2, %v15413_v1 }
  0x4f   :  { %12824 = vmatprep.subr.bf16.mxu1 %v15413_v1 }
  0x50   :  { %12765 = vmatmul.mubr.msk.bf16.gmra.mrb[24].mxu0 %vm140_vm3, %v15072_v30 }
  0x51   :  { %12770 = vmatprep.mubr.msk.bf16.mxu0 %vm15415_vm2, %v15413_v1 }
  0x55   :  { %12803 = vmatmul.mubr.msk.bf16.gmra.mrb[16].mxu1 %vm140_vm3, %v15073_v31 }
  0x56   :  { %12806 = vmatprep.mubr.msk.bf16.mxu1 %vm15415_vm2, %v15413_v1 }
  0x58   :  { %12771 = vmatmul.mubr.msk.bf16.vlgmr.msra.gmra.mrb[16].mxu0 %vm140_vm3, %v15074_v32 }
  0x59   :  { %12774 = vmatprep.mubr.msk.bf16.mxu0 %vm15415_vm2, %v15413_v1  ;;  %12783 = vmatpush3.bf16.msra.mxu0 %v15551_v17 }
  0x5a   :  { %12852 = vmatprep.subr.bf16.mxu0 %v15413_v1 }
  0x5d   :  { %12807 = vmatmul.mubr.msk.bf16.gmra.mrb[20].mxu1 %vm140_vm3, %v15075_v33 }
  0x5e   :  { %12812 = vmatprep.mubr.msk.bf16.mxu1 %vm15415_vm2, %v15413_v1 }
  0x60   :  { %12775 = vmatmul.mubr.msk.bf16.gmra.mrb[20].mxu0 %vm140_vm3, %v15076_v34 }
  0x61   :  { %12778 = vmatprep.mubr.msk.bf16.mxu0 %vm15415_vm2, %v15413_v1 }
  0x65   :  { %12813 = vmatmul.mubr.msk.bf16.vlgmr.msra.gmra.mrb[12].mxu1 %vm140_vm3, %v15077_v35 }
  0x66   :  { %12825 = vmatpush3.bf16.msra.mxu1 %v15499_v8  ;;  %12816 = vmatprep.mubr.msk.bf16.mxu1 %vm15415_vm2, %v15413_v1 }
  0x67   :  { %12838 = vmatprep.subr.bf16.mxu1 %v15413_v1 }
  0x68   :  { %12779 = vmatmul.mubr.msk.bf16.gmra.mrb[24].mxu0 %vm140_vm3, %v15078_v36 }
  0x69   :  { %12784 = vmatprep.mubr.msk.bf16.mxu0 %vm15415_vm2, %v15413_v1 }
  0x6d   :  { %12817 = vmatmul.mubr.msk.bf16.gmra.mrb[16].mxu1 %vm140_vm3, %v15079_v37 }
  0x6e   :  { %12820 = vmatprep.mubr.msk.bf16.mxu1 %vm15415_vm2, %v15413_v1 }
  0x70   :  { %12785 = vmatmul.mubr.msk.bf16.vlgmr.msra.gmra.mrb[16].mxu0 %vm140_vm3, %v15080_v38 }
  0x71   :  { %12788 = vmatprep.mubr.msk.bf16.mxu0 %vm15415_vm2, %v15413_v1  ;;  %12853 = vmatpush3.bf16.msra.mxu0 %v15509_v11 }
  0x72   :  { %12866 = vmatprep.subr.bf16.mxu0 %v15413_v1 }
  0x75   :  { %12821 = vmatmul.mubr.msk.bf16.gmra.mrb[20].mxu1 %vm140_vm3, %v15081_v39 }
  0x76   :  { %12826 = vmatprep.mubr.msk.bf16.mxu1 %vm15415_vm2, %v15413_v1 }
  0x78   :  { %12789 = vmatmul.mubr.msk.bf16.gmra.mrb[20].mxu0 %vm140_vm3, %v15082_v40 }
  0x79   :  { %12792 = vmatprep.mubr.msk.bf16.mxu0 %vm15415_vm2, %v15413_v1 }
  0x7d   :  { %12827 = vmatmul.mubr.msk.bf16.vlgmr.msra.gmra.mrb[12].mxu1 %vm140_vm3, %v15083_v41 }
  0x7e   :  { %12839 = vmatpush3.bf16.msra.mxu1 %v15551_v17  ;;  %12830 = vmatprep.mubr.msk.bf16.mxu1 %vm15415_vm2, %v15413_v1 }
  0x7f   :  { %12908 = vmatprep.subr.bf16.mxu1 %v15413_v1 }
  0x80   :  { %12793 = vmatmul.mubr.msk.bf16.gmra.mrb[24].mxu0 %vm140_vm3, %v15084_v42 }
  0x81   :  { %12854 = vmatprep.mubr.msk.bf16.mxu0 %vm15415_vm2, %v15413_v1 }
  0x85   :  { %12831 = vmatmul.mubr.msk.bf16.gmra.mrb[16].mxu1 %vm140_vm3, %v15085_v43 }
  0x86   :  { %12834 = vmatprep.mubr.msk.bf16.mxu1 %vm15415_vm2, %v15413_v1 }
  0x88   :  { %12855 = vmatmul.mubr.msk.bf16.vlgmr.msra.gmra.mrb[28].mxu0 %vm140_vm3, %v15086_v44 }
  0x89   :  { %12858 = vmatprep.mubr.msk.bf16.mxu0 %vm15415_vm2, %v15413_v1  ;;  %12867 = vmatpush3.bf16.msra.mxu0 %v15480_v0 }
  0x8a   :  { %12880 = vmatprep.subr.bf16.mxu0 %v15413_v1 }
  0x8d   :  { %12835 = vmatmul.mubr.msk.bf16.gmra.mrb[20].mxu1 %vm140_vm3, %v15087_v45 }
  0x8e   :  { %12840 = vmatprep.mubr.msk.bf16.mxu1 %vm15415_vm2, %v15413_v1 }
  0x90   :  { %12859 = vmatmul.mubr.msk.bf16.gmra.mrb[32].mxu0 %vm140_vm3, %v15088_v46 }
  0x91   :  { %12862 = vmatprep.mubr.msk.bf16.mxu0 %vm15415_vm2, %v15413_v1 }
  0x95   :  { %12841 = vmatmul.mubr.msk.bf16.vlgmr.msra.gmra.mrb[12].mxu1 %vm140_vm3, %v15089_v47 }
  0x96   :  { %12909 = vmatpush3.bf16.msra.mxu1 %v15509_v11  ;;  %12844 = vmatprep.mubr.msk.bf16.mxu1 %vm15415_vm2, %v15413_v1 }
  0x97   :  { %12922 = vmatprep.subr.bf16.mxu1 %v15413_v1 }
  0x98   :  { %12863 = vmatmul.mubr.msk.bf16.gmra.mrb[36].mxu0 %vm140_vm3, %v15090_v48 }
  0x99   :  { %12868 = vmatprep.mubr.msk.bf16.mxu0 %vm15415_vm2, %v15413_v1 }
  0x9a   :  { %16 = vsyncpa [#allocation5], 0  ;;  %v15092_v50 = vld [vmem:[%s17630_s0 + $0x34] sm:$0xff]   ;;  %v15093_v51 = vld [vmem:[%s17630_s0 + $0x88] ss:$0 sps:$4 sm:$0xff]   ;;  %vm522_vm5 = vcmask 60416  }
  0x9b   :  { %v15782_v52 = vld [vmem:[%s17632_s2 + $0x10] sm:$0xff]   ;;  %v15094_v53 = vld [vmem:[%s17630_s0 + $0x3c] sm:$0xff]   ;;  %v15096_v55 = vld [vmem:[%s17630_s0 + $0x44] ss:$0 sps:$4 sm:$0xff]   ;;  %vm7113_vm6 = vcmask 1043456   ;;  %vm7106_vm7 = vcmask 64512  }
  0x9c   :  { %v15095_v54 = vld [vmem:[%s17630_s0 + $0x60] sm:$0xff]   ;;  %v15805_v56 = vld [vmem:[%s17632_s2 + $0x8] sm:$0xff]   ;;  %v15098_v58 = vld [vmem:[%s17630_s0 + $0x78] sm:$0xff]   ;;  %vm8249_vm8 = vcmask 125952  }
  0x9d   :  { %12845 = vmatmul.mubr.msk.bf16.gmra.mrb[16].mxu1 %vm140_vm3, %v15091_v49  ;;  %v15097_v57 = vld [vmem:[%s17630_s0 + $0x68] sm:$0xff]   ;;  %v15099_v59 = vld [vmem:[%s17630_s0 + $0x70] ss:$0 sps:$4 sm:$0xff]   ;;  %v15100_v60 = vld [vmem:[%s17630_s0 + $0x80] sm:$0xff]  }
  0x9e   :  { %12848 = vmatprep.mubr.msk.bf16.mxu1 %vm15415_vm2, %v15413_v1  ;;  %v15101_v61 = vld [vmem:[%s17630_s0 + $0x78] sm:$0xff]   ;;  %v15102_v62 = vld [vmem:[%s17630_s0 + $0x88] ss:$0 sps:$4 sm:$0xff]   ;;  %v15103_v63 = vld [vmem:[%s17630_s0 + $0x80] sm:$0xff]  }
  0x9f   :  { %v15104_v0 = vld [vmem:[%s17630_s0 + $0x64] sm:$0xff]   ;;  %v15106_v4 = vld [vmem:[%s17630_s0 + $0x6c] sm:$0xff]   ;;  %v15108_v6 = vld [vmem:[%s17630_s0 + $0x74] ss:$0 sps:$4 sm:$0xff]  }
  0xa0   :  { %12869 = vmatmul.mubr.msk.bf16.vlgmr.msra.gmra.mrb[28].mxu0 %vm140_vm3, %v15092_v50  ;;  %v15105_v2 = vld [vmem:[%s17630_s0 + $0x88] ss:$0 sps:$4 sm:$0xff]   ;;  %v15872_v3 = vld [vmem:[%s17632_s2] sm:$0xff]   ;;  %v15107_v5 = vld [vmem:[%s17630_s0 + $0x90] sm:$0xff]  }
  0xa1   :  { %12872 = vmatprep.mubr.msk.bf16.mxu0 %vm15415_vm2, %v15413_v1  ;;  %12881 = vmatpush3.bf16.msra.mxu0 %v15782_v52  ;;  %v15895_v7 = vld [vmem:[%s17632_s2 + $0x18] sm:$0xff]   ;;  %v15111_v14 = vld [vmem:[%s17630_s0 + $0xa0] ss:$0 sps:$4 sm:$0xff]   ;;  %v15113_v20 = vld [vmem:[%s17630_s0 + $0xa8] sm:$0xff]  }
  0xa2   :  { %12894 = vmatprep.subr.bf16.mxu0 %v15413_v1  ;;  %v15109_v8 = vld [vmem:[%s17630_s0 + $0x98] sm:$0xff]   ;;  %v15112_v16 = vld [vmem:[%s17630_s0 + $0x80] sm:$0xff]   ;;  %v15114_v22 = vld [vmem:[%s17630_s0 + $0x88] ss:$0 sps:$4 sm:$0xff]  }
  0xa3   :  { %v15110_v10 = vld [vmem:[%s17630_s0 + $0x78] sm:$0xff]   ;;  %v15115_v26 = vld [vmem:[%s17630_s0 + $0xb0] sm:$0xff]   ;;  %v15116_v27 = vld [vmem:[%s17630_s0 + $0x64] sm:$0xff]  }
  0xa4   :  { %v15117_v28 = vld [vmem:[%s17630_s0 + $0xb8] ss:$0 sps:$4 sm:$0xff]   ;;  %v15960_v29 = vld [vmem:[%s17633_s3] ss:$0 sm:$0xff]  ;;  %v15118_v31 = vld [vmem:[%s17630_s0 + $0x6c] sm:$0xff]  }
  0xa5   :  { %12849 = vmatmul.mubr.msk.bf16.gmra.mrb[20].mxu1 %vm140_vm3, %v15093_v51  ;;  %v15119_v36 = vld [vmem:[%s17630_s0 + $0x90] sm:$0xff]   ;;  %v15121_v50 = vld [vmem:[%s17630_s0 + $0x98] sm:$0xff]  }
  0xa6   :  { %12910 = vmatprep.mubr.msk.bf16.mxu1 %vm15415_vm2, %v15413_v1  ;;  %v15120_v44 = vld [vmem:[%s17630_s0 + $0x74] ss:$0 sps:$4 sm:$0xff]  }
  0xa8   :  { %12873 = vmatmul.mubr.msk.bf16.gmra.mrb[32].mxu0 %vm140_vm3, %v15094_v53 }
  0xa9   :  { %12876 = vmatprep.mubr.msk.bf16.mxu0 %vm15415_vm2, %v15413_v1 }
  0xad   :  { %12911 = vmatmul.mubr.msk.bf16.vlgmr.msra.gmra.mrb[24].mxu1 %vm140_vm3, %v15095_v54 }
  0xae   :  { %12923 = vmatpush3.bf16.msra.mxu1 %v15805_v56  ;;  %12914 = vmatprep.mubr.msk.bf16.mxu1 %vm15415_vm2, %v15413_v1 }
  0xaf   :  { %12936 = vmatprep.subr.bf16.mxu1 %v15413_v1 }
  0xb0   :  { %12877 = vmatmul.mubr.msk.bf16.gmra.mrb[36].mxu0 %vm140_vm3, %v15096_v55 }
  0xb1   :  { %12882 = vmatprep.mubr.msk.bf16.mxu0 %vm15415_vm2, %v15413_v1 }
  0xb5   :  { %12915 = vmatmul.mubr.msk.bf16.gmra.mrb[28].mxu1 %vm140_vm3, %v15097_v57 }
  0xb6   :  { %12918 = vmatprep.mubr.msk.bf16.mxu1 %vm15415_vm2, %v15413_v1 }
  0xb8   :  { %12883 = vmatmul.mubr.msk.bf16.vlgmr.msra.gmra.mrb[28].mxu0 %vm140_vm3, %v15098_v58 }
  0xb9   :  { %12886 = vmatprep.mubr.msk.bf16.mxu0 %vm15415_vm2, %v15413_v1  ;;  %12895 = vmatpush3.bf16.msra.mxu0 %v15551_v17 }
  0xba   :  { %12964 = vmatprep.subr.bf16.mxu0 %v15413_v1 }
  0xbd   :  { %12919 = vmatmul.mubr.msk.bf16.gmra.mrb[32].mxu1 %vm140_vm3, %v15099_v59  ;;  %v15122_v59 = vld [vmem:[%s17630_s0 + $0xa8] sm:$0xff]  }
  0xbe   :  { %12924 = vmatprep.mubr.msk.bf16.mxu1 %vm15415_vm2, %v15413_v1 }
  0xc0   :  { %12887 = vmatmul.mubr.msk.bf16.gmra.mrb[32].mxu0 %vm140_vm3, %v15100_v60 }
  0xc1   :  { %12890 = vmatprep.mubr.msk.bf16.mxu0 %vm15415_vm2, %v15413_v1 }
  0xc5   :  { %12925 = vmatmul.mubr.msk.bf16.vlgmr.msra.gmra.mrb[24].mxu1 %vm140_vm3, %v15101_v61 }
  0xc6   :  { %12937 = vmatpush3.bf16.msra.mxu1 %v15782_v52  ;;  %12928 = vmatprep.mubr.msk.bf16.mxu1 %vm15415_vm2, %v15413_v1 }
  0xc7   :  { %12950 = vmatprep.subr.bf16.mxu1 %v15413_v1 }
  0xc8   :  { %12891 = vmatmul.mubr.msk.bf16.gmra.mrb[36].mxu0 %vm140_vm3, %v15102_v62 }
  0xc9   :  { %12896 = vmatprep.mubr.msk.bf16.mxu0 %vm15415_vm2, %v15413_v1 }
  0xcd   :  { %12929 = vmatmul.mubr.msk.bf16.gmra.mrb[28].mxu1 %vm140_vm3, %v15103_v63  ;;  %v15123_v63 = vld [vmem:[%s17630_s0 + $0xa0] ss:$0 sps:$4 sm:$0xff]  }
  0xce   :  { %12932 = vmatprep.mubr.msk.bf16.mxu1 %vm15415_vm2, %v15413_v1 }
  0xd0   :  { %12897 = vmatmul.mubr.msk.bf16.vlgmr.msra.gmra.mrb[28].mxu0 %vm140_vm3, %v15104_v0 }
  0xd1   :  { %12900 = vmatprep.mubr.msk.bf16.mxu0 %vm15415_vm2, %v15413_v1  ;;  %12965 = vmatpush3.bf16.msra.mxu0 %v15872_v3 }
  0xd2   :  { %12978 = vmatprep.subr.bf16.mxu0 %v15413_v1 }
  0xd5   :  { %12933 = vmatmul.mubr.msk.bf16.gmra.mrb[32].mxu1 %vm140_vm3, %v15105_v2 }
  0xd6   :  { %12938 = vmatprep.mubr.msk.bf16.mxu1 %vm15415_vm2, %v15413_v1 }
  0xd8   :  { %12901 = vmatmul.mubr.msk.bf16.gmra.mrb[32].mxu0 %vm140_vm3, %v15106_v4  ;;  %v15124_v4 = vld [vmem:[%s17630_s0 + $0xb0] sm:$0xff]  }
  0xd9   :  { %12904 = vmatprep.mubr.msk.bf16.mxu0 %vm15415_vm2, %v15413_v1 }
  0xdd   :  { %12939 = vmatmul.mubr.msk.bf16.vlgmr.msra.gmra.mrb[24].mxu1 %vm140_vm3, %v15107_v5  ;;  %v15125_v5 = vld [vmem:[%s17630_s0 + $0xa8] sm:$0xff]  }
  0xde   :  { %12951 = vmatpush3.bf16.msra.mxu1 %v15895_v7  ;;  %12942 = vmatprep.mubr.msk.bf16.mxu1 %vm15415_vm2, %v15413_v1 }
  0xdf   :  { %13020 = vmatprep.subr.bf16.mxu1 %v15413_v1 }
  0xe0   :  { %12905 = vmatmul.mubr.msk.bf16.gmra.mrb[36].mxu0 %vm140_vm3, %v15108_v6  ;;  %v15126_v6 = vld [vmem:[%s17630_s0 + $0xb8] ss:$0 sps:$4 sm:$0xff]  }
  0xe1   :  { %12966 = vmatprep.mubr.msk.bf16.mxu0 %vm15415_vm2, %v15413_v1 }
  0xe3   :  { %v184_v9 = vpop.f32.mrb[4].mxu0 }
  0xe4   :  { %v12688_v11 = vpop.f32.mrb[5].mxu0  ;;  %v206_v30 = vadd.f32 %v15960_v29, %v184_v9  ;;  %v15128_v9 = vld [vmem:[%s17630_s0 + $0x94] sm:$0xff]  }
  0xe5   :  { %12943 = vmatmul.mubr.msk.bf16.gmra.mrb[28].mxu1 %vm140_vm3, %v15109_v8  ;;  %v187_v12 = vpop.f32.mrb[6].mxu0  ;;  %v15127_v8 = vld [vmem:[%s17630_s0 + $0xb0] sm:$0xff]   ;;  %v15130_v11 = vld [vmem:[%s17630_s0 + $0x9c] sm:$0xff]  }
  0xe6   :  { %12946 = vmatprep.mubr.msk.bf16.mxu1 %vm15415_vm2, %v15413_v1  ;;  %v12689_v13 = vpop.f32.mrb[7].mxu0  ;;  %v207_v32 = vadd.f32 %v15960_v29, %v187_v12  ;;  %v15131_v12 = vld [vmem:[%s17630_s0 + $0xc0] sm:$0xff]  }
  0xe7   :  { %v15132_v13 = vld [vmem:[%s17630_s0 + $0xa4] ss:$0 sps:$4 sm:$0xff]  }
  0xe8   :  { %12967 = vmatmul.mubr.msk.bf16.vlgmr.msra.gmra.mrb[40].mxu0 %vm140_vm3, %v15110_v10  ;;  %v15129_v10 = vld [vmem:[%s17630_s0 + $0xb8] ss:$0 sps:$4 sm:$0xff]  }
  0xe9   :  { %12970 = vmatprep.mubr.msk.bf16.mxu0 %vm15415_vm2, %v15413_v1  ;;  %12979 = vmatpush3.bf16.msra.mxu0 %v15805_v56 }
  0xea   :  { %12992 = vmatprep.subr.bf16.mxu0 %v15413_v1 }
  0xeb   :  { %v192_v15 = vpop.f32.mrb[8].mxu0 }
  0xec   :  { %v12692_v17 = vpop.f32.mrb[9].mxu0  ;;  %v208_v43 = vadd.f32 %v15960_v29, %v192_v15 }
  0xed   :  { %12947 = vmatmul.mubr.msk.bf16.gmra.mrb[32].mxu1 %vm140_vm3, %v15111_v14  ;;  %v195_v18 = vpop.f32.mrb[10].mxu0  ;;  %v15133_v14 = vld [vmem:[%s17630_s0 + $0xc8] sm:$0xff]  }
  0xee   :  { %12952 = vmatprep.mubr.msk.bf16.mxu1 %vm15415_vm2, %v15413_v1  ;;  %v12693_v19 = vpop.f32.mrb[11].mxu0  ;;  %v209_v46 = vadd.f32 %v15960_v29, %v195_v18 }
  0xf0   :  { %12971 = vmatmul.mubr.msk.bf16.gmra.mrb[44].mxu0 %vm140_vm3, %v15112_v16  ;;  %v15134_v16 = vld [vmem:[%s17630_s0 + $0xa8] sm:$0xff]  }
  0xf1   :  { %12974 = vmatprep.mubr.msk.bf16.mxu0 %vm15415_vm2, %v15413_v1 }
  0xf3   :  { %v200_v21 = vpop.f32.mrb[12].mxu0 }
  0xf4   :  { %v12696_v23 = vpop.f32.mrb[13].mxu0 }
  0xf5   :  { %12953 = vmatmul.mubr.msk.bf16.vlgmr.msra.gmra.mrb[24].mxu1 %vm140_vm3, %v15113_v20  ;;  %v203_v24 = vpop.f32.mrb[14].mxu0  ;;  %v15135_v23 = vld [vmem:[%s17630_s0 + $0xd0] ss:$0 sps:$4 sm:$0xff]  }
  0xf6   :  { %13021 = vmatpush3.bf16.msra.mxu1 %v15872_v3  ;;  %12956 = vmatprep.mubr.msk.bf16.mxu1 %vm15415_vm2, %v15413_v1  ;;  %v12697_v25 = vpop.f32.mrb[15].mxu0 }
  0xf7   :  { %13034 = vmatprep.subr.bf16.mxu1 %v15413_v1 }
  0xf8   :  { %12975 = vmatmul.mubr.msk.bf16.gmra.mrb[48].mxu0 %vm140_vm3, %v15114_v22 }
  0xf9   :  { %12980 = vmatprep.mubr.msk.bf16.mxu0 %vm15415_vm2, %v15413_v1 }
  0xfd   :  { %12957 = vmatmul.mubr.msk.bf16.gmra.mrb[28].mxu1 %vm140_vm3, %v15115_v26 }
  0xfe   :  { %12960 = vmatprep.mubr.msk.bf16.mxu1 %vm15415_vm2, %v15413_v1 }
 0x100   :  { %12981 = vmatmul.mubr.msk.bf16.vlgmr.msra.gmra.mrb[40].mxu0 %vm140_vm3, %v15116_v27 }
 0x101   :  { %12984 = vmatprep.mubr.msk.bf16.mxu0 %vm15415_vm2, %v15413_v1  ;;  %12993 = vmatpush3.bf16.msra.mxu0 %v15782_v52 }
 0x102   :  { %13006 = vmatprep.subr.bf16.mxu0 %v15413_v1 }
 0x105   :  { %12961 = vmatmul.mubr.msk.bf16.gmra.mrb[32].mxu1 %vm140_vm3, %v15117_v28  ;;  %v15136_v28 = vld [vmem:[%s17630_s0 + $0xb0] sm:$0xff]  }
 0x106   :  { %13022 = vmatprep.mubr.msk.bf16.mxu1 %vm15415_vm2, %v15413_v1 }
 0x108   :  { %v469_v33 = vpop.f32.mrb[0].mxu1  ;;  %12985 = vmatmul.mubr.msk.bf16.gmra.mrb[44].mxu0 %vm140_vm3, %v15118_v31 }
 0x109   :  { %v14042_v34 = vadd.f32 %v469_v33, %v206_v30  ;;  %v12730_v35 = vpop.f32.mrb[1].mxu1  ;;  %12988 = vmatprep.mubr.msk.bf16.mxu0 %vm15415_vm2, %v15413_v1 }
 0x10a   :  { %v472_v37 = vpop.f32.mrb[2].mxu1 }
 0x10b   :  { %v496_v38 = vmax.f32 %v14042_v34, 0.0  ;;  %v14044_v39 = vadd.f32 %v472_v37, %v207_v32  ;;  %v12731_v40 = vpop.f32.mrb[3].mxu1 }
 0x10d   :  { %v12125_v41 = vpack.c.bf16 %v496_v38, %v496_v38  ;;  %v497_v42 = vmax.f32 %v14044_v39, 0.0  ;;  %13023 = vmatmul.mubr.msk.bf16.vlgmr.msra.gmra.mrb[36].mxu1 %vm140_vm3, %v15119_v36  ;;  %v15137_v36 = vld [vmem:[%s17630_s0 + $0xd8] sm:$0xff]  }
 0x10e   :  { %13035 = vmatpush3.bf16.msra.mxu1 %v15805_v56  ;;  %13026 = vmatprep.mubr.msk.bf16.mxu1 %vm15415_vm2, %v15413_v1 }
 0x10f   :  { %523 = vst.msk [vmem:[#allocation2] sm:$0xf] %vm522_vm5, %v12125_v41  ;;  %v12126_v45 = vpack.c.bf16 %v497_v42, %v497_v42  ;;  %13048 = vmatprep.subr.bf16.mxu1 %v15413_v1  ;;  %v15138_v41 = vld [vmem:[%s17630_s0 + $0xb8] ss:$0 sps:$4 sm:$0xff]  }
 0x110   :  { %v477_v47 = vpop.f32.mrb[4].mxu1  ;;  %12989 = vmatmul.mubr.msk.bf16.gmra.mrb[48].mxu0 %vm140_vm3, %v15120_v44 }
 0x111   :  { %524 = vst.msk [vmem:[#allocation2 + $0x4] sm:$0xf] %vm522_vm5, %v12126_v45  ;;  %v14046_v48 = vadd.f32 %v477_v47, %v208_v43  ;;  %v12734_v49 = vpop.f32.mrb[5].mxu1  ;;  %12994 = vmatprep.mubr.msk.bf16.mxu0 %vm15415_vm2, %v15413_v1  ;;  %v15139_v45 = vld [vmem:[%s17630_s0 + $0xe0] sm:$0xff]   ;;  %v15141_v47 = vld [vmem:[%s17630_s0 + $0xe8] ss:$0 sps:$4 sm:$0xff]  }
 0x112   :  { %v480_v51 = vpop.f32.mrb[6].mxu1 }
 0x113   :  { %v498_v53 = vmax.f32 %v14046_v48, 0.0  ;;  %v14048_v54 = vadd.f32 %v480_v51, %v209_v46  ;;  %v12735_v55 = vpop.f32.mrb[7].mxu1  ;;  %v15140_v46 = vld [vmem:[%s17630_s0 + $0x94] sm:$0xff]   ;;  %v15142_v48 = vld [vmem:[%s17630_s0 + $0x9c] sm:$0xff]  }
 0x115   :  { %v12127_v57 = vpack.c.bf16 %v498_v53, %v498_v53  ;;  %v499_v58 = vmax.f32 %v14048_v54, 0.0  ;;  %13027 = vmatmul.mubr.msk.bf16.gmra.mrb[40].mxu1 %vm140_vm3, %v15121_v50  ;;  %v15143_v53 = vld [vmem:[%s17630_s0 + $0xc0] sm:$0xff]  }
 0x116   :  { %13030 = vmatprep.mubr.msk.bf16.mxu1 %vm15415_vm2, %v15413_v1 }
 0x117   :  { %525 = vst.msk [vmem:[#allocation2 + $0x8] sm:$0xf] %vm522_vm5, %v12127_v57  ;;  %v12128_v60 = vpack.c.bf16 %v499_v58, %v499_v58 }
 0x118   :  { %v485_v61 = vpop.f32.mrb[8].mxu1  ;;  %12995 = vmatmul.mubr.msk.bf16.vlgmr.msra.gmra.mrb[40].mxu0 %vm140_vm3, %v15122_v59 }
 0x119   :  { %526 = vst.msk [vmem:[#allocation2 + $0xc] sm:$0xf] %vm522_vm5, %v12128_v60  ;;  %v12738_v62 = vpop.f32.mrb[9].mxu1  ;;  %12998 = vmatprep.mubr.msk.bf16.mxu0 %vm15415_vm2, %v15413_v1  ;;  %13007 = vmatpush3.bf16.msra.mxu0 %v15895_v7  ;;  %v15144_v61 = vld [vmem:[%s17630_s0 + $0xa4] ss:$0 sps:$4 sm:$0xff]  }
 0x11a   :  { %v488_v0 = vpop.f32.mrb[10].mxu1  ;;  %13076 = vmatprep.subr.bf16.mxu0 %v15413_v1 }
 0x11b   :  { %v12739_v2 = vpop.f32.mrb[11].mxu1 }
 0x11d   :  { %13031 = vmatmul.mubr.msk.bf16.gmra.mrb[44].mxu1 %vm140_vm3, %v15123_v63 }
 0x11e   :  { %13036 = vmatprep.mubr.msk.bf16.mxu1 %vm15415_vm2, %v15413_v1 }
 0x120   :  { %12999 = vmatmul.mubr.msk.bf16.gmra.mrb[44].mxu0 %vm140_vm3, %v15124_v4  ;;  %v15145_v4 = vld [vmem:[%s17630_s0 + $0xc8] sm:$0xff]  }
 0x121   :  { %13002 = vmatprep.mubr.msk.bf16.mxu0 %vm15415_vm2, %v15413_v1 }
 0x125   :  { %13037 = vmatmul.mubr.msk.bf16.vlgmr.msra.gmra.mrb[36].mxu1 %vm140_vm3, %v15125_v5 }
 0x126   :  { %13049 = vmatpush3.bf16.msra.mxu1 %v15782_v52  ;;  %13040 = vmatprep.mubr.msk.bf16.mxu1 %vm15415_vm2, %v15413_v1 }
 0x127   :  { %13062 = vmatprep.subr.bf16.mxu1 %v15413_v1 }
 0x128   :  { %13003 = vmatmul.mubr.msk.bf16.gmra.mrb[48].mxu0 %vm140_vm3, %v15126_v6 }
 0x129   :  { %13008 = vmatprep.mubr.msk.bf16.mxu0 %vm15415_vm2, %v15413_v1 }
 0x12d   :  { %13041 = vmatmul.mubr.msk.bf16.gmra.mrb[40].mxu1 %vm140_vm3, %v15127_v8 }
 0x12e   :  { %13044 = vmatprep.mubr.msk.bf16.mxu1 %vm15415_vm2, %v15413_v1 }
 0x130   :  { %13009 = vmatmul.mubr.msk.bf16.vlgmr.msra.gmra.mrb[40].mxu0 %vm140_vm3, %v15128_v9 }
 0x131   :  { %13012 = vmatprep.mubr.msk.bf16.mxu0 %vm15415_vm2, %v15413_v1  ;;  %13077 = vmatpush3.bf16.msra.mxu0 %v15872_v3 }
 0x132   :  { %13090 = vmatprep.subr.bf16.mxu0 %v15413_v1 }
 0x135   :  { %13045 = vmatmul.mubr.msk.bf16.gmra.mrb[44].mxu1 %vm140_vm3, %v15129_v10 }
 0x136   :  { %13050 = vmatprep.mubr.msk.bf16.mxu1 %vm15415_vm2, %v15413_v1 }
 0x138   :  { %13013 = vmatmul.mubr.msk.bf16.gmra.mrb[44].mxu0 %vm140_vm3, %v15130_v11 }
 0x139   :  { %13016 = vmatprep.mubr.msk.bf16.mxu0 %vm15415_vm2, %v15413_v1 }
 0x13d   :  { %13051 = vmatmul.mubr.msk.bf16.vlgmr.msra.gmra.mrb[36].mxu1 %vm140_vm3, %v15131_v12  ;;  %v15146_v12 = vld [vmem:[%s17630_s0 + $0xd8] sm:$0xff]  }
 0x13e   :  { %13063 = vmatpush3.bf16.msra.mxu1 %v15895_v7  ;;  %13054 = vmatprep.mubr.msk.bf16.mxu1 %vm15415_vm2, %v15413_v1 }
 0x13f   :  { %13132 = vmatprep.subr.bf16.mxu1 %v15413_v1 }
 0x140   :  { %13017 = vmatmul.mubr.msk.bf16.gmra.mrb[48].mxu0 %vm140_vm3, %v15132_v13 }
 0x141   :  { %13078 = vmatprep.mubr.msk.bf16.mxu0 %vm15415_vm2, %v15413_v1 }
 0x143   :  { %v853_v15 = vpop.f32.mrb[16].mxu0 }
 0x144   :  { %v14051_v17 = vadd.f32 %v15960_v29, %v853_v15  ;;  %v12786_v18 = vpop.f32.mrb[17].mxu0 }
 0x145   :  { %13055 = vmatmul.mubr.msk.bf16.gmra.mrb[40].mxu1 %vm140_vm3, %v15133_v14  ;;  %v856_v19 = vpop.f32.mrb[18].mxu0 }
 0x146   :  { %13058 = vmatprep.mubr.msk.bf16.mxu1 %vm15415_vm2, %v15413_v1  ;;  %v880_v20 = vmax.f32 %v14051_v17, 0.0  ;;  %v14052_v21 = vadd.f32 %v15960_v29, %v856_v19  ;;  %v12787_v22 = vpop.f32.mrb[19].mxu0  ;;  %v15148_v19 = vld [vmem:[%s17630_s0 + $0xe0] sm:$0xff]  }
 0x147   :  { %v15151_v22 = vld [vmem:[%s17630_s0 + $0xe0] sm:$0xff]  }
 0x148   :  { %13079 = vmatmul.mubr.msk.bf16.vlgmr.msra.gmra.mrb[52].mxu0 %vm140_vm3, %v15134_v16  ;;  %v12130_v24 = vpack.c.bf16 %v880_v20, %v880_v20  ;;  %v881_v25 = vmax.f32 %v14052_v21, 0.0  ;;  %v15147_v16 = vld [vmem:[%s17630_s0 + $0xd0] ss:$0 sps:$4 sm:$0xff]   ;;  %v15149_v20 = vld [vmem:[%s17630_s0 + $0xd8] sm:$0xff]   ;;  %v15150_v21 = vld [vmem:[%s17630_s0 + $0xe8] ss:$0 sps:$4 sm:$0xff]  }
 0x149   :  { %13082 = vmatprep.mubr.msk.bf16.mxu0 %vm15415_vm2, %v15413_v1  ;;  %13091 = vmatpush3.bf16.msra.mxu0 %v15805_v56 }
 0x14a   :  { %907 = vst.msk [vmem:[#allocation2 + $0x14] sm:$0xf] %vm522_vm5, %v12130_v24  ;;  %v12131_v26 = vpack.c.bf16 %v881_v25, %v881_v25  ;;  %13104 = vmatprep.subr.bf16.mxu0 %v15413_v1  ;;  %v15153_v24 = vld [vmem:[%s17630_s0 + $0xe8] ss:$0 sps:$4 sm:$0xff]   ;;  %v15154_v25 = vld [vmem:[%s17630_s0 + $0xcc] sm:$0xff]  }
 0x14b   :  { %v861_v27 = vpop.f32.mrb[20].mxu0 }
 0x14c   :  { %908 = vst.msk [vmem:[#allocation2 + $0x18] sm:$0xf] %vm522_vm5, %v12131_v26  ;;  %v14053_v30 = vadd.f32 %v15960_v29, %v861_v27  ;;  %v12790_v31 = vpop.f32.mrb[21].mxu0  ;;  %v15155_v26 = vld [vmem:[%s17630_s0 + $0xf0] sm:$0xff]  }
 0x14d   :  { %13059 = vmatmul.mubr.msk.bf16.gmra.mrb[44].mxu1 %vm140_vm3, %v15135_v23  ;;  %v864_v32 = vpop.f32.mrb[22].mxu0  ;;  %v15152_v23 = vld [vmem:[%s17630_s0 + $0xc4] sm:$0xff]   ;;  %v15156_v27 = vld [vmem:[%s17630_s0 + $0xd4] ss:$0 sps:$4 sm:$0xff]   ;;  %v15158_v31 = vld [vmem:[%s17630_s0 + $0xd8] sm:$0xff]  }
 0x14e   :  { %13064 = vmatprep.mubr.msk.bf16.mxu1 %vm15415_vm2, %v15413_v1  ;;  %v882_v33 = vmax.f32 %v14053_v30, 0.0  ;;  %v14054_v34 = vadd.f32 %v15960_v29, %v864_v32  ;;  %v12791_v35 = vpop.f32.mrb[23].mxu0 }
 0x150   :  { %13083 = vmatmul.mubr.msk.bf16.gmra.mrb[56].mxu0 %vm140_vm3, %v15136_v28  ;;  %v12132_v37 = vpack.c.bf16 %v882_v33, %v882_v33  ;;  %v883_v38 = vmax.f32 %v14054_v34, 0.0  ;;  %v15157_v28 = vld [vmem:[%s17630_s0 + $0xf8] sm:$0xff]  }
 0x151   :  { %13086 = vmatprep.mubr.msk.bf16.mxu0 %vm15415_vm2, %v15413_v1 }
 0x152   :  { %909 = vst.msk [vmem:[#allocation2 + $0x1c] sm:$0xf] %vm522_vm5, %v12132_v37  ;;  %v12133_v39 = vpack.c.bf16 %v883_v38, %v883_v38  ;;  %v15159_v38 = vld [vmem:[%s17630_s0 + $0x100] ss:$0 sps:$4 sm:$0xff]  }
 0x153   :  { %v869_v40 = vpop.f32.mrb[24].mxu0 }
 0x154   :  { %910 = vst.msk [vmem:[#allocation2 + $0x20] sm:$0xf] %vm522_vm5, %v12133_v39  ;;  %v12794_v42 = vpop.f32.mrb[25].mxu0 }
 0x155   :  { %13065 = vmatmul.mubr.msk.bf16.vlgmr.msra.gmra.mrb[36].mxu1 %vm140_vm3, %v15137_v36  ;;  %v872_v43 = vpop.f32.mrb[26].mxu0 }
 0x156   :  { %13133 = vmatpush3.bf16.msra.mxu1 %v15872_v3  ;;  %13068 = vmatprep.mubr.msk.bf16.mxu1 %vm15415_vm2, %v15413_v1  ;;  %v12795_v44 = vpop.f32.mrb[27].mxu0  ;;  %v15160_v43 = vld [vmem:[%s17630_s0 + $0xe0] sm:$0xff]  }
 0x157   :  { %13146 = vmatprep.subr.bf16.mxu1 %v15413_v1 }
 0x158   :  { %13087 = vmatmul.mubr.msk.bf16.gmra.mrb[60].mxu0 %vm140_vm3, %v15138_v41 }
 0x159   :  { %13092 = vmatprep.mubr.msk.bf16.mxu0 %vm15415_vm2, %v15413_v1 }
 0x15d   :  { %13069 = vmatmul.mubr.msk.bf16.gmra.mrb[40].mxu1 %vm140_vm3, %v15139_v45 }
 0x15e   :  { %13072 = vmatprep.mubr.msk.bf16.mxu1 %vm15415_vm2, %v15413_v1 }
 0x160   :  { %13093 = vmatmul.mubr.msk.bf16.vlgmr.msra.gmra.mrb[52].mxu0 %vm140_vm3, %v15140_v46 }
 0x161   :  { %13096 = vmatprep.mubr.msk.bf16.mxu0 %vm15415_vm2, %v15413_v1  ;;  %13105 = vmatpush3.bf16.msra.mxu0 %v15782_v52 }
 0x162   :  { %13118 = vmatprep.subr.bf16.mxu0 %v15413_v1 }
 0x165   :  { %13073 = vmatmul.mubr.msk.bf16.gmra.mrb[44].mxu1 %vm140_vm3, %v15141_v47 }
 0x166   :  { %13134 = vmatprep.mubr.msk.bf16.mxu1 %vm15415_vm2, %v15413_v1 }
 0x168   :  { %v1239_v49 = vpop.f32.mrb[12].mxu1  ;;  %13097 = vmatmul.mubr.msk.bf16.gmra.mrb[56].mxu0 %vm140_vm3, %v15142_v48 }
 0x169   :  { %v14056_v50 = vadd.f32 %v15960_v29, %v1239_v49  ;;  %v12842_v51 = vpop.f32.mrb[13].mxu1  ;;  %13100 = vmatprep.mubr.msk.bf16.mxu0 %vm15415_vm2, %v15413_v1 }
 0x16a   :  { %v1242_v54 = vpop.f32.mrb[14].mxu1 }
 0x16b   :  { %v1266_v55 = vmax.f32 %v14056_v50, 0.0  ;;  %v14057_v57 = vadd.f32 %v15960_v29, %v1242_v54  ;;  %v12843_v58 = vpop.f32.mrb[15].mxu1  ;;  %v15161_v50 = vld [vmem:[%s17630_s0 + $0x108] sm:$0xff]  }
 0x16d   :  { %v12135_v59 = vpack.c.bf16 %v1266_v55, %v1266_v55  ;;  %v1267_v60 = vmax.f32 %v14057_v57, 0.0  ;;  %13135 = vmatmul.mubr.msk.bf16.vlgmr.msra.gmra.mrb[48].mxu1 %vm140_vm3, %v15143_v53  ;;  %v15162_v57 = vld [vmem:[%s17630_s0 + $0xe8] ss:$0 sps:$4 sm:$0xff]  }
 0x16e   :  { %13147 = vmatpush3.bf16.msra.mxu1 %v15805_v56  ;;  %13138 = vmatprep.mubr.msk.bf16.mxu1 %vm15415_vm2, %v15413_v1 }
 0x16f   :  { %1293 = vst.msk [vmem:[#allocation2 + $0x28] sm:$0xf] %vm522_vm5, %v12135_v59  ;;  %v12136_v62 = vpack.c.bf16 %v1267_v60, %v1267_v60  ;;  %13160 = vmatprep.subr.bf16.mxu1 %v15413_v1 }
 0x170   :  { %v1247_v63 = vpop.f32.mrb[16].mxu1  ;;  %13101 = vmatmul.mubr.msk.bf16.gmra.mrb[60].mxu0 %vm140_vm3, %v15144_v61  ;;  %v15163_v61 = vld [vmem:[%s17630_s0 + $0x110] sm:$0xff]  }
 0x171   :  { %1294 = vst.msk [vmem:[#allocation2 + $0x2c] sm:$0xf] %vm522_vm5, %v12136_v62  ;;  %v14058_v0 = vadd.f32 %v15960_v29, %v1247_v63  ;;  %v12846_v2 = vpop.f32.mrb[17].mxu1  ;;  %13106 = vmatprep.mubr.msk.bf16.mxu0 %vm15415_vm2, %v15413_v1  ;;  %v15164_v62 = vld [vmem:[%s17630_s0 + $0xc4] sm:$0xff]   ;;  %v15165_v63 = vld [vmem:[%s17630_s0 + $0x118] ss:$0 sps:$4 sm:$0xff]  }
 0x172   :  { %v1250_v5 = vpop.f32.mrb[18].mxu1 }
 0x173   :  { %v1268_v6 = vmax.f32 %v14058_v0, 0.0  ;;  %v14059_v8 = vadd.f32 %v15960_v29, %v1250_v5  ;;  %v12847_v9 = vpop.f32.mrb[19].mxu1  ;;  %v15166_v0 = vld [vmem:[%s17630_s0 + $0xcc] sm:$0xff]  }
 0x175   :  { %v12137_v10 = vpack.c.bf16 %v1268_v6, %v1268_v6  ;;  %v1269_v11 = vmax.f32 %v14059_v8, 0.0  ;;  %13139 = vmatmul.mubr.msk.bf16.gmra.mrb[52].mxu1 %vm140_vm3, %v15145_v4  ;;  %v15167_v6 = vld [vmem:[%s17630_s0 + $0xf0] sm:$0xff]  }
 0x176   :  { %13142 = vmatprep.mubr.msk.bf16.mxu1 %vm15415_vm2, %v15413_v1 }
 0x177   :  { %1295 = vst.msk [vmem:[#allocation2 + $0x30] sm:$0xf] %vm522_vm5, %v12137_v10  ;;  %v12138_v13 = vpack.c.bf16 %v1269_v11, %v1269_v11 }
 0x178   :  { %v1255_v14 = vpop.f32.mrb[20].mxu1  ;;  %13107 = vmatmul.mubr.msk.bf16.vlgmr.msra.gmra.mrb[52].mxu0 %vm140_vm3, %v15146_v12 }
 0x179   :  { %1296 = vst.msk [vmem:[#allocation2 + $0x34] sm:$0xf] %vm522_vm5, %v12138_v13  ;;  %v12850_v15 = vpop.f32.mrb[21].mxu1  ;;  %13110 = vmatprep.mubr.msk.bf16.mxu0 %vm15415_vm2, %v15413_v1  ;;  %13119 = vmatpush3.bf16.msra.mxu0 %v15895_v7  ;;  %v15168_v14 = vld [vmem:[%s17630_s0 + $0xd4] ss:$0 sps:$4 sm:$0xff]  }
 0x17a   :  { %v1258_v17 = vpop.f32.mrb[22].mxu1  ;;  %13188 = vmatprep.subr.bf16.mxu0 %v15413_v1 }
 0x17b   :  { %v12851_v18 = vpop.f32.mrb[23].mxu1 }
 0x17d   :  { %13143 = vmatmul.mubr.msk.bf16.gmra.mrb[56].mxu1 %vm140_vm3, %v15147_v16 }
 0x17e   :  { %13148 = vmatprep.mubr.msk.bf16.mxu1 %vm15415_vm2, %v15413_v1 }
 0x180   :  { %13111 = vmatmul.mubr.msk.bf16.gmra.mrb[56].mxu0 %vm140_vm3, %v15148_v19 }
 0x181   :  { %13114 = vmatprep.mubr.msk.bf16.mxu0 %vm15415_vm2, %v15413_v1 }
 0x185   :  { %13149 = vmatmul.mubr.msk.bf16.vlgmr.msra.gmra.mrb[48].mxu1 %vm140_vm3, %v15149_v20 }
 0x186   :  { %13161 = vmatpush3.bf16.msra.mxu1 %v15782_v52  ;;  %13152 = vmatprep.mubr.msk.bf16.mxu1 %vm15415_vm2, %v15413_v1 }
 0x187   :  { %13174 = vmatprep.subr.bf16.mxu1 %v15413_v1 }
 0x188   :  { %13115 = vmatmul.mubr.msk.bf16.gmra.mrb[60].mxu0 %vm140_vm3, %v15150_v21 }
 0x189   :  { %13120 = vmatprep.mubr.msk.bf16.mxu0 %vm15415_vm2, %v15413_v1 }
 0x18d   :  { %13153 = vmatmul.mubr.msk.bf16.gmra.mrb[52].mxu1 %vm140_vm3, %v15151_v22 }
 0x18e   :  { %13156 = vmatprep.mubr.msk.bf16.mxu1 %vm15415_vm2, %v15413_v1 }
 0x190   :  { %13121 = vmatmul.mubr.msk.bf16.vlgmr.msra.gmra.mrb[52].mxu0 %vm140_vm3, %v15152_v23 }
 0x191   :  { %13124 = vmatprep.mubr.msk.bf16.mxu0 %vm15415_vm2, %v15413_v1  ;;  %13189 = vmatpush3.bf16.msra.mxu0 %v15872_v3 }
 0x192   :  { %13202 = vmatprep.subr.bf16.mxu0 %v15413_v1 }
 0x195   :  { %13157 = vmatmul.mubr.msk.bf16.gmra.mrb[56].mxu1 %vm140_vm3, %v15153_v24 }
 0x196   :  { %13162 = vmatprep.mubr.msk.bf16.mxu1 %vm15415_vm2, %v15413_v1 }
 0x198   :  { %13125 = vmatmul.mubr.msk.bf16.gmra.mrb[56].mxu0 %vm140_vm3, %v15154_v25  ;;  %v15170_v25 = vld [vmem:[%s17630_s0 + $0x108] sm:$0xff]  }
 0x199   :  { %13128 = vmatprep.mubr.msk.bf16.mxu0 %vm15415_vm2, %v15413_v1 }
 0x19d   :  { %13163 = vmatmul.mubr.msk.bf16.vlgmr.msra.gmra.mrb[48].mxu1 %vm140_vm3, %v15155_v26 }
 0x19e   :  { %13175 = vmatpush3.bf16.msra.mxu1 %v15895_v7  ;;  %13166 = vmatprep.mubr.msk.bf16.mxu1 %vm15415_vm2, %v15413_v1 }
 0x19f   :  { %13244 = vmatprep.subr.bf16.mxu1 %v15413_v1 }
 0x1a0   :  { %13129 = vmatmul.mubr.msk.bf16.gmra.mrb[60].mxu0 %vm140_vm3, %v15156_v27 }
 0x1a1   :  { %13190 = vmatprep.mubr.msk.bf16.mxu0 %vm15415_vm2, %v15413_v1 }
 0x1a3   :  { %v1623_v30 = vpop.f32.mrb[28].mxu0 }
 0x1a4   :  { %v14061_v32 = vadd.f32 %v15960_v29, %v1623_v30  ;;  %v12898_v33 = vpop.f32.mrb[29].mxu0  ;;  %v15171_v30 = vld [vmem:[%s17630_s0 + $0x100] ss:$0 sps:$4 sm:$0xff]  }
 0x1a5   :  { %13167 = vmatmul.mubr.msk.bf16.gmra.mrb[52].mxu1 %vm140_vm3, %v15157_v28  ;;  %v1626_v34 = vpop.f32.mrb[30].mxu0  ;;  %v15172_v33 = vld [vmem:[%s17630_s0 + $0x110] sm:$0xff]  }
 0x1a6   :  { %13170 = vmatprep.mubr.msk.bf16.mxu1 %vm15415_vm2, %v15413_v1  ;;  %v1650_v35 = vmax.f32 %v14061_v32, 0.0  ;;  %v14062_v36 = vadd.f32 %v15960_v29, %v1626_v34  ;;  %v12899_v37 = vpop.f32.mrb[31].mxu0  ;;  %v15173_v34 = vld [vmem:[%s17630_s0 + $0x108] sm:$0xff]  }
 0x1a7   :  { %v15177_v37 = vld [vmem:[%s17630_s0 + $0x118] ss:$0 sps:$4 sm:$0xff]  }
 0x1a8   :  { %13191 = vmatmul.mubr.msk.bf16.vlgmr.msra.gmra.mrb[64].mxu0 %vm140_vm3, %v15158_v31  ;;  %v12140_v39 = vpack.c.bf16 %v1650_v35, %v1650_v35  ;;  %v1651_v40 = vmax.f32 %v14062_v36, 0.0  ;;  %v15174_v35 = vld [vmem:[%s17630_s0 + $0x118] ss:$0 sps:$4 sm:$0xff]   ;;  %v15175_v36 = vld [vmem:[%s17630_s0 + $0x110] sm:$0xff]  }
 0x1a9   :  { %13194 = vmatprep.mubr.msk.bf16.mxu0 %vm15415_vm2, %v15413_v1  ;;  %13203 = vmatpush3.bf16.msra.mxu0 %v15805_v56 }
 0x1aa   :  { %1677 = vst.msk [vmem:[#allocation2 + $0x3c] sm:$0xf] %vm522_vm5, %v12140_v39  ;;  %v12141_v41 = vpack.c.bf16 %v1651_v40, %v1651_v40  ;;  %13216 = vmatprep.subr.bf16.mxu0 %v15413_v1  ;;  %v15179_v39 = vld [vmem:[%s17630_s0 + $0x120] sm:$0xff]   ;;  %v15181_v40 = vld [vmem:[%s17630_s0 + $0x128] sm:$0xff]  }
 0x1ab   :  { %v1631_v42 = vpop.f32.mrb[32].mxu0 }
 0x1ac   :  { %1678 = vst.msk [vmem:[#allocation2 + $0x40] sm:$0xf] %vm522_vm5, %v12141_v41  ;;  %v14063_v44 = vadd.f32 %v15960_v29, %v1631_v42  ;;  %v12902_v45 = vpop.f32.mrb[33].mxu0 }
 0x1ad   :  { %13171 = vmatmul.mubr.msk.bf16.gmra.mrb[56].mxu1 %vm140_vm3, %v15159_v38  ;;  %v1634_v46 = vpop.f32.mrb[34].mxu0  ;;  %v15178_v38 = vld [vmem:[%s17630_s0 + $0xfc] sm:$0xff]  }
 0x1ae   :  { %13176 = vmatprep.mubr.msk.bf16.mxu1 %vm15415_vm2, %v15413_v1  ;;  %v1652_v47 = vmax.f32 %v14063_v44, 0.0  ;;  %v14064_v48 = vadd.f32 %v15960_v29, %v1634_v46  ;;  %v12903_v49 = vpop.f32.mrb[35].mxu0 }
 0x1b0   :  { %13195 = vmatmul.mubr.msk.bf16.gmra.mrb[68].mxu0 %vm140_vm3, %v15160_v43  ;;  %v12142_v51 = vpack.c.bf16 %v1652_v47, %v1652_v47  ;;  %v1653_v53 = vmax.f32 %v14064_v48, 0.0  ;;  %v15183_v48 = vld [vmem:[%s17630_s0 + $0x130] ss:$0 sps:$4 sm:$0xff]  }
 0x1b1   :  { %13198 = vmatprep.mubr.msk.bf16.mxu0 %vm15415_vm2, %v15413_v1 }
 0x1b2   :  { %1679 = vst.msk [vmem:[#allocation2 + $0x44] sm:$0xf] %vm522_vm5, %v12142_v51  ;;  %v12143_v54 = vpack.c.bf16 %v1653_v53, %v1653_v53  ;;  %v16449_v51 = vld [vmem:[%s17632_s2 + $0x8] sm:$0xff]  }
 0x1b3   :  { %v1639_v55 = vpop.f32.mrb[36].mxu0 }
 0x1b4   :  { %1680 = vst.msk [vmem:[#allocation2 + $0x48] sm:$0xf] %vm522_vm5, %v12143_v54  ;;  %v12906_v58 = vpop.f32.mrb[37].mxu0  ;;  %v15184_v55 = vld [vmem:[%s17630_s0 + $0x110] sm:$0xff]  }
 0x1b5   :  { %13177 = vmatmul.mubr.msk.bf16.vlgmr.msra.gmra.mrb[48].mxu1 %vm140_vm3, %v15161_v50  ;;  %v1642_v59 = vpop.f32.mrb[38].mxu0 }
 0x1b6   :  { %13245 = vmatpush3.bf16.msra.mxu1 %v15872_v3  ;;  %13180 = vmatprep.mubr.msk.bf16.mxu1 %vm15415_vm2, %v15413_v1  ;;  %v12907_v60 = vpop.f32.mrb[39].mxu0 }
 0x1b7   :  { %13258 = vmatprep.subr.bf16.mxu1 %v15413_v1 }
 0x1b8   :  { %13199 = vmatmul.mubr.msk.bf16.gmra.mrb[72].mxu0 %vm140_vm3, %v15162_v57 }
 0x1b9   :  { %13204 = vmatprep.mubr.msk.bf16.mxu0 %vm15415_vm2, %v15413_v1 }
 0x1bd   :  { %13181 = vmatmul.mubr.msk.bf16.gmra.mrb[52].mxu1 %vm140_vm3, %v15163_v61 }
 0x1be   :  { %13184 = vmatprep.mubr.msk.bf16.mxu1 %vm15415_vm2, %v15413_v1 }
 0x1c0   :  { %13205 = vmatmul.mubr.msk.bf16.vlgmr.msra.gmra.mrb[64].mxu0 %vm140_vm3, %v15164_v62 }
 0x1c1   :  { %13208 = vmatprep.mubr.msk.bf16.mxu0 %vm15415_vm2, %v15413_v1  ;;  %13217 = vmatpush3.bf16.msra.mxu0 %v15782_v52 }
 0x1c2   :  { %13230 = vmatprep.subr.bf16.mxu0 %v15413_v1 }
 0x1c5   :  { %13185 = vmatmul.mubr.msk.bf16.gmra.mrb[56].mxu1 %vm140_vm3, %v15165_v63  ;;  %v15185_v63 = vld [vmem:[%s17630_s0 + $0x138] sm:$0xff]  }
 0x1c6   :  { %13246 = vmatprep.mubr.msk.bf16.mxu1 %vm15415_vm2, %v15413_v1 }
 0x1c8   :  { %v2009_v2 = vpop.f32.mrb[24].mxu1  ;;  %13209 = vmatmul.mubr.msk.bf16.gmra.mrb[68].mxu0 %vm140_vm3, %v15166_v0 }
 0x1c9   :  { %v14066_v4 = vadd.f32 %v15960_v29, %v2009_v2  ;;  %v12954_v5 = vpop.f32.mrb[25].mxu1  ;;  %13212 = vmatprep.mubr.msk.bf16.mxu0 %vm15415_vm2, %v15413_v1 }
 0x1ca   :  { %v2012_v8 = vpop.f32.mrb[26].mxu1  ;;  %v15186_v5 = vld [vmem:[%s17630_s0 + $0x118] ss:$0 sps:$4 sm:$0xff]  }
 0x1cb   :  { %v2036_v9 = vmax.f32 %v14066_v4, 0.0  ;;  %v14067_v10 = vadd.f32 %v15960_v29, %v2012_v8  ;;  %v12955_v11 = vpop.f32.mrb[27].mxu1  ;;  %v16478_v8 = vld [vmem:[%s17632_s2] sm:$0xff]  }
 0x1cc   :  { %v15187_v11 = vld [vmem:[%s17630_s0 + $0x140] sm:$0xff]  }
 0x1cd   :  { %v12145_v12 = vpack.c.bf16 %v2036_v9, %v2036_v9  ;;  %v2037_v13 = vmax.f32 %v14067_v10, 0.0  ;;  %13247 = vmatmul.mubr.msk.bf16.vlgmr.msra.gmra.mrb[60].mxu1 %vm140_vm3, %v15167_v6 }
 0x1ce   :  { %13259 = vmatpush3.bf16.msra.mxu1 %v15805_v56  ;;  %13250 = vmatprep.mubr.msk.bf16.mxu1 %vm15415_vm2, %v15413_v1  ;;  %v15169_v56 = vld [vmem:[%s17630_s0 + $0xf8] sm:$0xff]  }
 0x1cf   :  { %2063 = vst.msk [vmem:[#allocation2 + $0x50] sm:$0xf] %vm522_vm5, %v12145_v12  ;;  %v12146_v15 = vpack.c.bf16 %v2037_v13, %v2037_v13  ;;  %13272 = vmatprep.subr.bf16.mxu1 %v15413_v1  ;;  %v15188_v12 = vld [vmem:[%s17630_s0 + $0xf4] sm:$0xff]   ;;  %v15189_v13 = vld [vmem:[%s17630_s0 + $0x148] ss:$0 sps:$4 sm:$0xff]  }
 0x1d0   :  { %v2017_v16 = vpop.f32.mrb[28].mxu1  ;;  %13213 = vmatmul.mubr.msk.bf16.gmra.mrb[72].mxu0 %vm140_vm3, %v15168_v14  ;;  %v16505_v14 = vld [vmem:[%s17632_s2 + $0x10] sm:$0xff]  }
 0x1d1   :  { %2064 = vst.msk [vmem:[#allocation2 + $0x54] sm:$0xf] %vm522_vm5, %v12146_v15  ;;  %v14068_v17 = vadd.f32 %v15960_v29, %v2017_v16  ;;  %v12958_v18 = vpop.f32.mrb[29].mxu1  ;;  %13218 = vmatprep.mubr.msk.bf16.mxu0 %vm15415_vm2, %v15413_v1  ;;  %v15190_v15 = vld [vmem:[%s17630_s0 + $0xfc] sm:$0xff]  }
 0x1d2   :  { %v2020_v19 = vpop.f32.mrb[30].mxu1 }
 0x1d3   :  { %v2038_v20 = vmax.f32 %v14068_v17, 0.0  ;;  %v14069_v21 = vadd.f32 %v15960_v29, %v2020_v19  ;;  %v12959_v22 = vpop.f32.mrb[31].mxu1  ;;  %v16519_v17 = vld [vmem:[%s17633_s3] ss:$0 sm:$0xff] }
 0x1d4   :  { %v15191_v19 = vld [vmem:[%s17630_s0 + $0x120] sm:$0xff]  }
 0x1d5   :  { %v12147_v23 = vpack.c.bf16 %v2038_v20, %v2038_v20  ;;  %v2039_v24 = vmax.f32 %v14069_v21, 0.0  ;;  %13251 = vmatmul.mubr.msk.bf16.gmra.mrb[64].mxu1 %vm140_vm3, %v15169_v56 }
 0x1d6   :  { %13254 = vmatprep.mubr.msk.bf16.mxu1 %vm15415_vm2, %v15413_v1 }
 0x1d7   :  { %2065 = vst.msk [vmem:[#allocation2 + $0x58] sm:$0xf] %vm522_vm5, %v12147_v23  ;;  %v12148_v26 = vpack.c.bf16 %v2039_v24, %v2039_v24 }
 0x1d8   :  { %v2025_v27 = vpop.f32.mrb[32].mxu1  ;;  %13219 = vmatmul.mubr.msk.bf16.vlgmr.msra.gmra.mrb[64].mxu0 %vm140_vm3, %v15170_v25 }
 0x1d9   :  { %2066 = vst.msk [vmem:[#allocation2 + $0x5c] sm:$0xf] %vm522_vm5, %v12148_v26  ;;  %v12962_v28 = vpop.f32.mrb[33].mxu1  ;;  %13222 = vmatprep.mubr.msk.bf16.mxu0 %vm15415_vm2, %v15413_v1  ;;  %13231 = vmatpush3.bf16.msra.mxu0 %v15895_v7  ;;  %v15192_v26 = vld [vmem:[%s17630_s0 + $0x104] ss:$0 sps:$4 sm:$0xff]  }
 0x1da   :  { %v2028_v31 = vpop.f32.mrb[34].mxu1  ;;  %13300 = vmatprep.subr.bf16.mxu0 %v15413_v1 }
 0x1db   :  { %v12963_v32 = vpop.f32.mrb[35].mxu1 }
 0x1dc   :  { %v15193_v32 = vld [vmem:[%s17630_s0 + $0x128] sm:$0xff]  }
 0x1dd   :  { %13255 = vmatmul.mubr.msk.bf16.gmra.mrb[68].mxu1 %vm140_vm3, %v15171_v30 }
 0x1de   :  { %13260 = vmatprep.mubr.msk.bf16.mxu1 %vm15415_vm2, %v15413_v1 }
 0x1e0   :  { %13223 = vmatmul.mubr.msk.bf16.gmra.mrb[68].mxu0 %vm140_vm3, %v15172_v33 }
 0x1e1   :  { %13226 = vmatprep.mubr.msk.bf16.mxu0 %vm15415_vm2, %v15413_v1 }
 0x1e5   :  { %13261 = vmatmul.mubr.msk.bf16.vlgmr.msra.gmra.mrb[60].mxu1 %vm140_vm3, %v15173_v34 }
 0x1e6   :  { %13273 = vmatpush3.bf16.msra.mxu1 %v15782_v52  ;;  %13264 = vmatprep.mubr.msk.bf16.mxu1 %vm15415_vm2, %v15413_v1  ;;  %v15176_v52 = vld [vmem:[%s17630_s0 + $0xf4] sm:$0xff]  }
 0x1e7   :  { %13286 = vmatprep.subr.bf16.mxu1 %v15413_v1 }
 0x1e8   :  { %13227 = vmatmul.mubr.msk.bf16.gmra.mrb[72].mxu0 %vm140_vm3, %v15174_v35 }
 0x1e9   :  { %13232 = vmatprep.mubr.msk.bf16.mxu0 %vm15415_vm2, %v15413_v1 }
 0x1ed   :  { %13265 = vmatmul.mubr.msk.bf16.gmra.mrb[64].mxu1 %vm140_vm3, %v15175_v36 }
 0x1ee   :  { %13268 = vmatprep.mubr.msk.bf16.mxu1 %vm15415_vm2, %v15413_v1 }
 0x1f0   :  { %13233 = vmatmul.mubr.msk.bf16.vlgmr.msra.gmra.mrb[64].mxu0 %vm140_vm3, %v15176_v52 }
 0x1f1   :  { %13236 = vmatprep.mubr.msk.bf16.mxu0 %vm15415_vm2, %v15413_v1  ;;  %13301 = vmatpush3.bf16.msra.mxu0 %v15872_v3  ;;  %v15180_v3 = vld [vmem:[%s17630_s0 + $0x104] ss:$0 sps:$4 sm:$0xff]  }
 0x1f2   :  { %13314 = vmatprep.subr.bf16.mxu0 %v15413_v1 }
 0x1f5   :  { %13269 = vmatmul.mubr.msk.bf16.gmra.mrb[68].mxu1 %vm140_vm3, %v15177_v37 }
 0x1f6   :  { %13274 = vmatprep.mubr.msk.bf16.mxu1 %vm15415_vm2, %v15413_v1 }
 0x1f8   :  { %13237 = vmatmul.mubr.msk.bf16.gmra.mrb[68].mxu0 %vm140_vm3, %v15178_v38  ;;  %v15194_v38 = vld [vmem:[%s17630_s0 + $0x138] sm:$0xff]  }
 0x1f9   :  { %13240 = vmatprep.mubr.msk.bf16.mxu0 %vm15415_vm2, %v15413_v1 }
 0x1fd   :  { %13275 = vmatmul.mubr.msk.bf16.vlgmr.msra.gmra.mrb[60].mxu1 %vm140_vm3, %v15179_v39 }
 0x1fe   :  { %13287 = vmatpush3.bf16.msra.mxu1 %v15895_v7  ;;  %13278 = vmatprep.mubr.msk.bf16.mxu1 %vm15415_vm2, %v15413_v1  ;;  %v15182_v7 = vld [vmem:[%s17630_s0 + $0x108] sm:$0xff]  }
 0x1ff   :  { %13356 = vmatprep.subr.bf16.mxu1 %v15413_v1 }
 0x200   :  { %13241 = vmatmul.mubr.msk.bf16.gmra.mrb[72].mxu0 %vm140_vm3, %v15180_v3 }
 0x201   :  { %13302 = vmatprep.mubr.msk.bf16.mxu0 %vm15415_vm2, %v15413_v1 }
 0x203   :  { %v2393_v41 = vpop.f32.mrb[40].mxu0 }
 0x204   :  { %v14071_v42 = vadd.f32 %v15960_v29, %v2393_v41  ;;  %v13010_v43 = vpop.f32.mrb[41].mxu0  ;;  %v15195_v41 = vld [vmem:[%s17630_s0 + $0x130] ss:$0 sps:$4 sm:$0xff]  }
 0x205   :  { %13279 = vmatmul.mubr.msk.bf16.gmra.mrb[64].mxu1 %vm140_vm3, %v15181_v40  ;;  %v2396_v44 = vpop.f32.mrb[42].mxu0 }
 0x206   :  { %13282 = vmatprep.mubr.msk.bf16.mxu1 %vm15415_vm2, %v15413_v1  ;;  %v2420_v45 = vmax.f32 %v14071_v42, 0.0  ;;  %v14072_v46 = vadd.f32 %v15960_v29, %v2396_v44  ;;  %v13011_v47 = vpop.f32.mrb[43].mxu0  ;;  %v16563_v42 = vld [vmem:[%s17632_s2 + $0x18] sm:$0xff]   ;;  %v15196_v44 = vld [vmem:[%s17630_s0 + $0x140] sm:$0xff]  }
 0x207   :  { %v15199_v47 = vld [vmem:[%s17630_s0 + $0x140] sm:$0xff]  }
 0x208   :  { %13303 = vmatmul.mubr.msk.bf16.vlgmr.msra.gmra.mrb[76].mxu0 %vm140_vm3, %v15182_v7  ;;  %v12150_v49 = vpack.c.bf16 %v2420_v45, %v2420_v45  ;;  %v2421_v50 = vmax.f32 %v14072_v46, 0.0  ;;  %v15197_v45 = vld [vmem:[%s17630_s0 + $0x138] sm:$0xff]   ;;  %v15198_v46 = vld [vmem:[%s17630_s0 + $0x148] ss:$0 sps:$4 sm:$0xff]  }
 0x209   :  { %13306 = vmatprep.mubr.msk.bf16.mxu0 %vm15415_vm2, %v15413_v1  ;;  %13315 = vmatpush3.bf16.msra.mxu0 %v16449_v51 }
 0x20a   :  { %2447 = vst.msk [vmem:[#allocation2 + $0x64] sm:$0xf] %vm522_vm5, %v12150_v49  ;;  %v12151_v53 = vpack.c.bf16 %v2421_v50, %v2421_v50  ;;  %13328 = vmatprep.subr.bf16.mxu0 %v15413_v1  ;;  %v15201_v49 = vld [vmem:[%s17630_s0 + $0x148] ss:$0 sps:$4 sm:$0xff]   ;;  %v15202_v50 = vld [vmem:[%s17630_s0 + $0x12c] sm:$0xff]  }
 0x20b   :  { %v2401_v54 = vpop.f32.mrb[44].mxu0 }
 0x20c   :  { %2448 = vst.msk [vmem:[#allocation2 + $0x68] sm:$0xf] %vm522_vm5, %v12151_v53  ;;  %v14073_v57 = vadd.f32 %v15960_v29, %v2401_v54  ;;  %v13014_v58 = vpop.f32.mrb[45].mxu0  ;;  %v15203_v53 = vld [vmem:[%s17630_s0 + $0x150] sm:$0xff]  }
 0x20d   :  { %13283 = vmatmul.mubr.msk.bf16.gmra.mrb[68].mxu1 %vm140_vm3, %v15183_v48  ;;  %v2404_v59 = vpop.f32.mrb[46].mxu0  ;;  %v15200_v48 = vld [vmem:[%s17630_s0 + $0x124] sm:$0xff]   ;;  %v15204_v54 = vld [vmem:[%s17630_s0 + $0x134] ss:$0 sps:$4 sm:$0xff]   ;;  %v15206_v58 = vld [vmem:[%s17630_s0 + $0x138] sm:$0xff]  }
 0x20e   :  { %13288 = vmatprep.mubr.msk.bf16.mxu1 %vm15415_vm2, %v15413_v1  ;;  %v2422_v60 = vmax.f32 %v14073_v57, 0.0  ;;  %v14074_v61 = vadd.f32 %v15960_v29, %v2404_v59  ;;  %v13015_v62 = vpop.f32.mrb[47].mxu0 }
 0x210   :  { %13307 = vmatmul.mubr.msk.bf16.gmra.mrb[80].mxu0 %vm140_vm3, %v15184_v55  ;;  %v12152_v0 = vpack.c.bf16 %v2422_v60, %v2422_v60  ;;  %v2423_v2 = vmax.f32 %v14074_v61, 0.0  ;;  %v15205_v55 = vld [vmem:[%s17630_s0 + $0x158] sm:$0xff]  }
 0x211   :  { %13310 = vmatprep.mubr.msk.bf16.mxu0 %vm15415_vm2, %v15413_v1 }
 0x212   :  { %2449 = vst.msk [vmem:[#allocation2 + $0x6c] sm:$0xf] %vm522_vm5, %v12152_v0  ;;  %v12153_v4 = vpack.c.bf16 %v2423_v2, %v2423_v2  ;;  %v15207_v2 = vld [vmem:[%s17630_s0 + $0x160] ss:$0 sps:$4 sm:$0xff]  }
 0x213   :  { %v2409_v29 = vpop.f32.mrb[48].mxu0 }
 0x214   :  { %2450 = vst.msk [vmem:[#allocation2 + $0x70] sm:$0xf] %vm522_vm5, %v12153_v4  ;;  %v13018_v6 = vpop.f32.mrb[49].mxu0 }
 0x215   :  { %13289 = vmatmul.mubr.msk.bf16.vlgmr.msra.gmra.mrb[60].mxu1 %vm140_vm3, %v15185_v63  ;;  %v2412_v9 = vpop.f32.mrb[50].mxu0 }
 0x216   :  { %13357 = vmatpush3.bf16.msra.mxu1 %v16478_v8  ;;  %13292 = vmatprep.mubr.msk.bf16.mxu1 %vm15415_vm2, %v15413_v1  ;;  %v13019_v10 = vpop.f32.mrb[51].mxu0  ;;  %v15208_v9 = vld [vmem:[%s17630_s0 + $0x140] sm:$0xff]  }
 0x217   :  { %13370 = vmatprep.subr.bf16.mxu1 %v15413_v1 }
 0x218   :  { %13311 = vmatmul.mubr.msk.bf16.gmra.mrb[84].mxu0 %vm140_vm3, %v15186_v5 }
 0x219   :  { %13316 = vmatprep.mubr.msk.bf16.mxu0 %vm15415_vm2, %v15413_v1 }
 0x21d   :  { %13293 = vmatmul.mubr.msk.bf16.gmra.mrb[64].mxu1 %vm140_vm3, %v15187_v11 }
 0x21e   :  { %13296 = vmatprep.mubr.msk.bf16.mxu1 %vm15415_vm2, %v15413_v1 }
 0x220   :  { %13317 = vmatmul.mubr.msk.bf16.vlgmr.msra.gmra.mrb[76].mxu0 %vm140_vm3, %v15188_v12 }
 0x221   :  { %13320 = vmatprep.mubr.msk.bf16.mxu0 %vm15415_vm2, %v15413_v1  ;;  %13329 = vmatpush3.bf16.msra.mxu0 %v16505_v14 }
 0x222   :  { %13342 = vmatprep.subr.bf16.mxu0 %v15413_v1 }
 0x225   :  { %13297 = vmatmul.mubr.msk.bf16.gmra.mrb[68].mxu1 %vm140_vm3, %v15189_v13 }
 0x226   :  { %13358 = vmatprep.mubr.msk.bf16.mxu1 %vm15415_vm2, %v15413_v1 }
 0x228   :  { %v2779_v16 = vpop.f32.mrb[36].mxu1  ;;  %13321 = vmatmul.mubr.msk.bf16.gmra.mrb[80].mxu0 %vm140_vm3, %v15190_v15 }
 0x229   :  { %v14076_v18 = vadd.f32 %v16519_v17, %v2779_v16  ;;  %v13066_v56 = vpop.f32.mrb[37].mxu1  ;;  %13324 = vmatprep.mubr.msk.bf16.mxu0 %vm15415_vm2, %v15413_v1 }
 0x22a   :  { %v2782_v20 = vpop.f32.mrb[38].mxu1 }
 0x22b   :  { %v2806_v21 = vmax.f32 %v14076_v18, 0.0  ;;  %v14077_v22 = vadd.f32 %v16519_v17, %v2782_v20  ;;  %v13067_v23 = vpop.f32.mrb[39].mxu1  ;;  %v15209_v18 = vld [vmem:[%s17630_s0 + $0x168] sm:$0xff]  }
 0x22d   :  { %v12155_v24 = vpack.c.bf16 %v2806_v21, %v2806_v21  ;;  %v2807_v25 = vmax.f32 %v14077_v22, 0.0  ;;  %13359 = vmatmul.mubr.msk.bf16.vlgmr.msra.gmra.mrb[72].mxu1 %vm140_vm3, %v15191_v19  ;;  %v15210_v21 = vld [vmem:[%s17630_s0 + $0x148] ss:$0 sps:$4 sm:$0xff]  }
 0x22e   :  { %13371 = vmatpush3.bf16.msra.mxu1 %v16449_v51  ;;  %13362 = vmatprep.mubr.msk.bf16.mxu1 %vm15415_vm2, %v15413_v1 }
 0x22f   :  { %2833 = vst.msk [vmem:[#allocation2 + $0x78] sm:$0xf] %vm522_vm5, %v12155_v24  ;;  %v12156_v27 = vpack.c.bf16 %v2807_v25, %v2807_v25  ;;  %13384 = vmatprep.subr.bf16.mxu1 %v15413_v1 }
 0x230   :  { %v2787_v28 = vpop.f32.mrb[40].mxu1  ;;  %13325 = vmatmul.mubr.msk.bf16.gmra.mrb[84].mxu0 %vm140_vm3, %v15192_v26  ;;  %v15211_v26 = vld [vmem:[%s17630_s0 + $0x170] sm:$0xff]  }
 0x231   :  { %2834 = vst.msk [vmem:[#allocation2 + $0x7c] sm:$0xf] %vm522_vm5, %v12156_v27  ;;  %v14078_v30 = vadd.f32 %v16519_v17, %v2787_v28  ;;  %v13070_v31 = vpop.f32.mrb[41].mxu1  ;;  %13330 = vmatprep.mubr.msk.bf16.mxu0 %vm15415_vm2, %v15413_v1  ;;  %v15212_v27 = vld [vmem:[%s17630_s0 + $0x124] sm:$0xff]   ;;  %v15213_v28 = vld [vmem:[%s17630_s0 + $0x178] ss:$0 sps:$4 sm:$0xff]  }
 0x232   :  { %v2790_v33 = vpop.f32.mrb[42].mxu1 }
 0x233   :  { %v2808_v34 = vmax.f32 %v14078_v30, 0.0  ;;  %v14079_v35 = vadd.f32 %v16519_v17, %v2790_v33  ;;  %v13071_v36 = vpop.f32.mrb[43].mxu1  ;;  %v15214_v30 = vld [vmem:[%s17630_s0 + $0x12c] sm:$0xff]  }
 0x235   :  { %v12157_v52 = vpack.c.bf16 %v2808_v34, %v2808_v34  ;;  %v2809_v37 = vmax.f32 %v14079_v35, 0.0  ;;  %13363 = vmatmul.mubr.msk.bf16.gmra.mrb[76].mxu1 %vm140_vm3, %v15193_v32  ;;  %v15215_v34 = vld [vmem:[%s17630_s0 + $0x150] sm:$0xff]  }
 0x236   :  { %13366 = vmatprep.mubr.msk.bf16.mxu1 %vm15415_vm2, %v15413_v1 }
 0x237   :  { %2835 = vst.msk [vmem:[#allocation2 + $0x80] sm:$0xf] %vm522_vm5, %v12157_v52  ;;  %v12158_v39 = vpack.c.bf16 %v2809_v37, %v2809_v37 }
 0x238   :  { %v2795_v3 = vpop.f32.mrb[44].mxu1  ;;  %13331 = vmatmul.mubr.msk.bf16.vlgmr.msra.gmra.mrb[76].mxu0 %vm140_vm3, %v15194_v38 }
 0x239   :  { %2836 = vst.msk [vmem:[#allocation2 + $0x84] sm:$0xf] %vm522_vm5, %v12158_v39  ;;  %v13074_v40 = vpop.f32.mrb[45].mxu1  ;;  %13334 = vmatprep.mubr.msk.bf16.mxu0 %vm15415_vm2, %v15413_v1  ;;  %13343 = vmatpush3.bf16.msra.mxu0 %v16563_v42  ;;  %v15216_v3 = vld [vmem:[%s17630_s0 + $0x134] ss:$0 sps:$4 sm:$0xff]  }
 0x23a   :  { %v2798_v7 = vpop.f32.mrb[46].mxu1  ;;  %13412 = vmatprep.subr.bf16.mxu0 %v15413_v1 }
 0x23b   :  { %v13075_v43 = vpop.f32.mrb[47].mxu1 }
 0x23d   :  { %13367 = vmatmul.mubr.msk.bf16.gmra.mrb[80].mxu1 %vm140_vm3, %v15195_v41 }
 0x23e   :  { %13372 = vmatprep.mubr.msk.bf16.mxu1 %vm15415_vm2, %v15413_v1 }
 0x240   :  { %13335 = vmatmul.mubr.msk.bf16.gmra.mrb[80].mxu0 %vm140_vm3, %v15196_v44  ;;  %v15217_v44 = vld [vmem:[%s17630_s0 + $0x158] sm:$0xff]  }
 0x241   :  { %13338 = vmatprep.mubr.msk.bf16.mxu0 %vm15415_vm2, %v15413_v1 }
 0x245   :  { %13373 = vmatmul.mubr.msk.bf16.vlgmr.msra.gmra.mrb[72].mxu1 %vm140_vm3, %v15197_v45 }
 0x246   :  { %13385 = vmatpush3.bf16.msra.mxu1 %v16505_v14  ;;  %13376 = vmatprep.mubr.msk.bf16.mxu1 %vm15415_vm2, %v15413_v1 }
 0x247   :  { %13398 = vmatprep.subr.bf16.mxu1 %v15413_v1 }
 0x248   :  { %13339 = vmatmul.mubr.msk.bf16.gmra.mrb[84].mxu0 %vm140_vm3, %v15198_v46 }
 0x249   :  { %13344 = vmatprep.mubr.msk.bf16.mxu0 %vm15415_vm2, %v15413_v1 }
 0x24d   :  { %13377 = vmatmul.mubr.msk.bf16.gmra.mrb[76].mxu1 %vm140_vm3, %v15199_v47 }
 0x24e   :  { %13380 = vmatprep.mubr.msk.bf16.mxu1 %vm15415_vm2, %v15413_v1 }
 0x250   :  { %13345 = vmatmul.mubr.msk.bf16.vlgmr.msra.gmra.mrb[76].mxu0 %vm140_vm3, %v15200_v48 }
 0x251   :  { %13348 = vmatprep.mubr.msk.bf16.mxu0 %vm15415_vm2, %v15413_v1  ;;  %13413 = vmatpush3.bf16.msra.mxu0 %v16478_v8 }
 0x252   :  { %13426 = vmatprep.subr.bf16.mxu0 %v15413_v1 }
 0x255   :  { %13381 = vmatmul.mubr.msk.bf16.gmra.mrb[80].mxu1 %vm140_vm3, %v15201_v49 }
 0x256   :  { %13386 = vmatprep.mubr.msk.bf16.mxu1 %vm15415_vm2, %v15413_v1 }
 0x258   :  { %13349 = vmatmul.mubr.msk.bf16.gmra.mrb[80].mxu0 %vm140_vm3, %v15202_v50 }
 0x259   :  { %13352 = vmatprep.mubr.msk.bf16.mxu0 %vm15415_vm2, %v15413_v1 }
 0x25d   :  { %13387 = vmatmul.mubr.msk.bf16.vlgmr.msra.gmra.mrb[72].mxu1 %vm140_vm3, %v15203_v53  ;;  %v15218_v53 = vld [vmem:[%s17630_s0 + $0x168] sm:$0xff]  }
 0x25e   :  { %13399 = vmatpush3.bf16.msra.mxu1 %v16563_v42  ;;  %13390 = vmatprep.mubr.msk.bf16.mxu1 %vm15415_vm2, %v15413_v1 }
 0x25f   :  { %13468 = vmatprep.subr.bf16.mxu1 %v15413_v1 }
 0x260   :  { %13353 = vmatmul.mubr.msk.bf16.gmra.mrb[84].mxu0 %vm140_vm3, %v15204_v54 }
 0x261   :  { %13414 = vmatprep.mubr.msk.bf16.mxu0 %vm15415_vm2, %v15413_v1 }
 0x263   :  { %v3163_v57 = vpop.f32.mrb[52].mxu0 }
 0x264   :  { %v14081_v59 = vadd.f32 %v16519_v17, %v3163_v57  ;;  %v13122_v60 = vpop.f32.mrb[53].mxu0 }
 0x265   :  { %13391 = vmatmul.mubr.msk.bf16.gmra.mrb[76].mxu1 %vm140_vm3, %v15205_v55  ;;  %v3166_v61 = vpop.f32.mrb[54].mxu0 }
 0x266   :  { %13394 = vmatprep.mubr.msk.bf16.mxu1 %vm15415_vm2, %v15413_v1  ;;  %v3190_v62 = vmax.f32 %v14081_v59, 0.0  ;;  %v14082_v63 = vadd.f32 %v16519_v17, %v3166_v61  ;;  %v13123_v0 = vpop.f32.mrb[55].mxu0  ;;  %v15220_v61 = vld [vmem:[%s17630_s0 + $0x170] sm:$0xff]  }
 0x267   :  { %v15223_v0 = vld [vmem:[%s17630_s0 + $0x170] sm:$0xff]  }
 0x268   :  { %13415 = vmatmul.mubr.msk.bf16.vlgmr.msra.gmra.mrb[88].mxu0 %vm140_vm3, %v15206_v58  ;;  %v12160_v4 = vpack.c.bf16 %v3190_v62, %v3190_v62  ;;  %v3191_v5 = vmax.f32 %v14082_v63, 0.0  ;;  %v15219_v58 = vld [vmem:[%s17630_s0 + $0x160] ss:$0 sps:$4 sm:$0xff]   ;;  %v15221_v62 = vld [vmem:[%s17630_s0 + $0x168] sm:$0xff]   ;;  %v15222_v63 = vld [vmem:[%s17630_s0 + $0x178] ss:$0 sps:$4 sm:$0xff]  }
 0x269   :  { %13418 = vmatprep.mubr.msk.bf16.mxu0 %vm15415_vm2, %v15413_v1  ;;  %13427 = vmatpush3.bf16.msra.mxu0 %v16449_v51 }
 0x26a   :  { %3217 = vst.msk [vmem:[#allocation2 + $0x8c] sm:$0xf] %vm522_vm5, %v12160_v4  ;;  %v12161_v29 = vpack.c.bf16 %v3191_v5, %v3191_v5  ;;  %13440 = vmatprep.subr.bf16.mxu0 %v15413_v1  ;;  %v15225_v4 = vld [vmem:[%s17630_s0 + $0x178] ss:$0 sps:$4 sm:$0xff]   ;;  %v15226_v5 = vld [vmem:[%s17630_s0 + $0x15c] sm:$0xff]  }
 0x26b   :  { %v3171_v6 = vpop.f32.mrb[56].mxu0 }
 0x26c   :  { %3218 = vst.msk [vmem:[#allocation2 + $0x90] sm:$0xf] %vm522_vm5, %v12161_v29  ;;  %v14083_v10 = vadd.f32 %v16519_v17, %v3171_v6  ;;  %v13126_v11 = vpop.f32.mrb[57].mxu0  ;;  %v15227_v29 = vld [vmem:[%s17630_s0 + $0x180] sm:$0xff]  }
 0x26d   :  { %13395 = vmatmul.mubr.msk.bf16.gmra.mrb[80].mxu1 %vm140_vm3, %v15207_v2  ;;  %v3174_v12 = vpop.f32.mrb[58].mxu0  ;;  %v15224_v2 = vld [vmem:[%s17630_s0 + $0x154] sm:$0xff]   ;;  %v15228_v6 = vld [vmem:[%s17630_s0 + $0x164] ss:$0 sps:$4 sm:$0xff]   ;;  %v15230_v11 = vld [vmem:[%s17630_s0 + $0x168] sm:$0xff]  }
 0x26e   :  { %13400 = vmatprep.mubr.msk.bf16.mxu1 %vm15415_vm2, %v15413_v1  ;;  %v3192_v13 = vmax.f32 %v14083_v10, 0.0  ;;  %v14084_v15 = vadd.f32 %v16519_v17, %v3174_v12  ;;  %v13127_v16 = vpop.f32.mrb[59].mxu0 }
 0x270   :  { %13419 = vmatmul.mubr.msk.bf16.gmra.mrb[92].mxu0 %vm140_vm3, %v15208_v9  ;;  %v12162_v56 = vpack.c.bf16 %v3192_v13, %v3192_v13  ;;  %v3193_v19 = vmax.f32 %v14084_v15, 0.0  ;;  %v15229_v9 = vld [vmem:[%s17630_s0 + $0x188] sm:$0xff]  }
 0x271   :  { %13422 = vmatprep.mubr.msk.bf16.mxu0 %vm15415_vm2, %v15413_v1 }
 0x272   :  { %3219 = vst.msk [vmem:[#allocation2 + $0x94] sm:$0xf] %vm522_vm5, %v12162_v56  ;;  %v12163_v20 = vpack.c.bf16 %v3193_v19, %v3193_v19  ;;  %v15231_v19 = vld [vmem:[%s17630_s0 + $0x190] ss:$0 sps:$4 sm:$0xff]  }
 0x273   :  { %v3179_v22 = vpop.f32.mrb[60].mxu0 }
 0x274   :  { %3220 = vst.msk [vmem:[#allocation2 + $0x98] sm:$0xf] %vm522_vm5, %v12163_v20  ;;  %v13130_v23 = vpop.f32.mrb[61].mxu0 }
 0x275   :  { %13401 = vmatmul.mubr.msk.bf16.vlgmr.msra.gmra.mrb[72].mxu1 %vm140_vm3, %v15209_v18  ;;  %v3182_v24 = vpop.f32.mrb[62].mxu0 }
 0x276   :  { %13469 = vmatpush3.bf16.msra.mxu1 %v16478_v8  ;;  %13404 = vmatprep.mubr.msk.bf16.mxu1 %vm15415_vm2, %v15413_v1  ;;  %v13131_v25 = vpop.f32.mrb[63].mxu0  ;;  %v15232_v24 = vld [vmem:[%s17630_s0 + $0x170] sm:$0xff]  }
 0x277   :  { %13482 = vmatprep.subr.bf16.mxu1 %v15413_v1 }
 0x278   :  { %13423 = vmatmul.mubr.msk.bf16.gmra.mrb[96].mxu0 %vm140_vm3, %v15210_v21 }
 0x279   :  { %13428 = vmatprep.mubr.msk.bf16.mxu0 %vm15415_vm2, %v15413_v1 }
 0x27d   :  { %13405 = vmatmul.mubr.msk.bf16.gmra.mrb[76].mxu1 %vm140_vm3, %v15211_v26 }
 0x27e   :  { %13408 = vmatprep.mubr.msk.bf16.mxu1 %vm15415_vm2, %v15413_v1 }
 0x280   :  { %13429 = vmatmul.mubr.msk.bf16.vlgmr.msra.gmra.mrb[88].mxu0 %vm140_vm3, %v15212_v27 }
 0x281   :  { %13432 = vmatprep.mubr.msk.bf16.mxu0 %vm15415_vm2, %v15413_v1  ;;  %13441 = vmatpush3.bf16.msra.mxu0 %v16505_v14 }
 0x282   :  { %13454 = vmatprep.subr.bf16.mxu0 %v15413_v1 }
 0x285   :  { %13409 = vmatmul.mubr.msk.bf16.gmra.mrb[80].mxu1 %vm140_vm3, %v15213_v28 }
 0x286   :  { %13470 = vmatprep.mubr.msk.bf16.mxu1 %vm15415_vm2, %v15413_v1 }
 0x288   :  { %v3549_v31 = vpop.f32.mrb[48].mxu1  ;;  %13433 = vmatmul.mubr.msk.bf16.gmra.mrb[92].mxu0 %vm140_vm3, %v15214_v30 }
 0x289   :  { %v14086_v32 = vadd.f32 %v16519_v17, %v3549_v31  ;;  %v13178_v33 = vpop.f32.mrb[49].mxu1  ;;  %13436 = vmatprep.mubr.msk.bf16.mxu0 %vm15415_vm2, %v15413_v1 }
 0x28a   :  { %v3552_v35 = vpop.f32.mrb[50].mxu1 }
 0x28b   :  { %v3576_v36 = vmax.f32 %v14086_v32, 0.0  ;;  %v14087_v52 = vadd.f32 %v16519_v17, %v3552_v35  ;;  %v13179_v37 = vpop.f32.mrb[51].mxu1  ;;  %v15233_v32 = vld [vmem:[%s17630_s0 + $0x198] sm:$0xff]  }
 0x28c   :  { %v15234_v35 = vld [vmem:[%s17630_s0 + $0x178] ss:$0 sps:$4 sm:$0xff]  }
 0x28d   :  { %v12165_v38 = vpack.c.bf16 %v3576_v36, %v3576_v36  ;;  %v3577_v39 = vmax.f32 %v14087_v52, 0.0  ;;  %13471 = vmatmul.mubr.msk.bf16.vlgmr.msra.gmra.mrb[84].mxu1 %vm140_vm3, %v15215_v34 }
 0x28e   :  { %13483 = vmatpush3.bf16.msra.mxu1 %v16449_v51  ;;  %13474 = vmatprep.mubr.msk.bf16.mxu1 %vm15415_vm2, %v15413_v1 }
 0x28f   :  { %3603 = vst.msk [vmem:[#allocation2 + $0xa0] sm:$0xf] %vm522_vm5, %v12165_v38  ;;  %v12166_v40 = vpack.c.bf16 %v3577_v39, %v3577_v39  ;;  %13496 = vmatprep.subr.bf16.mxu1 %v15413_v1 }
 0x290   :  { %v3557_v41 = vpop.f32.mrb[52].mxu1  ;;  %13437 = vmatmul.mubr.msk.bf16.gmra.mrb[96].mxu0 %vm140_vm3, %v15216_v3  ;;  %v15235_v3 = vld [vmem:[%s17630_s0 + $0x1a0] sm:$0xff]  }
 0x291   :  { %3604 = vst.msk [vmem:[#allocation2 + $0xa4] sm:$0xf] %vm522_vm5, %v12166_v40  ;;  %v14088_v7 = vadd.f32 %v16519_v17, %v3557_v41  ;;  %v13182_v43 = vpop.f32.mrb[53].mxu1  ;;  %13442 = vmatprep.mubr.msk.bf16.mxu0 %vm15415_vm2, %v15413_v1  ;;  %v15236_v40 = vld [vmem:[%s17630_s0 + $0x154] sm:$0xff]   ;;  %v15237_v41 = vld [vmem:[%s17630_s0 + $0x1a8] ss:$0 sps:$4 sm:$0xff]  }
 0x292   :  { %v3560_v45 = vpop.f32.mrb[54].mxu1 }
 0x293   :  { %v3578_v46 = vmax.f32 %v14088_v7, 0.0  ;;  %v14089_v47 = vadd.f32 %v16519_v17, %v3560_v45  ;;  %v13183_v48 = vpop.f32.mrb[55].mxu1  ;;  %v15238_v7 = vld [vmem:[%s17630_s0 + $0x15c] sm:$0xff]  }
 0x295   :  { %v12167_v49 = vpack.c.bf16 %v3578_v46, %v3578_v46  ;;  %v3579_v50 = vmax.f32 %v14089_v47, 0.0  ;;  %13475 = vmatmul.mubr.msk.bf16.gmra.mrb[88].mxu1 %vm140_vm3, %v15217_v44  ;;  %v15239_v46 = vld [vmem:[%s17630_s0 + $0x180] sm:$0xff]  }
 0x296   :  { %13478 = vmatprep.mubr.msk.bf16.mxu1 %vm15415_vm2, %v15413_v1 }
 0x297   :  { %3605 = vst.msk [vmem:[#allocation2 + $0xa8] sm:$0xf] %vm522_vm5, %v12167_v49  ;;  %v12168_v54 = vpack.c.bf16 %v3579_v50, %v3579_v50 }
 0x298   :  { %v3565_v55 = vpop.f32.mrb[56].mxu1  ;;  %13443 = vmatmul.mubr.msk.bf16.vlgmr.msra.gmra.mrb[88].mxu0 %vm140_vm3, %v15218_v53 }
 0x299   :  { %3606 = vst.msk [vmem:[#allocation2 + $0xac] sm:$0xf] %vm522_vm5, %v12168_v54  ;;  %v13186_v57 = vpop.f32.mrb[57].mxu1  ;;  %13446 = vmatprep.mubr.msk.bf16.mxu0 %vm15415_vm2, %v15413_v1  ;;  %13455 = vmatpush3.bf16.msra.mxu0 %v16563_v42  ;;  %v15240_v55 = vld [vmem:[%s17630_s0 + $0x164] ss:$0 sps:$4 sm:$0xff]  }
 0x29a   :  { %v3568_v59 = vpop.f32.mrb[58].mxu1  ;;  %13524 = vmatprep.subr.bf16.mxu0 %v15413_v1 }
 0x29b   :  { %v13187_v60 = vpop.f32.mrb[59].mxu1 }
 0x29d   :  { %13479 = vmatmul.mubr.msk.bf16.gmra.mrb[92].mxu1 %vm140_vm3, %v15219_v58 }
 0x29e   :  { %13484 = vmatprep.mubr.msk.bf16.mxu1 %vm15415_vm2, %v15413_v1 }
 0x2a0   :  { %13447 = vmatmul.mubr.msk.bf16.gmra.mrb[92].mxu0 %vm140_vm3, %v15220_v61 }
 0x2a1   :  { %13450 = vmatprep.mubr.msk.bf16.mxu0 %vm15415_vm2, %v15413_v1 }
 0x2a5   :  { %13485 = vmatmul.mubr.msk.bf16.vlgmr.msra.gmra.mrb[84].mxu1 %vm140_vm3, %v15221_v62 }
 0x2a6   :  { %13497 = vmatpush3.bf16.msra.mxu1 %v16505_v14  ;;  %13488 = vmatprep.mubr.msk.bf16.mxu1 %vm15415_vm2, %v15413_v1 }
 0x2a7   :  { %13510 = vmatprep.subr.bf16.mxu1 %v15413_v1 }
 0x2a8   :  { %13451 = vmatmul.mubr.msk.bf16.gmra.mrb[96].mxu0 %vm140_vm3, %v15222_v63 }
 0x2a9   :  { %13456 = vmatprep.mubr.msk.bf16.mxu0 %vm15415_vm2, %v15413_v1 }
 0x2ad   :  { %13489 = vmatmul.mubr.msk.bf16.gmra.mrb[88].mxu1 %vm140_vm3, %v15223_v0 }
 0x2ae   :  { %13492 = vmatprep.mubr.msk.bf16.mxu1 %vm15415_vm2, %v15413_v1 }
 0x2b0   :  { %13457 = vmatmul.mubr.msk.bf16.vlgmr.msra.gmra.mrb[88].mxu0 %vm140_vm3, %v15224_v2 }
 0x2b1   :  { %13460 = vmatprep.mubr.msk.bf16.mxu0 %vm15415_vm2, %v15413_v1  ;;  %13525 = vmatpush3.bf16.msra.mxu0 %v16478_v8 }
 0x2b2   :  { %13538 = vmatprep.subr.bf16.mxu0 %v15413_v1 }
 0x2b5   :  { %13493 = vmatmul.mubr.msk.bf16.gmra.mrb[92].mxu1 %vm140_vm3, %v15225_v4 }
 0x2b6   :  { %13498 = vmatprep.mubr.msk.bf16.mxu1 %vm15415_vm2, %v15413_v1 }
 0x2b8   :  { %13461 = vmatmul.mubr.msk.bf16.gmra.mrb[92].mxu0 %vm140_vm3, %v15226_v5  ;;  %v15242_v5 = vld [vmem:[%s17630_s0 + $0x198] sm:$0xff]  }
 0x2b9   :  { %13464 = vmatprep.mubr.msk.bf16.mxu0 %vm15415_vm2, %v15413_v1 }
 0x2bd   :  { %13499 = vmatmul.mubr.msk.bf16.vlgmr.msra.gmra.mrb[84].mxu1 %vm140_vm3, %v15227_v29 }
 0x2be   :  { %13511 = vmatpush3.bf16.msra.mxu1 %v16563_v42  ;;  %13502 = vmatprep.mubr.msk.bf16.mxu1 %vm15415_vm2, %v15413_v1 }
 0x2bf   :  { %13580 = vmatprep.subr.bf16.mxu1 %v15413_v1 }
 0x2c0   :  { %13465 = vmatmul.mubr.msk.bf16.gmra.mrb[96].mxu0 %vm140_vm3, %v15228_v6  ;;  %v15243_v6 = vld [vmem:[%s17630_s0 + $0x190] ss:$0 sps:$4 sm:$0xff]  }
 0x2c1   :  { %13526 = vmatprep.mubr.msk.bf16.mxu0 %vm15415_vm2, %v15413_v1 }
 0x2c3   :  { %v3933_v10 = vpop.f32.mrb[64].mxu0 }
 0x2c4   :  { %v14091_v12 = vadd.f32 %v16519_v17, %v3933_v10  ;;  %v13234_v13 = vpop.f32.mrb[65].mxu0 }
 0x2c5   :  { %13503 = vmatmul.mubr.msk.bf16.gmra.mrb[88].mxu1 %vm140_vm3, %v15229_v9  ;;  %v3936_v15 = vpop.f32.mrb[66].mxu0  ;;  %v15244_v13 = vld [vmem:[%s17630_s0 + $0x1a0] sm:$0xff]  }
 0x2c6   :  { %13506 = vmatprep.mubr.msk.bf16.mxu1 %vm15415_vm2, %v15413_v1  ;;  %v3960_v16 = vmax.f32 %v14091_v12, 0.0  ;;  %v14092_v18 = vadd.f32 %v16519_v17, %v3936_v15  ;;  %v13235_v56 = vpop.f32.mrb[67].mxu0  ;;  %v15245_v15 = vld [vmem:[%s17630_s0 + $0x198] sm:$0xff]  }
 0x2c7   :  { %v15249_v56 = vld [vmem:[%s17630_s0 + $0x1a8] ss:$0 sps:$4 sm:$0xff]  }
 0x2c8   :  { %13527 = vmatmul.mubr.msk.bf16.vlgmr.msra.gmra.mrb[100].mxu0 %vm140_vm3, %v15230_v11  ;;  %v12170_v20 = vpack.c.bf16 %v3960_v16, %v3960_v16  ;;  %v3961_v21 = vmax.f32 %v14092_v18, 0.0  ;;  %v15246_v16 = vld [vmem:[%s17630_s0 + $0x1a8] ss:$0 sps:$4 sm:$0xff]   ;;  %v15247_v18 = vld [vmem:[%s17630_s0 + $0x1a0] sm:$0xff]  }
 0x2c9   :  { %13530 = vmatprep.mubr.msk.bf16.mxu0 %vm15415_vm2, %v15413_v1  ;;  %13539 = vmatpush3.bf16.msra.mxu0 %v16449_v51 }
 0x2ca   :  { %3987 = vst.msk [vmem:[#allocation2 + $0xb4] sm:$0xf] %vm522_vm5, %v12170_v20  ;;  %v12171_v22 = vpack.c.bf16 %v3961_v21, %v3961_v21  ;;  %13552 = vmatprep.subr.bf16.mxu0 %v15413_v1  ;;  %v15251_v20 = vld [vmem:[%s17630_s0 + $0x1b0] sm:$0xff]  }
 0x2cb   :  { %v3941_v23 = vpop.f32.mrb[68].mxu0  ;;  %v15252_v21 = vld [vmem:[%s17630_s0 + $0x194] ss:$0 sps:$4 sm:$0xff]  }
 0x2cc   :  { %3988 = vst.msk [vmem:[#allocation2 + $0xb8] sm:$0xf] %vm522_vm5, %v12171_v22  ;;  %v14093_v25 = vadd.f32 %v16519_v17, %v3941_v23  ;;  %v13238_v26 = vpop.f32.mrb[69].mxu0  ;;  %v15253_v22 = vld [vmem:[%s17630_s0 + $0x1b8] sm:$0xff]  }
 0x2cd   :  { %13507 = vmatmul.mubr.msk.bf16.gmra.mrb[92].mxu1 %vm140_vm3, %v15231_v19  ;;  %v3944_v27 = vpop.f32.mrb[70].mxu0  ;;  %v15250_v19 = vld [vmem:[%s17630_s0 + $0x18c] sm:$0xff]  }
 0x2ce   :  { %13512 = vmatprep.mubr.msk.bf16.mxu1 %vm15415_vm2, %v15413_v1  ;;  %v3962_v28 = vmax.f32 %v14093_v25, 0.0  ;;  %v14094_v30 = vadd.f32 %v16519_v17, %v3944_v27  ;;  %v13239_v31 = vpop.f32.mrb[71].mxu0 }
 0x2cf   :  { %v15255_v31 = vld [vmem:[%s17630_s0 + $0x1c0] ss:$0 sps:$4 sm:$0xff]  }
 0x2d0   :  { %13531 = vmatmul.mubr.msk.bf16.gmra.mrb[104].mxu0 %vm140_vm3, %v15232_v24  ;;  %v12172_v33 = vpack.c.bf16 %v3962_v28, %v3962_v28  ;;  %v3963_v34 = vmax.f32 %v14094_v30, 0.0 }
 0x2d1   :  { %13534 = vmatprep.mubr.msk.bf16.mxu0 %vm15415_vm2, %v15413_v1 }
 0x2d2   :  { %3989 = vst.msk [vmem:[#allocation2 + $0xbc] sm:$0xf] %vm522_vm5, %v12172_v33  ;;  %v12173_v36 = vpack.c.bf16 %v3963_v34, %v3963_v34  ;;  %v15385_v34 = vld [vmem:[%s17632_s2 + $0x8] sm:$0xff]  }
 0x2d3   :  { %v3949_v52 = vpop.f32.mrb[72].mxu0 }
 0x2d4   :  { %3990 = vst.msk [vmem:[#allocation2 + $0xc0] sm:$0xf] %vm522_vm5, %v12173_v36  ;;  %v13242_v37 = vpop.f32.mrb[73].mxu0  ;;  %v15256_v52 = vld [vmem:[%s17630_s0 + $0x1a0] sm:$0xff]  }
 0x2d5   :  { %13513 = vmatmul.mubr.msk.bf16.vlgmr.msra.gmra.mrb[84].mxu1 %vm140_vm3, %v15233_v32  ;;  %v3952_v38 = vpop.f32.mrb[74].mxu0 }
 0x2d6   :  { %13581 = vmatpush3.bf16.msra.mxu1 %v16478_v8  ;;  %13516 = vmatprep.mubr.msk.bf16.mxu1 %vm15415_vm2, %v15413_v1  ;;  %v13243_v39 = vpop.f32.mrb[75].mxu0 }
 0x2d7   :  { %13594 = vmatprep.subr.bf16.mxu1 %v15413_v1 }
 0x2d8   :  { %13535 = vmatmul.mubr.msk.bf16.gmra.mrb[108].mxu0 %vm140_vm3, %v15234_v35 }
 0x2d9   :  { %13540 = vmatprep.mubr.msk.bf16.mxu0 %vm15415_vm2, %v15413_v1 }
 0x2dd   :  { %13517 = vmatmul.mubr.msk.bf16.gmra.mrb[88].mxu1 %vm140_vm3, %v15235_v3 }
 0x2de   :  { %13520 = vmatprep.mubr.msk.bf16.mxu1 %vm15415_vm2, %v15413_v1 }
 0x2e0   :  { %13541 = vmatmul.mubr.msk.bf16.vlgmr.msra.gmra.mrb[100].mxu0 %vm140_vm3, %v15236_v40 }
 0x2e1   :  { %13544 = vmatprep.mubr.msk.bf16.mxu0 %vm15415_vm2, %v15413_v1  ;;  %13553 = vmatpush3.bf16.msra.mxu0 %v16505_v14 }
 0x2e2   :  { %13566 = vmatprep.subr.bf16.mxu0 %v15413_v1 }
 0x2e5   :  { %13521 = vmatmul.mubr.msk.bf16.gmra.mrb[92].mxu1 %vm140_vm3, %v15237_v41 }
 0x2e6   :  { %13582 = vmatprep.mubr.msk.bf16.mxu1 %vm15415_vm2, %v15413_v1 }
 0x2e8   :  { %v4319_v43 = vpop.f32.mrb[60].mxu1  ;;  %13545 = vmatmul.mubr.msk.bf16.gmra.mrb[104].mxu0 %vm140_vm3, %v15238_v7  ;;  %v15257_v7 = vld [vmem:[%s17630_s0 + $0x1c8] sm:$0xff]  }
 0x2e9   :  { %v14096_v44 = vadd.f32 %v16519_v17, %v4319_v43  ;;  %v13290_v45 = vpop.f32.mrb[61].mxu1  ;;  %13548 = vmatprep.mubr.msk.bf16.mxu0 %vm15415_vm2, %v15413_v1 }
 0x2ea   :  { %v4322_v47 = vpop.f32.mrb[62].mxu1 }
 0x2eb   :  { %v4346_v48 = vmax.f32 %v14096_v44, 0.0  ;;  %v14097_v49 = vadd.f32 %v16519_v17, %v4322_v47  ;;  %v13291_v50 = vpop.f32.mrb[63].mxu1  ;;  %v17036_v47 = vld [vmem:[%s17634_s4 + $0x4] sm:$0xf] }
 0x2ed   :  { %v12175_v53 = vpack.c.bf16 %v4346_v48, %v4346_v48  ;;  %v4347_v54 = vmax.f32 %v14097_v49, 0.0  ;;  %13583 = vmatmul.mubr.msk.bf16.vlgmr.msra.gmra.mrb[96].mxu1 %vm140_vm3, %v15239_v46 }
 0x2ee   :  { %13595 = vmatpush3.bf16.msra.mxu1 %v16449_v51  ;;  %13586 = vmatprep.mubr.msk.bf16.mxu1 %vm15415_vm2, %v15413_v1  ;;  %v15241_v51 = vld [vmem:[%s17630_s0 + $0x188] sm:$0xff]  }
 0x2ef   :  { %4373 = vst.msk [vmem:[#allocation2 + $0xc8] sm:$0xf] %vm522_vm5, %v12175_v53  ;;  %v12176_v57 = vpack.c.bf16 %v4347_v54, %v4347_v54  ;;  %13608 = vmatprep.subr.bf16.mxu1 %v15413_v1  ;;  %v15259_v54 = vld [vmem:[%s17630_s0 + $0x1d0] sm:$0xff]  }
 0x2f0   :  { %v4327_v58 = vpop.f32.mrb[64].mxu1  ;;  %13549 = vmatmul.mubr.msk.bf16.gmra.mrb[108].mxu0 %vm140_vm3, %v15240_v55  ;;  %v15260_v55 = vld [vmem:[%s17630_s0 + $0x184] sm:$0xff]  }
 0x2f1   :  { %4374 = vst.msk [vmem:[#allocation2 + $0xcc] sm:$0xf] %vm522_vm5, %v12176_v57  ;;  %v14098_v59 = vadd.f32 %v16519_v17, %v4327_v58  ;;  %v13294_v60 = vpop.f32.mrb[65].mxu1  ;;  %13554 = vmatprep.mubr.msk.bf16.mxu0 %vm15415_vm2, %v15413_v1  ;;  %v15261_v57 = vld [vmem:[%s17630_s0 + $0x1d8] ss:$0 sps:$4 sm:$0xff]   ;;  %v15386_v58 = vld [vmem:[%s17632_s2 + $0x10] sm:$0xff]  }
 0x2f2   :  { %v4330_v61 = vpop.f32.mrb[66].mxu1  ;;  %v15263_v60 = vld [vmem:[%s17630_s0 + $0x18c] sm:$0xff]  }
 0x2f3   :  { %v4348_v62 = vmax.f32 %v14098_v59, 0.0  ;;  %v14099_v63 = vadd.f32 %v16519_v17, %v4330_v61  ;;  %v13295_v0 = vpop.f32.mrb[67].mxu1  ;;  %v15262_v59 = vld [vmem:[#allocation2] sm:$0xff]  }
 0x2f4   :  { %v17076_v61 = vld [vmem:[%s17633_s3] ss:$0 sm:$0xff] }
 0x2f5   :  { %v12177_v2 = vpack.c.bf16 %v4348_v62, %v4348_v62  ;;  %v4349_v4 = vmax.f32 %v14099_v63, 0.0  ;;  %13587 = vmatmul.mubr.msk.bf16.gmra.mrb[100].mxu1 %vm140_vm3, %v15241_v51 }
 0x2f6   :  { %13590 = vmatprep.mubr.msk.bf16.mxu1 %vm15415_vm2, %v15413_v1 }
 0x2f7   :  { %4375 = vst.msk [vmem:[#allocation2 + $0xd0] sm:$0xf] %vm522_vm5, %v12177_v2  ;;  %v12178_v29 = vpack.c.bf16 %v4349_v4, %v4349_v4 }
 0x2f8   :  { %v4335_v9 = vpop.f32.mrb[68].mxu1  ;;  %13555 = vmatmul.mubr.msk.bf16.vlgmr.msra.gmra.mrb[100].mxu0 %vm140_vm3, %v15242_v5 }
 0x2f9   :  { %4376 = vst.msk [vmem:[#allocation2 + $0xd4] sm:$0xf] %vm522_vm5, %v12178_v29  ;;  %v13298_v10 = vpop.f32.mrb[69].mxu1  ;;  %13558 = vmatprep.mubr.msk.bf16.mxu0 %vm15415_vm2, %v15413_v1  ;;  %13567 = vmatpush3.bf16.msra.mxu0 %v16563_v42  ;;  %v15264_v29 = vld [vmem:[#allocation2 + $0x8] ss:$0 sps:$4 sm:$0xff]   ;;  %v15265_v9 = vld [vmem:[#allocation2 + $0x14] sm:$0xff]  }
 0x2fa   :  { %v4338_v11 = vpop.f32.mrb[70].mxu1  ;;  %13636 = vmatprep.subr.bf16.mxu0 %v15413_v1  ;;  %v17089_v10 = vld [vmem:[%s17634_s4 + $0x8] sm:$0xf] }
 0x2fb   :  { %v13299_v12 = vpop.f32.mrb[71].mxu1 }
 0x2fd   :  { %13591 = vmatmul.mubr.msk.bf16.gmra.mrb[104].mxu1 %vm140_vm3, %v15243_v6  ;;  %v17084_v6 = vsel %vm7113_vm6, %v17036_v47, 0 }
 0x2fe   :  { %13596 = vmatprep.mubr.msk.bf16.mxu1 %vm15415_vm2, %v15413_v1 }
 0x300   :  { %13559 = vmatmul.mubr.msk.bf16.gmra.mrb[104].mxu0 %vm140_vm3, %v15244_v13  ;;  %v15266_v13 = vld [vmem:[%s17630_s0 + $0x194] ss:$0 sps:$4 sm:$0xff]  }
 0x301   :  { %13562 = vmatprep.mubr.msk.bf16.mxu0 %vm15415_vm2, %v15413_v1 }
 0x305   :  { %13597 = vmatmul.mubr.msk.bf16.vlgmr.msra.gmra.mrb[96].mxu1 %vm140_vm3, %v15245_v15 }
 0x306   :  { %13609 = vmatpush3.bf16.msra.mxu1 %v16505_v14  ;;  %13600 = vmatprep.mubr.msk.bf16.mxu1 %vm15415_vm2, %v15413_v1  ;;  %v15248_v14 = vld [vmem:[%s17630_s0 + $0x184] sm:$0xff]  }
 0x307   :  { %13622 = vmatprep.subr.bf16.mxu1 %v15413_v1 }
 0x308   :  { %13563 = vmatmul.mubr.msk.bf16.gmra.mrb[108].mxu0 %vm140_vm3, %v15246_v16 }
 0x309   :  { %13568 = vmatprep.mubr.msk.bf16.mxu0 %vm15415_vm2, %v15413_v1 }
 0x30d   :  { %13601 = vmatmul.mubr.msk.bf16.gmra.mrb[100].mxu1 %vm140_vm3, %v15247_v18 }
 0x30e   :  { %13604 = vmatprep.mubr.msk.bf16.mxu1 %vm15415_vm2, %v15413_v1 }
 0x310   :  { %13569 = vmatmul.mubr.msk.bf16.vlgmr.msra.gmra.mrb[100].mxu0 %vm140_vm3, %v15248_v14 }
 0x311   :  { %13572 = vmatprep.mubr.msk.bf16.mxu0 %vm15415_vm2, %v15413_v1  ;;  %13637 = vmatpush3.bf16.msra.mxu0 %v16478_v8  ;;  %v16974_v8 = vld [vmem:[%s17634_s4] sm:$0xf] }
 0x312   :  { %13650 = vmatprep.subr.bf16.mxu0 %v15413_v1  ;;  %v17027_v45 = vsel %vm7113_vm6, %v16974_v8, 0 }
 0x315   :  { %13605 = vmatmul.mubr.msk.bf16.gmra.mrb[104].mxu1 %vm140_vm3, %v15249_v56 }
 0x316   :  { %13610 = vmatprep.mubr.msk.bf16.mxu1 %vm15415_vm2, %v15413_v1 }
 0x318   :  { %13573 = vmatmul.mubr.msk.bf16.gmra.mrb[104].mxu0 %vm140_vm3, %v15250_v19 }
 0x319   :  { %13576 = vmatprep.mubr.msk.bf16.mxu0 %vm15415_vm2, %v15413_v1 }
 0x31d   :  { %13611 = vmatmul.mubr.msk.bf16.vlgmr.msra.gmra.mrb[96].mxu1 %vm140_vm3, %v15251_v20 }
 0x31e   :  { %13623 = vmatpush3.bf16.msra.mxu1 %v16563_v42  ;;  %13614 = vmatprep.mubr.msk.bf16.mxu1 %vm15415_vm2, %v15413_v1  ;;  %v15254_v42 = vld [vmem:[%s17630_s0 + $0x198] sm:$0xff]  }
 0x31f   :  { %14998 = vmatprep.subr.msk.bf16.mxu1 %vm7113_vm6, %v16974_v8 }
 0x320   :  { %13577 = vmatmul.mubr.msk.bf16.gmra.mrb[108].mxu0 %vm140_vm3, %v15252_v21 }
 0x321   :  { %13638 = vmatprep.mubr.msk.bf16.mxu0 %vm15415_vm2, %v15413_v1 }
 0x323   :  { %v4703_v23 = vpop.f32.mrb[76].mxu0 }
 0x324   :  { %v14101_v24 = vadd.f32 %v16519_v17, %v4703_v23  ;;  %v13346_v25 = vpop.f32.mrb[77].mxu0 }
 0x325   :  { %13615 = vmatmul.mubr.msk.bf16.gmra.mrb[100].mxu1 %vm140_vm3, %v15253_v22  ;;  %v4706_v26 = vpop.f32.mrb[78].mxu0  ;;  %v15268_v25 = vld [vmem:[#allocation2 + $0x1c] ss:$0 sps:$4 sm:$0xff]  }
 0x326   :  { %13618 = vmatprep.mubr.msk.bf16.mxu1 %vm15415_vm2, %v15413_v1  ;;  %v4730_v27 = vmax.f32 %v14101_v24, 0.0  ;;  %v14102_v28 = vadd.f32 %v16519_v17, %v4706_v26  ;;  %v13347_v30 = vpop.f32.mrb[79].mxu0  ;;  %v17112_v26 = vsel %vm7113_vm6, %v17089_v10, 0 }
 0x327   :  { %v15269_v30 = vld [vmem:[#allocation2 + $0x4] sm:$0xff]  }
 0x328   :  { %13639 = vmatmul.mubr.msk.bf16.vlgmr.msra.gmra.mrb[112].mxu0 %vm140_vm3, %v15254_v42  ;;  %v12180_v32 = vpack.c.bf16 %v4730_v27, %v4730_v27  ;;  %v4731_v33 = vmax.f32 %v14102_v28, 0.0  ;;  %v15267_v42 = vld [vmem:[%s17630_s0 + $0x1c8] sm:$0xff]  }
 0x329   :  { %13642 = vmatprep.mubr.msk.bf16.mxu0 %vm15415_vm2, %v15413_v1  ;;  %13651 = vmatpush3.bf16.msra.mxu0 %v15385_v34  ;;  %v17117_v27 = vld [vmem:[%s17634_s4 + $0xc] sm:$0xf]  ;;  %v15388_v34 = vld [vmem:[%s17632_s2 + $0x18] sm:$0xff]  }
 0x32a   :  { %4757 = vst.msk [vmem:[#allocation2 + $0xdc] sm:$0xf] %vm522_vm5, %v12180_v32  ;;  %v12181_v35 = vpack.c.bf16 %v4731_v33, %v4731_v33  ;;  %13664 = vmatprep.subr.bf16.mxu0 %v15413_v1 }
 0x32b   :  { %v4711_v36 = vpop.f32.mrb[80].mxu0 }
 0x32c   :  { %4758 = vst.msk [vmem:[#allocation2 + $0xe0] sm:$0xf] %vm522_vm5, %v12181_v35  ;;  %v14103_v37 = vadd.f32 %v16519_v17, %v4711_v36  ;;  %v13350_v38 = vpop.f32.mrb[81].mxu0  ;;  %v15270_v35 = vld [vmem:[%s17630_s0 + $0x1d0] sm:$0xff]   ;;  %v15271_v36 = vld [vmem:[#allocation2 + $0xc] ss:$0 sps:$4 sm:$0xff]  }
 0x32d   :  { %13619 = vmatmul.mubr.msk.bf16.gmra.mrb[104].mxu1 %vm140_vm3, %v15255_v31  ;;  %v4714_v39 = vpop.f32.mrb[82].mxu0  ;;  %v17146_v38 = vld [vmem:[%s17634_s4 + $0x10] sm:$0xf] }
 0x32e   :  { %13624 = vmatprep.mubr.msk.bf16.mxu1 %vm15415_vm2, %v15413_v1  ;;  %v4732_v3 = vmax.f32 %v14103_v37, 0.0  ;;  %v14104_v40 = vadd.f32 %v16519_v17, %v4714_v39  ;;  %v13351_v41 = vpop.f32.mrb[83].mxu0  ;;  %v15258_v17 = vld [vmem:[%s17630_s0 + $0x1a8] ss:$0 sps:$4 sm:$0xff]   ;;  %v15272_v37 = vld [vmem:[#allocation2 + $0x18] sm:$0xff]  }
 0x32f   :  { %v15273_v39 = vld [vmem:[%s17630_s0 + $0x1d8] ss:$0 sps:$4 sm:$0xff]   ;;  %v17164_v41 = vsel %vm7113_vm6, %v17146_v38, 0 }
 0x330   :  { %13643 = vmatmul.mubr.msk.bf16.gmra.mrb[116].mxu0 %vm140_vm3, %v15256_v52  ;;  %v12182_v43 = vpack.c.bf16 %v4732_v3, %v4732_v3  ;;  %v4733_v44 = vmax.f32 %v14104_v40, 0.0  ;;  %v17141_v52 = vsel %vm7113_vm6, %v17117_v27, 0  ;;  %v15274_v3 = vld [vmem:[%s17630_s0 + $0x1b4] sm:$0xff]   ;;  %v15275_v40 = vld [vmem:[#allocation2 + $0x20] ss:$0 sps:$4 sm:$0xff]  }
 0x331   :  { %13646 = vmatprep.mubr.msk.bf16.mxu0 %vm15415_vm2, %v15413_v1 }
 0x332   :  { %4759 = vst.msk [vmem:[#allocation2 + $0xe4] sm:$0xf] %vm522_vm5, %v12182_v43  ;;  %v12183_v46 = vpack.c.bf16 %v4733_v44, %v4733_v44  ;;  %v17169_v43 = vld [vmem:[%s17634_s4 + $0x14] sm:$0xf]  ;;  %v15277_v44 = vld [vmem:[%s17630_s0 + $0x1bc] sm:$0xff]  }
 0x333   :  { %v4719_v48 = vpop.f32.mrb[84].mxu0 }
 0x334   :  { %4760 = vst.msk [vmem:[#allocation2 + $0xe8] sm:$0xf] %vm522_vm5, %v12183_v46  ;;  %v13354_v49 = vpop.f32.mrb[85].mxu0  ;;  %v17190_v46 = vsel %vm7113_vm6, %v17169_v43, 0  ;;  %v15279_v48 = vld [vmem:[#allocation2 + $0x3c] sm:$0xff]  }
 0x335   :  { %13625 = vmatmul.mubr.msk.bf16.vlgmr.msra.gmra.mrb[96].mxu1 %vm140_vm3, %v15257_v7  ;;  %v4722_v50 = vpop.f32.mrb[86].mxu0  ;;  %v15276_v7 = vld [vmem:[#allocation2 + $0x28] sm:$0xff]   ;;  %v17195_v49 = vld [vmem:[%s17634_s4 + $0x18] sm:$0xf] }
 0x336   :  { %13693 = vmatpush3.bf16.msra.mxu1 %v17027_v45  ;;  %13628 = vmatprep.mubr.msk.bf16.mxu1 %vm15415_vm2, %v15413_v1  ;;  %v13355_v53 = vpop.f32.mrb[87].mxu0  ;;  %v15280_v50 = vld [vmem:[%s17630_s0 + $0x1c4] ss:$0 sps:$4 sm:$0xff]  }
 0x337   :  { %14999 = vmatprep.subr.msk.bf16.mxu1 %vm7113_vm6, %v17036_v47  ;;  %v15281_v53 = vld [vmem:[#allocation2 + $0x50] sm:$0xff]  }
 0x338   :  { %13647 = vmatmul.mubr.msk.bf16.gmra.mrb[120].mxu0 %vm140_vm3, %v15258_v17  ;;  %v15278_v17 = vld [vmem:[#allocation2 + $0x30] ss:$0 sps:$4 sm:$0xff]  }
 0x339   :  { %13652 = vmatprep.mubr.msk.bf16.mxu0 %vm15415_vm2, %v15413_v1 }
 0x33d   :  { %13629 = vmatmul.mubr.msk.bf16.gmra.mrb[100].mxu1 %vm140_vm3, %v15259_v54 }
 0x33e   :  { %13632 = vmatprep.mubr.msk.bf16.mxu1 %vm15415_vm2, %v15413_v1 }
 0x340   :  { %13653 = vmatmul.mubr.msk.bf16.vlgmr.msra.gmra.mrb[112].mxu0 %vm140_vm3, %v15260_v55 }
 0x341   :  { %13656 = vmatprep.mubr.msk.bf16.mxu0 %vm15415_vm2, %v15413_v1  ;;  %13665 = vmatpush3.bf16.msra.mxu0 %v15386_v58  ;;  %v15284_v58 = vld [vmem:[#allocation2 + $0x44] ss:$0 sps:$4 sm:$0xff]  }
 0x342   :  { %13678 = vmatprep.subr.bf16.mxu0 %v15413_v1 }
 0x345   :  { %13633 = vmatmul.mubr.msk.bf16.gmra.mrb[104].mxu1 %vm140_vm3, %v15261_v57 }
 0x346   :  { %13694 = vmatprep.mubr.msk.bf16.mxu1 %vm7106_vm7, %v15262_v59 }
 0x348   :  { %v5089_v51 = vpop.f32.mrb[72].mxu1  ;;  %13657 = vmatmul.mubr.msk.bf16.gmra.mrb[116].mxu0 %vm140_vm3, %v15263_v60  ;;  %v15282_v60 = vld [vmem:[#allocation2 + $0x58] ss:$0 sps:$4 sm:$0xff]  }
 0x349   :  { %v14106_v62 = vadd.f32 %v17076_v61, %v5089_v51  ;;  %v13402_v63 = vpop.f32.mrb[73].mxu1  ;;  %13660 = vmatprep.mubr.msk.bf16.mxu0 %vm15415_vm2, %v15413_v1  ;;  %v17210_v51 = vsel %vm7113_vm6, %v17195_v49, 0 }
 0x34a   :  { %v5092_v0 = vpop.f32.mrb[74].mxu1 }
 0x34b   :  { %v5116_v2 = vmax.f32 %v14106_v62, 0.0  ;;  %v14107_v4 = vadd.f32 %v17076_v61, %v5092_v0  ;;  %v13403_v5 = vpop.f32.mrb[75].mxu1 }
 0x34d   :  { %v12185_v11 = vpack.c.bf16 %v5116_v2, %v5116_v2  ;;  %v5117_v12 = vmax.f32 %v14107_v4, 0.0  ;;  %13695 = vmatmul.mubr.msk.bf16.vlgmr.msra.gmra.mrb[108].mxu1 %vm7106_vm7, %v15264_v29  ;;  %v15283_v2 = vld [vmem:[#allocation2 + $0x64] sm:$0xff]   ;;  %v15285_v4 = vld [vmem:[#allocation2 + $0x2c] sm:$0xff]   ;;  %v17218_v29 = vld [vmem:[%s17634_s4 + $0x1c] sm:$0xf] }
 0x34e   :  { %13699 = vmatpush3.bf16.msra.mxu1 %v17084_v6  ;;  %13700 = vmatprep.mubr.msk.bf16.mxu1 %vm7106_vm7, %v15265_v9 }
 0x34f   :  { %5143 = vst.msk [vmem:[#allocation2 + $0xf0] sm:$0xf] %vm522_vm5, %v12185_v11  ;;  %v12186_v15 = vpack.c.bf16 %v5117_v12, %v5117_v12  ;;  %15000 = vmatprep.subr.msk.bf16.mxu1 %vm7113_vm6, %v17089_v10 }
 0x350   :  { %v5097_v16 = vpop.f32.mrb[76].mxu1  ;;  %13661 = vmatmul.mubr.msk.bf16.gmra.mrb[120].mxu0 %vm140_vm3, %v15266_v13 }
 0x351   :  { %5144 = vst.msk [vmem:[#allocation2 + $0xf4] sm:$0xf] %vm522_vm5, %v12186_v15  ;;  %v14108_v18 = vadd.f32 %v17076_v61, %v5097_v16  ;;  %v13406_v14 = vpop.f32.mrb[77].mxu1  ;;  %13666 = vmatprep.mubr.msk.bf16.mxu0 %vm15415_vm2, %v15413_v1 }
 0x352   :  { %v5100_v56 = vpop.f32.mrb[78].mxu1 }
 0x353   :  { %v5118_v19 = vmax.f32 %v14108_v18, 0.0  ;;  %v14109_v20 = vadd.f32 %v17076_v61, %v5100_v56  ;;  %v13407_v21 = vpop.f32.mrb[79].mxu1 }
 0x354   :  { %v15286_v21 = vld [vmem:[#allocation2 + $0x6c] ss:$0 sps:$4 sm:$0xff]  }
 0x355   :  { %v12187_v22 = vpack.c.bf16 %v5118_v19, %v5118_v19  ;;  %v5119_v23 = vmax.f32 %v14109_v20, 0.0 }
 0x357   :  { %5145 = vst.msk [vmem:[#allocation2 + $0xf8] sm:$0xf] %vm522_vm5, %v12187_v22  ;;  %v12188_v24 = vpack.c.bf16 %v5119_v23, %v5119_v23  ;;  %v15288_v22 = vld [vmem:[#allocation2 + $0x34] ss:$0 sps:$4 sm:$0xff]   ;;  %v17234_v23 = vsel %vm7113_vm6, %v17218_v29, 0 }
 0x358   :  { %v5105_v28 = vpop.f32.mrb[80].mxu1  ;;  %13667 = vmatmul.mubr.msk.bf16.vlgmr.msra.gmra.mrb[112].mxu0 %vm140_vm3, %v15267_v42 }
 0x359   :  { %5146 = vst.msk [vmem:[#allocation2 + $0xfc] sm:$0xf] %vm522_vm5, %v12188_v24  ;;  %v13410_v31 = vpop.f32.mrb[81].mxu1  ;;  %13701 = vmatmul.mubr.msk.bf16.vlgmr.msra.gmra.mrb[108].mxu1 %vm7106_vm7, %v15268_v25  ;;  %13670 = vmatprep.mubr.msk.bf16.mxu0 %vm15415_vm2, %v15413_v1  ;;  %v15287_v24 = vld [vmem:[#allocation2 + $0x54] sm:$0xff]   ;;  %v15289_v28 = vld [vmem:[#allocation2 + $0x40] sm:$0xff]  }
 0x35a   :  { %v5108_v32 = vpop.f32.mrb[82].mxu1  ;;  %13705 = vmatpush3.bf16.msra.mxu1 %v17112_v26  ;;  %13706 = vmatprep.mubr.msk.bf16.mxu1 %vm7106_vm7, %v15269_v30  ;;  %v17243_v30 = vld [vmem:[%s17634_s4 + $0x20] sm:$0xf] }
 0x35b   :  { %v13411_v33 = vpop.f32.mrb[83].mxu1  ;;  %15001 = vmatprep.subr.msk.bf16.mxu1 %vm7113_vm6, %v17117_v27  ;;  %13679 = vmatpush3.bf16.msra.mxu0 %v15388_v34  ;;  %v15290_v34 = vld [vmem:[#allocation2 + $0x5c] ss:$0 sps:$4 sm:$0xff]  }
 0x35c   :  { %15014 = vmatprep.subr.msk.bf16.mxu0 %vm7113_vm6, %v16974_v8 }
 0x360   :  { %13671 = vmatmul.mubr.msk.bf16.gmra.mrb[116].mxu0 %vm140_vm3, %v15270_v35  ;;  %v15292_v35 = vld [vmem:[#allocation2 + $0x48] ss:$0 sps:$4 sm:$0xff]  }
 0x361   :  { %13674 = vmatprep.mubr.msk.bf16.mxu0 %vm15415_vm2, %v15413_v1 }
 0x365   :  { %13707 = vmatmul.mubr.msk.bf16.vlgmr.msra.gmra.mrb[108].mxu1 %vm7106_vm7, %v15271_v36  ;;  %v17255_v36 = vsel %vm7113_vm6, %v17243_v30, 0 }
 0x366   :  { %13711 = vmatpush3.bf16.msra.mxu1 %v17141_v52  ;;  %13712 = vmatprep.mubr.msk.bf16.mxu1 %vm7106_vm7, %v15272_v37  ;;  %v15291_v37 = vld [vmem:[#allocation2 + $0x68] sm:$0xff]  }
 0x367   :  { %15002 = vmatprep.subr.msk.bf16.mxu1 %vm7113_vm6, %v17146_v38 }
 0x368   :  { %13675 = vmatmul.mubr.msk.bf16.gmra.mrb[120].mxu0 %vm140_vm3, %v15273_v39  ;;  %v15293_v39 = vld [vmem:[#allocation2 + $0x50] sm:$0xff]  }
 0x369   :  { %13680 = vmatprep.mubr.msk.bf16.mxu0 %vm15415_vm2, %v15413_v1 }
 0x370   :  { %13681 = vmatmul.mubr.msk.bf16.vlgmr.msra.gmra.mrb[112].mxu0 %vm140_vm3, %v15274_v3  ;;  %v17262_v3 = vld [vmem:[%s17634_s4 + $0x24] sm:$0xf] }
 0x371   :  { %13713 = vmatmul.mubr.msk.bf16.vlgmr.msra.gmra.mrb[108].mxu1 %vm7106_vm7, %v15275_v40  ;;  %13684 = vmatprep.mubr.msk.bf16.mxu0 %vm15415_vm2, %v15413_v1 }
 0x372   :  { %13717 = vmatpush3.bf16.msra.mxu1 %v17164_v41  ;;  %13718 = vmatprep.mubr.msk.bf16.mxu1 %vm7106_vm7, %v15276_v7 }
 0x373   :  { %15003 = vmatprep.subr.msk.bf16.mxu1 %vm7113_vm6, %v17169_v43  ;;  %13789 = vmatpush3.bf16.msra.mxu0 %v17027_v45 }
 0x374   :  { %15015 = vmatprep.subr.msk.bf16.mxu0 %vm7113_vm6, %v17036_v47 }
 0x378   :  { %13685 = vmatmul.mubr.msk.bf16.gmra.mrb[116].mxu0 %vm140_vm3, %v15277_v44 }
 0x379   :  { %13688 = vmatprep.mubr.msk.bf16.mxu0 %vm15415_vm2, %v15413_v1 }
 0x37d   :  { %13719 = vmatmul.mubr.msk.bf16.vlgmr.msra.gmra.mrb[108].mxu1 %vm7106_vm7, %v15278_v17 }
 0x37e   :  { %13723 = vmatpush3.bf16.msra.mxu1 %v17190_v46  ;;  %13724 = vmatprep.mubr.msk.bf16.mxu1 %vm7106_vm7, %v15279_v48  ;;  %v15296_v48 = vld [vmem:[#allocation2 + $0x58] ss:$0 sps:$4 sm:$0xff]  }
 0x37f   :  { %15004 = vmatprep.subr.msk.bf16.mxu1 %vm7113_vm6, %v17195_v49 }
 0x380   :  { %13689 = vmatmul.mubr.msk.bf16.gmra.mrb[120].mxu0 %vm140_vm3, %v15280_v50 }
 0x381   :  { %13790 = vmatprep.mubr.msk.bf16.mxu0 %vm7106_vm7, %v15281_v53 }
 0x383   :  { %v5473_v54 = vpop.f32.mrb[88].mxu0 }
 0x384   :  { %v14111_v55 = vadd.f32 %v17076_v61, %v5473_v54  ;;  %v13458_v57 = vpop.f32.mrb[89].mxu0 }
 0x385   :  { %v5476_v59 = vpop.f32.mrb[90].mxu0  ;;  %v17276_v57 = vsel %vm7113_vm6, %v17262_v3, 0 }
 0x386   :  { %v5500_v62 = vmax.f32 %v14111_v55, 0.0  ;;  %v14112_v63 = vadd.f32 %v17076_v61, %v5476_v59  ;;  %v13459_v0 = vpop.f32.mrb[91].mxu0  ;;  %v15294_v55 = vld [vmem:[#allocation2 + $0x70] ss:$0 sps:$4 sm:$0xff]  }
 0x388   :  { %13791 = vmatmul.mubr.msk.bf16.vlgmr.msra.gmra.mrb[124].mxu0 %vm7106_vm7, %v15282_v60  ;;  %v12190_v5 = vpack.c.bf16 %v5500_v62, %v5500_v62  ;;  %v5501_v9 = vmax.f32 %v14112_v63, 0.0  ;;  %v15297_v62 = vld [vmem:[#allocation2 + $0x64] sm:$0xff]  }
 0x389   :  { %13725 = vmatmul.mubr.msk.bf16.vlgmr.msra.gmra.mrb[108].mxu1 %vm7106_vm7, %v15284_v58  ;;  %13796 = vmatprep.mubr.msk.bf16.mxu0 %vm7106_vm7, %v15283_v2  ;;  %v15295_v58 = vld [vmem:[#allocation2 + $0x78] sm:$0xff]   ;;  %v17283_v63 = vld [vmem:[%s17634_s4 + $0x28] sm:$0xf] }
 0x38a   :  { %13729 = vmatpush3.bf16.msra.mxu1 %v17210_v51  ;;  %13730 = vmatprep.mubr.msk.bf16.mxu1 %vm7106_vm7, %v15285_v4  ;;  %5527 = vst.msk [vmem:[#allocation2 + $0x104] sm:$0xf] %vm522_vm5, %v12190_v5  ;;  %v12191_v11 = vpack.c.bf16 %v5501_v9, %v5501_v9 }
 0x38b   :  { %13795 = vmatpush3.bf16.msra.mxu0 %v17084_v6  ;;  %15005 = vmatprep.subr.msk.bf16.mxu1 %vm7113_vm6, %v17218_v29  ;;  %v5481_v12 = vpop.f32.mrb[92].mxu0 }
 0x38c   :  { %15016 = vmatprep.subr.msk.bf16.mxu0 %vm7113_vm6, %v17089_v10  ;;  %5528 = vst.msk [vmem:[#allocation2 + $0x108] sm:$0xf] %vm522_vm5, %v12191_v11  ;;  %v14113_v13 = vadd.f32 %v17076_v61, %v5481_v12  ;;  %v13462_v15 = vpop.f32.mrb[93].mxu0 }
 0x38d   :  { %v5484_v16 = vpop.f32.mrb[94].mxu0 }
 0x38e   :  { %v5502_v18 = vmax.f32 %v14113_v13, 0.0  ;;  %v14114_v14 = vadd.f32 %v17076_v61, %v5484_v16  ;;  %v13463_v56 = vpop.f32.mrb[95].mxu0 }
 0x38f   :  { %v15300_v56 = vld [vmem:[#allocation2 + $0x6c] ss:$0 sps:$4 sm:$0xff]  }
 0x390   :  { %v12192_v19 = vpack.c.bf16 %v5502_v18, %v5502_v18  ;;  %v5503_v20 = vmax.f32 %v14114_v14, 0.0  ;;  %v15298_v14 = vld [vmem:[#allocation2 + $0x80] ss:$0 sps:$4 sm:$0xff]  }
 0x392   :  { %5529 = vst.msk [vmem:[#allocation2 + $0x10c] sm:$0xf] %vm522_vm5, %v12192_v19  ;;  %v12193_v42 = vpack.c.bf16 %v5503_v20, %v5503_v20  ;;  %v17300_v19 = vsel %vm7113_vm6, %v17283_v63, 0 }
 0x393   :  { %v5489_v25 = vpop.f32.mrb[96].mxu0 }
 0x394   :  { %13797 = vmatmul.mubr.msk.bf16.vlgmr.msra.gmra.mrb[124].mxu0 %vm7106_vm7, %v15286_v21  ;;  %5530 = vst.msk [vmem:[#allocation2 + $0x110] sm:$0xf] %vm522_vm5, %v12193_v42  ;;  %v13466_v31 = vpop.f32.mrb[97].mxu0  ;;  %v15299_v21 = vld [vmem:[#allocation2 + $0x8c] sm:$0xff]   ;;  %v15301_v42 = vld [vmem:[#allocation2 + $0x54] sm:$0xff]  }
 0x395   :  { %13731 = vmatmul.mubr.msk.bf16.vlgmr.msra.gmra.mrb[108].mxu1 %vm7106_vm7, %v15288_v22  ;;  %13802 = vmatprep.mubr.msk.bf16.mxu0 %vm7106_vm7, %v15287_v24  ;;  %v5492_v32 = vpop.f32.mrb[98].mxu0  ;;  %v17308_v24 = vld [vmem:[%s17634_s4 + $0x2c] sm:$0xf]  ;;  %v15302_v31 = vld [vmem:[#allocation2 + $0x94] ss:$0 sps:$4 sm:$0xff]  }
 0x396   :  { %13735 = vmatpush3.bf16.msra.mxu1 %v17234_v23  ;;  %13736 = vmatprep.mubr.msk.bf16.mxu1 %vm7106_vm7, %v15289_v28  ;;  %v13467_v33 = vpop.f32.mrb[99].mxu0  ;;  %v15304_v32 = vld [vmem:[#allocation2 + $0x5c] ss:$0 sps:$4 sm:$0xff]  }
 0x397   :  { %13801 = vmatpush3.bf16.msra.mxu0 %v17112_v26  ;;  %15006 = vmatprep.subr.msk.bf16.mxu1 %vm7113_vm6, %v17243_v30  ;;  %v17320_v33 = vsel %vm7113_vm6, %v17308_v24, 0 }
 0x398   :  { %15017 = vmatprep.subr.msk.bf16.mxu0 %vm7113_vm6, %v17117_v27 }
 0x3a0   :  { %13803 = vmatmul.mubr.msk.bf16.vlgmr.msra.gmra.mrb[124].mxu0 %vm7106_vm7, %v15290_v34  ;;  %v15303_v34 = vld [vmem:[#allocation2 + $0x7c] sm:$0xff]  }
 0x3a1   :  { %13737 = vmatmul.mubr.msk.bf16.vlgmr.msra.gmra.mrb[108].mxu1 %vm7106_vm7, %v15292_v35  ;;  %13808 = vmatprep.mubr.msk.bf16.mxu0 %vm7106_vm7, %v15291_v37  ;;  %v15305_v35 = vld [vmem:[#allocation2 + $0x68] sm:$0xff]   ;;  %v17327_v37 = vld [vmem:[%s17634_s4 + $0x30] sm:$0xf] }
 0x3a2   :  { %13741 = vmatpush3.bf16.msra.mxu1 %v17255_v36  ;;  %13742 = vmatprep.mubr.msk.bf16.mxu1 %vm7106_vm7, %v15293_v39  ;;  %v15306_v39 = vld [vmem:[#allocation2 + $0x84] ss:$0 sps:$4 sm:$0xff]  }
 0x3a3   :  { %13807 = vmatpush3.bf16.msra.mxu0 %v17141_v52  ;;  %15007 = vmatprep.subr.msk.bf16.mxu1 %vm7113_vm6, %v17262_v3 }
 0x3a4   :  { %15018 = vmatprep.subr.msk.bf16.mxu0 %vm7113_vm6, %v17146_v38 }
 0x3a8   :  { %v5859_v40 = vpop.f32.mrb[84].mxu1 }
 0x3a9   :  { %v14116_v7 = vadd.f32 %v17076_v61, %v5859_v40  ;;  %v13514_v44 = vpop.f32.mrb[85].mxu1  ;;  %v15308_v40 = vld [vmem:[#allocation2 + $0x70] ss:$0 sps:$4 sm:$0xff]  }
 0x3aa   :  { %v5862_v17 = vpop.f32.mrb[86].mxu1  ;;  %v15307_v44 = vld [vmem:[#allocation2 + $0x90] sm:$0xff]  }
 0x3ab   :  { %v5886_v50 = vmax.f32 %v14116_v7, 0.0  ;;  %v14117_v53 = vadd.f32 %v17076_v61, %v5862_v17  ;;  %v13515_v54 = vpop.f32.mrb[87].mxu1  ;;  %v17339_v7 = vsel %vm7113_vm6, %v17327_v37, 0  ;;  %v15309_v17 = vld [vmem:[#allocation2 + $0x78] sm:$0xff]  }
 0x3ac   :  { %13809 = vmatmul.mubr.msk.bf16.vlgmr.msra.gmra.mrb[124].mxu0 %vm7106_vm7, %v15294_v55  ;;  %v15311_v55 = vld [vmem:[#allocation2 + $0xa0] sm:$0xff]  }
 0x3ad   :  { %v12195_v59 = vpack.c.bf16 %v5886_v50, %v5886_v50  ;;  %v5887_v60 = vmax.f32 %v14117_v53, 0.0  ;;  %13743 = vmatmul.mubr.msk.bf16.vlgmr.msra.gmra.mrb[108].mxu1 %vm7106_vm7, %v15296_v48  ;;  %13814 = vmatprep.mubr.msk.bf16.mxu0 %vm7106_vm7, %v15295_v58  ;;  %v17346_v48 = vld [vmem:[%s17634_s4 + $0x34] sm:$0xf]  ;;  %v15310_v50 = vld [vmem:[#allocation2 + $0x98] ss:$0 sps:$4 sm:$0xff]   ;;  %v15313_v58 = vld [vmem:[#allocation2 + $0x8c] sm:$0xff]  }
 0x3ae   :  { %13747 = vmatpush3.bf16.msra.mxu1 %v17276_v57  ;;  %13748 = vmatprep.mubr.msk.bf16.mxu1 %vm7106_vm7, %v15297_v62  ;;  %v15312_v53 = vld [vmem:[#allocation2 + $0x80] ss:$0 sps:$4 sm:$0xff]   ;;  %v17358_v54 = vsel %vm7113_vm6, %v17346_v48, 0 }
 0x3af   :  { %5913 = vst.msk [vmem:[#allocation2 + $0x118] sm:$0xf] %vm522_vm5, %v12195_v59  ;;  %v12196_v0 = vpack.c.bf16 %v5887_v60, %v5887_v60  ;;  %13813 = vmatpush3.bf16.msra.mxu0 %v17164_v41  ;;  %15008 = vmatprep.subr.msk.bf16.mxu1 %vm7113_vm6, %v17283_v63  ;;  %v17365_v59 = vld [vmem:[%s17634_s4 + $0x38] sm:$0xf] }
 0x3b0   :  { %v5867_v2 = vpop.f32.mrb[88].mxu1  ;;  %15019 = vmatprep.subr.msk.bf16.mxu0 %vm7113_vm6, %v17169_v43 }
 0x3b1   :  { %5914 = vst.msk [vmem:[#allocation2 + $0x11c] sm:$0xf] %vm522_vm5, %v12196_v0  ;;  %v14118_v4 = vadd.f32 %v17076_v61, %v5867_v2  ;;  %v13518_v5 = vpop.f32.mrb[89].mxu1  ;;  %v15316_v2 = vld [vmem:[#allocation2 + $0x94] ss:$0 sps:$4 sm:$0xff]  }
 0x3b2   :  { %v5870_v9 = vpop.f32.mrb[90].mxu1  ;;  %v15314_v5 = vld [vmem:[#allocation2 + $0xa8] ss:$0 sps:$4 sm:$0xff]  }
 0x3b3   :  { %v5888_v11 = vmax.f32 %v14118_v4, 0.0  ;;  %v14119_v12 = vadd.f32 %v17076_v61, %v5870_v9  ;;  %v13519_v13 = vpop.f32.mrb[91].mxu1  ;;  %v17378_v9 = vsel %vm7113_vm6, %v17365_v59, 0 }
 0x3b5   :  { %v12197_v15 = vpack.c.bf16 %v5888_v11, %v5888_v11  ;;  %v5889_v16 = vmax.f32 %v14119_v12, 0.0 }
 0x3b7   :  { %5915 = vst.msk [vmem:[#allocation2 + $0x120] sm:$0xf] %vm522_vm5, %v12197_v15  ;;  %v12198_v18 = vpack.c.bf16 %v5889_v16, %v5889_v16  ;;  %v15315_v15 = vld [vmem:[#allocation2 + $0xb4] sm:$0xff]   ;;  %v15317_v16 = vld [vmem:[#allocation2 + $0x7c] sm:$0xff]  }
 0x3b8   :  { %v5875_v20 = vpop.f32.mrb[92].mxu1  ;;  %13815 = vmatmul.mubr.msk.bf16.vlgmr.msra.gmra.mrb[124].mxu0 %vm7106_vm7, %v15298_v14  ;;  %v17386_v14 = vld [vmem:[%s17634_s4 + $0x3c] sm:$0xf] }
 0x3b9   :  { %5916 = vst.msk [vmem:[#allocation2 + $0x124] sm:$0xf] %vm522_vm5, %v12198_v18  ;;  %v13522_v22 = vpop.f32.mrb[93].mxu1  ;;  %13749 = vmatmul.mubr.msk.bf16.vlgmr.msra.gmra.mrb[108].mxu1 %vm7106_vm7, %v15300_v56  ;;  %13820 = vmatprep.mubr.msk.bf16.mxu0 %vm7106_vm7, %v15299_v21 }
 0x3ba   :  { %v5878_v25 = vpop.f32.mrb[94].mxu1  ;;  %13753 = vmatpush3.bf16.msra.mxu1 %v17300_v19  ;;  %13754 = vmatprep.mubr.msk.bf16.mxu1 %vm7106_vm7, %v15301_v42 }
 0x3bb   :  { %v13523_v28 = vpop.f32.mrb[95].mxu1  ;;  %13819 = vmatpush3.bf16.msra.mxu0 %v17190_v46  ;;  %15009 = vmatprep.subr.msk.bf16.mxu1 %vm7113_vm6, %v17308_v24 }
 0x3bc   :  { %15020 = vmatprep.subr.msk.bf16.mxu0 %vm7113_vm6, %v17195_v49 }
 0x3c4   :  { %13821 = vmatmul.mubr.msk.bf16.vlgmr.msra.gmra.mrb[124].mxu0 %vm7106_vm7, %v15302_v31 }
 0x3c5   :  { %13755 = vmatmul.mubr.msk.bf16.vlgmr.msra.gmra.mrb[108].mxu1 %vm7106_vm7, %v15304_v32  ;;  %13826 = vmatprep.mubr.msk.bf16.mxu0 %vm7106_vm7, %v15303_v34 }
 0x3c6   :  { %13759 = vmatpush3.bf16.msra.mxu1 %v17320_v33  ;;  %13760 = vmatprep.mubr.msk.bf16.mxu1 %vm7106_vm7, %v15305_v35 }
 0x3c7   :  { %13825 = vmatpush3.bf16.msra.mxu0 %v17210_v51  ;;  %15010 = vmatprep.subr.msk.bf16.mxu1 %vm7113_vm6, %v17327_v37 }
 0x3c8   :  { %15021 = vmatprep.subr.msk.bf16.mxu0 %vm7113_vm6, %v17218_v29 }
 0x3d0   :  { %13827 = vmatmul.mubr.msk.bf16.vlgmr.msra.gmra.mrb[124].mxu0 %vm7106_vm7, %v15306_v39  ;;  %v15318_v39 = vld [vmem:[#allocation2 + $0xbc] ss:$0 sps:$4 sm:$0xff]  }
 0x3d1   :  { %13761 = vmatmul.mubr.msk.bf16.vlgmr.msra.gmra.mrb[108].mxu1 %vm7106_vm7, %v15308_v40  ;;  %13832 = vmatprep.mubr.msk.bf16.mxu0 %vm7106_vm7, %v15307_v44  ;;  %v15320_v40 = vld [vmem:[#allocation2 + $0x84] ss:$0 sps:$4 sm:$0xff]   ;;  %v17402_v44 = vsel %vm7113_vm6, %v17386_v14, 0 }
 0x3d2   :  { %13765 = vmatpush3.bf16.msra.mxu1 %v17339_v7  ;;  %13766 = vmatprep.mubr.msk.bf16.mxu1 %vm7106_vm7, %v15309_v17 }
 0x3d3   :  { %13831 = vmatpush3.bf16.msra.mxu0 %v17234_v23  ;;  %15011 = vmatprep.subr.msk.bf16.mxu1 %vm7113_vm6, %v17346_v48 }
 0x3d4   :  { %15022 = vmatprep.subr.msk.bf16.mxu0 %vm7113_vm6, %v17243_v30 }
 0x3dc   :  { %13833 = vmatmul.mubr.msk.bf16.vlgmr.msra.gmra.mrb[124].mxu0 %vm7106_vm7, %v15310_v50  ;;  %v15319_v50 = vld [vmem:[#allocation2 + $0xa4] sm:$0xff]  }
 0x3dd   :  { %13767 = vmatmul.mubr.msk.bf16.vlgmr.msra.gmra.mrb[108].mxu1 %vm7106_vm7, %v15312_v53  ;;  %13838 = vmatprep.mubr.msk.bf16.mxu0 %vm7106_vm7, %v15311_v55  ;;  %v15321_v55 = vld [vmem:[#allocation2 + $0x90] sm:$0xff]  }
 0x3de   :  { %13771 = vmatpush3.bf16.msra.mxu1 %v17358_v54  ;;  %13772 = vmatprep.mubr.msk.bf16.mxu1 %vm7106_vm7, %v15313_v58 }
 0x3df   :  { %13837 = vmatpush3.bf16.msra.mxu0 %v17255_v36  ;;  %15012 = vmatprep.subr.msk.bf16.mxu1 %vm7113_vm6, %v17365_v59 }
 0x3e0   :  { %15023 = vmatprep.subr.msk.bf16.mxu0 %vm7113_vm6, %v17262_v3 }
 0x3e3   :  { %v6243_v60 = vpop.f32.mrb[100].mxu0 }
 0x3e4   :  { %v14121_v62 = vadd.f32 %v17076_v61, %v6243_v60  ;;  %v13570_v0 = vpop.f32.mrb[101].mxu0 }
 0x3e5   :  { %v6246_v4 = vpop.f32.mrb[102].mxu0  ;;  %v15324_v0 = vld [vmem:[#allocation2 + $0x98] ss:$0 sps:$4 sm:$0xff]  }
 0x3e6   :  { %v6270_v11 = vmax.f32 %v14121_v62, 0.0  ;;  %v14122_v12 = vadd.f32 %v17076_v61, %v6246_v4  ;;  %v13571_v13 = vpop.f32.mrb[103].mxu0  ;;  %v15322_v62 = vld [vmem:[#allocation2 + $0xac] ss:$0 sps:$4 sm:$0xff]   ;;  %v15325_v4 = vld [vmem:[#allocation2 + $0xa0] sm:$0xff]  }
 0x3e8   :  { %13839 = vmatmul.mubr.msk.bf16.vlgmr.msra.gmra.mrb[124].mxu0 %vm7106_vm7, %v15314_v5  ;;  %v12200_v18 = vpack.c.bf16 %v6270_v11, %v6270_v11  ;;  %v6271_v56 = vmax.f32 %v14122_v12, 0.0  ;;  %v15327_v11 = vld [vmem:[#allocation2 + $0xb4] sm:$0xff]  }
 0x3e9   :  { %13773 = vmatmul.mubr.msk.bf16.vlgmr.msra.gmra.mrb[108].mxu1 %vm7106_vm7, %v15316_v2  ;;  %13844 = vmatprep.mubr.msk.bf16.mxu0 %vm7106_vm7, %v15315_v15  ;;  %v15323_v2 = vld [vmem:[#allocation2 + $0xb8] sm:$0xff]   ;;  %v15328_v15 = vld [vmem:[#allocation2 + $0xc0] ss:$0 sps:$4 sm:$0xff]  }
 0x3ea   :  { %13777 = vmatpush3.bf16.msra.mxu1 %v17378_v9  ;;  %13778 = vmatprep.mubr.msk.bf16.mxu1 %vm7106_vm7, %v15317_v16  ;;  %6297 = vst.msk [vmem:[#allocation2 + $0x12c] sm:$0xf] %vm522_vm5, %v12200_v18  ;;  %v12201_v20 = vpack.c.bf16 %v6271_v56, %v6271_v56 }
 0x3eb   :  { %13843 = vmatpush3.bf16.msra.mxu0 %v17276_v57  ;;  %15013 = vmatprep.subr.msk.bf16.mxu1 %vm7113_vm6, %v17386_v14  ;;  %v6251_v21 = vpop.f32.mrb[104].mxu0 }
 0x3ec   :  { %15024 = vmatprep.subr.msk.bf16.mxu0 %vm7113_vm6, %v17283_v63  ;;  %6298 = vst.msk [vmem:[#allocation2 + $0x130] sm:$0xf] %vm522_vm5, %v12201_v20  ;;  %v14123_v22 = vadd.f32 %v17076_v61, %v6251_v21  ;;  %v13574_v42 = vpop.f32.mrb[105].mxu0  ;;  %v15330_v20 = vld [vmem:[#allocation2 + $0xbc] ss:$0 sps:$4 sm:$0xff]   ;;  %v15331_v21 = vld [vmem:[#allocation2 + $0xa4] sm:$0xff]  }
 0x3ed   :  { %v6254_v25 = vpop.f32.mrb[106].mxu0  ;;  %v15333_v42 = vld [vmem:[#allocation2 + $0xdc] sm:$0xff]  }
 0x3ee   :  { %v6272_v28 = vmax.f32 %v14123_v22, 0.0  ;;  %v14124_v31 = vadd.f32 %v17076_v61, %v6254_v25  ;;  %v13575_v32 = vpop.f32.mrb[107].mxu0 }
 0x3ef   :  { %v15335_v32 = vld [vmem:[#allocation2 + $0xb8] sm:$0xff]  }
 0x3f0   :  { %v12202_v34 = vpack.c.bf16 %v6272_v28, %v6272_v28  ;;  %v6273_v35 = vmax.f32 %v14124_v31, 0.0 }
 0x3f2   :  { %6299 = vst.msk [vmem:[#allocation2 + $0x134] sm:$0xf] %vm522_vm5, %v12202_v34  ;;  %v12203_v17 = vpack.c.bf16 %v6273_v35, %v6273_v35  ;;  %v15337_v34 = vld [vmem:[#allocation2 + $0xcc] sm:$0xff]   ;;  %v15338_v35 = vld [vmem:[#allocation2 + $0xc0] ss:$0 sps:$4 sm:$0xff]  }
 0x3f3   :  { %v6259_v53 = vpop.f32.mrb[108].mxu0 }
 0x3f4   :  { %13845 = vmatmul.mubr.msk.bf16.vlgmr.msra.gmra.mrb[124].mxu0 %vm7106_vm7, %v15318_v39  ;;  %6300 = vst.msk [vmem:[#allocation2 + $0x138] sm:$0xf] %vm522_vm5, %v12203_v17  ;;  %v13578_v61 = vpop.f32.mrb[109].mxu0  ;;  %v15339_v39 = vld [vmem:[#allocation2 + $0xc8] sm:$0xff]   ;;  %v15343_v17 = vld [vmem:[#allocation2 + $0xdc] sm:$0xff]  }
 0x3f5   :  { %13779 = vmatmul.mubr.msk.bf16.vlgmr.msra.gmra.mrb[108].mxu1 %vm7106_vm7, %v15320_v40  ;;  %13850 = vmatprep.mubr.msk.bf16.mxu0 %vm7106_vm7, %v15319_v50  ;;  %v6262_v58 = vpop.f32.mrb[110].mxu0  ;;  %v15342_v40 = vld [vmem:[#allocation2 + $0xd0] ss:$0 sps:$4 sm:$0xff]  }
 0x3f6   :  { %13783 = vmatpush3.bf16.msra.mxu1 %v17402_v44  ;;  %13784 = vmatprep.mubr.msk.bf16.mxu1 %vm7106_vm7, %v15321_v55  ;;  %v13579_v60 = vpop.f32.mrb[111].mxu0  ;;  %v15346_v50 = vld [vmem:[#allocation2 + $0xcc] sm:$0xff]  }
 0x3f7   :  { %13849 = vmatpush3.bf16.msra.mxu0 %v17300_v19  ;;  %15030 = vmatprep.subr.msk.bf16.mxu1 %vm7113_vm6, %v16974_v8  ;;  %v15326_v8 = vld [vmem:[#allocation2 + $0xa8] ss:$0 sps:$4 sm:$0xff]  }
 0x3f8   :  { %15025 = vmatprep.subr.msk.bf16.mxu0 %vm7113_vm6, %v17308_v24 }
 0x400   :  { %13851 = vmatmul.mubr.msk.bf16.vlgmr.msra.gmra.mrb[124].mxu0 %vm7106_vm7, %v15322_v62  ;;  %v15347_v62 = vld [vmem:[#allocation2 + $0xd4] ss:$0 sps:$4 sm:$0xff]  }
 0x401   :  { %13785 = vmatmul.mubr.msk.bf16.vlgmr.msra.gmra.mrb[108].mxu1 %vm7106_vm7, %v15324_v0  ;;  %13856 = vmatprep.mubr.msk.bf16.mxu0 %vm7106_vm7, %v15323_v2  ;;  %v15348_v2 = vld [vmem:[#allocation2 + $0xe0] sm:$0xff]  }
 0x402   :  { %13885 = vmatpush3.bf16.msra.mxu1 %v17027_v45  ;;  %13886 = vmatprep.mubr.msk.bf16.mxu1 %vm7106_vm7, %v15325_v4 }
 0x403   :  { %13855 = vmatpush3.bf16.msra.mxu0 %v17320_v33  ;;  %15031 = vmatprep.subr.msk.bf16.mxu1 %vm7113_vm6, %v17036_v47  ;;  %v15329_v47 = vld [vmem:[#allocation2 + $0xc8] sm:$0xff]  }
 0x404   :  { %15026 = vmatprep.subr.msk.bf16.mxu0 %vm7113_vm6, %v17327_v37 }
 0x408   :  { %v6629_v5 = vpop.f32.mrb[96].mxu1 }
 0x409   :  { %v13626_v12 = vpop.f32.mrb[97].mxu1  ;;  %13887 = vmatmul.mubr.msk.bf16.vlgmr.msra.gmra.mrb[112].mxu1 %vm7106_vm7, %v15326_v8  ;;  %v15349_v5 = vld [vmem:[#allocation2 + $0xe8] ss:$0 sps:$4 sm:$0xff]  }
 0x40a   :  { %v6632_v13 = vpop.f32.mrb[98].mxu1  ;;  %13891 = vmatpush3.bf16.msra.mxu1 %v17084_v6  ;;  %13892 = vmatprep.mubr.msk.bf16.mxu1 %vm7106_vm7, %v15327_v11  ;;  %v15350_v11 = vld [vmem:[#allocation2 + $0xf0] sm:$0xff]   ;;  %v15352_v12 = vld [vmem:[#allocation2 + $0x104] sm:$0xff]  }
 0x40b   :  { %v13627_v45 = vpop.f32.mrb[99].mxu1  ;;  %15032 = vmatprep.subr.msk.bf16.mxu1 %vm7113_vm6, %v17089_v10  ;;  %v15332_v10 = vld [vmem:[#allocation2 + $0xd0] ss:$0 sps:$4 sm:$0xff]   ;;  %v15354_v13 = vld [vmem:[#allocation2 + $0xf4] sm:$0xff]  }
 0x40c   :  { %13857 = vmatmul.mubr.msk.bf16.vlgmr.msra.gmra.mrb[124].mxu0 %vm7106_vm7, %v15328_v15  ;;  %v15356_v45 = vld [vmem:[#allocation2 + $0x108] sm:$0xff]  }
 0x40d   :  { %13862 = vmatprep.mubr.msk.bf16.mxu0 %vm7106_vm7, %v15329_v47  ;;  %13861 = vmatpush3.bf16.msra.mxu0 %v17339_v7 }
 0x40e   :  { %15027 = vmatprep.subr.msk.bf16.mxu0 %vm7113_vm6, %v17346_v48 }
 0x410   :  { %v6637_v16 = vpop.f32.mrb[100].mxu1 }
 0x411   :  { %v13630_v18 = vpop.f32.mrb[101].mxu1 }
 0x412   :  { %v6640_v6 = vpop.f32.mrb[102].mxu1 }
 0x413   :  { %v13631_v56 = vpop.f32.mrb[103].mxu1 }
 0x415   :  { %13893 = vmatmul.mubr.msk.bf16.vlgmr.msra.gmra.mrb[112].mxu1 %vm7106_vm7, %v15330_v20 }
 0x416   :  { %13897 = vmatpush3.bf16.msra.mxu1 %v17112_v26  ;;  %13898 = vmatprep.mubr.msk.bf16.mxu1 %vm7106_vm7, %v15331_v21  ;;  %v15334_v26 = vld [vmem:[#allocation2 + $0xac] ss:$0 sps:$4 sm:$0xff]  }
 0x417   :  { %15033 = vmatprep.subr.msk.bf16.mxu1 %vm7113_vm6, %v17117_v27  ;;  %v15336_v27 = vld [vmem:[#allocation2 + $0xe4] ss:$0 sps:$4 sm:$0xff]  }
 0x418   :  { %v6645_v22 = vpop.f32.mrb[104].mxu1  ;;  %13863 = vmatmul.mubr.msk.bf16.vlgmr.msra.gmra.mrb[124].mxu0 %vm7106_vm7, %v15332_v10 }
 0x419   :  { %v13634_v25 = vpop.f32.mrb[105].mxu1  ;;  %13868 = vmatprep.mubr.msk.bf16.mxu0 %vm7106_vm7, %v15333_v42  ;;  %13867 = vmatpush3.bf16.msra.mxu0 %v17358_v54  ;;  %v15367_v42 = vld [vmem:[%s17636_s6 + $0x8] sm:$0xff]  }
 0x41a   :  { %v6648_v28 = vpop.f32.mrb[106].mxu1  ;;  %15028 = vmatprep.subr.msk.bf16.mxu0 %vm7113_vm6, %v17365_v59 }
 0x41b   :  { %v13635_v31 = vpop.f32.mrb[107].mxu1  ;;  %v15368_v28 = vld [vmem:[%s17636_s6 + $0x10] sm:$0xff]  }
 0x421   :  { %13899 = vmatmul.mubr.msk.bf16.vlgmr.msra.gmra.mrb[112].mxu1 %vm7106_vm7, %v15334_v26  ;;  %v15369_v26 = vld [vmem:[%s17636_s6 + $0x18] sm:$0xff]  }
 0x422   :  { %13903 = vmatpush3.bf16.msra.mxu1 %v17141_v52  ;;  %13904 = vmatprep.mubr.msk.bf16.mxu1 %vm7106_vm7, %v15335_v32  ;;  %v15340_v52 = vld [vmem:[#allocation2 + $0xd4] ss:$0 sps:$4 sm:$0xff]  }
 0x423   :  { %15034 = vmatprep.subr.msk.bf16.mxu1 %vm7113_vm6, %v17146_v38  ;;  %v15341_v38 = vld [vmem:[#allocation2 + $0xe0] sm:$0xff]  }
 0x424   :  { %13869 = vmatmul.mubr.msk.bf16.vlgmr.msra.gmra.mrb[124].mxu0 %vm7106_vm7, %v15336_v27 }
 0x425   :  { %13874 = vmatprep.mubr.msk.bf16.mxu0 %vm7106_vm7, %v15337_v34  ;;  %13873 = vmatpush3.bf16.msra.mxu0 %v17378_v9 }
 0x426   :  { %15029 = vmatprep.subr.msk.bf16.mxu0 %vm7113_vm6, %v17386_v14 }
 0x42d   :  { %13905 = vmatmul.mubr.msk.bf16.vlgmr.msra.gmra.mrb[112].mxu1 %vm7106_vm7, %v15338_v35 }
 0x42e   :  { %13909 = vmatpush3.bf16.msra.mxu1 %v17164_v41  ;;  %13910 = vmatprep.mubr.msk.bf16.mxu1 %vm7106_vm7, %v15339_v39  ;;  %v15344_v41 = vld [vmem:[#allocation2 + $0xe8] ss:$0 sps:$4 sm:$0xff]  }
 0x42f   :  { %15035 = vmatprep.subr.msk.bf16.mxu1 %vm7113_vm6, %v17169_v43  ;;  %v15345_v43 = vld [vmem:[#allocation2 + $0xe4] ss:$0 sps:$4 sm:$0xff]  }
 0x430   :  { %13875 = vmatmul.mubr.msk.bf16.vlgmr.msra.gmra.mrb[124].mxu0 %vm7106_vm7, %v15340_v52 }
 0x431   :  { %13880 = vmatprep.mubr.msk.bf16.mxu0 %vm7106_vm7, %v15341_v38  ;;  %13879 = vmatpush3.bf16.msra.mxu0 %v17402_v44 }
 0x432   :  { %13980 = vmatprep.subr.bf16.mxu0 %v15413_v1 }
 0x439   :  { %13911 = vmatmul.mubr.msk.bf16.vlgmr.msra.gmra.mrb[112].mxu1 %vm7106_vm7, %v15342_v40 }
 0x43a   :  { %13915 = vmatpush3.bf16.msra.mxu1 %v17190_v46  ;;  %13916 = vmatprep.mubr.msk.bf16.mxu1 %vm7106_vm7, %v15343_v17 }
 0x43b   :  { %15036 = vmatprep.subr.msk.bf16.mxu1 %vm7113_vm6, %v17195_v49 }
 0x43c   :  { %13881 = vmatmul.mubr.msk.bf16.vlgmr.msra.gmra.mrb[124].mxu0 %vm7106_vm7, %v15344_v41 }
 0x43d   :  { %13982 = vmatprep.mubr.msk.bf16.mxu0 %vm15415_vm2, %v15413_v1 }
 0x443   :  { %v7013_v53 = vpop.f32.mrb[112].mxu0 }
 0x444   :  { %v13682_v55 = vpop.f32.mrb[113].mxu0 }
 0x445   :  { %13917 = vmatmul.mubr.msk.bf16.vlgmr.msra.gmra.mrb[112].mxu1 %vm7106_vm7, %v15345_v43  ;;  %v7016_v46 = vpop.f32.mrb[114].mxu0 }
 0x446   :  { %13921 = vmatpush3.bf16.msra.mxu1 %v17210_v51  ;;  %13922 = vmatprep.mubr.msk.bf16.mxu1 %vm7106_vm7, %v15346_v50  ;;  %v13683_v49 = vpop.f32.mrb[115].mxu0  ;;  %v15370_v46 = vld [vmem:[%s17636_s6 + $0x20] sm:$0xff]  }
 0x447   :  { %15037 = vmatprep.subr.msk.bf16.mxu1 %vm7113_vm6, %v17218_v29 }
 0x44b   :  { %v7021_v61 = vpop.f32.mrb[116].mxu0 }
 0x44c   :  { %v13686_v58 = vpop.f32.mrb[117].mxu0  ;;  %v15371_v61 = vld [vmem:[%s17636_s6 + $0x28] sm:$0xff]  }
 0x44d   :  { %v7024_v60 = vpop.f32.mrb[118].mxu0 }
 0x44e   :  { %v13687_v0 = vpop.f32.mrb[119].mxu0  ;;  %v15372_v60 = vld [vmem:[%s17636_s6 + $0x30] sm:$0xff]  }
 0x451   :  { %13923 = vmatmul.mubr.msk.bf16.vlgmr.msra.gmra.mrb[112].mxu1 %vm7106_vm7, %v15347_v62 }
 0x452   :  { %13927 = vmatpush3.bf16.msra.mxu1 %v17234_v23  ;;  %13928 = vmatprep.mubr.msk.bf16.mxu1 %vm7106_vm7, %v15348_v2  ;;  %v15366_v23 = vld [vmem:[%s17636_s6] sm:$0xff]  }
 0x453   :  { %15038 = vmatprep.subr.msk.bf16.mxu1 %vm7113_vm6, %v17243_v30  ;;  %v7029_v51 = vpop.f32.mrb[120].mxu0  ;;  %13981 = vmatpush3.bf16.msra.mxu0 %v15366_v23  ;;  %v15351_v30 = vld [vmem:[#allocation2 + $0xf8] ss:$0 sps:$4 sm:$0xff]  }
 0x454   :  { %v13690_v4 = vpop.f32.mrb[121].mxu0  ;;  %13986 = vmatprep.subr.bf16.mxu0 %v15413_v1 }
 0x455   :  { %v7032_v8 = vpop.f32.mrb[122].mxu0 }
 0x456   :  { %v13691_v29 = vpop.f32.mrb[123].mxu0 }
 0x45d   :  { %13929 = vmatmul.mubr.msk.bf16.vlgmr.msra.gmra.mrb[112].mxu1 %vm7106_vm7, %v15349_v5 }
 0x45e   :  { %13933 = vmatpush3.bf16.msra.mxu1 %v17255_v36  ;;  %13934 = vmatprep.mubr.msk.bf16.mxu1 %vm7106_vm7, %v15350_v11  ;;  %v15353_v36 = vld [vmem:[#allocation2 + $0x10c] ss:$0 sps:$4 sm:$0xff]  }
 0x45f   :  { %15039 = vmatprep.subr.msk.bf16.mxu1 %vm7113_vm6, %v17262_v3  ;;  %v15355_v3 = vld [vmem:[#allocation2 + $0xfc] ss:$0 sps:$4 sm:$0xff]  }
 0x469   :  { %13935 = vmatmul.mubr.msk.bf16.vlgmr.msra.gmra.mrb[112].mxu1 %vm7106_vm7, %v15351_v30 }
 0x46a   :  { %13939 = vmatpush3.bf16.msra.mxu1 %v17276_v57  ;;  %13940 = vmatprep.mubr.msk.bf16.mxu1 %vm7106_vm7, %v15352_v12  ;;  %v15357_v57 = vld [vmem:[#allocation2 + $0x110] ss:$0 sps:$4 sm:$0xff]  }
 0x46b   :  { %15040 = vmatprep.subr.msk.bf16.mxu1 %vm7113_vm6, %v17283_v63  ;;  %v15358_v63 = vld [vmem:[#allocation2 + $0x118] sm:$0xff]  }
 0x475   :  { %13941 = vmatmul.mubr.msk.bf16.vlgmr.msra.gmra.mrb[112].mxu1 %vm7106_vm7, %v15353_v36 }
 0x476   :  { %13945 = vmatpush3.bf16.msra.mxu1 %v17300_v19  ;;  %13946 = vmatprep.mubr.msk.bf16.mxu1 %vm7106_vm7, %v15354_v13  ;;  %v15359_v19 = vld [vmem:[#allocation2 + $0x120] ss:$0 sps:$4 sm:$0xff]  }
 0x477   :  { %15041 = vmatprep.subr.msk.bf16.mxu1 %vm7113_vm6, %v17308_v24  ;;  %v15360_v24 = vld [vmem:[#allocation2 + $0x12c] sm:$0xff]  }
 0x481   :  { %13947 = vmatmul.mubr.msk.bf16.vlgmr.msra.gmra.mrb[112].mxu1 %vm7106_vm7, %v15355_v3  ;;  %v15373_v3 = vld [vmem:[%s17636_s6 + $0x38] sm:$0xff]  }
 0x482   :  { %13951 = vmatpush3.bf16.msra.mxu1 %v17320_v33  ;;  %13952 = vmatprep.mubr.msk.bf16.mxu1 %vm7106_vm7, %v15356_v45  ;;  %v15361_v33 = vld [vmem:[#allocation2 + $0x134] ss:$0 sps:$4 sm:$0xff]  }
 0x483   :  { %15042 = vmatprep.subr.msk.bf16.mxu1 %vm7113_vm6, %v17327_v37  ;;  %v15362_v37 = vld [vmem:[#allocation2 + $0x11c] sm:$0xff]  }
 0x48d   :  { %13953 = vmatmul.mubr.msk.bf16.vlgmr.msra.gmra.mrb[112].mxu1 %vm7106_vm7, %v15357_v57  ;;  %v15374_v57 = vld [vmem:[%s17636_s6 + $0x40] sm:$0xff]  }
 0x48e   :  { %13957 = vmatpush3.bf16.msra.mxu1 %v17339_v7  ;;  %13958 = vmatprep.mubr.msk.bf16.mxu1 %vm7106_vm7, %v15358_v63  ;;  %v15363_v7 = vld [vmem:[#allocation2 + $0x124] ss:$0 sps:$4 sm:$0xff]  }
 0x48f   :  { %15043 = vmatprep.subr.msk.bf16.mxu1 %vm7113_vm6, %v17346_v48  ;;  %v15364_v48 = vld [vmem:[#allocation2 + $0x130] sm:$0xff]  }
 0x499   :  { %13959 = vmatmul.mubr.msk.bf16.vlgmr.msra.gmra.mrb[112].mxu1 %vm7106_vm7, %v15359_v19 }
 0x49a   :  { %13963 = vmatpush3.bf16.msra.mxu1 %v17358_v54  ;;  %13964 = vmatprep.mubr.msk.bf16.mxu1 %vm7106_vm7, %v15360_v24  ;;  %v15365_v54 = vld [vmem:[#allocation2 + $0x138] ss:$0 sps:$4 sm:$0xff]   ;;  %v15375_v24 = vld [vmem:[%s17638_s8] sm:$0xff]   ;;  %s15416_s8 = smov [#allocation4]  }
 0x49b   :  { %15044 = vmatprep.subr.msk.bf16.mxu1 %vm7113_vm6, %v17365_v59  ;;  %v17529_v59 = vld [vmem:[%s17635_s5] ss:$0 sm:$0xff]  ;;  %s11015_s30 = sshll.u32 %s15416_s8, 4  ;;  %s11016_s30 = int_to_ptr.vmem [resolvable:$true] %s11015_s30 }
 0x49c   :  { %p15394_p1 = scmp.lt.s32.totalorder %s11016_s30, %s11016_s30 }
 0x4a5   :  { %13965 = vmatmul.mubr.msk.bf16.vlgmr.msra.gmra.mrb[112].mxu1 %vm7106_vm7, %v15361_v33  ;;  %v12104_v33 = vld [vmem:[%s17637_s7] ss:$0 sm:$0xff]  ;;  %s15389_s7 = scalar_lea.vmem %s11016_s30, 128 }
 0x4a6   :  { %13969 = vmatpush3.bf16.msra.mxu1 %v17378_v9  ;;  %13970 = vmatprep.mubr.msk.bf16.mxu1 %vm7106_vm7, %v15362_v37  ;;  %p15390_p0 = scmp.ne.s32.totalorder %s11016_s30, %s15389_s7  ;;  %p15395_p2 = scmp.lt.s32.totalorder %s15389_s7, %s15389_s7 }
 0x4a7   :  { %15045 = vmatprep.subr.msk.bf16.mxu1 %vm7113_vm6, %v17386_v14 }
 0x4a8   :  { %p15396_p3 = por %p15395_p2, %p15394_p1 }
 0x4aa   :  { %p15397_p4 = pnand %p15396_p3, %p15390_p0 }
 0x4b1   :  { %13971 = vmatmul.mubr.msk.bf16.vlgmr.msra.gmra.mrb[112].mxu1 %vm7106_vm7, %v15363_v7 }
 0x4b2   :  { %13975 = vmatpush3.bf16.msra.mxu1 %v17402_v44  ;;  %13976 = vmatprep.mubr.msk.bf16.mxu1 %vm7106_vm7, %v15364_v48 }
 0x4bd   :  { %13977 = vmatmul.mubr.msk.bf16.vlgmr.msra.gmra.mrb[112].mxu1 %vm7106_vm7, %v15365_v54 }
 0x4d4   :  { %v13786_v9 = vpop.f32.mrb[108].mxu1 }
 0x4d5   :  { %v14136_v15 = vadd.f32 %v13786_v9, %v17529_v59  ;;  %v8216_v14 = vpop.f32.mrb[109].mxu1 }
 0x4d6   :  { %v14137_v47 = vadd.f32 %v17529_v59, %v8216_v14  ;;  %v13787_v16 = vpop.f32.mrb[110].mxu1 }
 0x4d7   :  { %v8235_v18 = vmax.f32 %v14136_v15, 0.0  ;;  %v8219_v6 = vpop.f32.mrb[111].mxu1 }
 0x4d8   :  { %v8233_v44 = vmax.f32 %v14137_v47, 0.0  ;;  %v14138_v56 = vadd.f32 %v17529_v59, %v8219_v6 }
 0x4d9   :  { %v12217_v20 = vpack.c.bf16 %v8235_v18, %v8235_v18 }
 0x4da   :  { %v12215_v21 = vpack.c.bf16 %v8233_v44, %v8233_v44  ;;  %v8234_v10 = vmax.f32 %v14138_v56, 0.0 }
 0x4db   :  { %8252 = vst.msk [vmem:[#allocation3 + $0x8] sm:$0xf] %vm8249_vm8, %v12217_v20 }
 0x4dc   :  { %8250 = vst.msk [vmem:[#allocation3] sm:$0xf] %vm8249_vm8, %v12215_v21  ;;  %v12216_v22 = vpack.c.bf16 %v8234_v10, %v8234_v10 }
 0x4de   :  { %8251 = vst.msk [vmem:[#allocation3 + $0x4] sm:$0xf] %vm8249_vm8, %v12216_v22 }
 0x4e2   :  { %v10596_v32 = vld [vmem:[#allocation3 + $0x8] sm:$0xf] }
 0x4e3   :  { %v10494_v25 = vld [vmem:[#allocation3] sm:$0xf] }
 0x4e4   :  { %13983 = vmatmul.mubr.msk.bf16.vlgmr.msra.gmra.mrb[128].mxu0 %vm140_vm3, %v10494_v25 }
 0x4e5   :  { %13987 = vmatpush3.bf16.msra.mxu0 %v15367_v42  ;;  %13988 = vmatprep.mubr.msk.bf16.mxu0 %vm15415_vm2, %v15413_v1  ;;  %v10545_v31 = vld [vmem:[#allocation3 + $0x4] sm:$0xf] }
 0x4e6   :  { %13992 = vmatprep.subr.bf16.mxu0 %v15413_v1 }
 0x4f0   :  { %13989 = vmatmul.mubr.msk.bf16.vlgmr.msra.gmra.mrb[128].mxu0 %vm140_vm3, %v10545_v31 }
 0x4f1   :  { %13993 = vmatpush3.bf16.msra.mxu0 %v15368_v28  ;;  %13994 = vmatprep.mubr.msk.bf16.mxu0 %vm15415_vm2, %v15413_v1 }
 0x4f2   :  { %13998 = vmatprep.subr.bf16.mxu0 %v15413_v1 }
 0x4fc   :  { %13995 = vmatmul.mubr.msk.bf16.vlgmr.msra.gmra.mrb[128].mxu0 %vm140_vm3, %v10596_v32 }
 0x4fd   :  { %13999 = vmatpush3.bf16.msra.mxu0 %v15369_v26  ;;  %14000 = vmatprep.mubr.msk.bf16.mxu0 %vm15415_vm2, %v15413_v1 }
 0x4fe   :  { %14004 = vmatprep.subr.bf16.mxu0 %v15413_v1 }
 0x50f   :  { %v13882_v27 = vpop.f32.mrb[124].mxu0 }
 0x510   :  { %v14139_v34 = vadd.f32 %v13882_v27, %v17529_v59  ;;  %v9324_v35 = vpop.f32.mrb[125].mxu0 }
 0x511   :  { %v14140_v39 = vadd.f32 %v17529_v59, %v9324_v35  ;;  %v13883_v52 = vpop.f32.mrb[126].mxu0 }
 0x512   :  { %v9343_v38 = vmax.f32 %v14139_v34, 0.0  ;;  %v9327_v40 = vpop.f32.mrb[127].mxu0 }
 0x513   :  { %v9341_v17 = vmax.f32 %v14140_v39, 0.0  ;;  %v14141_v41 = vadd.f32 %v17529_v59, %v9327_v40 }
 0x514   :  { %v12220_v43 = vpack.c.bf16 %v9343_v38, %v9343_v38 }
 0x515   :  { %v12218_v50 = vpack.c.bf16 %v9341_v17, %v9341_v17  ;;  %v9342_v53 = vmax.f32 %v14141_v41, 0.0 }
 0x516   :  { %9360 = vst.msk [vmem:[#allocation3 + $0x14] sm:$0xf] %vm8249_vm8, %v12220_v43 }
 0x517   :  { %9358 = vst.msk [vmem:[#allocation3 + $0xc] sm:$0xf] %vm8249_vm8, %v12218_v50  ;;  %v12219_v55 = vpack.c.bf16 %v9342_v53, %v9342_v53 }
 0x519   :  { %9359 = vst.msk [vmem:[#allocation3 + $0x10] sm:$0xf] %vm8249_vm8, %v12219_v55 }
 0x51d   :  { %v10749_v62 = vld [vmem:[#allocation3 + $0x14] sm:$0xf] }
 0x51e   :  { %v10647_v49 = vld [vmem:[#allocation3 + $0xc] sm:$0xf] }
 0x51f   :  { %14001 = vmatmul.mubr.msk.bf16.vlgmr.msra.gmra.mrb[128].mxu0 %vm140_vm3, %v10647_v49 }
 0x520   :  { %14005 = vmatpush3.bf16.msra.mxu0 %v15370_v46  ;;  %14006 = vmatprep.mubr.msk.bf16.mxu0 %vm15415_vm2, %v15413_v1  ;;  %v10698_v58 = vld [vmem:[#allocation3 + $0x10] sm:$0xf] }
 0x521   :  { %14010 = vmatprep.subr.bf16.mxu0 %v15413_v1 }
 0x52b   :  { %14007 = vmatmul.mubr.msk.bf16.vlgmr.msra.gmra.mrb[128].mxu0 %vm140_vm3, %v10698_v58 }
 0x52c   :  { %14011 = vmatpush3.bf16.msra.mxu0 %v15371_v61  ;;  %14012 = vmatprep.mubr.msk.bf16.mxu0 %vm15415_vm2, %v15413_v1 }
 0x52d   :  { %14016 = vmatprep.subr.bf16.mxu0 %v15413_v1 }
 0x537   :  { %14013 = vmatmul.mubr.msk.bf16.vlgmr.msra.gmra.mrb[128].mxu0 %vm140_vm3, %v10749_v62 }
 0x538   :  { %14017 = vmatpush3.bf16.msra.mxu0 %v15372_v60  ;;  %14018 = vmatprep.mubr.msk.bf16.mxu0 %vm15415_vm2, %v15413_v1 }
 0x539   :  { %14022 = vmatprep.subr.bf16.mxu0 %v15413_v1 }
 0x590   :  { %v13978_v0 = vpop.f32.mrb[112].mxu1 }
 0x591   :  { %v14142_v2 = vadd.f32 %v13978_v0, %v17529_v59  ;;  %v10432_v51 = vpop.f32.mrb[113].mxu1 }
 0x592   :  { %v14143_v4 = vadd.f32 %v17529_v59, %v10432_v51  ;;  %v13979_v8 = vpop.f32.mrb[114].mxu1 }
 0x593   :  { %v10451_v29 = vmax.f32 %v14142_v2, 0.0  ;;  %v10435_v5 = vpop.f32.mrb[115].mxu1 }
 0x594   :  { %v10449_v11 = vmax.f32 %v14143_v4, 0.0  ;;  %v14144_v23 = vadd.f32 %v17529_v59, %v10435_v5 }
 0x595   :  { %v12223_v30 = vpack.c.bf16 %v10451_v29, %v10451_v29 }
 0x596   :  { %v12221_v12 = vpack.c.bf16 %v10449_v11, %v10449_v11  ;;  %v10450_v36 = vmax.f32 %v14144_v23, 0.0 }
 0x597   :  { %10468 = vst.msk [vmem:[#allocation3 + $0x20] sm:$0xf] %vm8249_vm8, %v12223_v30 }
 0x598   :  { %10466 = vst.msk [vmem:[#allocation3 + $0x18] sm:$0xf] %vm8249_vm8, %v12221_v12  ;;  %v12222_v13 = vpack.c.bf16 %v10450_v36, %v10450_v36 }
 0x59a   :  { %10467 = vst.msk [vmem:[#allocation3 + $0x1c] sm:$0xf] %vm8249_vm8, %v12222_v13 }
 0x59e   :  { %v10902_v19 = vld [vmem:[#allocation3 + $0x20] sm:$0xf] }
 0x59f   :  { %v10800_v45 = vld [vmem:[#allocation3 + $0x18] sm:$0xf] }
 0x5a0   :  { %14019 = vmatmul.mubr.msk.bf16.vlgmr.msra.gmra.mrb[128].mxu0 %vm140_vm3, %v10800_v45 }
 0x5a1   :  { %14023 = vmatpush3.bf16.msra.mxu0 %v15373_v3  ;;  %14024 = vmatprep.mubr.msk.bf16.mxu0 %vm15415_vm2, %v15413_v1  ;;  %v10851_v63 = vld [vmem:[#allocation3 + $0x1c] sm:$0xf] }
 0x5a2   :  { %14028 = vmatprep.subr.bf16.mxu0 %v15413_v1 }
 0x5ac   :  { %14025 = vmatmul.mubr.msk.bf16.vlgmr.msra.gmra.mrb[128].mxu0 %vm140_vm3, %v10851_v63 }
 0x5ad   :  { %14029 = vmatpush3.bf16.msra.mxu0 %v15374_v57  ;;  %14030 = vmatprep.mubr.msk.bf16.mxu0 %vm15415_vm2, %v15413_v1 }
 0x5ae   :  { %14034 = vmatprep.subr.bf16.mxu0 %v15413_v1 }
 0x5b8   :  { %14031 = vmatmul.mubr.msk.bf16.vlgmr.msra.gmra.mrb[128].mxu0 %vm140_vm3, %v10902_v19 }
 0x5b9   :  { %14036 = vmatprep.mubr.msk.bf16.mxu0 %vm15415_vm2, %v15413_v1  ;;  %14035 = vmatpush3.bf16.msra.mxu0 %v15375_v24  ;;  %v11023_v1 = vld [vmem:[%s17640_s10] ss:$0 sm:$0xff] }
 0x68b   :  { %v10946_v37 = vpop.f32.mrb[128].mxu0 }
 0x68c   :  { %v14145_v7 = vadd.f32 %v12104_v33, %v10946_v37  ;;  %v14032_v48 = vpop.f32.mrb[129].mxu0 }
 0x68d   :  { %v10949_v54 = vpop.f32.mrb[130].mxu0 }
 0x68e   :  { %v10953_v59 = vmax.f32 %v14145_v7, 0.0  ;;  %v14033_v9 = vpop.f32.mrb[131].mxu0 }
 0x690   :  { %v10954_v15 = vpack.c.bf16 %v10953_v59, %v10953_v59 }
 0x692   :  { %14037 = vmatmul.mubr.msk.bf16.vlgmr.msra.gmra.mrb[0].mxu0 %vm140_vm3, %v10954_v15 }
 0x765   :  { %v11000_v14 = vpop.f32.mrb[0].mxu0 }
 0x766   :  { %v14040_v47 = vadd.f32 %v11023_v1, %v11000_v14  ;;  %v14038_v16 = vpop.f32.mrb[1].mxu0 }
 0x767   :  { %v11003_v18 = vpop.f32.mrb[2].mxu0 }
 0x768   :  { %v11007_v6 = vmax.f32 %v14040_v47, 0.0  ;;  %v14039_v44 = vpop.f32.mrb[3].mxu0 }
 0x76a   :  { %11008 = vst [vmem:[#allocation4] sm:$0xff] %v11007_v6 }
 0x76b   :  { %15400 = shalt.err (!%p15397_p4)
}
 0x76c   :  { %s15401_s10 = scalar_lea.hbm %s17641_s11, 128 }
 0x76d   :  { %p15402_p5 = scmp.ne.s32.totalorder %s17641_s11, %s15401_s10  ;;  %p15405_p6 = scmp.lt.u32.totalorder %s15401_s10, %s17641_s11 }
 0x76f   :  { %p15407_p7 = pnand %p15405_p6, %p15402_p5 }
 0x771   :  { %15410 = shalt.err (!%p15407_p7)
}
 0x772   :  { %11018 = dma.vmem_to_hbm [thread:$0]  %s11016_s30, 128, %s17641_s11, [#allocation5]  }
 0x773   :  { %15411 = dma.done.wait [#allocation5], 128  }
 0x774   :  { %15412 = vsyncadd [#allocation5], 4294967168 }
 0x775   :  { %11022 = vsyncpa [#allocation5], 1 }

</bundles_post_ra>
